<compile_context>
chip_gen: v7x
topology: tpu7x:2x2x1
jax: 0.10.0
libtpu: 0.0.40
codegen_flags: <defaults>
</compile_context>

<pallas_src>
import functools
import math

import jax
import jax.numpy as jnp
from jax import lax
from jax.experimental import pallas as pl
from jax.experimental.pallas import tpu as pltpu

F32 = jnp.float32
BF16 = jnp.bfloat16


# ----------------------------------------------------------------------------
# In-kernel helpers (operate on VMEM-resident values; never touch HBM)
# ----------------------------------------------------------------------------

def _ln(x, g, b, eps):
    """LayerNorm over the last dim.  x:(T,D) f32, g/b:(1,D) f32."""
    mu = jnp.mean(x, axis=-1, keepdims=True)
    xc = x - mu
    var = jnp.mean(xc * xc, axis=-1, keepdims=True)
    return xc * lax.rsqrt(var + eps) * g + b


def _gelu(x):
    """Exact erf GELU (torch nn.GELU default)."""
    return 0.5 * x * (1.0 + lax.erf(x * 0.7071067811865476))


def _softmax_rows(s):
    """Row softmax in f32; denominator via EUP reciprocal (free slot)."""
    s = s - jnp.max(s, axis=-1, keepdims=True)
    p = jnp.exp(s)
    return p * pl.reciprocal(jnp.sum(p, axis=-1, keepdims=True), approx=True)


def _mhsa(x, qkv_w, qkv_b, proj_w, proj_b, heads):
    """Multi-head self attention on one token block.

    x:      (T, D)  f32
    qkv_w:  (D, 3D) bf16   qkv_b:  (1, 3D) f32
    proj_w: (D, D)  bf16   proj_b: (1, D)  f32
    Returns (T, D) f32 (attention output incl. output projection + bias).
    """
    T, D = x.shape
    Dh = D // heads
    scale = 1.0 / math.sqrt(Dh)

    qkv = jnp.dot(x.astype(BF16), qkv_w, preferred_element_type=F32) + qkv_b  # (T,3D)

    outs = []
    for hd in range(heads):                      # static unroll; Dh lane-aligned
        lo = hd * Dh
        q = (qkv[:, lo:lo + Dh] * scale).astype(BF16)           # scale folded into q
        k = qkv[:, D + lo:D + lo + Dh].astype(BF16)
        v = qkv[:, 2 * D + lo:2 * D + lo + Dh].astype(BF16)
        s = lax.dot_general(q, k, (((1,), (1,)), ((), ())),
                            preferred_element_type=F32)         # (T, T) f32
        p = _softmax_rows(s)
        outs.append(jnp.dot(p.astype(BF16), v, preferred_element_type=F32))  # (T,Dh)
    o = jnp.concatenate(outs, axis=-1)                           # (T, D)
    # Single full-K output projection (MXU-friendly, K = D).
    return jnp.dot(o.astype(BF16), proj_w, preferred_element_type=F32) + proj_b


# ----------------------------------------------------------------------------
# Pallas kernels
# ----------------------------------------------------------------------------

def _patch_embed_kernel(x_ref, w_ref, b_ref, o_ref):
    o_ref[...] = jnp.dot(x_ref[...], w_ref[...],
                         preferred_element_type=F32) + b_ref[...]


def _trunk_kernel(x_ref,
                  ln1_g_ref, ln1_b_ref, qkv_w_ref, qkv_b_ref,
                  proj_w_ref, proj_b_ref, ln2_g_ref, ln2_b_ref,
                  fc1_w_ref, fc1_b_ref, fc2_w_ref, fc2_b_ref,
                  norm_g_ref, norm_b_ref,
                  o_ref, x_scr, *, heads, eps):
    """One pre-norm ViT block per grid step along the depth axis.

    Tokens are carried across layers in `x_scr` (VMEM); weights for layer
    `pl.program_id(1)` are streamed in (double-buffered) by their BlockSpecs.
    Final trunk LayerNorm fused on the last layer step.
    """
    l = pl.program_id(1)

    @pl.when(l == 0)
    def _():
        x_scr[...] = x_ref[0]                                    # load tokens once

    x = x_scr[...]                                               # (T, D) f32

    # --- MHSA sub-block ---
    h = _ln(x, ln1_g_ref[0], ln1_b_ref[0], eps)
    x = x + _mhsa(h, qkv_w_ref[0], qkv_b_ref[0],
                  proj_w_ref[0], proj_b_ref[0], heads)
    # --- MLP sub-block ---
    h = _ln(x, ln2_g_ref[0], ln2_b_ref[0], eps)
    f = jnp.dot(h.astype(BF16), fc1_w_ref[0],
                preferred_element_type=F32) + fc1_b_ref[0]
    f = _gelu(f)
    f = jnp.dot(f.astype(BF16), fc2_w_ref[0],
                preferred_element_type=F32) + fc2_b_ref[0]
    x = x + f

    x_scr[...] = x

    @pl.when(l == pl.num_programs(1) - 1)
    def _():
        # Final trunk LayerNorm fused here (per-token; caller drops CLS later).
        o_ref[0] = _ln(x, norm_g_ref[...], norm_b_ref[...], eps)


def _agg_kernel(x_ref, q_w_ref, q_b_ref, kv_w_ref, kv_b_ref,
                proj_w_ref, proj_b_ref, ln1_g_ref, ln1_b_ref,
                fc1_w_ref, fc1_b_ref, fc2_w_ref, fc2_b_ref,
                ln2_g_ref, ln2_b_ref, o_ref, *, heads, eps):
    """torch.nn.TransformerEncoderLayer (norm_first=False, relu), CLS path only.

    Only the CLS row is written out, so q / residual / LN / MLP are computed for
    row 0 only; K and V use all tokens (identical result, ~hw x less work).
    """
    x = x_ref[0]                                                 # (Ts, D) f32
    Ts, D = x.shape
    Dh = D // heads
    scale = 1.0 / math.sqrt(Dh)

    cls = x[0:1, :]                                              # (1, D) f32
    q = jnp.dot(cls.astype(BF16), q_w_ref[...],
                preferred_element_type=F32) + q_b_ref[...]       # (1, D)
    kv = jnp.dot(x.astype(BF16), kv_w_ref[...],
                 preferred_element_type=F32) + kv_b_ref[...]     # (Ts, 2D)

    outs = []
    for hd in range(heads):
        lo = hd * Dh
        qh = (q[:, lo:lo + Dh] * scale).astype(BF16)             # (1, Dh)
        kh = kv[:, lo:lo + Dh].astype(BF16)                      # (Ts, Dh)
        vh = kv[:, D + lo:D + lo + Dh].astype(BF16)              # (Ts, Dh)
        s = lax.dot_general(qh, kh, (((1,), (1,)), ((), ())),
                            preferred_element_type=F32)          # (1, Ts)
        p = _softmax_rows(s)
        outs.append(jnp.dot(p.astype(BF16), vh, preferred_element_type=F32))
    a = jnp.concatenate(outs, axis=-1)                           # (1, D)
    a = jnp.dot(a.astype(BF16), proj_w_ref[...],
                preferred_element_type=F32) + proj_b_ref[...]

    y = _ln(cls + a, ln1_g_ref[...], ln1_b_ref[...], eps)        # (1, D)
    f = jnp.dot(y.astype(BF16), fc1_w_ref[...],
                preferred_element_type=F32) + fc1_b_ref[...]     # (1, FF)
    f = jnp.maximum(f, 0.0)                                      # relu
    f = jnp.dot(f.astype(BF16), fc2_w_ref[...],
                preferred_element_type=F32) + fc2_b_ref[...]
    y = _ln(y + f, ln2_g_ref[...], ln2_b_ref[...], eps)
    o_ref[0] = y                                                 # CLS row only


# ----------------------------------------------------------------------------
# BlockSpec helpers & VMEM budgeting
# ----------------------------------------------------------------------------

def _const_spec(shape):
    """Full-array block, constant index regardless of grid rank."""
    nd = len(shape)
    return pl.BlockSpec(shape, lambda *g, _nd=nd: (0,) * _nd)


def _layer_spec(shape):
    """Per-layer streamed block for trunk weights: leading dim indexed by depth."""
    nd = len(shape)
    return pl.BlockSpec(shape, lambda i, l, _nd=nd: (l,) + (0,) * (_nd - 1))


def _trunk_vmem_limit(T, D, MLP, heads):
    w_layer = 2 * (D * 3 * D + D * D + D * MLP + MLP * D)        # bf16 weights / layer
    b_layer = 4 * (3 * D + MLP + 6 * D)                          # f32 biases + LN / layer
    io = 4 * T * D * 2                                           # token block in + out
    scr = 4 * T * D
    acts = 4 * (3 * T * D + heads * T * T + T * MLP + 8 * T * D)  # in-flight f32
    est = 2 * (w_layer + b_layer + io) + scr + acts + (4 << 20)  # x2 = double-buffer
    return int(min(max(est, 16 << 20), 60 << 20))


def _agg_vmem_limit(Ts, D, FF, heads):
    w = 2 * (D * D + D * 2 * D + D * D + D * FF + FF * D)        # bf16 weights
    b = 4 * (3 * D + 2 * D + FF + 5 * D)
    io = 4 * (Ts * D + D)
    acts = 4 * (3 * Ts * D + heads * Ts + FF + 8 * D)
    est = 2 * (w + b + io) + acts + (4 << 20)
    return int(min(max(est, 16 << 20), 60 << 20))


def _patch_vmem_limit(tm, K, N):
    est = 2 * (2 * tm * K + 2 * K * N + 4 * N + 4 * tm * N) + (2 << 20)
    return int(min(max(est, 16 << 20), 60 << 20))


# ----------------------------------------------------------------------------
# pallas_call wrappers
# ----------------------------------------------------------------------------

def patch_embed(x, w, b):
    """x: (M, K) patch rows, cast to bf16 here (halves DMA of a mem-bound matmul)."""
    x = x.astype(BF16)
    M, K = x.shape
    _, N = w.shape
    tm = 256 if (M % 256 == 0) else (64 if (M % 64 == 0) else M)
    return pl.pallas_call(
        _patch_embed_kernel,
        out_shape=jax.ShapeDtypeStruct((M, N), F32),
        grid=(M // tm,),
        in_specs=[pl.BlockSpec((tm, K), lambda i: (i, 0)),
                  pl.BlockSpec((K, N), lambda i: (0, 0)),
                  pl.BlockSpec((1, N), lambda i: (0, 0))],
        out_specs=pl.BlockSpec((tm, N), lambda i: (i, 0)),
        compiler_params=pltpu.CompilerParams(
            dimension_semantics=("parallel",),
            vmem_limit_bytes=_patch_vmem_limit(tm, K, N)),
    )(x, w, b)


def trunk_forward(x, params, cfg):
    """x: (BS, T, D) tokens (CLS + patches + pos).

    Grid (BS, depth): one ViT block per depth step, weights streamed per layer,
    tokens carried in VMEM scratch.  Output written once per segment.
    """
    BS, T, D = x.shape
    L, MLP, heads = cfg["DEPTH"], cfg["MLP"], cfg["HEADS"]
    tp = params["trunk"]
    kern = functools.partial(_trunk_kernel, heads=heads, eps=1e-5)
    return pl.pallas_call(
        kern,
        out_shape=jax.ShapeDtypeStruct((BS, T, D), F32),
        grid=(BS, L),
        in_specs=[
            pl.BlockSpec((1, T, D), lambda i, l: (i, 0, 0)),          # tokens
            _layer_spec((1, 1, D)), _layer_spec((1, 1, D)),           # ln1 g/b
            _layer_spec((1, D, 3 * D)), _layer_spec((1, 1, 3 * D)),   # qkv w/b
            _layer_spec((1, D, D)), _layer_spec((1, 1, D)),           # proj w/b
            _layer_spec((1, 1, D)), _layer_spec((1, 1, D)),           # ln2 g/b
            _layer_spec((1, D, MLP)), _layer_spec((1, 1, MLP)),       # fc1 w/b
            _layer_spec((1, MLP, D)), _layer_spec((1, 1, D)),         # fc2 w/b
            _const_spec((1, D)), _const_spec((1, D)),                 # final norm g/b
        ],
        out_specs=pl.BlockSpec((1, T, D), lambda i, l: (i, 0, 0)),
        scratch_shapes=[pltpu.VMEM((T, D), F32)],
        compiler_params=pltpu.CompilerParams(
            dimension_semantics=("parallel", "arbitrary"),
            vmem_limit_bytes=_trunk_vmem_limit(T, D, MLP, heads)),
    )(x, tp["ln1_g"], tp["ln1_b"], tp["qkv_w"], tp["qkv_b"],
      tp["proj_w"], tp["proj_b"], tp["ln2_g"], tp["ln2_b"],
      tp["fc1_w"], tp["fc1_b"], tp["fc2_w"], tp["fc2_b"],
      params["norm_g"], params["norm_b"])


def agg_forward(xs, agg, cfg):
    """xs: (BS*t, 1+hw, D) assembled spatial tokens.  Returns (BS*t, 1, D) CLS feats."""
    N, Ts, D = xs.shape
    heads, FF = cfg["AGG_HEADS"], cfg["AGG_FF"]
    kern = functools.partial(_agg_kernel, heads=heads, eps=1e-5)
    return pl.pallas_call(
        kern,
        out_shape=jax.ShapeDtypeStruct((N, 1, D), F32),
        grid=(N,),
        in_specs=[
            pl.BlockSpec((1, Ts, D), lambda i: (i, 0, 0)),
            _const_spec((D, D)), _const_spec((1, D)),            # q  w/b
            _const_spec((D, 2 * D)), _const_spec((1, 2 * D)),    # kv w/b
            _const_spec((D, D)), _const_spec((1, D)),            # out proj w/b
            _const_spec((1, D)), _const_spec((1, D)),            # ln1 g/b
            _const_spec((D, FF)), _const_spec((1, FF)),          # fc1 w/b
            _const_spec((FF, D)), _const_spec((1, D)),           # fc2 w/b
            _const_spec((1, D)), _const_spec((1, D)),            # ln2 g/b
        ],
        out_specs=pl.BlockSpec((1, 1, D), lambda i: (i, 0, 0)),
        compiler_params=pltpu.CompilerParams(
            dimension_semantics=("parallel",),
            vmem_limit_bytes=_agg_vmem_limit(Ts, D, FF, heads)),
    )(xs, agg["q_w"], agg["q_b"], agg["kv_w"], agg["kv_b"],
      agg["proj_w"], agg["proj_b"], agg["ln1_g"], agg["ln1_b"],
      agg["fc1_w"], agg["fc1_b"], agg["fc2_w"], agg["fc2_b"],
      agg["ln2_g"], agg["ln2_b"])


# ----------------------------------------------------------------------------
# Synchformer = MotionFormer(extract_features=True, factorize_space_time=True,
#               agg_space='TransformerEncoderLayer', agg_time=Identity,
#               add_global_repr=False)  --  small synthetic configuration.
# D / MLP / FF multiples of 128 (lane-dense); Dh = D/heads = 128 so per-head
# qkv slices are lane-aligned.
# ----------------------------------------------------------------------------

CFG = dict(
    B=2, S=2, Tv=4, C=3, H=64, W=64,     # video: (B, S, Tv, C, H, W)
    PT=2, PH=16, PW=16,                  # Conv3d patch-embed kernel == stride
    D=256, HEADS=2, DEPTH=2, MLP=512,    # trunk
    AGG_HEADS=2, AGG_FF=512,             # spatial aggregation encoder layer
)


def init_params(key, cfg):
    D, L, MLP = cfg["D"], cfg["DEPTH"], cfg["MLP"]
    FF = cfg["AGG_FF"]
    patch_dim = cfg["C"] * cfg["PT"] * cfg["PH"] * cfg["PW"]
    t = cfg["Tv"] // cfg["PT"]
    hh = cfg["H"] // cfg["PH"]
    ww = cfg["W"] // cfg["PW"]
    n_tok = 1 + t * hh * ww
    n_sp = 1 + hh * ww

    keys = iter(jax.random.split(key, 32))

    def nrm(shape, dtype=F32, std=0.02):
        return (std * jax.random.normal(next(keys), shape)).astype(dtype)

    params = {
        # Conv3d(C, D, kernel=stride) flattened as (C*PT*PH*PW, D), bf16 for MXU.
        "patch_w": nrm((patch_dim, D), BF16),
        "patch_b": jnp.zeros((1, D), F32),
        "cls": nrm((1, 1, D)),
        "pos": nrm((1, n_tok, D)),
        "norm_g": jnp.ones((1, D), F32),
        "norm_b": jnp.zeros((1, D), F32),
        "trunk": {  # per-layer params stacked on a leading depth axis (streamed)
            "ln1_g": jnp.ones((L, 1, D), F32), "ln1_b": jnp.zeros((L, 1, D), F32),
            "qkv_w": nrm((L, D, 3 * D), BF16), "qkv_b": jnp.zeros((L, 1, 3 * D), F32),
            "proj_w": nrm((L, D, D), BF16), "proj_b": jnp.zeros((L, 1, D), F32),
            "ln2_g": jnp.ones((L, 1, D), F32), "ln2_b": jnp.zeros((L, 1, D), F32),
            "fc1_w": nrm((L, D, MLP), BF16), "fc1_b": jnp.zeros((L, 1, MLP), F32),
            "fc2_w": nrm((L, MLP, D), BF16), "fc2_b": jnp.zeros((L, 1, D), F32),
        },
        "agg": {
            "cls": nrm((1, 1, D)),
            "pos": nrm((1, n_sp, D)),
            # in_proj split into q and kv halves (kernel computes q for CLS only)
            "q_w": nrm((D, D), BF16), "q_b": jnp.zeros((1, D), F32),
            "kv_w": nrm((D, 2 * D), BF16), "kv_b": jnp.zeros((1, 2 * D), F32),
            "proj_w": nrm((D, D), BF16), "proj_b": jnp.zeros((1, D), F32),
            "ln1_g": jnp.ones((1, D), F32), "ln1_b": jnp.zeros((1, D), F32),
            "fc1_w": nrm((D, FF), BF16), "fc1_b": jnp.zeros((1, FF), F32),
            "fc2_w": nrm((FF, D), BF16), "fc2_b": jnp.zeros((1, D), F32),
            "ln2_g": jnp.ones((1, D), F32), "ln2_b": jnp.zeros((1, D), F32),
        },
    }
    return params


def synchformer_forward(params, vis, cfg):
    """vis: (B, S, Tv, C, H, W)  ->  (B, S, t, D)   (t = Tv // patch_t)."""
    B, S, Tv, C, H, W = vis.shape
    PT, PH, PW = cfg["PT"], cfg["PH"], cfg["PW"]
    D = cfg["D"]
    t, hh, ww = Tv // PT, H // PH, W // PW
    hw = hh * ww
    BS = B * S

    # Synchformer.forward: permute (B,S,Tv,C,H,W) -> (B,S,C,Tv,H,W), flatten segs.
    x = jnp.transpose(vis, (0, 1, 3, 2, 4, 5)).reshape(BS, C, Tv, H, W)

    # Conv3d patch embed (kernel == stride) => non-overlapping patch gather + matmul.
    x = x.reshape(BS, C, t, PT, hh, PH, ww, PW)
    x = jnp.transpose(x, (0, 2, 4, 6, 1, 3, 5, 7))            # (BS,t,h,w,C,PT,PH,PW)
    x = x.reshape(BS * t * hw, C * PT * PH * PW)
    x = patch_embed(x, params["patch_w"], params["patch_b"])  # Pallas MXU matmul
    x = x.reshape(BS, t * hw, D)

    # CLS token + positional embedding (tiny XLA glue).
    cls = jnp.broadcast_to(params["cls"], (BS, 1, D))
    x = jnp.concatenate([cls, x], axis=1) + params["pos"]     # (BS, 1+t*h*w, D)

    # Fused ViT trunk (per-layer streamed weights) + final trunk LayerNorm.
    x = trunk_forward(x, params, cfg)

    # extract_features: drop CLS; pre_logits = Identity.
    # factorize_space_time: per (segment, t) spatial tokens + agg CLS + agg pos,
    # then spatial aggregation (post-norm encoder layer); temporal agg = Identity.
    x = x[:, 1:, :].reshape(BS * t, hw, D)
    agg = params["agg"]
    acls = jnp.broadcast_to(agg["cls"], (BS * t, 1, D))
    xs = jnp.concatenate([acls, x], axis=1) + agg["pos"]      # (BS*t, 1+h*w, D)
    out = agg_forward(xs, agg, cfg)                           # (BS*t, 1, D) CLS feats
    return out.reshape(B, S, t, D)


if __name__ == "__main__":
    cfg = CFG
    key = jax.random.PRNGKey(0)
    pkey, xkey = jax.random.split(key)
    params = init_params(pkey, cfg)
    vis = jax.random.normal(
        xkey, (cfg["B"], cfg["S"], cfg["Tv"], cfg["C"], cfg["H"], cfg["W"]),
        dtype=jnp.float32)

    fwd = jax.jit(lambda p, v: synchformer_forward(p, v, cfg))
    out = fwd(params, vis)
    out = jax.block_until_ready(out)

    expected = (cfg["B"], cfg["S"], cfg["Tv"] // cfg["PT"], cfg["D"])
    assert out.shape == expected, (out.shape, expected)
    assert bool(jnp.all(jnp.isfinite(out)))
    print("KERNEL_OK")
</pallas_src>

<mosaic_0001>
module attributes {stable_mosaic.version = 11 : i64} {
  func.func @_patch_embed_kernel(%arg0: i32, %arg1: memref<64x1536xbf16, #tpu.memory_space<vmem>>, %arg2: memref<1536x256xbf16, #tpu.memory_space<vmem>>, %arg3: memref<1x256xf32, #tpu.memory_space<vmem>>, %arg4: memref<64x256xf32, #tpu.memory_space<vmem>>) attributes {dimension_semantics = [#tpu.dimension_semantics<parallel>], iteration_bounds = array<i64: 2>, scalar_prefetch = 0 : i64, scratch_operands = 0 : i64, tpu.core_type = #tpu.core_type<tc>, window_params = [{transform_indices = @transform_0, window_bounds = array<i64: 64, 1536>}, {pipeline_mode = #tpu.pipeline_mode<synchronous>, transform_indices = @transform_1, window_bounds = array<i64: 1536, 256>}, {pipeline_mode = #tpu.pipeline_mode<synchronous>, transform_indices = @transform_2, window_bounds = array<i64: 1, 256>}, {transform_indices = @transform_3, window_bounds = array<i64: 64, 256>}]} {
    %c0 = arith.constant 0 : index
    %c0_0 = arith.constant 0 : index
    %0 = vector.load %arg1[%c0, %c0_0] : memref<64x1536xbf16, #tpu.memory_space<vmem>>, vector<64x1536xbf16>
    %c0_1 = arith.constant 0 : index
    %c0_2 = arith.constant 0 : index
    %1 = vector.load %arg2[%c0_1, %c0_2] : memref<1536x256xbf16, #tpu.memory_space<vmem>>, vector<1536x256xbf16>
    %cst = arith.constant dense<0.000000e+00> : vector<64x256xf32>
    %2 = tpu.matmul %0, %1, %cst {dimension_numbers = #tpu.dot_dimension_numbers<[1], [0], [0], [1], [0, 0, 1, 1], [], []>} : vector<64x1536xbf16>, vector<1536x256xbf16>, vector<64x256xf32> -> vector<64x256xf32>
    %c0_3 = arith.constant 0 : index
    %c0_4 = arith.constant 0 : index
    %3 = vector.load %arg3[%c0_3, %c0_4] : memref<1x256xf32, #tpu.memory_space<vmem>>, vector<1x256xf32>
    %4 = vector.broadcast %3 : vector<1x256xf32> to vector<64x256xf32>
    %5 = arith.addf %2, %4 : vector<64x256xf32>
    %c0_5 = arith.constant 0 : index
    %c0_6 = arith.constant 0 : index
    %6 = vector.load %arg4[%c0_5, %c0_6] : memref<64x256xf32, #tpu.memory_space<vmem>>, vector<64x256xf32>
    tpu.vector_store %arg4[%c0_5, %c0_6], %5 {strides = array<i32>} : memref<64x256xf32, #tpu.memory_space<vmem>>, vector<64x256xf32>,
    return
  }
  func.func @transform_0(%arg0: i32) -> (i32, i32) {
    %c0_i32 = arith.constant 0 : i32
    %c0_i32_0 = arith.constant 0 : i32
    return %arg0, %c0_i32 : i32, i32
  }
  func.func @transform_1(%arg0: i32) -> (i32, i32) {
    %c0_i32 = arith.constant 0 : i32
    %c0_i32_0 = arith.constant 0 : i32
    %c0_i32_1 = arith.constant 0 : i32
    return %c0_i32, %c0_i32_0 : i32, i32
  }
  func.func @transform_2(%arg0: i32) -> (i32, i32) {
    %c0_i32 = arith.constant 0 : i32
    %c0_i32_0 = arith.constant 0 : i32
    %c0_i32_1 = arith.constant 0 : i32
    return %c0_i32, %c0_i32_0 : i32, i32
  }
  func.func @transform_3(%arg0: i32) -> (i32, i32) {
    %c0_i32 = arith.constant 0 : i32
    %c0_i32_0 = arith.constant 0 : i32
    return %arg0, %c0_i32 : i32, i32
  }
}

module attributes {stable_mosaic.version = 11 : i64} {
  func.func @_trunk_kernel(%arg0: i32, %arg1: i32, %arg2: memref<1x33x256xf32, #tpu.memory_space<vmem>>, %arg3: memref<1x1x256xf32, #tpu.memory_space<vmem>>, %arg4: memref<1x1x256xf32, #tpu.memory_space<vmem>>, %arg5: memref<1x256x768xbf16, #tpu.memory_space<vmem>>, %arg6: memref<1x1x768xf32, #tpu.memory_space<vmem>>, %arg7: memref<1x256x256xbf16, #tpu.memory_space<vmem>>, %arg8: memref<1x1x256xf32, #tpu.memory_space<vmem>>, %arg9: memref<1x1x256xf32, #tpu.memory_space<vmem>>, %arg10: memref<1x1x256xf32, #tpu.memory_space<vmem>>, %arg11: memref<1x256x512xbf16, #tpu.memory_space<vmem>>, %arg12: memref<1x1x512xf32, #tpu.memory_space<vmem>>, %arg13: memref<1x512x256xbf16, #tpu.memory_space<vmem>>, %arg14: memref<1x1x256xf32, #tpu.memory_space<vmem>>, %arg15: memref<1x256xf32, #tpu.memory_space<vmem>>, %arg16: memref<1x256xf32, #tpu.memory_space<vmem>>, %arg17: memref<1x33x256xf32, #tpu.memory_space<vmem>>, %arg18: memref<33x256xf32, #tpu.memory_space<vmem>>) attributes {dimension_semantics = [#tpu.dimension_semantics<parallel>, #tpu.dimension_semantics<arbitrary>], iteration_bounds = array<i64: 4, 2>, scalar_prefetch = 0 : i64, scratch_operands = 1 : i64, tpu.core_type = #tpu.core_type<tc>, window_params = [{transform_indices = @transform_0, window_bounds = array<i64: 1, 33, 256>}, {transform_indices = @transform_1, window_bounds = array<i64: 1, 1, 256>}, {transform_indices = @transform_2, window_bounds = array<i64: 1, 1, 256>}, {transform_indices = @transform_3, window_bounds = array<i64: 1, 256, 768>}, {transform_indices = @transform_4, window_bounds = array<i64: 1, 1, 768>}, {transform_indices = @transform_5, window_bounds = array<i64: 1, 256, 256>}, {transform_indices = @transform_6, window_bounds = array<i64: 1, 1, 256>}, {transform_indices = @transform_7, window_bounds = array<i64: 1, 1, 256>}, {transform_indices = @transform_8, window_bounds = array<i64: 1, 1, 256>}, {transform_indices = @transform_9, window_bounds = array<i64: 1, 256, 512>}, {transform_indices = @transform_10, window_bounds = array<i64: 1, 1, 512>}, {transform_indices = @transform_11, window_bounds = array<i64: 1, 512, 256>}, {transform_indices = @transform_12, window_bounds = array<i64: 1, 1, 256>}, {pipeline_mode = #tpu.pipeline_mode<synchronous>, transform_indices = @transform_13, window_bounds = array<i64: 1, 256>}, {pipeline_mode = #tpu.pipeline_mode<synchronous>, transform_indices = @transform_14, window_bounds = array<i64: 1, 256>}, {transform_indices = @transform_15, window_bounds = array<i64: 1, 33, 256>}]} {
    %c0_i32 = arith.constant 0 : i32
    %0 = arith.cmpi eq, %arg1, %c0_i32 : i32
    %1 = arith.extui %0 : i1 to i32
    %c0_i32_0 = arith.constant 0 : i32
    %2 = arith.cmpi ne, %1, %c0_i32_0 : i32
    scf.if %2 {
      %c0_67 = arith.constant 0 : index
      %c0_68 = arith.constant 0 : index
      %c0_69 = arith.constant 0 : index
      %141 = vector.load %arg2[%c0_67, %c0_68, %c0_69] : memref<1x33x256xf32, #tpu.memory_space<vmem>>, vector<1x33x256xf32>
      %142 = vector.shape_cast %141 : vector<1x33x256xf32> to vector<33x256xf32>
      %c0_70 = arith.constant 0 : index
      %c0_71 = arith.constant 0 : index
      %143 = vector.load %arg18[%c0_70, %c0_71] : memref<33x256xf32, #tpu.memory_space<vmem>>, vector<33x256xf32>
      tpu.vector_store %arg18[%c0_70, %c0_71], %142 {strides = array<i32>} : memref<33x256xf32, #tpu.memory_space<vmem>>, vector<33x256xf32>,
    } else {
    }
    %c0 = arith.constant 0 : index
    %c0_1 = arith.constant 0 : index
    %3 = vector.load %arg18[%c0, %c0_1] : memref<33x256xf32, #tpu.memory_space<vmem>>, vector<33x256xf32>
    %c0_2 = arith.constant 0 : index
    %c0_3 = arith.constant 0 : index
    %c0_4 = arith.constant 0 : index
    %4 = vector.load %arg3[%c0_2, %c0_3, %c0_4] : memref<1x1x256xf32, #tpu.memory_space<vmem>>, vector<1x1x256xf32>
    %5 = vector.shape_cast %4 : vector<1x1x256xf32> to vector<1x256xf32>
    %c0_5 = arith.constant 0 : index
    %c0_6 = arith.constant 0 : index
    %c0_7 = arith.constant 0 : index
    %6 = vector.load %arg4[%c0_5, %c0_6, %c0_7] : memref<1x1x256xf32, #tpu.memory_space<vmem>>, vector<1x1x256xf32>
    %7 = vector.shape_cast %6 : vector<1x1x256xf32> to vector<1x256xf32>
    %cst = arith.constant dense<0.000000e+00> : vector<33xf32>
    %8 = vector.multi_reduction <add>, %3, %cst [1] : vector<33x256xf32> to vector<33xf32>
    %9 = vector.shape_cast %8 : vector<33xf32> to vector<33x1xf32>
    %cst_8 = arith.constant 2.560000e+02 : f32
    %10 = vector.broadcast %cst_8 : f32 to vector<33x1xf32>
    %11 = arith.divf %9, %10 : vector<33x1xf32>
    %12 = vector.broadcast %11 : vector<33x1xf32> to vector<33x256xf32>
    %13 = arith.subf %3, %12 : vector<33x256xf32>
    %14 = arith.mulf %13, %13 : vector<33x256xf32>
    %cst_9 = arith.constant dense<0.000000e+00> : vector<33xf32>
    %15 = vector.multi_reduction <add>, %14, %cst_9 [1] : vector<33x256xf32> to vector<33xf32>
    %16 = vector.shape_cast %15 : vector<33xf32> to vector<33x1xf32>
    %cst_10 = arith.constant 2.560000e+02 : f32
    %17 = vector.broadcast %cst_10 : f32 to vector<33x1xf32>
    %18 = arith.divf %16, %17 : vector<33x1xf32>
    %cst_11 = arith.constant 9.99999974E-6 : f32
    %19 = vector.broadcast %cst_11 : f32 to vector<33x1xf32>
    %20 = arith.addf %18, %19 : vector<33x1xf32>
    %21 = math.rsqrt %20 : vector<33x1xf32>
    %22 = vector.broadcast %21 : vector<33x1xf32> to vector<33x256xf32>
    %23 = arith.mulf %13, %22 : vector<33x256xf32>
    %24 = vector.broadcast %5 : vector<1x256xf32> to vector<33x256xf32>
    %25 = arith.mulf %23, %24 : vector<33x256xf32>
    %26 = vector.broadcast %7 : vector<1x256xf32> to vector<33x256xf32>
    %27 = arith.addf %25, %26 : vector<33x256xf32>
    %c0_12 = arith.constant 0 : index
    %c0_13 = arith.constant 0 : index
    %c0_14 = arith.constant 0 : index
    %28 = vector.load %arg5[%c0_12, %c0_13, %c0_14] : memref<1x256x768xbf16, #tpu.memory_space<vmem>>, vector<1x256x768xbf16>
    %29 = vector.shape_cast %28 : vector<1x256x768xbf16> to vector<256x768xbf16>
    %c0_15 = arith.constant 0 : index
    %c0_16 = arith.constant 0 : index
    %c0_17 = arith.constant 0 : index
    %30 = vector.load %arg6[%c0_15, %c0_16, %c0_17] : memref<1x1x768xf32, #tpu.memory_space<vmem>>, vector<1x1x768xf32>
    %31 = vector.shape_cast %30 : vector<1x1x768xf32> to vector<1x768xf32>
    %c0_18 = arith.constant 0 : index
    %c0_19 = arith.constant 0 : index
    %c0_20 = arith.constant 0 : index
    %32 = vector.load %arg7[%c0_18, %c0_19, %c0_20] : memref<1x256x256xbf16, #tpu.memory_space<vmem>>, vector<1x256x256xbf16>
    %33 = vector.shape_cast %32 : vector<1x256x256xbf16> to vector<256x256xbf16>
    %c0_21 = arith.constant 0 : index
    %c0_22 = arith.constant 0 : index
    %c0_23 = arith.constant 0 : index
    %34 = vector.load %arg8[%c0_21, %c0_22, %c0_23] : memref<1x1x256xf32, #tpu.memory_space<vmem>>, vector<1x1x256xf32>
    %35 = vector.shape_cast %34 : vector<1x1x256xf32> to vector<1x256xf32>
    %36 = arith.truncf %27 : vector<33x256xf32> to vector<33x256xbf16>
    %cst_24 = arith.constant dense<0.000000e+00> : vector<33x768xf32>
    %37 = tpu.matmul %36, %29, %cst_24 {dimension_numbers = #tpu.dot_dimension_numbers<[1], [0], [0], [1], [0, 0, 1, 1], [], []>} : vector<33x256xbf16>, vector<256x768xbf16>, vector<33x768xf32> -> vector<33x768xf32>
    %38 = vector.broadcast %31 : vector<1x768xf32> to vector<33x768xf32>
    %39 = arith.addf %37, %38 : vector<33x768xf32>
    %40 = vector.extract_strided_slice %39 {offsets = [0, 0], sizes = [33, 128], strides = [1, 1]} : vector<33x768xf32> to vector<33x128xf32>
    %cst_25 = arith.constant 0.0883883461 : f32
    %41 = vector.broadcast %cst_25 : f32 to vector<33x128xf32>
    %42 = arith.mulf %40, %41 : vector<33x128xf32>
    %43 = arith.truncf %42 : vector<33x128xf32> to vector<33x128xbf16>
    %44 = vector.extract_strided_slice %39 {offsets = [0, 256], sizes = [33, 128], strides = [1, 1]} : vector<33x768xf32> to vector<33x128xf32>
    %45 = arith.truncf %44 : vector<33x128xf32> to vector<33x128xbf16>
    %46 = vector.extract_strided_slice %39 {offsets = [0, 512], sizes = [33, 128], strides = [1, 1]} : vector<33x768xf32> to vector<33x128xf32>
    %47 = arith.truncf %46 : vector<33x128xf32> to vector<33x128xbf16>
    %cst_26 = arith.constant dense<0.000000e+00> : vector<33x33xf32>
    %48 = tpu.matmul %43, %45, %cst_26 {dimension_numbers = #tpu.dot_dimension_numbers<[1], [1], [0], [0], [0, 0, 1, 0], [], []>} : vector<33x128xbf16>, vector<33x128xbf16>, vector<33x33xf32> -> vector<33x33xf32>
    %cst_27 = arith.constant dense<0xFF800000> : vector<33xf32>
    %49 = vector.multi_reduction <maximumf>, %48, %cst_27 [1] : vector<33x33xf32> to vector<33xf32>
    %50 = vector.shape_cast %49 : vector<33xf32> to vector<33x1xf32>
    %51 = vector.broadcast %50 : vector<33x1xf32> to vector<33x33xf32>
    %52 = arith.subf %48, %51 : vector<33x33xf32>
    %53 = math.exp %52 : vector<33x33xf32>
    %cst_28 = arith.constant dense<0.000000e+00> : vector<33xf32>
    %54 = vector.multi_reduction <add>, %53, %cst_28 [1] : vector<33x33xf32> to vector<33xf32>
    %55 = vector.shape_cast %54 : vector<33xf32> to vector<33x1xf32>
    %56 = tpu.reciprocal %55 {approx = true} : vector<33x1xf32> -> vector<33x1xf32>
    %57 = vector.broadcast %56 : vector<33x1xf32> to vector<33x33xf32>
    %58 = arith.mulf %53, %57 : vector<33x33xf32>
    %59 = arith.truncf %58 : vector<33x33xf32> to vector<33x33xbf16>
    %cst_29 = arith.constant dense<0.000000e+00> : vector<33x128xf32>
    %60 = tpu.matmul %59, %47, %cst_29 {dimension_numbers = #tpu.dot_dimension_numbers<[1], [0], [0], [1], [0, 0, 1, 1], [], []>} : vector<33x33xbf16>, vector<33x128xbf16>, vector<33x128xf32> -> vector<33x128xf32>
    %61 = vector.extract_strided_slice %39 {offsets = [0, 128], sizes = [33, 128], strides = [1, 1]} : vector<33x768xf32> to vector<33x128xf32>
    %cst_30 = arith.constant 0.0883883461 : f32
    %62 = vector.broadcast %cst_30 : f32 to vector<33x128xf32>
    %63 = arith.mulf %61, %62 : vector<33x128xf32>
    %64 = arith.truncf %63 : vector<33x128xf32> to vector<33x128xbf16>
    %65 = vector.extract_strided_slice %39 {offsets = [0, 384], sizes = [33, 128], strides = [1, 1]} : vector<33x768xf32> to vector<33x128xf32>
    %66 = arith.truncf %65 : vector<33x128xf32> to vector<33x128xbf16>
    %67 = vector.extract_strided_slice %39 {offsets = [0, 640], sizes = [33, 128], strides = [1, 1]} : vector<33x768xf32> to vector<33x128xf32>
    %68 = arith.truncf %67 : vector<33x128xf32> to vector<33x128xbf16>
    %cst_31 = arith.constant dense<0.000000e+00> : vector<33x33xf32>
    %69 = tpu.matmul %64, %66, %cst_31 {dimension_numbers = #tpu.dot_dimension_numbers<[1], [1], [0], [0], [0, 0, 1, 0], [], []>} : vector<33x128xbf16>, vector<33x128xbf16>, vector<33x33xf32> -> vector<33x33xf32>
    %cst_32 = arith.constant dense<0xFF800000> : vector<33xf32>
    %70 = vector.multi_reduction <maximumf>, %69, %cst_32 [1] : vector<33x33xf32> to vector<33xf32>
    %71 = vector.shape_cast %70 : vector<33xf32> to vector<33x1xf32>
    %72 = vector.broadcast %71 : vector<33x1xf32> to vector<33x33xf32>
    %73 = arith.subf %69, %72 : vector<33x33xf32>
    %74 = math.exp %73 : vector<33x33xf32>
    %cst_33 = arith.constant dense<0.000000e+00> : vector<33xf32>
    %75 = vector.multi_reduction <add>, %74, %cst_33 [1] : vector<33x33xf32> to vector<33xf32>
    %76 = vector.shape_cast %75 : vector<33xf32> to vector<33x1xf32>
    %77 = tpu.reciprocal %76 {approx = true} : vector<33x1xf32> -> vector<33x1xf32>
    %78 = vector.broadcast %77 : vector<33x1xf32> to vector<33x33xf32>
    %79 = arith.mulf %74, %78 : vector<33x33xf32>
    %80 = arith.truncf %79 : vector<33x33xf32> to vector<33x33xbf16>
    %cst_34 = arith.constant dense<0.000000e+00> : vector<33x128xf32>
    %81 = tpu.matmul %80, %68, %cst_34 {dimension_numbers = #tpu.dot_dimension_numbers<[1], [0], [0], [1], [0, 0, 1, 1], [], []>} : vector<33x33xbf16>, vector<33x128xbf16>, vector<33x128xf32> -> vector<33x128xf32>
    %82 = tpu.concatenate %60, %81 in 1 : vector<33x128xf32>, vector<33x128xf32> -> vector<33x256xf32>
    %83 = arith.truncf %82 : vector<33x256xf32> to vector<33x256xbf16>
    %cst_35 = arith.constant dense<0.000000e+00> : vector<33x256xf32>
    %84 = tpu.matmul %83, %33, %cst_35 {dimension_numbers = #tpu.dot_dimension_numbers<[1], [0], [0], [1], [0, 0, 1, 1], [], []>} : vector<33x256xbf16>, vector<256x256xbf16>, vector<33x256xf32> -> vector<33x256xf32>
    %85 = vector.broadcast %35 : vector<1x256xf32> to vector<33x256xf32>
    %86 = arith.addf %84, %85 : vector<33x256xf32>
    %87 = arith.addf %3, %86 : vector<33x256xf32>
    %c0_36 = arith.constant 0 : index
    %c0_37 = arith.constant 0 : index
    %c0_38 = arith.constant 0 : index
    %88 = vector.load %arg9[%c0_36, %c0_37, %c0_38] : memref<1x1x256xf32, #tpu.memory_space<vmem>>, vector<1x1x256xf32>
    %89 = vector.shape_cast %88 : vector<1x1x256xf32> to vector<1x256xf32>
    %c0_39 = arith.constant 0 : index
    %c0_40 = arith.constant 0 : index
    %c0_41 = arith.constant 0 : index
    %90 = vector.load %arg10[%c0_39, %c0_40, %c0_41] : memref<1x1x256xf32, #tpu.memory_space<vmem>>, vector<1x1x256xf32>
    %91 = vector.shape_cast %90 : vector<1x1x256xf32> to vector<1x256xf32>
    %cst_42 = arith.constant dense<0.000000e+00> : vector<33xf32>
    %92 = vector.multi_reduction <add>, %87, %cst_42 [1] : vector<33x256xf32> to vector<33xf32>
    %93 = vector.shape_cast %92 : vector<33xf32> to vector<33x1xf32>
    %cst_43 = arith.constant 2.560000e+02 : f32
    %94 = vector.broadcast %cst_43 : f32 to vector<33x1xf32>
    %95 = arith.divf %93, %94 : vector<33x1xf32>
    %96 = vector.broadcast %95 : vector<33x1xf32> to vector<33x256xf32>
    %97 = arith.subf %87, %96 : vector<33x256xf32>
    %98 = arith.mulf %97, %97 : vector<33x256xf32>
    %cst_44 = arith.constant dense<0.000000e+00> : vector<33xf32>
    %99 = vector.multi_reduction <add>, %98, %cst_44 [1] : vector<33x256xf32> to vector<33xf32>
    %100 = vector.shape_cast %99 : vector<33xf32> to vector<33x1xf32>
    %cst_45 = arith.constant 2.560000e+02 : f32
    %101 = vector.broadcast %cst_45 : f32 to vector<33x1xf32>
    %102 = arith.divf %100, %101 : vector<33x1xf32>
    %cst_46 = arith.constant 9.99999974E-6 : f32
    %103 = vector.broadcast %cst_46 : f32 to vector<33x1xf32>
    %104 = arith.addf %102, %103 : vector<33x1xf32>
    %105 = math.rsqrt %104 : vector<33x1xf32>
    %106 = vector.broadcast %105 : vector<33x1xf32> to vector<33x256xf32>
    %107 = arith.mulf %97, %106 : vector<33x256xf32>
    %108 = vector.broadcast %89 : vector<1x256xf32> to vector<33x256xf32>
    %109 = arith.mulf %107, %108 : vector<33x256xf32>
    %110 = vector.broadcast %91 : vector<1x256xf32> to vector<33x256xf32>
    %111 = arith.addf %109, %110 : vector<33x256xf32>
    %112 = arith.truncf %111 : vector<33x256xf32> to vector<33x256xbf16>
    %c0_47 = arith.constant 0 : index
    %c0_48 = arith.constant 0 : index
    %c0_49 = arith.constant 0 : index
    %113 = vector.load %arg11[%c0_47, %c0_48, %c0_49] : memref<1x256x512xbf16, #tpu.memory_space<vmem>>, vector<1x256x512xbf16>
    %114 = vector.shape_cast %113 : vector<1x256x512xbf16> to vector<256x512xbf16>
    %cst_50 = arith.constant dense<0.000000e+00> : vector<33x512xf32>
    %115 = tpu.matmul %112, %114, %cst_50 {dimension_numbers = #tpu.dot_dimension_numbers<[1], [0], [0], [1], [0, 0, 1, 1], [], []>} : vector<33x256xbf16>, vector<256x512xbf16>, vector<33x512xf32> -> vector<33x512xf32>
    %c0_51 = arith.constant 0 : index
    %c0_52 = arith.constant 0 : index
    %c0_53 = arith.constant 0 : index
    %116 = vector.load %arg12[%c0_51, %c0_52, %c0_53] : memref<1x1x512xf32, #tpu.memory_space<vmem>>, vector<1x1x512xf32>
    %117 = vector.shape_cast %116 : vector<1x1x512xf32> to vector<1x512xf32>
    %118 = vector.broadcast %117 : vector<1x512xf32> to vector<33x512xf32>
    %119 = arith.addf %115, %118 : vector<33x512xf32>
    %cst_54 = arith.constant 5.000000e-01 : f32
    %120 = vector.broadcast %cst_54 : f32 to vector<33x512xf32>
    %121 = arith.mulf %120, %119 : vector<33x512xf32>
    %cst_55 = arith.constant 0.707106769 : f32
    %122 = vector.broadcast %cst_55 : f32 to vector<33x512xf32>
    %123 = arith.mulf %119, %122 : vector<33x512xf32>
    %124 = math.erf %123 : vector<33x512xf32>
    %cst_56 = arith.constant 1.000000e+00 : f32
    %125 = vector.broadcast %cst_56 : f32 to vector<33x512xf32>
    %126 = arith.addf %125, %124 : vector<33x512xf32>
    %127 = arith.mulf %121, %126 : vector<33x512xf32>
    %128 = arith.truncf %127 : vector<33x512xf32> to vector<33x512xbf16>
    %c0_57 = arith.constant 0 : index
    %c0_58 = arith.constant 0 : index
    %c0_59 = arith.constant 0 : index
    %129 = vector.load %arg13[%c0_57, %c0_58, %c0_59] : memref<1x512x256xbf16, #tpu.memory_space<vmem>>, vector<1x512x256xbf16>
    %130 = vector.shape_cast %129 : vector<1x512x256xbf16> to vector<512x256xbf16>
    %cst_60 = arith.constant dense<0.000000e+00> : vector<33x256xf32>
    %131 = tpu.matmul %128, %130, %cst_60 {dimension_numbers = #tpu.dot_dimension_numbers<[1], [0], [0], [1], [0, 0, 1, 1], [], []>} : vector<33x512xbf16>, vector<512x256xbf16>, vector<33x256xf32> -> vector<33x256xf32>
    %c0_61 = arith.constant 0 : index
    %c0_62 = arith.constant 0 : index
    %c0_63 = arith.constant 0 : index
    %132 = vector.load %arg14[%c0_61, %c0_62, %c0_63] : memref<1x1x256xf32, #tpu.memory_space<vmem>>, vector<1x1x256xf32>
    %133 = vector.shape_cast %132 : vector<1x1x256xf32> to vector<1x256xf32>
    %134 = vector.broadcast %133 : vector<1x256xf32> to vector<33x256xf32>
    %135 = arith.addf %131, %134 : vector<33x256xf32>
    %136 = arith.addf %87, %135 : vector<33x256xf32>
    %c0_64 = arith.constant 0 : index
    %c0_65 = arith.constant 0 : index
    %137 = vector.load %arg18[%c0_64, %c0_65] : memref<33x256xf32, #tpu.memory_space<vmem>>, vector<33x256xf32>
    tpu.vector_store %arg18[%c0_64, %c0_65], %136 {strides = array<i32>} : memref<33x256xf32, #tpu.memory_space<vmem>>, vector<33x256xf32>,
    %c1_i32 = arith.constant 1 : i32
    %138 = arith.cmpi eq, %arg1, %c1_i32 : i32
    %139 = arith.extui %138 : i1 to i32
    %c0_i32_66 = arith.constant 0 : i32
    %140 = arith.cmpi ne, %139, %c0_i32_66 : i32
    scf.if %140 {
      %c0_67 = arith.constant 0 : index
      %c0_68 = arith.constant 0 : index
      %141 = vector.load %arg15[%c0_67, %c0_68] : memref<1x256xf32, #tpu.memory_space<vmem>>, vector<1x256xf32>
      %c0_69 = arith.constant 0 : index
      %c0_70 = arith.constant 0 : index
      %142 = vector.load %arg16[%c0_69, %c0_70] : memref<1x256xf32, #tpu.memory_space<vmem>>, vector<1x256xf32>
      %cst_71 = arith.constant dense<0.000000e+00> : vector<33xf32>
      %143 = vector.multi_reduction <add>, %136, %cst_71 [1] : vector<33x256xf32> to vector<33xf32>
      %144 = vector.shape_cast %143 : vector<33xf32> to vector<33x1xf32>
      %cst_72 = arith.constant 2.560000e+02 : f32
      %145 = vector.broadcast %cst_72 : f32 to vector<33x1xf32>
      %146 = arith.divf %144, %145 : vector<33x1xf32>
      %147 = vector.broadcast %146 : vector<33x1xf32> to vector<33x256xf32>
      %148 = arith.subf %136, %147 : vector<33x256xf32>
      %149 = arith.mulf %148, %148 : vector<33x256xf32>
      %cst_73 = arith.constant dense<0.000000e+00> : vector<33xf32>
      %150 = vector.multi_reduction <add>, %149, %cst_73 [1] : vector<33x256xf32> to vector<33xf32>
      %151 = vector.shape_cast %150 : vector<33xf32> to vector<33x1xf32>
      %cst_74 = arith.constant 2.560000e+02 : f32
      %152 = vector.broadcast %cst_74 : f32 to vector<33x1xf32>
      %153 = arith.divf %151, %152 : vector<33x1xf32>
      %cst_75 = arith.constant 9.99999974E-6 : f32
      %154 = vector.broadcast %cst_75 : f32 to vector<33x1xf32>
      %155 = arith.addf %153, %154 : vector<33x1xf32>
      %156 = math.rsqrt %155 : vector<33x1xf32>
      %157 = vector.broadcast %156 : vector<33x1xf32> to vector<33x256xf32>
      %158 = arith.mulf %148, %157 : vector<33x256xf32>
      %159 = vector.broadcast %141 : vector<1x256xf32> to vector<33x256xf32>
      %160 = arith.mulf %158, %159 : vector<33x256xf32>
      %161 = vector.broadcast %142 : vector<1x256xf32> to vector<33x256xf32>
      %162 = arith.addf %160, %161 : vector<33x256xf32>
      %c0_76 = arith.constant 0 : index
      %c0_77 = arith.constant 0 : index
      %c0_78 = arith.constant 0 : index
      %163 = vector.load %arg17[%c0_76, %c0_77, %c0_78] : memref<1x33x256xf32, #tpu.memory_space<vmem>>, vector<1x33x256xf32>
      %164 = vector.shape_cast %163 : vector<1x33x256xf32> to vector<33x256xf32>
      %165 = vector.shape_cast %162 : vector<33x256xf32> to vector<1x33x256xf32>
      tpu.vector_store %arg17[%c0_76, %c0_77, %c0_78], %165 {strides = array<i32>} : memref<1x33x256xf32, #tpu.memory_space<vmem>>, vector<1x33x256xf32>,
    } else {
    }
    return
  }
  func.func @transform_0(%arg0: i32, %arg1: i32) -> (i32, i32, i32) {
    %c0_i32 = arith.constant 0 : i32
    %c0_i32_0 = arith.constant 0 : i32
    %c0_i32_1 = arith.constant 0 : i32
    return %arg0, %c0_i32, %c0_i32_0 : i32, i32, i32
  }
  func.func @transform_1(%arg0: i32, %arg1: i32) -> (i32, i32, i32) {
    %c0_i32 = arith.constant 0 : i32
    %c0_i32_0 = arith.constant 0 : i32
    %c0_i32_1 = arith.constant 0 : i32
    return %arg1, %c0_i32, %c0_i32_0 : i32, i32, i32
  }
  func.func @transform_2(%arg0: i32, %arg1: i32) -> (i32, i32, i32) {
    %c0_i32 = arith.constant 0 : i32
    %c0_i32_0 = arith.constant 0 : i32
    %c0_i32_1 = arith.constant 0 : i32
    return %arg1, %c0_i32, %c0_i32_0 : i32, i32, i32
  }
  func.func @transform_3(%arg0: i32, %arg1: i32) -> (i32, i32, i32) {
    %c0_i32 = arith.constant 0 : i32
    %c0_i32_0 = arith.constant 0 : i32
    %c0_i32_1 = arith.constant 0 : i32
    return %arg1, %c0_i32, %c0_i32_0 : i32, i32, i32
  }
  func.func @transform_4(%arg0: i32, %arg1: i32) -> (i32, i32, i32) {
    %c0_i32 = arith.constant 0 : i32
    %c0_i32_0 = arith.constant 0 : i32
    %c0_i32_1 = arith.constant 0 : i32
    return %arg1, %c0_i32, %c0_i32_0 : i32, i32, i32
  }
  func.func @transform_5(%arg0: i32, %arg1: i32) -> (i32, i32, i32) {
    %c0_i32 = arith.constant 0 : i32
    %c0_i32_0 = arith.constant 0 : i32
    %c0_i32_1 = arith.constant 0 : i32
    return %arg1, %c0_i32, %c0_i32_0 : i32, i32, i32
  }
  func.func @transform_6(%arg0: i32, %arg1: i32) -> (i32, i32, i32) {
    %c0_i32 = arith.constant 0 : i32
    %c0_i32_0 = arith.constant 0 : i32
    %c0_i32_1 = arith.constant 0 : i32
    return %arg1, %c0_i32, %c0_i32_0 : i32, i32, i32
  }
  func.func @transform_7(%arg0: i32, %arg1: i32) -> (i32, i32, i32) {
    %c0_i32 = arith.constant 0 : i32
    %c0_i32_0 = arith.constant 0 : i32
    %c0_i32_1 = arith.constant 0 : i32
    return %arg1, %c0_i32, %c0_i32_0 : i32, i32, i32
  }
  func.func @transform_8(%arg0: i32, %arg1: i32) -> (i32, i32, i32) {
    %c0_i32 = arith.constant 0 : i32
    %c0_i32_0 = arith.constant 0 : i32
    %c0_i32_1 = arith.constant 0 : i32
    return %arg1, %c0_i32, %c0_i32_0 : i32, i32, i32
  }
  func.func @transform_9(%arg0: i32, %arg1: i32) -> (i32, i32, i32) {
    %c0_i32 = arith.constant 0 : i32
    %c0_i32_0 = arith.constant 0 : i32
    %c0_i32_1 = arith.constant 0 : i32
    return %arg1, %c0_i32, %c0_i32_0 : i32, i32, i32
  }
  func.func @transform_10(%arg0: i32, %arg1: i32) -> (i32, i32, i32) {
    %c0_i32 = arith.constant 0 : i32
    %c0_i32_0 = arith.constant 0 : i32
    %c0_i32_1 = arith.constant 0 : i32
    return %arg1, %c0_i32, %c0_i32_0 : i32, i32, i32
  }
  func.func @transform_11(%arg0: i32, %arg1: i32) -> (i32, i32, i32) {
    %c0_i32 = arith.constant 0 : i32
    %c0_i32_0 = arith.constant 0 : i32
    %c0_i32_1 = arith.constant 0 : i32
    return %arg1, %c0_i32, %c0_i32_0 : i32, i32, i32
  }
  func.func @transform_12(%arg0: i32, %arg1: i32) -> (i32, i32, i32) {
    %c0_i32 = arith.constant 0 : i32
    %c0_i32_0 = arith.constant 0 : i32
    %c0_i32_1 = arith.constant 0 : i32
    return %arg1, %c0_i32, %c0_i32_0 : i32, i32, i32
  }
  func.func @transform_13(%arg0: i32, %arg1: i32) -> (i32, i32) {
    %c0_i32 = arith.constant 0 : i32
    %c0_i32_0 = arith.constant 0 : i32
    %c0_i32_1 = arith.constant 0 : i32
    return %c0_i32, %c0_i32_0 : i32, i32
  }
  func.func @transform_14(%arg0: i32, %arg1: i32) -> (i32, i32) {
    %c0_i32 = arith.constant 0 : i32
    %c0_i32_0 = arith.constant 0 : i32
    %c0_i32_1 = arith.constant 0 : i32
    return %c0_i32, %c0_i32_0 : i32, i32
  }
  func.func @transform_15(%arg0: i32, %arg1: i32) -> (i32, i32, i32) {
    %c0_i32 = arith.constant 0 : i32
    %c0_i32_0 = arith.constant 0 : i32
    %c0_i32_1 = arith.constant 0 : i32
    return %arg0, %c0_i32, %c0_i32_0 : i32, i32, i32
  }
}

module attributes {stable_mosaic.version = 11 : i64} {
  func.func @_agg_kernel(%arg0: i32, %arg1: memref<1x17x256xf32, #tpu.memory_space<vmem>>, %arg2: memref<256x256xbf16, #tpu.memory_space<vmem>>, %arg3: memref<1x256xf32, #tpu.memory_space<vmem>>, %arg4: memref<256x512xbf16, #tpu.memory_space<vmem>>, %arg5: memref<1x512xf32, #tpu.memory_space<vmem>>, %arg6: memref<256x256xbf16, #tpu.memory_space<vmem>>, %arg7: memref<1x256xf32, #tpu.memory_space<vmem>>, %arg8: memref<1x256xf32, #tpu.memory_space<vmem>>, %arg9: memref<1x256xf32, #tpu.memory_space<vmem>>, %arg10: memref<256x512xbf16, #tpu.memory_space<vmem>>, %arg11: memref<1x512xf32, #tpu.memory_space<vmem>>, %arg12: memref<512x256xbf16, #tpu.memory_space<vmem>>, %arg13: memref<1x256xf32, #tpu.memory_space<vmem>>, %arg14: memref<1x256xf32, #tpu.memory_space<vmem>>, %arg15: memref<1x256xf32, #tpu.memory_space<vmem>>, %arg16: memref<1x1x256xf32, #tpu.memory_space<vmem>>) attributes {dimension_semantics = [#tpu.dimension_semantics<parallel>], iteration_bounds = array<i64: 8>, scalar_prefetch = 0 : i64, scratch_operands = 0 : i64, tpu.core_type = #tpu.core_type<tc>, window_params = [{transform_indices = @transform_0, window_bounds = array<i64: 1, 17, 256>}, {pipeline_mode = #tpu.pipeline_mode<synchronous>, transform_indices = @transform_1, window_bounds = array<i64: 256, 256>}, {pipeline_mode = #tpu.pipeline_mode<synchronous>, transform_indices = @transform_2, window_bounds = array<i64: 1, 256>}, {pipeline_mode = #tpu.pipeline_mode<synchronous>, transform_indices = @transform_3, window_bounds = array<i64: 256, 512>}, {pipeline_mode = #tpu.pipeline_mode<synchronous>, transform_indices = @transform_4, window_bounds = array<i64: 1, 512>}, {pipeline_mode = #tpu.pipeline_mode<synchronous>, transform_indices = @transform_5, window_bounds = array<i64: 256, 256>}, {pipeline_mode = #tpu.pipeline_mode<synchronous>, transform_indices = @transform_6, window_bounds = array<i64: 1, 256>}, {pipeline_mode = #tpu.pipeline_mode<synchronous>, transform_indices = @transform_7, window_bounds = array<i64: 1, 256>}, {pipeline_mode = #tpu.pipeline_mode<synchronous>, transform_indices = @transform_8, window_bounds = array<i64: 1, 256>}, {pipeline_mode = #tpu.pipeline_mode<synchronous>, transform_indices = @transform_9, window_bounds = array<i64: 256, 512>}, {pipeline_mode = #tpu.pipeline_mode<synchronous>, transform_indices = @transform_10, window_bounds = array<i64: 1, 512>}, {pipeline_mode = #tpu.pipeline_mode<synchronous>, transform_indices = @transform_11, window_bounds = array<i64: 512, 256>}, {pipeline_mode = #tpu.pipeline_mode<synchronous>, transform_indices = @transform_12, window_bounds = array<i64: 1, 256>}, {pipeline_mode = #tpu.pipeline_mode<synchronous>, transform_indices = @transform_13, window_bounds = array<i64: 1, 256>}, {pipeline_mode = #tpu.pipeline_mode<synchronous>, transform_indices = @transform_14, window_bounds = array<i64: 1, 256>}, {transform_indices = @transform_15, window_bounds = array<i64: 1, 1, 256>}]} {
    %c0 = arith.constant 0 : index
    %c0_0 = arith.constant 0 : index
    %c0_1 = arith.constant 0 : index
    %0 = vector.load %arg1[%c0, %c0_0, %c0_1] : memref<1x17x256xf32, #tpu.memory_space<vmem>>, vector<1x17x256xf32>
    %1 = vector.shape_cast %0 : vector<1x17x256xf32> to vector<17x256xf32>
    %2 = vector.extract_strided_slice %1 {offsets = [0, 0], sizes = [1, 256], strides = [1, 1]} : vector<17x256xf32> to vector<1x256xf32>
    %3 = arith.truncf %2 : vector<1x256xf32> to vector<1x256xbf16>
    %c0_2 = arith.constant 0 : index
    %c0_3 = arith.constant 0 : index
    %4 = vector.load %arg2[%c0_2, %c0_3] : memref<256x256xbf16, #tpu.memory_space<vmem>>, vector<256x256xbf16>
    %cst = arith.constant dense<0.000000e+00> : vector<1x256xf32>
    %5 = tpu.matmul %3, %4, %cst {dimension_numbers = #tpu.dot_dimension_numbers<[1], [0], [0], [1], [0, 0, 1, 1], [], []>} : vector<1x256xbf16>, vector<256x256xbf16>, vector<1x256xf32> -> vector<1x256xf32>
    %c0_4 = arith.constant 0 : index
    %c0_5 = arith.constant 0 : index
    %6 = vector.load %arg3[%c0_4, %c0_5] : memref<1x256xf32, #tpu.memory_space<vmem>>, vector<1x256xf32>
    %7 = arith.addf %5, %6 : vector<1x256xf32>
    %8 = arith.truncf %1 : vector<17x256xf32> to vector<17x256xbf16>
    %c0_6 = arith.constant 0 : index
    %c0_7 = arith.constant 0 : index
    %9 = vector.load %arg4[%c0_6, %c0_7] : memref<256x512xbf16, #tpu.memory_space<vmem>>, vector<256x512xbf16>
    %cst_8 = arith.constant dense<0.000000e+00> : vector<17x512xf32>
    %10 = tpu.matmul %8, %9, %cst_8 {dimension_numbers = #tpu.dot_dimension_numbers<[1], [0], [0], [1], [0, 0, 1, 1], [], []>} : vector<17x256xbf16>, vector<256x512xbf16>, vector<17x512xf32> -> vector<17x512xf32>
    %c0_9 = arith.constant 0 : index
    %c0_10 = arith.constant 0 : index
    %11 = vector.load %arg5[%c0_9, %c0_10] : memref<1x512xf32, #tpu.memory_space<vmem>>, vector<1x512xf32>
    %12 = vector.broadcast %11 : vector<1x512xf32> to vector<17x512xf32>
    %13 = arith.addf %10, %12 : vector<17x512xf32>
    %14 = vector.extract_strided_slice %7 {offsets = [0, 0], sizes = [1, 128], strides = [1, 1]} : vector<1x256xf32> to vector<1x128xf32>
    %cst_11 = arith.constant 0.0883883461 : f32
    %15 = vector.broadcast %cst_11 : f32 to vector<1x128xf32>
    %16 = arith.mulf %14, %15 : vector<1x128xf32>
    %17 = arith.truncf %16 : vector<1x128xf32> to vector<1x128xbf16>
    %18 = vector.extract_strided_slice %13 {offsets = [0, 0], sizes = [17, 128], strides = [1, 1]} : vector<17x512xf32> to vector<17x128xf32>
    %19 = arith.truncf %18 : vector<17x128xf32> to vector<17x128xbf16>
    %20 = vector.extract_strided_slice %13 {offsets = [0, 256], sizes = [17, 128], strides = [1, 1]} : vector<17x512xf32> to vector<17x128xf32>
    %21 = arith.truncf %20 : vector<17x128xf32> to vector<17x128xbf16>
    %cst_12 = arith.constant dense<0.000000e+00> : vector<1x17xf32>
    %22 = tpu.matmul %17, %19, %cst_12 {dimension_numbers = #tpu.dot_dimension_numbers<[1], [1], [0], [0], [0, 0, 1, 0], [], []>} : vector<1x128xbf16>, vector<17x128xbf16>, vector<1x17xf32> -> vector<1x17xf32>
    %cst_13 = arith.constant dense<0xFF800000> : vector<1xf32>
    %23 = vector.multi_reduction <maximumf>, %22, %cst_13 [1] : vector<1x17xf32> to vector<1xf32>
    %24 = vector.shape_cast %23 : vector<1xf32> to vector<1x1xf32>
    %25 = vector.broadcast %24 : vector<1x1xf32> to vector<1x17xf32>
    %26 = arith.subf %22, %25 : vector<1x17xf32>
    %27 = math.exp %26 : vector<1x17xf32>
    %cst_14 = arith.constant dense<0.000000e+00> : vector<1xf32>
    %28 = vector.multi_reduction <add>, %27, %cst_14 [1] : vector<1x17xf32> to vector<1xf32>
    %29 = vector.shape_cast %28 : vector<1xf32> to vector<1x1xf32>
    %30 = tpu.reciprocal %29 {approx = true} : vector<1x1xf32> -> vector<1x1xf32>
    %31 = vector.broadcast %30 : vector<1x1xf32> to vector<1x17xf32>
    %32 = arith.mulf %27, %31 : vector<1x17xf32>
    %33 = arith.truncf %32 : vector<1x17xf32> to vector<1x17xbf16>
    %cst_15 = arith.constant dense<0.000000e+00> : vector<1x128xf32>
    %34 = tpu.matmul %33, %21, %cst_15 {dimension_numbers = #tpu.dot_dimension_numbers<[1], [0], [0], [1], [0, 0, 1, 1], [], []>} : vector<1x17xbf16>, vector<17x128xbf16>, vector<1x128xf32> -> vector<1x128xf32>
    %35 = vector.extract_strided_slice %7 {offsets = [0, 128], sizes = [1, 128], strides = [1, 1]} : vector<1x256xf32> to vector<1x128xf32>
    %cst_16 = arith.constant 0.0883883461 : f32
    %36 = vector.broadcast %cst_16 : f32 to vector<1x128xf32>
    %37 = arith.mulf %35, %36 : vector<1x128xf32>
    %38 = arith.truncf %37 : vector<1x128xf32> to vector<1x128xbf16>
    %39 = vector.extract_strided_slice %13 {offsets = [0, 128], sizes = [17, 128], strides = [1, 1]} : vector<17x512xf32> to vector<17x128xf32>
    %40 = arith.truncf %39 : vector<17x128xf32> to vector<17x128xbf16>
    %41 = vector.extract_strided_slice %13 {offsets = [0, 384], sizes = [17, 128], strides = [1, 1]} : vector<17x512xf32> to vector<17x128xf32>
    %42 = arith.truncf %41 : vector<17x128xf32> to vector<17x128xbf16>
    %cst_17 = arith.constant dense<0.000000e+00> : vector<1x17xf32>
    %43 = tpu.matmul %38, %40, %cst_17 {dimension_numbers = #tpu.dot_dimension_numbers<[1], [1], [0], [0], [0, 0, 1, 0], [], []>} : vector<1x128xbf16>, vector<17x128xbf16>, vector<1x17xf32> -> vector<1x17xf32>
    %cst_18 = arith.constant dense<0xFF800000> : vector<1xf32>
    %44 = vector.multi_reduction <maximumf>, %43, %cst_18 [1] : vector<1x17xf32> to vector<1xf32>
    %45 = vector.shape_cast %44 : vector<1xf32> to vector<1x1xf32>
    %46 = vector.broadcast %45 : vector<1x1xf32> to vector<1x17xf32>
    %47 = arith.subf %43, %46 : vector<1x17xf32>
    %48 = math.exp %47 : vector<1x17xf32>
    %cst_19 = arith.constant dense<0.000000e+00> : vector<1xf32>
    %49 = vector.multi_reduction <add>, %48, %cst_19 [1] : vector<1x17xf32> to vector<1xf32>
    %50 = vector.shape_cast %49 : vector<1xf32> to vector<1x1xf32>
    %51 = tpu.reciprocal %50 {approx = true} : vector<1x1xf32> -> vector<1x1xf32>
    %52 = vector.broadcast %51 : vector<1x1xf32> to vector<1x17xf32>
    %53 = arith.mulf %48, %52 : vector<1x17xf32>
    %54 = arith.truncf %53 : vector<1x17xf32> to vector<1x17xbf16>
    %cst_20 = arith.constant dense<0.000000e+00> : vector<1x128xf32>
    %55 = tpu.matmul %54, %42, %cst_20 {dimension_numbers = #tpu.dot_dimension_numbers<[1], [0], [0], [1], [0, 0, 1, 1], [], []>} : vector<1x17xbf16>, vector<17x128xbf16>, vector<1x128xf32> -> vector<1x128xf32>
    %56 = tpu.concatenate %34, %55 in 1 : vector<1x128xf32>, vector<1x128xf32> -> vector<1x256xf32>
    %57 = arith.truncf %56 : vector<1x256xf32> to vector<1x256xbf16>
    %c0_21 = arith.constant 0 : index
    %c0_22 = arith.constant 0 : index
    %58 = vector.load %arg6[%c0_21, %c0_22] : memref<256x256xbf16, #tpu.memory_space<vmem>>, vector<256x256xbf16>
    %cst_23 = arith.constant dense<0.000000e+00> : vector<1x256xf32>
    %59 = tpu.matmul %57, %58, %cst_23 {dimension_numbers = #tpu.dot_dimension_numbers<[1], [0], [0], [1], [0, 0, 1, 1], [], []>} : vector<1x256xbf16>, vector<256x256xbf16>, vector<1x256xf32> -> vector<1x256xf32>
    %c0_24 = arith.constant 0 : index
    %c0_25 = arith.constant 0 : index
    %60 = vector.load %arg7[%c0_24, %c0_25] : memref<1x256xf32, #tpu.memory_space<vmem>>, vector<1x256xf32>
    %61 = arith.addf %59, %60 : vector<1x256xf32>
    %62 = arith.addf %2, %61 : vector<1x256xf32>
    %c0_26 = arith.constant 0 : index
    %c0_27 = arith.constant 0 : index
    %63 = vector.load %arg8[%c0_26, %c0_27] : memref<1x256xf32, #tpu.memory_space<vmem>>, vector<1x256xf32>
    %c0_28 = arith.constant 0 : index
    %c0_29 = arith.constant 0 : index
    %64 = vector.load %arg9[%c0_28, %c0_29] : memref<1x256xf32, #tpu.memory_space<vmem>>, vector<1x256xf32>
    %cst_30 = arith.constant dense<0.000000e+00> : vector<1xf32>
    %65 = vector.multi_reduction <add>, %62, %cst_30 [1] : vector<1x256xf32> to vector<1xf32>
    %66 = vector.shape_cast %65 : vector<1xf32> to vector<1x1xf32>
    %cst_31 = arith.constant 2.560000e+02 : f32
    %67 = vector.broadcast %cst_31 : f32 to vector<1x1xf32>
    %68 = arith.divf %66, %67 : vector<1x1xf32>
    %69 = vector.broadcast %68 : vector<1x1xf32> to vector<1x256xf32>
    %70 = arith.subf %62, %69 : vector<1x256xf32>
    %71 = arith.mulf %70, %70 : vector<1x256xf32>
    %cst_32 = arith.constant dense<0.000000e+00> : vector<1xf32>
    %72 = vector.multi_reduction <add>, %71, %cst_32 [1] : vector<1x256xf32> to vector<1xf32>
    %73 = vector.shape_cast %72 : vector<1xf32> to vector<1x1xf32>
    %cst_33 = arith.constant 2.560000e+02 : f32
    %74 = vector.broadcast %cst_33 : f32 to vector<1x1xf32>
    %75 = arith.divf %73, %74 : vector<1x1xf32>
    %cst_34 = arith.constant 9.99999974E-6 : f32
    %76 = vector.broadcast %cst_34 : f32 to vector<1x1xf32>
    %77 = arith.addf %75, %76 : vector<1x1xf32>
    %78 = math.rsqrt %77 : vector<1x1xf32>
    %79 = vector.broadcast %78 : vector<1x1xf32> to vector<1x256xf32>
    %80 = arith.mulf %70, %79 : vector<1x256xf32>
    %81 = arith.mulf %80, %63 : vector<1x256xf32>
    %82 = arith.addf %81, %64 : vector<1x256xf32>
    %83 = arith.truncf %82 : vector<1x256xf32> to vector<1x256xbf16>
    %c0_35 = arith.constant 0 : index
    %c0_36 = arith.constant 0 : index
    %84 = vector.load %arg10[%c0_35, %c0_36] : memref<256x512xbf16, #tpu.memory_space<vmem>>, vector<256x512xbf16>
    %cst_37 = arith.constant dense<0.000000e+00> : vector<1x512xf32>
    %85 = tpu.matmul %83, %84, %cst_37 {dimension_numbers = #tpu.dot_dimension_numbers<[1], [0], [0], [1], [0, 0, 1, 1], [], []>} : vector<1x256xbf16>, vector<256x512xbf16>, vector<1x512xf32> -> vector<1x512xf32>
    %c0_38 = arith.constant 0 : index
    %c0_39 = arith.constant 0 : index
    %86 = vector.load %arg11[%c0_38, %c0_39] : memref<1x512xf32, #tpu.memory_space<vmem>>, vector<1x512xf32>
    %87 = arith.addf %85, %86 : vector<1x512xf32>
    %cst_40 = arith.constant 0.000000e+00 : f32
    %88 = vector.broadcast %cst_40 : f32 to vector<1x512xf32>
    %89 = arith.maximumf %87, %88 : vector<1x512xf32>
    %90 = arith.truncf %89 : vector<1x512xf32> to vector<1x512xbf16>
    %c0_41 = arith.constant 0 : index
    %c0_42 = arith.constant 0 : index
    %91 = vector.load %arg12[%c0_41, %c0_42] : memref<512x256xbf16, #tpu.memory_space<vmem>>, vector<512x256xbf16>
    %cst_43 = arith.constant dense<0.000000e+00> : vector<1x256xf32>
    %92 = tpu.matmul %90, %91, %cst_43 {dimension_numbers = #tpu.dot_dimension_numbers<[1], [0], [0], [1], [0, 0, 1, 1], [], []>} : vector<1x512xbf16>, vector<512x256xbf16>, vector<1x256xf32> -> vector<1x256xf32>
    %c0_44 = arith.constant 0 : index
    %c0_45 = arith.constant 0 : index
    %93 = vector.load %arg13[%c0_44, %c0_45] : memref<1x256xf32, #tpu.memory_space<vmem>>, vector<1x256xf32>
    %94 = arith.addf %92, %93 : vector<1x256xf32>
    %95 = arith.addf %82, %94 : vector<1x256xf32>
    %c0_46 = arith.constant 0 : index
    %c0_47 = arith.constant 0 : index
    %96 = vector.load %arg14[%c0_46, %c0_47] : memref<1x256xf32, #tpu.memory_space<vmem>>, vector<1x256xf32>
    %c0_48 = arith.constant 0 : index
    %c0_49 = arith.constant 0 : index
    %97 = vector.load %arg15[%c0_48, %c0_49] : memref<1x256xf32, #tpu.memory_space<vmem>>, vector<1x256xf32>
    %cst_50 = arith.constant dense<0.000000e+00> : vector<1xf32>
    %98 = vector.multi_reduction <add>, %95, %cst_50 [1] : vector<1x256xf32> to vector<1xf32>
    %99 = vector.shape_cast %98 : vector<1xf32> to vector<1x1xf32>
    %cst_51 = arith.constant 2.560000e+02 : f32
    %100 = vector.broadcast %cst_51 : f32 to vector<1x1xf32>
    %101 = arith.divf %99, %100 : vector<1x1xf32>
    %102 = vector.broadcast %101 : vector<1x1xf32> to vector<1x256xf32>
    %103 = arith.subf %95, %102 : vector<1x256xf32>
    %104 = arith.mulf %103, %103 : vector<1x256xf32>
    %cst_52 = arith.constant dense<0.000000e+00> : vector<1xf32>
    %105 = vector.multi_reduction <add>, %104, %cst_52 [1] : vector<1x256xf32> to vector<1xf32>
    %106 = vector.shape_cast %105 : vector<1xf32> to vector<1x1xf32>
    %cst_53 = arith.constant 2.560000e+02 : f32
    %107 = vector.broadcast %cst_53 : f32 to vector<1x1xf32>
    %108 = arith.divf %106, %107 : vector<1x1xf32>
    %cst_54 = arith.constant 9.99999974E-6 : f32
    %109 = vector.broadcast %cst_54 : f32 to vector<1x1xf32>
    %110 = arith.addf %108, %109 : vector<1x1xf32>
    %111 = math.rsqrt %110 : vector<1x1xf32>
    %112 = vector.broadcast %111 : vector<1x1xf32> to vector<1x256xf32>
    %113 = arith.mulf %103, %112 : vector<1x256xf32>
    %114 = arith.mulf %113, %96 : vector<1x256xf32>
    %115 = arith.addf %114, %97 : vector<1x256xf32>
    %c0_55 = arith.constant 0 : index
    %c0_56 = arith.constant 0 : index
    %c0_57 = arith.constant 0 : index
    %116 = vector.load %arg16[%c0_55, %c0_56, %c0_57] : memref<1x1x256xf32, #tpu.memory_space<vmem>>, vector<1x1x256xf32>
    %117 = vector.shape_cast %116 : vector<1x1x256xf32> to vector<1x256xf32>
    %118 = vector.shape_cast %115 : vector<1x256xf32> to vector<1x1x256xf32>
    tpu.vector_store %arg16[%c0_55, %c0_56, %c0_57], %118 {strides = array<i32>} : memref<1x1x256xf32, #tpu.memory_space<vmem>>, vector<1x1x256xf32>,
    return
  }
  func.func @transform_0(%arg0: i32) -> (i32, i32, i32) {
    %c0_i32 = arith.constant 0 : i32
    %c0_i32_0 = arith.constant 0 : i32
    %c0_i32_1 = arith.constant 0 : i32
    return %arg0, %c0_i32, %c0_i32_0 : i32, i32, i32
  }
  func.func @transform_1(%arg0: i32) -> (i32, i32) {
    %c0_i32 = arith.constant 0 : i32
    %c0_i32_0 = arith.constant 0 : i32
    %c0_i32_1 = arith.constant 0 : i32
    return %c0_i32, %c0_i32_0 : i32, i32
  }
  func.func @transform_2(%arg0: i32) -> (i32, i32) {
    %c0_i32 = arith.constant 0 : i32
    %c0_i32_0 = arith.constant 0 : i32
    %c0_i32_1 = arith.constant 0 : i32
    return %c0_i32, %c0_i32_0 : i32, i32
  }
  func.func @transform_3(%arg0: i32) -> (i32, i32) {
    %c0_i32 = arith.constant 0 : i32
    %c0_i32_0 = arith.constant 0 : i32
    %c0_i32_1 = arith.constant 0 : i32
    return %c0_i32, %c0_i32_0 : i32, i32
  }
  func.func @transform_4(%arg0: i32) -> (i32, i32) {
    %c0_i32 = arith.constant 0 : i32
    %c0_i32_0 = arith.constant 0 : i32
    %c0_i32_1 = arith.constant 0 : i32
    return %c0_i32, %c0_i32_0 : i32, i32
  }
  func.func @transform_5(%arg0: i32) -> (i32, i32) {
    %c0_i32 = arith.constant 0 : i32
    %c0_i32_0 = arith.constant 0 : i32
    %c0_i32_1 = arith.constant 0 : i32
    return %c0_i32, %c0_i32_0 : i32, i32
  }
  func.func @transform_6(%arg0: i32) -> (i32, i32) {
    %c0_i32 = arith.constant 0 : i32
    %c0_i32_0 = arith.constant 0 : i32
    %c0_i32_1 = arith.constant 0 : i32
    return %c0_i32, %c0_i32_0 : i32, i32
  }
  func.func @transform_7(%arg0: i32) -> (i32, i32) {
    %c0_i32 = arith.constant 0 : i32
    %c0_i32_0 = arith.constant 0 : i32
    %c0_i32_1 = arith.constant 0 : i32
    return %c0_i32, %c0_i32_0 : i32, i32
  }
  func.func @transform_8(%arg0: i32) -> (i32, i32) {
    %c0_i32 = arith.constant 0 : i32
    %c0_i32_0 = arith.constant 0 : i32
    %c0_i32_1 = arith.constant 0 : i32
    return %c0_i32, %c0_i32_0 : i32, i32
  }
  func.func @transform_9(%arg0: i32) -> (i32, i32) {
    %c0_i32 = arith.constant 0 : i32
    %c0_i32_0 = arith.constant 0 : i32
    %c0_i32_1 = arith.constant 0 : i32
    return %c0_i32, %c0_i32_0 : i32, i32
  }
  func.func @transform_10(%arg0: i32) -> (i32, i32) {
    %c0_i32 = arith.constant 0 : i32
    %c0_i32_0 = arith.constant 0 : i32
    %c0_i32_1 = arith.constant 0 : i32
    return %c0_i32, %c0_i32_0 : i32, i32
  }
  func.func @transform_11(%arg0: i32) -> (i32, i32) {
    %c0_i32 = arith.constant 0 : i32
    %c0_i32_0 = arith.constant 0 : i32
    %c0_i32_1 = arith.constant 0 : i32
    return %c0_i32, %c0_i32_0 : i32, i32
  }
  func.func @transform_12(%arg0: i32) -> (i32, i32) {
    %c0_i32 = arith.constant 0 : i32
    %c0_i32_0 = arith.constant 0 : i32
    %c0_i32_1 = arith.constant 0 : i32
    return %c0_i32, %c0_i32_0 : i32, i32
  }
  func.func @transform_13(%arg0: i32) -> (i32, i32) {
    %c0_i32 = arith.constant 0 : i32
    %c0_i32_0 = arith.constant 0 : i32
    %c0_i32_1 = arith.constant 0 : i32
    return %c0_i32, %c0_i32_0 : i32, i32
  }
  func.func @transform_14(%arg0: i32) -> (i32, i32) {
    %c0_i32 = arith.constant 0 : i32
    %c0_i32_0 = arith.constant 0 : i32
    %c0_i32_1 = arith.constant 0 : i32
    return %c0_i32, %c0_i32_0 : i32, i32
  }
  func.func @transform_15(%arg0: i32) -> (i32, i32, i32) {
    %c0_i32 = arith.constant 0 : i32
    %c0_i32_0 = arith.constant 0 : i32
    %c0_i32_1 = arith.constant 0 : i32
    return %arg0, %c0_i32, %c0_i32_0 : i32, i32, i32
  }
}

</mosaic_0001>

<bundles_post_ra>
// kernel: _lambda_.3
= control target key start
LH: loop header
LB: loop body
LE: loop exit
PB: predicated region body
PF: predicated region fallthrough
CT: control target
= control target key end

     0   :  { %s2889_s12 = smov 0   ;;  %s3579_s0 = inlined_call_operand.vmem [shape: bf16[128,1536], index: 0, kind: input, shape index: {}]   ;;  %s3580_s1 = inlined_call_operand.vmem [shape: bf16[1536,256], index: 1, kind: input, shape index: {}]   ;;  %s3581_s2 = inlined_call_operand.vmem [shape: f32[1,256], index: 2, kind: input, shape index: {}]   ;;  %s3582_s3 = inlined_call_operand.vmem [shape: f32[128,256], index: 3, kind: output, shape index: {}]  }
   0x1 LB: > { %s2143_s13 = sadd.s32 4294967295, %s2867_s12   ;;  %p2147_p0 = scmp.ge.s32.totalorder %s2867_s12, 1  ;;  %s2867_s12 = sphi %s2889_s12, %s13_s12  }
   0x2   : > { %p139_p1 = scmp.lt.s32.totalorder %s2867_s12, 3 }
   0x4   : > { %p140_p2 = pnand %p2147_p0, %p139_p1 }
   0x5   : > { %v2501_v0 = vld [vmem:[%s3580_s1 + $0x4] ss:$8 sps:$4 sm:$0xff] (!%p140_p2)   ;;  %v2505_v2 = vld [vmem:[%s3580_s1] ss:$8 sps:$4 sm:$0xff] (!%p140_p2)   ;;  %v2507_v4 = vld [vmem:[%s3580_s1 + $0x14] ss:$8 sps:$4 sm:$0xff] (!%p140_p2)  }
   0x6   : > { %143 = sbr.rel (%p140_p2) target bundleno = 442 (0x1ba), region = 32  ;;  %v2503_v1 = vld [vmem:[%s3580_s1 + $0x304] ss:$8 sps:$4 sm:$0xff] (!%p140_p2)   ;;  %1631 = vmatprep.subr.bf16.mxu1 (!%p140_p2), %v2501_v0  ;;  %v2506_v3 = vld [vmem:[%s3580_s1 + $0x300] ss:$8 sps:$4 sm:$0xff] (!%p140_p2)   ;;  %s2148_s24 = sshll.u32 (!%p140_p2), %s2143_s13, 3 }
   0x7   : > { %1850 = vmatprep.subr.bf16.mxu0 (!%p140_p2), %v2503_v1  ;;  %1632 = vmatpush1.bf16.msra.mxu1 (!%p140_p2), %v2505_v2  ;;  %v2509_v5 = vld [vmem:[%s3580_s1 + $0x314] ss:$8 sps:$4 sm:$0xff] (!%p140_p2)   ;;  %v2511_v6 = vld [vmem:[%s3580_s1 + $0x10] ss:$8 sps:$4 sm:$0xff] (!%p140_p2)   ;;  %v2513_v8 = vld [vmem:[%s3580_s1 + $0x24] ss:$8 sps:$4 sm:$0xff] (!%p140_p2)  }
   0x8   : > { %1851 = vmatpush1.bf16.msra.mxu0 (!%p140_p2), %v2506_v3  ;;  %1633 = vmatprep.subr.bf16.mxu1 (!%p140_p2), %v2507_v4  ;;  %v2512_v7 = vld [vmem:[%s3580_s1 + $0x310] ss:$8 sps:$4 sm:$0xff] (!%p140_p2)   ;;  %v2515_v9 = vld [vmem:[%s3580_s1 + $0x324] ss:$8 sps:$4 sm:$0xff] (!%p140_p2)   ;;  %v2517_v10 = vld [vmem:[%s3580_s1 + $0x20] ss:$8 sps:$4 sm:$0xff] (!%p140_p2)  }
   0x9   : > { %1852 = vmatprep.subr.bf16.mxu0 (!%p140_p2), %v2509_v5  ;;  %v2518_v11 = vld [vmem:[%s3580_s1 + $0x320] ss:$8 sps:$4 sm:$0xff] (!%p140_p2)   ;;  %v2519_v12 = vld [vmem:[%s3580_s1 + $0x34] ss:$8 sps:$4 sm:$0xff] (!%p140_p2)   ;;  %v2523_v14 = vld [vmem:[%s3580_s1 + $0x30] ss:$8 sps:$4 sm:$0xff] (!%p140_p2)  }
   0xa   : > { %v2521_v13 = vld [vmem:[%s3580_s1 + $0x334] ss:$8 sps:$4 sm:$0xff] (!%p140_p2)   ;;  %v2524_v15 = vld [vmem:[%s3580_s1 + $0x330] ss:$8 sps:$4 sm:$0xff] (!%p140_p2)   ;;  %v2525_v16 = vld [vmem:[%s3580_s1 + $0x44] ss:$8 sps:$4 sm:$0xff] (!%p140_p2)  }
   0xb   : > { %1634 = vmatpush1.bf16.msra.mxu1 (!%p140_p2), %v2511_v6  ;;  %v2527_v17 = vld [vmem:[%s3580_s1 + $0x344] ss:$8 sps:$4 sm:$0xff] (!%p140_p2)   ;;  %v2529_v18 = vld [vmem:[%s3580_s1 + $0x40] ss:$8 sps:$4 sm:$0xff] (!%p140_p2)   ;;  %v2531_v20 = vld [vmem:[%s3580_s1 + $0x54] ss:$8 sps:$4 sm:$0xff] (!%p140_p2)  }
   0xc   : > { %1853 = vmatpush1.bf16.msra.mxu0 (!%p140_p2), %v2512_v7  ;;  %1635 = vmatprep.subr.bf16.mxu1 (!%p140_p2), %v2513_v8  ;;  %v2530_v19 = vld [vmem:[%s3580_s1 + $0x340] ss:$8 sps:$4 sm:$0xff] (!%p140_p2)   ;;  %v2533_v21 = vld [vmem:[%s3580_s1 + $0x354] ss:$8 sps:$4 sm:$0xff] (!%p140_p2)   ;;  %v2535_v22 = vld [vmem:[%s3580_s1 + $0x50] ss:$8 sps:$4 sm:$0xff] (!%p140_p2)  }
   0xd   : > { %1854 = vmatprep.subr.bf16.mxu0 %v2515_v9  ;;  %v2536_v23 = vld [vmem:[%s3580_s1 + $0x350] ss:$8 sps:$4 sm:$0xff]   ;;  %v2537_v24 = vld [vmem:[%s3580_s1 + $0x64] ss:$8 sps:$4 sm:$0xff]   ;;  %v2541_v26 = vld [vmem:[%s3580_s1 + $0x60] ss:$8 sps:$4 sm:$0xff]  }
   0xe   : > { %v2539_v25 = vld [vmem:[%s3580_s1 + $0x364] ss:$8 sps:$4 sm:$0xff]   ;;  %v2542_v27 = vld [vmem:[%s3580_s1 + $0x360] ss:$8 sps:$4 sm:$0xff]   ;;  %v2543_v28 = vld [vmem:[%s3580_s1 + $0x74] ss:$8 sps:$4 sm:$0xff]  }
   0xf   : > { %1636 = vmatpush1.bf16.msra.mxu1 %v2517_v10  ;;  %v2545_v29 = vld [vmem:[%s3580_s1 + $0x374] ss:$8 sps:$4 sm:$0xff]   ;;  %v2547_v30 = vld [vmem:[%s3580_s1 + $0x70] ss:$8 sps:$4 sm:$0xff]   ;;  %v2549_v32 = vld [vmem:[%s3580_s1 + $0x84] ss:$8 sps:$4 sm:$0xff]  }
  0x10   : > { %1855 = vmatpush1.bf16.msra.mxu0 %v2518_v11  ;;  %1637 = vmatprep.subr.bf16.mxu1 %v2519_v12  ;;  %v2548_v31 = vld [vmem:[%s3580_s1 + $0x370] ss:$8 sps:$4 sm:$0xff]   ;;  %p166_p3 = scmp.lt.s32.totalorder %s2148_s24, 15  ;;  %v2551_v33 = vld [vmem:[%s3580_s1 + $0x384] ss:$8 sps:$4 sm:$0xff]  }
  0x11   : > { %1856 = vmatprep.subr.bf16.mxu0 %v2521_v13  ;;  %v2553_v34 = vld [vmem:[%s3580_s1 + $0x80] ss:$8 sps:$4 sm:$0xff]   ;;  %v2555_v36 = vld [vmem:[%s3580_s1 + $0x94] ss:$8 sps:$4 sm:$0xff]   ;;  %v2559_v38 = vld [vmem:[%s3580_s1 + $0x90] ss:$8 sps:$4 sm:$0xff]  }
  0x12   : > { %v2554_v35 = vld [vmem:[%s3580_s1 + $0x380] ss:$8 sps:$4 sm:$0xff]   ;;  %s3584_s24 = smov (!%p166_p3, %s2148_s24), 15  ;;  %v2557_v37 = vld [vmem:[%s3580_s1 + $0x394] ss:$8 sps:$4 sm:$0xff]  }
  0x13   : > { %1638 = vmatpush1.bf16.msra.mxu1 %v2523_v14  ;;  %v2560_v39 = vld [vmem:[%s3580_s1 + $0x390] ss:$8 sps:$4 sm:$0xff]   ;;  %v2561_v40 = vld [vmem:[%s3580_s1 + $0xa4] ss:$8 sps:$4 sm:$0xff]   ;;  %s2492_s21 = smul.u32 48, %s3584_s24  ;;  %s2395_s16 = sshll.u32 %s3584_s24, 4 }
  0x14   : > { %1857 = vmatpush1.bf16.msra.mxu0 %v2524_v15  ;;  %1639 = vmatprep.subr.bf16.mxu1 %v2525_v16  ;;  %v2563_v41 = vld [vmem:[%s3580_s1 + $0x3a4] ss:$8 sps:$4 sm:$0xff]   ;;  %v2565_v42 = vld [vmem:[%s3580_s1 + $0xa0] ss:$8 sps:$4 sm:$0xff]   ;;  %v2567_v44 = vld [vmem:[%s3580_s1 + $0xb4] ss:$8 sps:$4 sm:$0xff]   ;;  %s3543_s18 = scalar_lea.vmem %s3582_s3, %s2395_s16 }
  0x15   : > { %1858 = vmatprep.subr.bf16.mxu0 %v2527_v17  ;;  %v2566_v43 = vld [vmem:[%s3580_s1 + $0x3a0] ss:$8 sps:$4 sm:$0xff]   ;;  %s3040_s13 = scalar_lea.vmem %s3579_s0, %s2492_s21  ;;  %v2569_v45 = vld [vmem:[%s3580_s1 + $0x3b4] ss:$8 sps:$4 sm:$0xff]   ;;  %v2571_v46 = vld [vmem:[%s3580_s1 + $0xb0] ss:$8 sps:$4 sm:$0xff]  }
  0x16   : > { %v2572_v47 = vld [vmem:[%s3580_s1 + $0x3b0] ss:$8 sps:$4 sm:$0xff]   ;;  %v2599_v48 = vld [vmem:[%s3040_s13 + $0x4] ss:$48 sps:$4 sm:$0xff]   ;;  %v2605_v51 = vld [vmem:[%s3040_s13 + $0x1c] ss:$48 sps:$4 sm:$0xff]  }
  0x17   : > { %1640 = vmatpush1.bf16.msra.mxu1 %v2529_v18  ;;  %v2573_v49 = vld [vmem:[%s3580_s1 + $0xc4] ss:$8 sps:$4 sm:$0xff]   ;;  %1663 = vmatprep.mubr.bf16.mxu1 %v2599_v48  ;;  %v2577_v52 = vld [vmem:[%s3580_s1 + $0xc0] ss:$8 sps:$4 sm:$0xff]   ;;  %v2579_v54 = vld [vmem:[%s3580_s1 + $0xd4] ss:$8 sps:$4 sm:$0xff]  }
  0x18   : > { %1859 = vmatpush1.bf16.msra.mxu0 %v2530_v19  ;;  %1641 = vmatprep.subr.bf16.mxu1 %v2531_v20  ;;  %v2575_v50 = vld [vmem:[%s3580_s1 + $0x3c4] ss:$8 sps:$4 sm:$0xff]   ;;  %v2578_v53 = vld [vmem:[%s3580_s1 + $0x3c0] ss:$8 sps:$4 sm:$0xff]   ;;  %v2581_v55 = vld [vmem:[%s3580_s1 + $0x3d4] ss:$8 sps:$4 sm:$0xff]  }
  0x19   : > { %1860 = vmatprep.subr.bf16.mxu0 %v2533_v21  ;;  %1882 = vmatprep.mubr.bf16.mxu0 %v2605_v51  ;;  %v2583_v56 = vld [vmem:[%s3580_s1 + $0xd0] ss:$8 sps:$4 sm:$0xff]   ;;  %v2585_v58 = vld [vmem:[%s3580_s1 + $0xe4] ss:$8 sps:$4 sm:$0xff]   ;;  %v2589_v60 = vld [vmem:[%s3580_s1 + $0xe0] ss:$8 sps:$4 sm:$0xff]  }
  0x1a   : > { %v2584_v57 = vld [vmem:[%s3580_s1 + $0x3d0] ss:$8 sps:$4 sm:$0xff]   ;;  %v2587_v59 = vld [vmem:[%s3580_s1 + $0x3e4] ss:$8 sps:$4 sm:$0xff]   ;;  %v2590_v61 = vld [vmem:[%s3580_s1 + $0x3e0] ss:$8 sps:$4 sm:$0xff]  }
  0x1b   : > { %1642 = vmatpush1.bf16.msra.mxu1 %v2535_v22  ;;  %v2591_v62 = vld [vmem:[%s3580_s1 + $0xf4] ss:$8 sps:$4 sm:$0xff]   ;;  %v2595_v0 = vld [vmem:[%s3580_s1 + $0xf0] ss:$8 sps:$4 sm:$0xff]   ;;  %v2602_v2 = vld [vmem:[%s3580_s1 + $0x104] ss:$8 sps:$4 sm:$0xff]  }
  0x1c   : > { %1861 = vmatpush1.bf16.msra.mxu0 %v2536_v23  ;;  %1643 = vmatprep.subr.bf16.mxu1 %v2537_v24  ;;  %v2593_v63 = vld [vmem:[%s3580_s1 + $0x3f4] ss:$8 sps:$4 sm:$0xff]   ;;  %v2596_v1 = vld [vmem:[%s3580_s1 + $0x3f0] ss:$8 sps:$4 sm:$0xff]   ;;  %v2608_v3 = vld [vmem:[%s3580_s1 + $0x404] ss:$8 sps:$4 sm:$0xff]  }
  0x1d   : > { %1862 = vmatprep.subr.bf16.mxu0 %v2539_v25  ;;  %v2597_v4 = vld [vmem:[%s3040_s13] ss:$48 sps:$4 sm:$0xff]   ;;  %v2603_v6 = vld [vmem:[%s3040_s13 + $0x18] ss:$48 sps:$4 sm:$0xff]   ;;  %v2611_v8 = vld [vmem:[%s3580_s1 + $0x114] ss:$8 sps:$4 sm:$0xff]  }
  0x1e   : > { %v2600_v5 = vld [vmem:[%s3580_s1 + $0x100] ss:$8 sps:$4 sm:$0xff]   ;;  %v2614_v9 = vld [vmem:[%s3580_s1 + $0x414] ss:$8 sps:$4 sm:$0xff]   ;;  %v2609_v10 = vld [vmem:[%s3580_s1 + $0x110] ss:$8 sps:$4 sm:$0xff]  }
  0x1f   : > { %1644 = vmatpush1.bf16.msra.mxu1 %v2541_v26  ;;  %v2606_v7 = vld [vmem:[%s3580_s1 + $0x400] ss:$8 sps:$4 sm:$0xff]   ;;  %v2612_v11 = vld [vmem:[%s3580_s1 + $0x410] ss:$8 sps:$4 sm:$0xff]   ;;  %v2617_v12 = vld [vmem:[%s3580_s1 + $0x124] ss:$8 sps:$4 sm:$0xff]  }
  0x20   : > { %1863 = vmatpush1.bf16.msra.mxu0 %v2542_v27  ;;  %1645 = vmatprep.subr.bf16.mxu1 %v2543_v28  ;;  %v2620_v13 = vld [vmem:[%s3580_s1 + $0x424] ss:$8 sps:$4 sm:$0xff]   ;;  %v2615_v14 = vld [vmem:[%s3580_s1 + $0x120] ss:$8 sps:$4 sm:$0xff]   ;;  %v2623_v16 = vld [vmem:[%s3580_s1 + $0x134] ss:$8 sps:$4 sm:$0xff]  }
  0x21   : > { %1864 = vmatprep.subr.bf16.mxu0 %v2545_v29  ;;  %v2618_v15 = vld [vmem:[%s3580_s1 + $0x420] ss:$8 sps:$4 sm:$0xff]   ;;  %v2663_v17 = vld [vmem:[%s3040_s13 + $0x64] ss:$48 sps:$4 sm:$0xff]   ;;  %v2621_v19 = vld [vmem:[%s3580_s1 + $0x130] ss:$8 sps:$4 sm:$0xff]  }
  0x22   : > { %v2626_v18 = vld [vmem:[%s3580_s1 + $0x434] ss:$8 sps:$4 sm:$0xff]   ;;  %v2624_v20 = vld [vmem:[%s3580_s1 + $0x430] ss:$8 sps:$4 sm:$0xff]   ;;  %v2629_v22 = vld [vmem:[%s3580_s1 + $0x144] ss:$8 sps:$4 sm:$0xff]  }
  0x23   : > { %1646 = vmatpush1.bf16.msra.mxu1 %v2547_v30  ;;  %v2668_v21 = vld [vmem:[%s3040_s13 + $0x7c] ss:$48 sps:$4 sm:$0xff]   ;;  %v2673_v24 = vld [vmem:[%s3040_s13 + $0x60] ss:$48 sps:$4 sm:$0xff]   ;;  %v2674_v25 = vld [vmem:[%s3040_s13 + $0x78] ss:$48 sps:$4 sm:$0xff]  }
  0x24   : > { %1865 = vmatpush1.bf16.msra.mxu0 %v2548_v31  ;;  %1647 = vmatprep.subr.bf16.mxu1 %v2549_v32  ;;  %v2632_v23 = vld [vmem:[%s3580_s1 + $0x444] ss:$8 sps:$4 sm:$0xff]   ;;  %v2627_v26 = vld [vmem:[%s3580_s1 + $0x140] ss:$8 sps:$4 sm:$0xff]   ;;  %v2635_v28 = vld [vmem:[%s3580_s1 + $0x154] ss:$8 sps:$4 sm:$0xff]  }
  0x25   : > { %1866 = vmatprep.subr.bf16.mxu0 %v2551_v33  ;;  %v2630_v27 = vld [vmem:[%s3580_s1 + $0x440] ss:$8 sps:$4 sm:$0xff]   ;;  %v2681_v29 = vld [vmem:[%s3040_s13 + $0xc4] ss:$48 sps:$4 sm:$0xff]   ;;  %v2633_v31 = vld [vmem:[%s3580_s1 + $0x150] ss:$8 sps:$4 sm:$0xff]  }
  0x26   : > { %v2638_v30 = vld [vmem:[%s3580_s1 + $0x454] ss:$8 sps:$4 sm:$0xff]   ;;  %v2636_v32 = vld [vmem:[%s3580_s1 + $0x450] ss:$8 sps:$4 sm:$0xff]   ;;  %v2654_v51 = vld [vmem:[%s3580_s1 + $0x480] ss:$8 sps:$4 sm:$0xff]  }
  0x27   : > { %1648 = vmatpush1.bf16.msra.mxu1 %v2553_v34  ;;  %v2686_v33 = vld [vmem:[%s3040_s13 + $0xdc] ss:$48 sps:$4 sm:$0xff]   ;;  %v2709_v48 = vld [vmem:[%s3040_s13 + $0x120] ss:$48 sps:$4 sm:$0xff]  }
  0x28   : > { %1867 = vmatpush1.bf16.msra.mxu0 %v2554_v35  ;;  %1649 = vmatprep.subr.bf16.mxu1 %v2555_v36  ;;  %v2641_v34 = vld [vmem:[%s3580_s1 + $0x164] ss:$8 sps:$4 sm:$0xff]   ;;  %v2691_v36 = vld [vmem:[%s3040_s13 + $0xc0] ss:$48 sps:$4 sm:$0xff]  }
  0x29   : > { %1868 = vmatprep.subr.bf16.mxu0 %v2557_v37  ;;  %v2644_v35 = vld [vmem:[%s3580_s1 + $0x464] ss:$8 sps:$4 sm:$0xff]   ;;  %v2692_v37 = vld [vmem:[%s3040_s13 + $0xd8] ss:$48 sps:$4 sm:$0xff]  }
  0x2b   : > { %1650 = vmatpush1.bf16.msra.mxu1 %v2559_v38  ;;  %v2639_v38 = vld [vmem:[%s3580_s1 + $0x160] ss:$8 sps:$4 sm:$0xff]  }
  0x2c   : > { %1869 = vmatpush1.bf16.msra.mxu0 %v2560_v39  ;;  %1651 = vmatprep.subr.bf16.mxu1 %v2561_v40  ;;  %v2642_v39 = vld [vmem:[%s3580_s1 + $0x460] ss:$8 sps:$4 sm:$0xff]   ;;  %v2647_v40 = vld [vmem:[%s3580_s1 + $0x174] ss:$8 sps:$4 sm:$0xff]  }
  0x2d   : > { %1870 = vmatprep.subr.bf16.mxu0 %v2563_v41  ;;  %v2699_v41 = vld [vmem:[%s3040_s13 + $0x124] ss:$48 sps:$4 sm:$0xff]  }
  0x2f   : > { %1652 = vmatpush1.bf16.msra.mxu1 %v2565_v42  ;;  %v2650_v42 = vld [vmem:[%s3580_s1 + $0x474] ss:$8 sps:$4 sm:$0xff]  }
  0x30   : > { %1871 = vmatpush1.bf16.msra.mxu0 %v2566_v43  ;;  %1653 = vmatprep.subr.bf16.mxu1 %v2567_v44  ;;  %v2645_v43 = vld [vmem:[%s3580_s1 + $0x170] ss:$8 sps:$4 sm:$0xff]  }
  0x31   : > { %1872 = vmatprep.subr.bf16.mxu0 %v2569_v45  ;;  %v2648_v44 = vld [vmem:[%s3580_s1 + $0x470] ss:$8 sps:$4 sm:$0xff]   ;;  %v2704_v45 = vld [vmem:[%s3040_s13 + $0x13c] ss:$48 sps:$4 sm:$0xff]  }
  0x33   : > { %1654 = vmatpush1.bf16.msra.mxu1 %v2571_v46  ;;  %v2653_v46 = vld [vmem:[%s3580_s1 + $0x184] ss:$8 sps:$4 sm:$0xff]  }
  0x34   : > { %1873 = vmatpush1.bf16.msra.mxu0 %v2572_v47  ;;  %1655 = vmatprep.subr.bf16.mxu1 %v2573_v49  ;;  %v2656_v47 = vld [vmem:[%s3580_s1 + $0x484] ss:$8 sps:$4 sm:$0xff]   ;;  %v2710_v49 = vld [vmem:[%s3040_s13 + $0x138] ss:$48 sps:$4 sm:$0xff]  }
  0x35   : > { %1874 = vmatprep.subr.bf16.mxu0 %v2575_v50  ;;  %v2651_v50 = vld [vmem:[%s3580_s1 + $0x180] ss:$8 sps:$4 sm:$0xff]  }
  0x37   : > { %1656 = vmatpush1.bf16.msra.mxu1 %v2577_v52  ;;  %v2659_v52 = vld [vmem:[%s3580_s1 + $0x194] ss:$8 sps:$4 sm:$0xff]  }
  0x38   : > { %1875 = vmatpush1.bf16.msra.mxu0 %v2578_v53  ;;  %1657 = vmatprep.subr.bf16.mxu1 %v2579_v54  ;;  %v2662_v53 = vld [vmem:[%s3580_s1 + $0x494] ss:$8 sps:$4 sm:$0xff]  }
  0x39   : > { %1876 = vmatprep.subr.bf16.mxu0 %v2581_v55  ;;  %v2719_v54 = vld [vmem:[%s3040_s13 + $0xc] ss:$48 sps:$4 sm:$0xff]   ;;  %v2657_v55 = vld [vmem:[%s3580_s1 + $0x190] ss:$8 sps:$4 sm:$0xff]  }
  0x3b   : > { %1658 = vmatpush1.bf16.msra.mxu1 %v2583_v56  ;;  %v2660_v56 = vld [vmem:[%s3580_s1 + $0x490] ss:$8 sps:$4 sm:$0xff]  }
  0x3c   : > { %1877 = vmatpush1.bf16.msra.mxu0 %v2584_v57  ;;  %1659 = vmatprep.subr.bf16.mxu1 %v2585_v58  ;;  %v2725_v57 = vld [vmem:[%s3040_s13 + $0x24] ss:$48 sps:$4 sm:$0xff]  }
  0x3d   : > { %1878 = vmatprep.subr.bf16.mxu0 %v2587_v59  ;;  %v2667_v58 = vld [vmem:[%s3580_s1 + $0x1a4] ss:$8 sps:$4 sm:$0xff]  }
  0x3e   : > { %v2672_v59 = vld [vmem:[%s3580_s1 + $0x4a4] ss:$8 sps:$4 sm:$0xff]  }
  0x3f   : > { %1660 = vmatpush1.bf16.msra.mxu1 %v2589_v60  ;;  %v2665_v60 = vld [vmem:[%s3580_s1 + $0x1a0] ss:$8 sps:$4 sm:$0xff]  }
  0x40   : > { %1879 = vmatpush1.bf16.msra.mxu0 %v2590_v61  ;;  %1661 = vmatprep.subr.bf16.mxu1 %v2591_v62  ;;  %v2670_v61 = vld [vmem:[%s3580_s1 + $0x4a0] ss:$8 sps:$4 sm:$0xff]   ;;  %v2677_v62 = vld [vmem:[%s3580_s1 + $0x1b4] ss:$8 sps:$4 sm:$0xff]  }
  0x41   : > { %1880 = vmatprep.subr.bf16.mxu0 %v2593_v63  ;;  %v2680_v63 = vld [vmem:[%s3580_s1 + $0x4b4] ss:$8 sps:$4 sm:$0xff]  }
  0x43   : > { %1662 = vmatpush1.bf16.msra.mxu1 %v2595_v0  ;;  %v2675_v0 = vld [vmem:[%s3580_s1 + $0x1b0] ss:$8 sps:$4 sm:$0xff]  }
  0x44   : > { %1881 = vmatpush1.bf16.msra.mxu0 %v2596_v1  ;;  %1704 = vmatprep.subr.bf16.mxu1 %v2602_v2  ;;  %v2678_v1 = vld [vmem:[%s3580_s1 + $0x4b0] ss:$8 sps:$4 sm:$0xff]   ;;  %v2685_v2 = vld [vmem:[%s3580_s1 + $0x1c4] ss:$8 sps:$4 sm:$0xff]  }
  0x45   : > { %1923 = vmatprep.subr.bf16.mxu0 %v2608_v3  ;;  %v2690_v3 = vld [vmem:[%s3580_s1 + $0x4c4] ss:$8 sps:$4 sm:$0xff]  }
  0x46   : > { %1664 = vmatmul.mubr.bf16.vlgmr.msra.gmra.mrb[0].mxu1 %v2597_v4  ;;  %v2683_v4 = vld [vmem:[%s3580_s1 + $0x1c0] ss:$8 sps:$4 sm:$0xff]  }
  0x47   : > { %1883 = vmatmul.mubr.bf16.vlgmr.msra.gmra.mrb[0].mxu0 %v2603_v6  ;;  %1705 = vmatpush1.bf16.msra.mxu1 %v2600_v5  ;;  %v2688_v5 = vld [vmem:[%s3580_s1 + $0x4c0] ss:$8 sps:$4 sm:$0xff]   ;;  %v2695_v6 = vld [vmem:[%s3580_s1 + $0x1d4] ss:$8 sps:$4 sm:$0xff]  }
  0x48   : > { %1924 = vmatpush1.bf16.msra.mxu0 %v2606_v7  ;;  %1706 = vmatprep.subr.bf16.mxu1 %v2611_v8  ;;  %v2698_v7 = vld [vmem:[%s3580_s1 + $0x4d4] ss:$8 sps:$4 sm:$0xff]   ;;  %v2693_v8 = vld [vmem:[%s3580_s1 + $0x1d0] ss:$8 sps:$4 sm:$0xff]  }
  0x49   : > { %1925 = vmatprep.subr.bf16.mxu0 %v2614_v9  ;;  %1673 = vmatprep.mubr.bf16.mxu1 %v2663_v17  ;;  %v2696_v9 = vld [vmem:[%s3580_s1 + $0x4d0] ss:$8 sps:$4 sm:$0xff]  }
  0x4a   : > { %1892 = vmatprep.mubr.bf16.mxu0 %v2668_v21  ;;  %v2714_v17 = vld [vmem:[%s3580_s1 + $0x4f0] ss:$8 sps:$4 sm:$0xff]   ;;  %v2720_v21 = vld [vmem:[%s3580_s1 + $0x200] ss:$8 sps:$4 sm:$0xff]  }
  0x4b   : > { %1707 = vmatpush1.bf16.msra.mxu1 %v2609_v10  ;;  %v2703_v10 = vld [vmem:[%s3580_s1 + $0x1e4] ss:$8 sps:$4 sm:$0xff]  }
  0x4c   : > { %1926 = vmatpush1.bf16.msra.mxu0 %v2612_v11  ;;  %1708 = vmatprep.subr.bf16.mxu1 %v2617_v12  ;;  %v2708_v11 = vld [vmem:[%s3580_s1 + $0x4e4] ss:$8 sps:$4 sm:$0xff]   ;;  %v2701_v12 = vld [vmem:[%s3580_s1 + $0x1e0] ss:$8 sps:$4 sm:$0xff]  }
  0x4d   : > { %1927 = vmatprep.subr.bf16.mxu0 %v2620_v13  ;;  %v2706_v13 = vld [vmem:[%s3580_s1 + $0x4e0] ss:$8 sps:$4 sm:$0xff]  }
  0x4e   : > { %1674 = vmatmul.mubr.bf16.gmra.mrb[4].mxu1 %v2673_v24  ;;  %v2731_v24 = vld [vmem:[%s3580_s1 + $0x214] ss:$8 sps:$4 sm:$0xff]  }
  0x4f   : > { %1709 = vmatpush1.bf16.msra.mxu1 %v2615_v14  ;;  %1893 = vmatmul.mubr.bf16.gmra.mrb[4].mxu0 %v2674_v25  ;;  %v2713_v14 = vld [vmem:[%s3580_s1 + $0x1f4] ss:$8 sps:$4 sm:$0xff]  }
  0x50   : > { %1928 = vmatpush1.bf16.msra.mxu0 %v2618_v15  ;;  %1710 = vmatprep.subr.bf16.mxu1 %v2623_v16  ;;  %v2716_v15 = vld [vmem:[%s3580_s1 + $0x4f4] ss:$8 sps:$4 sm:$0xff]   ;;  %v2711_v16 = vld [vmem:[%s3580_s1 + $0x1f0] ss:$8 sps:$4 sm:$0xff]  }
  0x51   : > { %1929 = vmatprep.subr.bf16.mxu0 %v2626_v18  ;;  %1683 = vmatprep.mubr.bf16.mxu1 %v2681_v29  ;;  %v2722_v18 = vld [vmem:[%s3580_s1 + $0x204] ss:$8 sps:$4 sm:$0xff]   ;;  %v2734_v25 = vld [vmem:[%s3580_s1 + $0x514] ss:$8 sps:$4 sm:$0xff]   ;;  %v2732_v29 = vld [vmem:[%s3580_s1 + $0x510] ss:$8 sps:$4 sm:$0xff]  }
  0x52   : > { %1902 = vmatprep.mubr.bf16.mxu0 %v2686_v33  ;;  %v2787_v33 = vld [vmem:[%s3040_s13 + $0x68] ss:$48 sps:$4 sm:$0xff]  }
  0x53   : > { %1711 = vmatpush1.bf16.msra.mxu1 %v2621_v19  ;;  %v2728_v19 = vld [vmem:[%s3580_s1 + $0x504] ss:$8 sps:$4 sm:$0xff]  }
  0x54   : > { %1930 = vmatpush1.bf16.msra.mxu0 %v2624_v20  ;;  %1712 = vmatprep.subr.bf16.mxu1 %v2629_v22  ;;  %v2717_v20 = vld [vmem:[%s3040_s13 + $0x8] ss:$48 sps:$4 sm:$0xff]   ;;  %v2723_v22 = vld [vmem:[%s3040_s13 + $0x20] ss:$48 sps:$4 sm:$0xff]  }
  0x55   : > { %1931 = vmatprep.subr.bf16.mxu0 %v2632_v23  ;;  %v2726_v23 = vld [vmem:[%s3580_s1 + $0x500] ss:$8 sps:$4 sm:$0xff]  }
  0x56   : > { %1684 = vmatmul.mubr.bf16.gmra.mrb[8].mxu1 %v2691_v36  ;;  %v2743_v36 = vld [vmem:[%s3580_s1 + $0x234] ss:$8 sps:$4 sm:$0xff]  }
  0x57   : > { %1713 = vmatpush1.bf16.msra.mxu1 %v2627_v26  ;;  %1903 = vmatmul.mubr.bf16.gmra.mrb[8].mxu0 %v2692_v37  ;;  %v2783_v26 = vld [vmem:[%s3040_s13 + $0x6c] ss:$48 sps:$4 sm:$0xff]  }
  0x58   : > { %1932 = vmatpush1.bf16.msra.mxu0 %v2630_v27  ;;  %1714 = vmatprep.subr.bf16.mxu1 %v2635_v28  ;;  %v2785_v27 = vld [vmem:[%s3040_s13 + $0x84] ss:$48 sps:$4 sm:$0xff]   ;;  %v2729_v28 = vld [vmem:[%s3580_s1 + $0x210] ss:$8 sps:$4 sm:$0xff]  }
  0x59   : > { %1933 = vmatprep.subr.bf16.mxu0 %v2638_v30  ;;  %1693 = vmatprep.mubr.bf16.mxu1 %v2699_v41  ;;  %v2737_v30 = vld [vmem:[%s3580_s1 + $0x224] ss:$8 sps:$4 sm:$0xff]   ;;  %v2746_v37 = vld [vmem:[%s3580_s1 + $0x534] ss:$8 sps:$4 sm:$0xff]   ;;  %v2744_v41 = vld [vmem:[%s3580_s1 + $0x530] ss:$8 sps:$4 sm:$0xff]  }
  0x5a   : > { %1912 = vmatprep.mubr.bf16.mxu0 %v2704_v45  ;;  %v2805_v45 = vld [vmem:[%s3040_s13 + $0xc8] ss:$48 sps:$4 sm:$0xff]  }
  0x5b   : > { %1715 = vmatpush1.bf16.msra.mxu1 %v2633_v31  ;;  %v2740_v31 = vld [vmem:[%s3580_s1 + $0x524] ss:$8 sps:$4 sm:$0xff]  }
  0x5c   : > { %1934 = vmatpush1.bf16.msra.mxu0 %v2636_v32  ;;  %1716 = vmatprep.subr.bf16.mxu1 %v2641_v34  ;;  %v2735_v32 = vld [vmem:[%s3580_s1 + $0x220] ss:$8 sps:$4 sm:$0xff]  }
  0x5d   : > { %1935 = vmatprep.subr.bf16.mxu0 %v2644_v35  ;;  %v2791_v34 = vld [vmem:[%s3040_s13 + $0x80] ss:$48 sps:$4 sm:$0xff]  }
  0x5e   : > { %1694 = vmatmul.mubr.bf16.gmra.mrb[12].mxu1 %v2709_v48  ;;  %v2738_v35 = vld [vmem:[%s3580_s1 + $0x520] ss:$8 sps:$4 sm:$0xff]   ;;  %v2755_v48 = vld [vmem:[%s3580_s1 + $0x254] ss:$8 sps:$4 sm:$0xff]  }
  0x5f   : > { %1717 = vmatpush1.bf16.msra.mxu1 %v2639_v38  ;;  %1913 = vmatmul.mubr.bf16.gmra.mrb[12].mxu0 %v2710_v49  ;;  %v2801_v38 = vld [vmem:[%s3040_s13 + $0xcc] ss:$48 sps:$4 sm:$0xff]  }
  0x60   : > { %1936 = vmatpush1.bf16.msra.mxu0 %v2642_v39  ;;  %1718 = vmatprep.subr.bf16.mxu1 %v2647_v40  ;;  %v2803_v39 = vld [vmem:[%s3040_s13 + $0xe4] ss:$48 sps:$4 sm:$0xff]   ;;  %v2741_v40 = vld [vmem:[%s3580_s1 + $0x230] ss:$8 sps:$4 sm:$0xff]  }
  0x61   : > { %1937 = vmatprep.subr.bf16.mxu0 %v2650_v42  ;;  %1736 = vmatprep.mubr.bf16.mxu1 %v2719_v54  ;;  %v2749_v42 = vld [vmem:[%s3580_s1 + $0x244] ss:$8 sps:$4 sm:$0xff]   ;;  %v2758_v49 = vld [vmem:[%s3580_s1 + $0x554] ss:$8 sps:$4 sm:$0xff]  }
  0x62   : > { %1955 = vmatprep.mubr.bf16.mxu0 %v2725_v57  ;;  %v2761_v54 = vld [vmem:[%s3580_s1 + $0x264] ss:$8 sps:$4 sm:$0xff]   ;;  %v2762_v57 = vld [vmem:[%s3580_s1 + $0x560] ss:$8 sps:$4 sm:$0xff]  }
  0x63   : > { %1719 = vmatpush1.bf16.msra.mxu1 %v2645_v43  ;;  %v2752_v43 = vld [vmem:[%s3580_s1 + $0x544] ss:$8 sps:$4 sm:$0xff]  }
  0x64   : > { %1938 = vmatpush1.bf16.msra.mxu0 %v2648_v44  ;;  %1720 = vmatprep.subr.bf16.mxu1 %v2653_v46  ;;  %v2747_v44 = vld [vmem:[%s3580_s1 + $0x240] ss:$8 sps:$4 sm:$0xff]  }
  0x65   : > { %1939 = vmatprep.subr.bf16.mxu0 %v2656_v47  ;;  %v2809_v46 = vld [vmem:[%s3040_s13 + $0xe0] ss:$48 sps:$4 sm:$0xff]  }
  0x66   : > { %v2750_v47 = vld [vmem:[%s3580_s1 + $0x540] ss:$8 sps:$4 sm:$0xff]  }
  0x67   : > { %1721 = vmatpush1.bf16.msra.mxu1 %v2651_v50  ;;  %v2819_v50 = vld [vmem:[%s3040_s13 + $0x12c] ss:$48 sps:$4 sm:$0xff]  }
  0x68   : > { %1940 = vmatpush1.bf16.msra.mxu0 %v2654_v51  ;;  %1722 = vmatprep.subr.bf16.mxu1 %v2659_v52  ;;  %v2821_v51 = vld [vmem:[%s3040_s13 + $0x144] ss:$48 sps:$4 sm:$0xff]   ;;  %v2753_v52 = vld [vmem:[%s3580_s1 + $0x250] ss:$8 sps:$4 sm:$0xff]  }
  0x69   : > { %1941 = vmatprep.subr.bf16.mxu0 %v2662_v53  ;;  %v2756_v53 = vld [vmem:[%s3580_s1 + $0x550] ss:$8 sps:$4 sm:$0xff]  }
  0x6b   : > { %1723 = vmatpush1.bf16.msra.mxu1 %v2657_v55  ;;  %v2764_v55 = vld [vmem:[%s3580_s1 + $0x564] ss:$8 sps:$4 sm:$0xff]  }
  0x6c   : > { %1942 = vmatpush1.bf16.msra.mxu0 %v2660_v56  ;;  %1724 = vmatprep.subr.bf16.mxu1 %v2667_v58  ;;  %v2759_v56 = vld [vmem:[%s3580_s1 + $0x260] ss:$8 sps:$4 sm:$0xff]  }
  0x6d   : > { %1943 = vmatprep.subr.bf16.mxu0 %v2672_v59  ;;  %v2823_v58 = vld [vmem:[%s3040_s13 + $0x128] ss:$48 sps:$4 sm:$0xff]   ;;  %v2827_v59 = vld [vmem:[%s3040_s13 + $0x140] ss:$48 sps:$4 sm:$0xff]  }
  0x6f   : > { %1725 = vmatpush1.bf16.msra.mxu1 %v2665_v60  ;;  %v2767_v60 = vld [vmem:[%s3580_s1 + $0x274] ss:$8 sps:$4 sm:$0xff]  }
  0x70   : > { %1944 = vmatpush1.bf16.msra.mxu0 %v2670_v61  ;;  %1726 = vmatprep.subr.bf16.mxu1 %v2677_v62  ;;  %v2770_v61 = vld [vmem:[%s3580_s1 + $0x574] ss:$8 sps:$4 sm:$0xff]  }
  0x71   : > { %1945 = vmatprep.subr.bf16.mxu0 %v2680_v63  ;;  %v2839_v62 = vld [vmem:[%s3040_s13 + $0x14] ss:$48 sps:$4 sm:$0xff]   ;;  %v2842_v63 = vld [vmem:[%s3040_s13 + $0x2c] ss:$48 sps:$4 sm:$0xff]  }
  0x73   : > { %1727 = vmatpush1.bf16.msra.mxu1 %v2675_v0  ;;  %v2765_v0 = vld [vmem:[%s3580_s1 + $0x270] ss:$8 sps:$4 sm:$0xff]  }
  0x74   : > { %1946 = vmatpush1.bf16.msra.mxu0 %v2678_v1  ;;  %1728 = vmatprep.subr.bf16.mxu1 %v2685_v2  ;;  %v2768_v1 = vld [vmem:[%s3580_s1 + $0x570] ss:$8 sps:$4 sm:$0xff]   ;;  %v2773_v2 = vld [vmem:[%s3580_s1 + $0x284] ss:$8 sps:$4 sm:$0xff]  }
  0x75   : > { %1947 = vmatprep.subr.bf16.mxu0 %v2690_v3  ;;  %v2776_v3 = vld [vmem:[%s3580_s1 + $0x584] ss:$8 sps:$4 sm:$0xff]  }
  0x77   : > { %1729 = vmatpush1.bf16.msra.mxu1 %v2683_v4  ;;  %v2771_v4 = vld [vmem:[%s3580_s1 + $0x280] ss:$8 sps:$4 sm:$0xff]  }
  0x78   : > { %1948 = vmatpush1.bf16.msra.mxu0 %v2688_v5  ;;  %1730 = vmatprep.subr.bf16.mxu1 %v2695_v6  ;;  %v2774_v5 = vld [vmem:[%s3580_s1 + $0x580] ss:$8 sps:$4 sm:$0xff]   ;;  %v2779_v6 = vld [vmem:[%s3580_s1 + $0x294] ss:$8 sps:$4 sm:$0xff]  }
  0x79   : > { %1949 = vmatprep.subr.bf16.mxu0 %v2698_v7  ;;  %v2782_v7 = vld [vmem:[%s3580_s1 + $0x594] ss:$8 sps:$4 sm:$0xff]  }
  0x7b   : > { %1731 = vmatpush1.bf16.msra.mxu1 %v2693_v8  ;;  %v2777_v8 = vld [vmem:[%s3580_s1 + $0x290] ss:$8 sps:$4 sm:$0xff]  }
  0x7c   : > { %1950 = vmatpush1.bf16.msra.mxu0 %v2696_v9  ;;  %1732 = vmatprep.subr.bf16.mxu1 %v2703_v10  ;;  %v2780_v9 = vld [vmem:[%s3580_s1 + $0x590] ss:$8 sps:$4 sm:$0xff]   ;;  %v2790_v10 = vld [vmem:[%s3580_s1 + $0x2a4] ss:$8 sps:$4 sm:$0xff]  }
  0x7d   : > { %1951 = vmatprep.subr.bf16.mxu0 %v2708_v11  ;;  %v2794_v11 = vld [vmem:[%s3580_s1 + $0x5a4] ss:$8 sps:$4 sm:$0xff]  }
  0x7f   : > { %1733 = vmatpush1.bf16.msra.mxu1 %v2701_v12  ;;  %v2788_v12 = vld [vmem:[%s3580_s1 + $0x2a0] ss:$8 sps:$4 sm:$0xff]  }
  0x80   : > { %1952 = vmatpush1.bf16.msra.mxu0 %v2706_v13  ;;  %1734 = vmatprep.subr.bf16.mxu1 %v2713_v14  ;;  %v2792_v13 = vld [vmem:[%s3580_s1 + $0x5a0] ss:$8 sps:$4 sm:$0xff]   ;;  %v2797_v14 = vld [vmem:[%s3580_s1 + $0x2b4] ss:$8 sps:$4 sm:$0xff]  }
  0x81   : > { %1953 = vmatprep.subr.bf16.mxu0 %v2716_v15  ;;  %v2800_v15 = vld [vmem:[%s3580_s1 + $0x5b4] ss:$8 sps:$4 sm:$0xff]  }
  0x83   : > { %1735 = vmatpush1.bf16.msra.mxu1 %v2711_v16  ;;  %v2795_v16 = vld [vmem:[%s3580_s1 + $0x2b0] ss:$8 sps:$4 sm:$0xff]  }
  0x84   : > { %1954 = vmatpush1.bf16.msra.mxu0 %v2714_v17  ;;  %1777 = vmatprep.subr.bf16.mxu1 %v2722_v18  ;;  %v2798_v17 = vld [vmem:[%s3580_s1 + $0x5b0] ss:$8 sps:$4 sm:$0xff]   ;;  %v2808_v18 = vld [vmem:[%s3580_s1 + $0x2c4] ss:$8 sps:$4 sm:$0xff]  }
  0x85   : > { %1996 = vmatprep.subr.bf16.mxu0 %v2728_v19  ;;  %v2812_v19 = vld [vmem:[%s3580_s1 + $0x5c4] ss:$8 sps:$4 sm:$0xff]  }
  0x86   : > { %1737 = vmatmul.mubr.bf16.vlgmr.msra.gmra.mrb[0].mxu1 %v2717_v20  ;;  %v2806_v20 = vld [vmem:[%s3580_s1 + $0x2c0] ss:$8 sps:$4 sm:$0xff]  }
  0x87   : > { %1956 = vmatmul.mubr.bf16.vlgmr.msra.gmra.mrb[0].mxu0 %v2723_v22  ;;  %1778 = vmatpush1.bf16.msra.mxu1 %v2720_v21  ;;  %v2810_v21 = vld [vmem:[%s3580_s1 + $0x5c0] ss:$8 sps:$4 sm:$0xff]   ;;  %v2815_v22 = vld [vmem:[%s3580_s1 + $0x2d4] ss:$8 sps:$4 sm:$0xff]  }
  0x88   : > { %1997 = vmatpush1.bf16.msra.mxu0 %v2726_v23  ;;  %1779 = vmatprep.subr.bf16.mxu1 %v2731_v24  ;;  %v2818_v23 = vld [vmem:[%s3580_s1 + $0x5d4] ss:$8 sps:$4 sm:$0xff]   ;;  %v2813_v24 = vld [vmem:[%s3580_s1 + $0x2d0] ss:$8 sps:$4 sm:$0xff]  }
  0x89   : > { %1998 = vmatprep.subr.bf16.mxu0 %v2734_v25  ;;  %1746 = vmatprep.mubr.bf16.mxu1 %v2783_v26  ;;  %v2816_v25 = vld [vmem:[%s3580_s1 + $0x5d0] ss:$8 sps:$4 sm:$0xff]   ;;  %v2826_v26 = vld [vmem:[%s3580_s1 + $0x2e4] ss:$8 sps:$4 sm:$0xff]  }
  0x8a   : > { %1965 = vmatprep.mubr.bf16.mxu0 %v2785_v27  ;;  %v2830_v27 = vld [vmem:[%s3580_s1 + $0x5e4] ss:$8 sps:$4 sm:$0xff]  }
  0x8b   : > { %1780 = vmatpush1.bf16.msra.mxu1 %v2729_v28  ;;  %v2824_v28 = vld [vmem:[%s3580_s1 + $0x2e0] ss:$8 sps:$4 sm:$0xff]  }
  0x8c   : > { %1999 = vmatpush1.bf16.msra.mxu0 %v2732_v29  ;;  %1781 = vmatprep.subr.bf16.mxu1 %v2737_v30  ;;  %v2828_v29 = vld [vmem:[%s3580_s1 + $0x5e0] ss:$8 sps:$4 sm:$0xff]   ;;  %v2833_v30 = vld [vmem:[%s3580_s1 + $0x2f4] ss:$8 sps:$4 sm:$0xff]  }
  0x8d   : > { %2000 = vmatprep.subr.bf16.mxu0 %v2740_v31  ;;  %v2836_v31 = vld [vmem:[%s3580_s1 + $0x5f4] ss:$8 sps:$4 sm:$0xff]  }
  0x8e   : > { %1747 = vmatmul.mubr.bf16.gmra.mrb[4].mxu1 %v2787_v33  ;;  %v2834_v33 = vld [vmem:[%s3580_s1 + $0x5f0] ss:$8 sps:$4 sm:$0xff]  }
  0x8f   : > { %1966 = vmatmul.mubr.bf16.gmra.mrb[4].mxu0 %v2791_v34  ;;  %1782 = vmatpush1.bf16.msra.mxu1 %v2735_v32  ;;  %v2831_v32 = vld [vmem:[%s3580_s1 + $0x2f0] ss:$8 sps:$4 sm:$0xff]  }
  0x90   : > { %2001 = vmatpush1.bf16.msra.mxu0 %v2738_v35  ;;  %1783 = vmatprep.subr.bf16.mxu1 %v2743_v36  ;;  %v2837_v34 = vld [vmem:[%s3040_s13 + $0x10] ss:$48 sps:$4 sm:$0xff]   ;;  %v2840_v35 = vld [vmem:[%s3040_s13 + $0x28] ss:$48 sps:$4 sm:$0xff]   ;;  %v2843_v36 = vld [vmem:[%s3040_s13 + $0x74] ss:$48 sps:$4 sm:$0xff]  }
  0x91   : > { %2002 = vmatprep.subr.bf16.mxu0 %v2746_v37  ;;  %1756 = vmatprep.mubr.bf16.mxu1 %v2801_v38  ;;  %v2845_v37 = vld [vmem:[%s3040_s13 + $0x8c] ss:$48 sps:$4 sm:$0xff]   ;;  %v2847_v38 = vld [vmem:[%s3040_s13 + $0x70] ss:$48 sps:$4 sm:$0xff]  }
  0x92   : > { %1975 = vmatprep.mubr.bf16.mxu0 %v2803_v39  ;;  %v2848_v39 = vld [vmem:[%s3040_s13 + $0x88] ss:$48 sps:$4 sm:$0xff]  }
  0x93   : > { %1784 = vmatpush1.bf16.msra.mxu1 %v2741_v40  ;;  %v2849_v40 = vld [vmem:[%s3040_s13 + $0xd4] ss:$48 sps:$4 sm:$0xff]  }
  0x94   : > { %2003 = vmatpush1.bf16.msra.mxu0 %v2744_v41  ;;  %1785 = vmatprep.subr.bf16.mxu1 %v2749_v42  ;;  %v2851_v41 = vld [vmem:[%s3040_s13 + $0xec] ss:$48 sps:$4 sm:$0xff]   ;;  %v2853_v42 = vld [vmem:[%s3040_s13 + $0xd0] ss:$48 sps:$4 sm:$0xff]  }
  0x95   : > { %2004 = vmatprep.subr.bf16.mxu0 %v2752_v43  ;;  %v2854_v43 = vld [vmem:[%s3040_s13 + $0xe8] ss:$48 sps:$4 sm:$0xff]  }
  0x96   : > { %1757 = vmatmul.mubr.bf16.gmra.mrb[8].mxu1 %v2805_v45  ;;  %v2857_v45 = vld [vmem:[%s3040_s13 + $0x14c] ss:$48 sps:$4 sm:$0xff]  }
  0x97   : > { %1976 = vmatmul.mubr.bf16.gmra.mrb[8].mxu0 %v2809_v46  ;;  %1786 = vmatpush1.bf16.msra.mxu1 %v2747_v44  ;;  %v2855_v44 = vld [vmem:[%s3040_s13 + $0x134] ss:$48 sps:$4 sm:$0xff]   ;;  %v2859_v46 = vld [vmem:[%s3040_s13 + $0x130] ss:$48 sps:$4 sm:$0xff]  }
  0x98   : > { %2005 = vmatpush1.bf16.msra.mxu0 %v2750_v47  ;;  %1787 = vmatprep.subr.bf16.mxu1 %v2755_v48  ;;  %v2860_v47 = vld [vmem:[%s3040_s13 + $0x148] ss:$48 sps:$4 sm:$0xff]   ;;  %v421_v48 = vlaneseq }
  0x99   : > { %2006 = vmatprep.subr.bf16.mxu0 %v2758_v49  ;;  %1766 = vmatprep.mubr.bf16.mxu1 %v2819_v50 }
  0x9a   : > { %1985 = vmatprep.mubr.bf16.mxu0 %v2821_v51  ;;  %v422_v49 = vshrl.u32 %v421_v48, 7  ;;  %v419_v51 = vld [vmem:[%s3581_s2] sm:$0x3] }
  0x9b   : > { %1788 = vmatpush1.bf16.msra.mxu1 %v2753_v52 }
  0x9c   : > { %2007 = vmatpush1.bf16.msra.mxu0 %v2756_v53  ;;  %1789 = vmatprep.subr.bf16.mxu1 %v2761_v54  ;;  %v423_v50 = vsub.s32 0, %v422_v49  ;;  %v427_v52 = vsub.s32 1, %v422_v49 }
  0x9d   : > { %2008 = vmatprep.subr.bf16.mxu0 %v2764_v55 }
  0x9e   : > { %1767 = vmatmul.mubr.bf16.gmra.mrb[12].mxu1 %v2823_v58  ;;  %v3534_v53 = vrot.slane %v419_v51, %v423_v50  ;;  %v3536_v54 = vrot.slane %v419_v51, %v427_v52 }
  0x9f   : > { %1986 = vmatmul.mubr.bf16.gmra.mrb[12].mxu0 %v2827_v59  ;;  %1790 = vmatpush1.bf16.msra.mxu1 %v2759_v56 }
  0xa0   : > { %2009 = vmatpush1.bf16.msra.mxu0 %v2762_v57  ;;  %1791 = vmatprep.subr.bf16.mxu1 %v2767_v60 }
  0xa1   : > { %2010 = vmatprep.subr.bf16.mxu0 %v2770_v61  ;;  %1809 = vmatprep.mubr.bf16.mxu1 %v2839_v62 }
  0xa2   : > { %2028 = vmatprep.mubr.bf16.mxu0 %v2842_v63 }
  0xa3   : > { %1792 = vmatpush1.bf16.msra.mxu1 %v2765_v0 }
  0xa4   : > { %2011 = vmatpush1.bf16.msra.mxu0 %v2768_v1  ;;  %1793 = vmatprep.subr.bf16.mxu1 %v2773_v2 }
  0xa5   : > { %2012 = vmatprep.subr.bf16.mxu0 %v2776_v3 }
  0xa7   : > { %1794 = vmatpush1.bf16.msra.mxu1 %v2771_v4 }
  0xa8   : > { %2013 = vmatpush1.bf16.msra.mxu0 %v2774_v5  ;;  %1795 = vmatprep.subr.bf16.mxu1 %v2779_v6 }
  0xa9   : > { %2014 = vmatprep.subr.bf16.mxu0 %v2782_v7 }
  0xab   : > { %1796 = vmatpush1.bf16.msra.mxu1 %v2777_v8 }
  0xac   : > { %2015 = vmatpush1.bf16.msra.mxu0 %v2780_v9  ;;  %1797 = vmatprep.subr.bf16.mxu1 %v2790_v10 }
  0xad   : > { %2016 = vmatprep.subr.bf16.mxu0 %v2794_v11 }
  0xaf   : > { %1798 = vmatpush1.bf16.msra.mxu1 %v2788_v12 }
  0xb0   : > { %2017 = vmatpush1.bf16.msra.mxu0 %v2792_v13  ;;  %1799 = vmatprep.subr.bf16.mxu1 %v2797_v14 }
  0xb1   : > { %2018 = vmatprep.subr.bf16.mxu0 %v2800_v15 }
  0xb3   : > { %1800 = vmatpush1.bf16.msra.mxu1 %v2795_v16 }
  0xb4   : > { %2019 = vmatpush1.bf16.msra.mxu0 %v2798_v17  ;;  %1801 = vmatprep.subr.bf16.mxu1 %v2808_v18 }
  0xb5   : > { %2020 = vmatprep.subr.bf16.mxu0 %v2812_v19 }
  0xb7   : > { %1802 = vmatpush1.bf16.msra.mxu1 %v2806_v20 }
  0xb8   : > { %2021 = vmatpush1.bf16.msra.mxu0 %v2810_v21  ;;  %1803 = vmatprep.subr.bf16.mxu1 %v2815_v22 }
  0xb9   : > { %2022 = vmatprep.subr.bf16.mxu0 %v2818_v23 }
  0xbb   : > { %1804 = vmatpush1.bf16.msra.mxu1 %v2813_v24 }
  0xbc   : > { %2023 = vmatpush1.bf16.msra.mxu0 %v2816_v25  ;;  %1805 = vmatprep.subr.bf16.mxu1 %v2826_v26 }
  0xbd   : > { %2024 = vmatprep.subr.bf16.mxu0 %v2830_v27 }
  0xbf   : > { %1806 = vmatpush1.bf16.msra.mxu1 %v2824_v28 }
  0xc0   : > { %2025 = vmatpush1.bf16.msra.mxu0 %v2828_v29  ;;  %1807 = vmatprep.subr.bf16.mxu1 %v2833_v30 }
  0xc1   : > { %2026 = vmatprep.subr.bf16.mxu0 %v2836_v31 }
  0xc3   : > { %1808 = vmatpush1.bf16.msra.mxu1 %v2831_v32 }
  0xc4   : > { %2027 = vmatpush1.bf16.msra.mxu0 %v2834_v33 }
  0xc6   : > { %1810 = vmatmul.mubr.bf16.vlgmr.msra.gmra.mrb[0].mxu1 %v2837_v34 }
  0xc7   : > { %2029 = vmatmul.mubr.bf16.vlgmr.msra.gmra.mrb[0].mxu0 %v2840_v35  ;;  %1819 = vmatprep.mubr.bf16.mxu1 %v2843_v36 }
  0xc8   : > { %2038 = vmatprep.mubr.bf16.mxu0 %v2845_v37 }
  0xce   : > { %1820 = vmatmul.mubr.bf16.gmra.mrb[4].mxu1 %v2847_v38 }
  0xcf   : > { %2039 = vmatmul.mubr.bf16.gmra.mrb[4].mxu0 %v2848_v39  ;;  %1829 = vmatprep.mubr.bf16.mxu1 %v2849_v40 }
  0xd0   : > { %2048 = vmatprep.mubr.bf16.mxu0 %v2851_v41 }
  0xd6   : > { %1830 = vmatmul.mubr.bf16.gmra.mrb[8].mxu1 %v2853_v42 }
  0xd7   : > { %2049 = vmatmul.mubr.bf16.gmra.mrb[8].mxu0 %v2854_v43  ;;  %1839 = vmatprep.mubr.bf16.mxu1 %v2855_v44 }
  0xd8   : > { %2058 = vmatprep.mubr.bf16.mxu0 %v2857_v45 }
  0xde   : > { %1840 = vmatmul.mubr.bf16.gmra.mrb[12].mxu1 %v2859_v46 }
  0xdf   : > { %2059 = vmatmul.mubr.bf16.gmra.mrb[12].mxu0 %v2860_v47 }
 0x199   : > { %v1811_v55 = vpop.f32.mrb[0].mxu1 }
 0x19a   : > { %v2030_v56 = vpop.f32.mrb[0].mxu0  ;;  %v2396_v57 = vadd.f32 %v1811_v55, %v3534_v53  ;;  %v1813_v58 = vpop.f32.mrb[1].mxu1 }
 0x19b   : > { %v2032_v59 = vpop.f32.mrb[1].mxu0  ;;  %v2398_v60 = vadd.f32 %v1813_v58, %v3536_v54  ;;  %v1815_v61 = vpop.f32.mrb[2].mxu1 }
 0x19c   : > { %v2034_v62 = vpop.f32.mrb[2].mxu0  ;;  %v2397_v63 = vadd.f32 %v2396_v57, %v2030_v56  ;;  %v2400_v0 = vadd.f32 %v1815_v61, %v3534_v53  ;;  %v1817_v1 = vpop.f32.mrb[3].mxu1 }
 0x19d   : > { %v2036_v2 = vpop.f32.mrb[3].mxu0  ;;  %v2399_v3 = vadd.f32 %v2398_v60, %v2032_v59  ;;  %v2402_v4 = vadd.f32 %v1817_v1, %v3536_v54 }
 0x19e   : > { %2069 = vst [vmem:[%s3543_s18] sm:$0xff] %v2397_v63  ;;  %v2401_v5 = vadd.f32 %v2400_v0, %v2034_v62 }
 0x19f   : > { %2070 = vst [vmem:[%s3543_s18 + $0x8] sm:$0xff] %v2399_v3  ;;  %v2403_v6 = vadd.f32 %v2402_v4, %v2036_v2 }
 0x1a0   : > { %2071 = vst [vmem:[%s3543_s18 + $0x10] sm:$0xff] %v2401_v5 }
 0x1a1   : > { %2072 = vst [vmem:[%s3543_s18 + $0x18] sm:$0xff] %v2403_v6  ;;  %v1821_v7 = vpop.f32.mrb[4].mxu1 }
 0x1a2   : > { %v2040_v8 = vpop.f32.mrb[4].mxu0  ;;  %v2404_v9 = vadd.f32 %v1821_v7, %v3534_v53  ;;  %v1823_v10 = vpop.f32.mrb[5].mxu1 }
 0x1a3   : > { %v2042_v11 = vpop.f32.mrb[5].mxu0  ;;  %v2406_v12 = vadd.f32 %v1823_v10, %v3536_v54  ;;  %v1825_v13 = vpop.f32.mrb[6].mxu1 }
 0x1a4   : > { %v2044_v14 = vpop.f32.mrb[6].mxu0  ;;  %v2405_v15 = vadd.f32 %v2404_v9, %v2040_v8  ;;  %v2408_v16 = vadd.f32 %v1825_v13, %v3534_v53  ;;  %v1827_v17 = vpop.f32.mrb[7].mxu1 }
 0x1a5   : > { %v2046_v18 = vpop.f32.mrb[7].mxu0  ;;  %v2407_v19 = vadd.f32 %v2406_v12, %v2042_v11  ;;  %v2410_v20 = vadd.f32 %v1827_v17, %v3536_v54 }
 0x1a6   : > { %2073 = vst [vmem:[%s3543_s18 + $0x20] sm:$0xff] %v2405_v15  ;;  %v2409_v21 = vadd.f32 %v2408_v16, %v2044_v14 }
 0x1a7   : > { %2074 = vst [vmem:[%s3543_s18 + $0x28] sm:$0xff] %v2407_v19  ;;  %v2411_v22 = vadd.f32 %v2410_v20, %v2046_v18 }
 0x1a8   : > { %2075 = vst [vmem:[%s3543_s18 + $0x30] sm:$0xff] %v2409_v21 }
 0x1a9   : > { %2076 = vst [vmem:[%s3543_s18 + $0x38] sm:$0xff] %v2411_v22  ;;  %v1831_v23 = vpop.f32.mrb[8].mxu1 }
 0x1aa   : > { %v2050_v24 = vpop.f32.mrb[8].mxu0  ;;  %v2412_v25 = vadd.f32 %v1831_v23, %v3534_v53  ;;  %v1833_v26 = vpop.f32.mrb[9].mxu1 }
 0x1ab   : > { %v2052_v27 = vpop.f32.mrb[9].mxu0  ;;  %v2414_v28 = vadd.f32 %v1833_v26, %v3536_v54  ;;  %v1835_v29 = vpop.f32.mrb[10].mxu1 }
 0x1ac   : > { %v2054_v30 = vpop.f32.mrb[10].mxu0  ;;  %v2413_v31 = vadd.f32 %v2412_v25, %v2050_v24  ;;  %v2416_v32 = vadd.f32 %v1835_v29, %v3534_v53  ;;  %v1837_v33 = vpop.f32.mrb[11].mxu1 }
 0x1ad   : > { %v2056_v34 = vpop.f32.mrb[11].mxu0  ;;  %v2415_v35 = vadd.f32 %v2414_v28, %v2052_v27  ;;  %v2418_v36 = vadd.f32 %v1837_v33, %v3536_v54 }
 0x1ae   : > { %2077 = vst [vmem:[%s3543_s18 + $0x40] sm:$0xff] %v2413_v31  ;;  %v2417_v37 = vadd.f32 %v2416_v32, %v2054_v30 }
 0x1af   : > { %2078 = vst [vmem:[%s3543_s18 + $0x48] sm:$0xff] %v2415_v35  ;;  %v2419_v38 = vadd.f32 %v2418_v36, %v2056_v34 }
 0x1b0   : > { %2079 = vst [vmem:[%s3543_s18 + $0x50] sm:$0xff] %v2417_v37 }
 0x1b1   : > { %2080 = vst [vmem:[%s3543_s18 + $0x58] sm:$0xff] %v2419_v38  ;;  %v1841_v39 = vpop.f32.mrb[12].mxu1 }
 0x1b2   : > { %v2060_v40 = vpop.f32.mrb[12].mxu0  ;;  %v2420_v41 = vadd.f32 %v1841_v39, %v3534_v53  ;;  %v1843_v42 = vpop.f32.mrb[13].mxu1 }
 0x1b3   : > { %v2062_v43 = vpop.f32.mrb[13].mxu0  ;;  %v2422_v44 = vadd.f32 %v1843_v42, %v3536_v54  ;;  %v1845_v45 = vpop.f32.mrb[14].mxu1 }
 0x1b4   : > { %v2064_v46 = vpop.f32.mrb[14].mxu0  ;;  %v2421_v47 = vadd.f32 %v2420_v41, %v2060_v40  ;;  %v2424_v48 = vadd.f32 %v1845_v45, %v3534_v53  ;;  %v1847_v49 = vpop.f32.mrb[15].mxu1 }
 0x1b5   : > { %v2066_v50 = vpop.f32.mrb[15].mxu0  ;;  %v2423_v51 = vadd.f32 %v2422_v44, %v2062_v43  ;;  %v2426_v52 = vadd.f32 %v1847_v49, %v3536_v54 }
 0x1b6   : > { %2081 = vst [vmem:[%s3543_s18 + $0x60] sm:$0xff] %v2421_v47  ;;  %v2425_v55 = vadd.f32 %v2424_v48, %v2064_v46 }
 0x1b7   : > { %2082 = vst [vmem:[%s3543_s18 + $0x68] sm:$0xff] %v2423_v51  ;;  %v2427_v56 = vadd.f32 %v2426_v52, %v2066_v50 }
 0x1b8   : > { %2083 = vst [vmem:[%s3543_s18 + $0x70] sm:$0xff] %v2425_v55 }
 0x1b9   : > { %2084 = vst [vmem:[%s3543_s18 + $0x78] sm:$0xff] %v2427_v56 }
 0x1ba PF: > { %s13_s12 = sadd.s32 1, %s2867_s12  }
 0x1bb   : > { %p10_p4 = scmp.ge.s32.totalorder %s13_s12, 4  }
 0x1bd   :  { %12 = sbr.rel (!%p10_p4) target bundleno = 1 (0x1), region = 62 }

// kernel: _lambda_.4
= control target key start
LH: loop header
LB: loop body
LE: loop exit
PB: predicated region body
PF: predicated region fallthrough
CT: control target
= control target key end

     0   :  { %s5101_s18 = smov 0   ;;  %s5103_s19 = smov 0   ;;  %s6137_s0 = inlined_call_operand.vmem [shape: f32[4,33,256], index: 0, kind: input, shape index: {}]   ;;  %s6138_s1 = inlined_call_operand.vmem [shape: f32[2,1,256], index: 1, kind: input, shape index: {}]   ;;  %s6139_s2 = inlined_call_operand.vmem [shape: f32[2,1,256], index: 2, kind: input, shape index: {}]   ;;  %s6140_s3 = inlined_call_operand.vmem [shape: bf16[2,256,768], index: 3, kind: input, shape index: {}]   ;;  %s6141_s4 = inlined_call_operand.vmem [shape: f32[2,1,768], index: 4, kind: input, shape index: {}]   ;;  %s6142_s5 = inlined_call_operand.vmem [shape: bf16[2,256,256], index: 5, kind: input, shape index: {}]   ;;  %s6143_s6 = inlined_call_operand.vmem [shape: f32[2,1,256], index: 6, kind: input, shape index: {}]   ;;  %s6144_s7 = inlined_call_operand.vmem [shape: f32[2,1,256], index: 7, kind: input, shape index: {}]   ;;  %s6145_s8 = inlined_call_operand.vmem [shape: f32[2,1,256], index: 8, kind: input, shape index: {}]   ;;  %s6146_s9 = inlined_call_operand.vmem [shape: bf16[2,256,512], index: 9, kind: input, shape index: {}]   ;;  %s6147_s10 = inlined_call_operand.vmem [shape: f32[2,1,512], index: 10, kind: input, shape index: {}]   ;;  %s6148_s11 = inlined_call_operand.vmem [shape: bf16[2,512,256], index: 11, kind: input, shape index: {}]   ;;  %s6149_s12 = inlined_call_operand.vmem [shape: f32[2,1,256], index: 12, kind: input, shape index: {}]   ;;  %s6150_s13 = inlined_call_operand.vmem [shape: f32[1,256], index: 13, kind: input, shape index: {}]   ;;  %s6151_s14 = inlined_call_operand.vmem [shape: f32[1,256], index: 14, kind: input, shape index: {}]   ;;  %s6152_s15 = inlined_call_operand.vmem [shape: f32[4,33,256], index: 15, kind: output, shape index: {}]  }
   0x1   :  { %6157 = sst [smem:[#allocation9_spill]] %s6137_s0  ;;  %s5105_s20 = smov 0  }
   0x2   :  { %6158 = sst [smem:[#allocation10_spill]] %s6138_s1  ;;  %s5107_s21 = smov 0  }
   0x3   :  { %6159 = sst [smem:[#allocation11_spill]] %s6140_s3  ;;  %s5109_s22 = smov 0  }
   0x4   :  { %6160 = sst [smem:[#allocation12_spill]] %s6141_s4 }
   0x5   :  { %6161 = sst [smem:[#allocation13_spill]] %s6142_s5 }
   0x6   :  { %6162 = sst [smem:[#allocation14_spill]] %s6149_s12 }
   0x7   :  { %6163 = sst [smem:[#allocation15_spill]] %s6150_s13 }
   0x8   :  { %6164 = sst [smem:[#allocation16_spill]] %s6151_s14 }
   0x9   :  { %6165 = sst [smem:[#allocation17_spill]] %s6152_s15 }
   0xa LB: > { %6166 = sst [smem:[#allocation3_spill]] %s5000_s18  ;;  %s34_s23 = sadd.s32 1, %s5008_s20  ;;  %s5016_s22 = sphi %s5109_s22, %s25_s22   ;;  %s5012_s21 = sphi %s5107_s21, %s6194_s21   ;;  %s5008_s20 = sphi %s5105_s20, %s6193_s20   ;;  %s5004_s19 = sphi %s5103_s19, %s6192_s19   ;;  %s5000_s18 = sphi %s5101_s18, %s6191_s18  }
   0xb   : > { %6167 = sst [smem:[#allocation4_spill]] %s5008_s20  ;;  %s37_s24 = sadd.s32 1, %s5012_s21 }
   0xc   : > { %6168 = sst [smem:[#allocation5_spill]] %s5012_s21  ;;  %p35_p0 = scmp.ge.s32.totalorder %s34_s23, 2 }
   0xd   : > { %6169 = sst [smem:[#allocation6_spill]] %s5016_s22  ;;  %p4030_p1 = scmp.ge.s32.totalorder %s5016_s22, 1 }
   0xe   : > { %p561_p2 = scmp.lt.s32.totalorder %s5016_s22, 9  ;;  %s6196_s23 = smov (%p35_p0, %s34_s23), 0 }
   0xf   : > { %6170 = sst [smem:[#allocation7_spill]] %s6196_s23  ;;  %s6198_s24 = smov (!%p35_p0, %s37_s24), %s5012_s21 }
  0x10   : > { %p562_p3 = pnand %p4030_p1, %p561_p2  ;;  %p39_p4 = scmp.ge.s32.totalorder %s6198_s24, 4 }
  0x11   : > { %p661_p5 = scmp.lt.s32.totalorder (!%p562_p3), %s5004_s19, 3  ;;  %p666_p6 = scmp.lt.s32.totalorder (!%p562_p3), %s5000_s18, 1 }
  0x12   : > { %s6200_s24 = smov (%p39_p4, %s6198_s24), 0  ;;  %565 = sbr.rel (%p562_p3) target bundleno = 3321 (0xcf9), region = 80 }
  0x13   : > { %6171 = sst [smem:[#allocation8_spill]] %s6200_s24  ;;  %s6172_s0 = sld [smem:[#allocation9_spill]] (!%p562_p3) }
  0x14   : > { %s6174_s3 = sld [smem:[#allocation11_spill]] (!%p562_p3)  ;;  %s6175_s5 = sld [smem:[#allocation13_spill]] (!%p562_p3) }
  0x15   : > { %s6176_s4 = sld [smem:[#allocation12_spill]] (!%p562_p3) }
  0x19   : > { %s6202_s19 = smov (!%p661_p5, %s5004_s19), 3 }
  0x1a   : > { %s667_s25 = scalar_select %p666_p6, %s5000_s18, 1 }
  0x1b   : > { %s4428_s26 = smul.u32 80, %s6202_s19 }
  0x1c   : > { %s5135_s27 = sshll.u32 %s667_s25, 1  ;;  %s4429_s28 = smul.u32 768, %s667_s25 }
  0x1d   : > { %s5140_s16 = scalar_lea.vmem %s6172_s0, %s4428_s26  ;;  %s4430_s18 = smul.u32 6, %s667_s25 }
  0x1e   : > { %s5153_s13 = scalar_lea.vmem %s6174_s3, %s4429_s28  ;;  %s4313_s15 = sshll.u32 %s667_s25, 8 }
  0x1f   : > { %s5158_s30 = scalar_lea.vmem %s6175_s5, %s4313_s15  ;;  %s5167_s21 = scalar_lea.vmem %s6176_s4, %s4430_s18 }
  0x20   : > { %s4314_s12 = sshll.u32 %s667_s25, 9  ;;  %s4042_s0 = sshll.u32 %s667_s25, 2 }
  0x21   : > { %s5180_s5 = scalar_lea.vmem %s6146_s9, %s4314_s12  ;;  %s5185_s1 = scalar_lea.vmem %s6147_s10, %s4042_s0 }
  0x22   : > { %s5190_s19 = scalar_lea.vmem %s6148_s11, %s4314_s12  ;;  %s6177_s28 = sld [smem:[#allocation14_spill]] }
  0x23   : > { %s6178_s15 = sld [smem:[#allocation17_spill]]  ;;  %s6179_s25 = sld [smem:[#allocation3_spill]] }
  0x28   : > { %s717_s3 = scalar_lea.vmem %s6177_s28, %s5135_s27 }
  0x29   : > { %s5199_s29 = scalar_lea.vmem %s6178_s15, %s4428_s26  ;;  %p4047_p7 = scmp.ne.s32.totalorder %s6179_s25, 0 }
  0x2a   : > { %v728_v0 = vld [vmem:[%s5140_s16] sm:$0xff] (!%p4047_p7)  ;;  %v729_v1 = vld [vmem:[%s5140_s16 + $0x8] sm:$0xff] (!%p4047_p7)  ;;  %v730_v2 = vld [vmem:[%s5140_s16 + $0x10] sm:$0xff] (!%p4047_p7) }
  0x2b   : > { %727 = sbr.rel (%p4047_p7) target bundleno = 50 (0x32), region = 84  ;;  %738 = vst [vmem:[#allocation2] sm:$0xff] (!%p4047_p7), %v728_v0  ;;  %739 = vst [vmem:[#allocation2 + $0x8] sm:$0xff] (!%p4047_p7), %v729_v1  ;;  %v731_v3 = vld [vmem:[%s5140_s16 + $0x18] sm:$0xff] (!%p4047_p7)  ;;  %v732_v4 = vld [vmem:[%s5140_s16 + $0x20] sm:$0xff] (!%p4047_p7) }
  0x2c   : > { %740 = vst [vmem:[#allocation2 + $0x10] sm:$0xff] (!%p4047_p7), %v730_v2  ;;  %v733_v5 = vld [vmem:[%s5140_s16 + $0x28] sm:$0xff] (!%p4047_p7)  ;;  %741 = vst [vmem:[#allocation2 + $0x18] sm:$0xff] (!%p4047_p7), %v731_v3  ;;  %v734_v6 = vld [vmem:[%s5140_s16 + $0x30] sm:$0xff] (!%p4047_p7) }
  0x2d   : > { %742 = vst [vmem:[#allocation2 + $0x20] sm:$0xff] (!%p4047_p7), %v732_v4  ;;  %743 = vst [vmem:[#allocation2 + $0x28] sm:$0xff] (!%p4047_p7), %v733_v5  ;;  %v735_v7 = vld [vmem:[%s5140_s16 + $0x38] sm:$0xff] (!%p4047_p7)  ;;  %v736_v8 = vld [vmem:[%s5140_s16 + $0x40] sm:$0x1] (!%p4047_p7) }
  0x2e   : > { %744 = vst [vmem:[#allocation2 + $0x30] sm:$0xff] (!%p4047_p7), %v734_v6  ;;  %745 = vst [vmem:[#allocation2 + $0x38] sm:$0xff] (!%p4047_p7), %v735_v7  ;;  %v737_v9 = vld [vmem:[%s5140_s16 + $0x48] sm:$0x1] (!%p4047_p7) }
  0x2f   : > { %746 = vst [vmem:[#allocation2 + $0x40] sm:$0x1] (!%p4047_p7), %v736_v8  ;;  %747 = vst [vmem:[#allocation2 + $0x48] sm:$0x1] (!%p4047_p7), %v737_v9 }
  0x32 PF: > { %v5212_v10 = vld [vmem:[#allocation2] sm:$0xff]  ;;  %v5214_v11 = vld [vmem:[#allocation2 + $0x8] sm:$0xff]  ;;  %vm772_vm0 = vcmask 1040384   ;;  %v4483_v32 = vld [vmem:[%s5153_s13 + $0x3c] ss:$24 sps:$4 sm:$0xff]   ;;  %s6180_s16 = sld [smem:[#allocation10_spill]]  ;;  %s6182_s0 = scalar_lea.vmem %s6139_s2, %s5135_s27 }
  0x33   : > { %v760_v13 = vadd.f32 %v5214_v11, %v5212_v10  ;;  %v5222_v15 = vld [vmem:[#allocation2 + $0x10] sm:$0xff]  ;;  %v5224_v16 = vld [vmem:[#allocation2 + $0x18] sm:$0xff]  ;;  %v4477_v29 = vld [vmem:[%s5153_s13 + $0xc] ss:$24 sps:$4 sm:$0xff]   ;;  %vm5019_vm1 = vmmov 0   ;;  %vm1788_vm2 = vcmask 269312   ;;  %s6184_s18 = scalar_lea.vmem %s6144_s7, %s5135_s27  ;;  %s6185_s20 = scalar_lea.vmem %s6145_s8, %s5135_s27 }
  0x34   : > { %v5216_v12 = vld [vmem:[#allocation2 + $0x20] sm:$0xff]  ;;  %v5220_v14 = vld [vmem:[#allocation2 + $0x28] sm:$0xff]  ;;  %v763_v21 = vadd.f32 %v5224_v16, %v5222_v15  ;;  %1596 = vmatprep.subr.bf16.mxu1 %v4477_v29  ;;  %v4485_v34 = vld [vmem:[%s5153_s13 + $0x38] ss:$24 sps:$4 sm:$0xff]   ;;  %vm1801_vm3 = vcmask 262144  }
  0x35   : > { %v766_v17 = vadd.f32 %v5220_v14, %v5216_v12  ;;  %v5228_v18 = vld [vmem:[#allocation2 + $0x30] sm:$0xff]  ;;  %v5230_v19 = vld [vmem:[#allocation2 + $0x38] sm:$0xff]  ;;  %761 = vadd.xlane.f32.xlu0 %v760_v13  ;;  %v4479_v30 = vld [vmem:[%s5153_s13 + $0x8] ss:$24 sps:$4 sm:$0xff]  }
  0x36   : > { %v5232_v20 = vld [vmem:[#allocation2 + $0x40] sm:$0x1]  ;;  %v5236_v22 = vld [vmem:[#allocation2 + $0x48] sm:$0x1]  ;;  %v769_v23 = vadd.f32 %v5230_v19, %v5228_v18  ;;  %v4474_v27 = vld [vmem:[%s5153_s13 + $0x4] ss:$24 sps:$4 sm:$0xff]   ;;  %1597 = vmatpush1.bf16.msra.mxu1 %v4479_v30 }
  0x37   : > { %767 = vadd.xlane.f32.xlu1 %v766_v17  ;;  %v773_v24 = vsel %vm772_vm0, %v5232_v20, 0.0  ;;  %v774_v25 = vsel %vm772_vm0, %v5236_v22, 0.0  ;;  %v4476_v28 = vld [vmem:[%s5153_s13] ss:$24 sps:$4 sm:$0xff]   ;;  %v4480_v31 = vld [vmem:[%s5153_s13 + $0x34] ss:$24 sps:$4 sm:$0xff]   ;;  %1535 = vmatprep.subr.bf16.mxu0 %v4474_v27 }
  0x38   : > { %v775_v26 = vadd.f32 %v774_v25, %v773_v24  ;;  %1536 = vmatpush1.bf16.msra.mxu0 %v4476_v28  ;;  %v4482_v33 = vld [vmem:[%s5153_s13 + $0x30] ss:$24 sps:$4 sm:$0xff]   ;;  %1598 = vmatprep.subr.bf16.mxu1 %v4483_v32  ;;  %v4486_v35 = vld [vmem:[%s5153_s13 + $0x64] ss:$24 sps:$4 sm:$0xff]   ;;  %v4488_v37 = vld [vmem:[%s5153_s13 + $0x60] ss:$24 sps:$4 sm:$0xff]   ;;  %s6181_s17 = scalar_lea.vmem %s6180_s16, %s5135_s27 }
  0x39   : > { %764 = vadd.xlane.f32.xlu0 %v763_v21  ;;  %1537 = vmatprep.subr.bf16.mxu0 %v4480_v31  ;;  %v4489_v36 = vld [vmem:[%s5153_s13 + $0x6c] ss:$24 sps:$4 sm:$0xff]   ;;  %v4491_v38 = vld [vmem:[%s5153_s13 + $0x68] ss:$24 sps:$4 sm:$0xff]   ;;  %v4495_v40 = vld [vmem:[%s5153_s13 + $0x9c] ss:$24 sps:$4 sm:$0xff]  }
  0x3a   : > { %1599 = vmatpush1.bf16.msra.mxu1 %v4485_v34  ;;  %v4492_v39 = vld [vmem:[%s5153_s13 + $0x94] ss:$24 sps:$4 sm:$0xff]   ;;  %v4494_v41 = vld [vmem:[%s5153_s13 + $0x90] ss:$24 sps:$4 sm:$0xff]   ;;  %v4498_v43 = vld [vmem:[%s5153_s13 + $0xc4] ss:$24 sps:$4 sm:$0xff]  }
  0x3b   : > { %770 = vadd.xlane.f32.xlu1 %v769_v23  ;;  %1600 = vmatprep.subr.bf16.mxu1 %v4489_v36  ;;  %v4497_v42 = vld [vmem:[%s5153_s13 + $0x98] ss:$24 sps:$4 sm:$0xff]   ;;  %v4501_v44 = vld [vmem:[%s5153_s13 + $0xcc] ss:$24 sps:$4 sm:$0xff]   ;;  %v4503_v46 = vld [vmem:[%s5153_s13 + $0xc8] ss:$24 sps:$4 sm:$0xff]  }
  0x3c   : > { %1538 = vmatpush1.bf16.msra.mxu0 %v4482_v33  ;;  %v4500_v45 = vld [vmem:[%s5153_s13 + $0xc0] ss:$24 sps:$4 sm:$0xff]   ;;  %v4504_v47 = vld [vmem:[%s5153_s13 + $0xf4] ss:$24 sps:$4 sm:$0xff]   ;;  %v4506_v49 = vld [vmem:[%s5153_s13 + $0xf0] ss:$24 sps:$4 sm:$0xff]  }
  0x3d   : > { %776 = vadd.xlane.f32.xlu0 %v775_v26  ;;  %1539 = vmatprep.subr.bf16.mxu0 %v4486_v35  ;;  %v4507_v48 = vld [vmem:[%s5153_s13 + $0xfc] ss:$24 sps:$4 sm:$0xff]   ;;  %v4509_v50 = vld [vmem:[%s5153_s13 + $0xf8] ss:$24 sps:$4 sm:$0xff]   ;;  %v4513_v52 = vld [vmem:[%s5153_s13 + $0x12c] ss:$24 sps:$4 sm:$0xff]  }
  0x3e   : > { %1601 = vmatpush1.bf16.msra.mxu1 %v4491_v38  ;;  %v4510_v51 = vld [vmem:[%s5153_s13 + $0x124] ss:$24 sps:$4 sm:$0xff]   ;;  %v4512_v53 = vld [vmem:[%s5153_s13 + $0x120] ss:$24 sps:$4 sm:$0xff]   ;;  %v4516_v55 = vld [vmem:[%s5153_s13 + $0x154] ss:$24 sps:$4 sm:$0xff]  }
  0x3f   : > { %1602 = vmatprep.subr.bf16.mxu1 %v4495_v40  ;;  %v4515_v54 = vld [vmem:[%s5153_s13 + $0x128] ss:$24 sps:$4 sm:$0xff]   ;;  %v4519_v56 = vld [vmem:[%s5153_s13 + $0x15c] ss:$24 sps:$4 sm:$0xff]   ;;  %v4521_v58 = vld [vmem:[%s5153_s13 + $0x158] ss:$24 sps:$4 sm:$0xff]  }
  0x40   : > { %1540 = vmatpush1.bf16.msra.mxu0 %v4488_v37  ;;  %v4518_v57 = vld [vmem:[%s5153_s13 + $0x150] ss:$24 sps:$4 sm:$0xff]   ;;  %v4522_v59 = vld [vmem:[%s5153_s13 + $0x184] ss:$24 sps:$4 sm:$0xff]   ;;  %v4524_v61 = vld [vmem:[%s5153_s13 + $0x180] ss:$24 sps:$4 sm:$0xff]  }
  0x41   : > { %1541 = vmatprep.subr.bf16.mxu0 %v4492_v39  ;;  %v4525_v60 = vld [vmem:[%s5153_s13 + $0x18c] ss:$24 sps:$4 sm:$0xff]   ;;  %v4527_v62 = vld [vmem:[%s5153_s13 + $0x188] ss:$24 sps:$4 sm:$0xff]   ;;  %v4531_v38 = vld [vmem:[%s5153_s13 + $0x1bc] ss:$24 sps:$4 sm:$0xff]  }
  0x42   : > { %1603 = vmatpush1.bf16.msra.mxu1 %v4497_v42  ;;  %v4528_v63 = vld [vmem:[%s5153_s13 + $0x1b4] ss:$24 sps:$4 sm:$0xff]   ;;  %v4530_v37 = vld [vmem:[%s5153_s13 + $0x1b0] ss:$24 sps:$4 sm:$0xff]   ;;  %v4534_v40 = vld [vmem:[%s5153_s13 + $0x1e4] ss:$24 sps:$4 sm:$0xff]  }
  0x43   : > { %1604 = vmatprep.subr.bf16.mxu1 %v4501_v44  ;;  %v4533_v39 = vld [vmem:[%s5153_s13 + $0x1b8] ss:$24 sps:$4 sm:$0xff]   ;;  %v4537_v42 = vld [vmem:[%s5153_s13 + $0x1ec] ss:$24 sps:$4 sm:$0xff]  }
  0x44   : > { %1542 = vmatpush1.bf16.msra.mxu0 %v4494_v41  ;;  %v4536_v41 = vld [vmem:[%s5153_s13 + $0x1e0] ss:$24 sps:$4 sm:$0xff]   ;;  %v4540_v44 = vld [vmem:[%s5153_s13 + $0x214] ss:$24 sps:$4 sm:$0xff]  }
  0x45   : > { %1543 = vmatprep.subr.bf16.mxu0 %v4498_v43  ;;  %v4539_v43 = vld [vmem:[%s5153_s13 + $0x1e8] ss:$24 sps:$4 sm:$0xff]  }
  0x46   : > { %1605 = vmatpush1.bf16.msra.mxu1 %v4503_v46  ;;  %v4543_v46 = vld [vmem:[%s5153_s13 + $0x21c] ss:$24 sps:$4 sm:$0xff]  }
  0x47   : > { %1606 = vmatprep.subr.bf16.mxu1 %v4507_v48  ;;  %v4546_v48 = vld [vmem:[%s5153_s13 + $0x244] ss:$24 sps:$4 sm:$0xff]  }
  0x48   : > { %1544 = vmatpush1.bf16.msra.mxu0 %v4500_v45  ;;  %v4542_v45 = vld [vmem:[%s5153_s13 + $0x210] ss:$24 sps:$4 sm:$0xff]  }
  0x49   : > { %1545 = vmatprep.subr.bf16.mxu0 %v4504_v47  ;;  %v4545_v47 = vld [vmem:[%s5153_s13 + $0x218] ss:$24 sps:$4 sm:$0xff]  }
  0x4a   : > { %1607 = vmatpush1.bf16.msra.mxu1 %v4509_v50  ;;  %v4549_v50 = vld [vmem:[%s5153_s13 + $0x24c] ss:$24 sps:$4 sm:$0xff]  }
  0x4b   : > { %1608 = vmatprep.subr.bf16.mxu1 %v4513_v52  ;;  %v4552_v52 = vld [vmem:[%s5153_s13 + $0x274] ss:$24 sps:$4 sm:$0xff]  }
  0x4c   : > { %1546 = vmatpush1.bf16.msra.mxu0 %v4506_v49  ;;  %v4548_v49 = vld [vmem:[%s5153_s13 + $0x240] ss:$24 sps:$4 sm:$0xff]  }
  0x4d   : > { %1547 = vmatprep.subr.bf16.mxu0 %v4510_v51  ;;  %v4551_v51 = vld [vmem:[%s5153_s13 + $0x248] ss:$24 sps:$4 sm:$0xff]  }
  0x4e   : > { %1609 = vmatpush1.bf16.msra.mxu1 %v4515_v54  ;;  %v4555_v54 = vld [vmem:[%s5153_s13 + $0x27c] ss:$24 sps:$4 sm:$0xff]  }
  0x4f   : > { %1610 = vmatprep.subr.bf16.mxu1 %v4519_v56  ;;  %v4558_v56 = vld [vmem:[%s5153_s13 + $0x2a4] ss:$24 sps:$4 sm:$0xff]  }
  0x50   : > { %1548 = vmatpush1.bf16.msra.mxu0 %v4512_v53  ;;  %v4554_v53 = vld [vmem:[%s5153_s13 + $0x270] ss:$24 sps:$4 sm:$0xff]  }
  0x51   : > { %1549 = vmatprep.subr.bf16.mxu0 %v4516_v55  ;;  %v4557_v55 = vld [vmem:[%s5153_s13 + $0x278] ss:$24 sps:$4 sm:$0xff]  }
  0x52   : > { %1611 = vmatpush1.bf16.msra.mxu1 %v4521_v58  ;;  %v4560_v58 = vld [vmem:[%s5153_s13 + $0x2a0] ss:$24 sps:$4 sm:$0xff]  }
  0x53   : > { %1612 = vmatprep.subr.bf16.mxu1 %v4525_v60  ;;  %v4564_v60 = vld [vmem:[%s5153_s13 + $0x2d4] ss:$24 sps:$4 sm:$0xff]  }
  0x54   : > { %1550 = vmatpush1.bf16.msra.mxu0 %v4518_v57  ;;  %v4561_v57 = vld [vmem:[%s5153_s13 + $0x2ac] ss:$24 sps:$4 sm:$0xff]  }
  0x55   : > { %1551 = vmatprep.subr.bf16.mxu0 %v4522_v59  ;;  %v4563_v59 = vld [vmem:[%s5153_s13 + $0x2a8] ss:$24 sps:$4 sm:$0xff]  }
  0x56   : > { %1613 = vmatpush1.bf16.msra.mxu1 %v4527_v62  ;;  %v4566_v62 = vld [vmem:[%s5153_s13 + $0x2d0] ss:$24 sps:$4 sm:$0xff]  }
  0x57   : > { %1614 = vmatprep.subr.bf16.mxu1 %v4531_v38 }
  0x58   : > { %1552 = vmatpush1.bf16.msra.mxu0 %v4524_v61  ;;  %v4567_v61 = vld [vmem:[%s5153_s13 + $0x2dc] ss:$24 sps:$4 sm:$0xff]  }
  0x59   : > { %1553 = vmatprep.subr.bf16.mxu0 %v4528_v63  ;;  %v4569_v63 = vld [vmem:[%s5153_s13 + $0x2d8] ss:$24 sps:$4 sm:$0xff]  }
  0x5a   : > { %1615 = vmatpush1.bf16.msra.mxu1 %v4533_v39 }
  0x5b   : > { %1616 = vmatprep.subr.bf16.mxu1 %v4537_v42 }
  0x5c   : > { %1554 = vmatpush1.bf16.msra.mxu0 %v4530_v37 }
  0x5d   : > { %1555 = vmatprep.subr.bf16.mxu0 %v4534_v40 }
  0x5e   : > { %1617 = vmatpush1.bf16.msra.mxu1 %v4539_v43 }
  0x5f   : > { %1618 = vmatprep.subr.bf16.mxu1 %v4543_v46 }
  0x60   : > { %1556 = vmatpush1.bf16.msra.mxu0 %v4536_v41 }
  0x61   : > { %1557 = vmatprep.subr.bf16.mxu0 %v4540_v44 }
  0x62   : > { %1619 = vmatpush1.bf16.msra.mxu1 %v4545_v47 }
  0x63   : > { %1620 = vmatprep.subr.bf16.mxu1 %v4549_v50 }
  0x64   : > { %1558 = vmatpush1.bf16.msra.mxu0 %v4542_v45 }
  0x65   : > { %1559 = vmatprep.subr.bf16.mxu0 %v4546_v48 }
  0x66   : > { %1621 = vmatpush1.bf16.msra.mxu1 %v4551_v51 }
  0x67   : > { %1622 = vmatprep.subr.bf16.mxu1 %v4555_v54 }
  0x68   : > { %1560 = vmatpush1.bf16.msra.mxu0 %v4548_v49 }
  0x69   : > { %1561 = vmatprep.subr.bf16.mxu0 %v4552_v52 }
  0x6a   : > { %1623 = vmatpush1.bf16.msra.mxu1 %v4557_v55 }
  0x6b   : > { %1624 = vmatprep.subr.bf16.mxu1 %v4561_v57 }
  0x6c   : > { %1562 = vmatpush1.bf16.msra.mxu0 %v4554_v53 }
  0x6d   : > { %1563 = vmatprep.subr.bf16.mxu0 %v4558_v56  ;;  %v4570_v56 = vld [vmem:[%s5153_s13 + $0x10] ss:$24 sps:$4 sm:$0xff]  }
  0x6e   : > { %1625 = vmatpush1.bf16.msra.mxu1 %v4563_v59 }
  0x6f   : > { %1626 = vmatprep.subr.bf16.mxu1 %v4567_v61  ;;  %v4573_v61 = vld [vmem:[%s5153_s13 + $0x40] ss:$24 sps:$4 sm:$0xff]  }
  0x70   : > { %1564 = vmatpush1.bf16.msra.mxu0 %v4560_v58 }
  0x71   : > { %1565 = vmatprep.subr.bf16.mxu0 %v4564_v60 }
  0x72   : > { %1627 = vmatpush1.bf16.msra.mxu1 %v4569_v63 }
  0x74   : > { %1566 = vmatpush1.bf16.msra.mxu0 %v4566_v62  ;;  %v4578_v62 = vld [vmem:[%s5153_s13 + $0x74] ss:$24 sps:$4 sm:$0xff]  }
  0xc2   : > { %v762_v0 = vpop.xlane.xlu0 %761 }
  0xc3   : > { %v779_v1 = vmul.f32 0.00390625, %v762_v0  ;;  %v4572_v0 = vld [vmem:[%s5153_s13 + $0x14] ss:$24 sps:$4 sm:$0xff]  }
  0xc4   : > { %v768_v2 = vpop.xlane.xlu1 %767  ;;  %1657 = vmatprep.subr.bf16.mxu0 %v4572_v0 }
  0xc5   : > { %v781_v3 = vmul.f32 0.00390625, %v768_v2  ;;  %v5282_v4 = vsub.f32 %v5212_v10, %v779_v1  ;;  %v5285_v5 = vsub.f32 %v5214_v11, %v779_v1 }
  0xc6   : > { %v765_v8 = vpop.xlane.xlu0 %764 }
  0xc7   : > { %v5288_v6 = vsub.f32 %v5216_v12, %v781_v3  ;;  %v5291_v7 = vsub.f32 %v5220_v14, %v781_v3  ;;  %v780_v9 = vmul.f32 0.00390625, %v765_v8  ;;  %v794_v17 = vmul.f32 %v5282_v4, %v5282_v4 }
  0xc8   : > { %v771_v13 = vpop.xlane.xlu1 %770  ;;  %v795_v21 = vmul.f32 %v5285_v5, %v5285_v5 }
  0xc9   : > { %v782_v10 = vmul.f32 0.00390625, %v771_v13  ;;  %v798_v11 = vmul.f32 %v5288_v6, %v5288_v6  ;;  %v799_v12 = vmul.f32 %v5291_v7, %v5291_v7  ;;  %v5302_v23 = vsub.f32 %v5222_v15, %v780_v9 }
  0xca   : > { %v5305_v14 = vsub.f32 %v5224_v16, %v780_v9  ;;  %v804_v24 = vadd.f32 %v795_v21, %v794_v17  ;;  %v777_v27 = vpop.xlane.xlu0 %776  ;;  %v847_v13 = vlaneseq }
  0xcb   : > { %v5308_v25 = vsub.f32 %v5228_v18, %v782_v10  ;;  %v5311_v26 = vsub.f32 %v5230_v19, %v782_v10  ;;  %v783_v28 = vmul.f32 0.00390625, %v777_v27  ;;  %v810_v29 = vadd.f32 %v799_v12, %v798_v11 }
  0xcc   : > { %805 = vadd.xlane.f32.xlu1 %v804_v24  ;;  %v796_v30 = vmul.f32 %v5302_v23, %v5302_v23  ;;  %v797_v15 = vmul.f32 %v5305_v14, %v5305_v14  ;;  %v5361_v24 = vshrl.u32 %v847_v13, 7 }
  0xcd   : > { %v800_v16 = vmul.f32 %v5308_v25, %v5308_v25  ;;  %v801_v18 = vmul.f32 %v5311_v26, %v5311_v26  ;;  %v5322_v19 = vsub.f32 %v5232_v20, %v783_v28  ;;  %v5325_v31 = vsub.f32 %v5236_v22, %v783_v28 }
  0xce   : > { %v807_v32 = vadd.f32 %v797_v15, %v796_v30 }
  0xcf   : > { %v813_v33 = vadd.f32 %v801_v18, %v800_v16  ;;  %v802_v34 = vmul.f32 %v5322_v19, %v5322_v19  ;;  %v803_v35 = vmul.f32 %v5325_v31, %v5325_v31  ;;  %v5364_v16 = vsub.s32 1, %v5361_v24  ;;  %v758_v18 = vld [vmem:[%s6181_s17] sm:$0x3] }
  0xd0   : > { %811 = vadd.xlane.f32.xlu1 %v810_v29  ;;  %808 = vadd.xlane.f32.xlu0 %v807_v32  ;;  %v5372_v32 = vsub.s32 0, %v5361_v24 }
  0xd1   : > { %v816_v20 = vsel %vm772_vm0, %v802_v34, 0.0  ;;  %v817_v36 = vsel %vm772_vm0, %v803_v35, 0.0  ;;  %v854_v35 = vrot.slane %v758_v18, %v5364_v16 }
  0xd2   : > { %v818_v22 = vadd.f32 %v817_v36, %v816_v20  ;;  %v759_v20 = vld [vmem:[%s6182_s0] sm:$0x3] }
  0xd3   : > { %v875_v40 = vrot.slane %v759_v20, %v5364_v16  ;;  %v871_v44 = vrot.slane %v759_v20, %v5372_v32  ;;  %v4597_v20 = vld [vmem:[%s5153_s13 + $0x1c0] ss:$24 sps:$4 sm:$0xff]  }
  0xd4   : > { %814 = vadd.xlane.f32.xlu0 %v813_v33  ;;  %819 = vadd.xlane.f32.xlu1 %v818_v22  ;;  %v850_v22 = vrot.slane %v758_v18, %v5372_v32  ;;  %v4591_v18 = vld [vmem:[%s5153_s13 + $0x160] ss:$24 sps:$4 sm:$0xff]  }
 0x159   : > { %v806_v1 = vpop.xlane.xlu1 %805 }
 0x15a   : > { %v821_v2 = vmul.f32 0.00390625, %v806_v1 }
 0x15c   : > { %v826_v3 = vadd.f32 1e-05, %v821_v2 }
 0x15d   : > { %v812_v8 = vpop.xlane.xlu1 %811  ;;  %v809_v9 = vpop.xlane.xlu0 %808 }
 0x15e   : > { %4858 = vrsqrt.f32 %v826_v3  ;;  %v823_v17 = vmul.f32 0.00390625, %v812_v8  ;;  %v822_v21 = vmul.f32 0.00390625, %v809_v9  ;;  %v4576_v3 = vld [vmem:[%s5153_s13 + $0x70] ss:$24 sps:$4 sm:$0xff]   ;;  %v4581_v9 = vld [vmem:[%s5153_s13 + $0xa4] ss:$24 sps:$4 sm:$0xff]  }
 0x160   : > { %v828_v10 = vadd.f32 1e-05, %v823_v17  ;;  %v827_v11 = vadd.f32 1e-05, %v822_v21  ;;  %v4584_v21 = vld [vmem:[%s5153_s13 + $0xd4] ss:$24 sps:$4 sm:$0xff]  }
 0x161   : > { %v815_v12 = vpop.xlane.xlu0 %814  ;;  %v820_v28 = vpop.xlane.xlu1 %819 }
 0x162   : > { %4860 = vrsqrt.f32 %v828_v10  ;;  %v824_v27 = vmul.f32 0.00390625, %v815_v12  ;;  %v825_v29 = vmul.f32 0.00390625, %v820_v28  ;;  %v4585_v28 = vld [vmem:[%s5153_s13 + $0x100] ss:$24 sps:$4 sm:$0xff]  }
 0x163   : > { %4862 = vrsqrt.f32 %v827_v11  ;;  %v4582_v11 = vld [vmem:[%s5153_s13 + $0xd0] ss:$24 sps:$4 sm:$0xff]  }
 0x164   : > { %v829_v30 = vadd.f32 1e-05, %v824_v27  ;;  %v830_v15 = vadd.f32 1e-05, %v825_v29  ;;  %v4587_v27 = vld [vmem:[%s5153_s13 + $0x104] ss:$24 sps:$4 sm:$0xff]  }
 0x165   : > { %v4590_v29 = vld [vmem:[%s5153_s13 + $0x134] ss:$24 sps:$4 sm:$0xff]  }
 0x166   : > { %4864 = vrsqrt.f32 %v829_v30  ;;  %v4588_v30 = vld [vmem:[%s5153_s13 + $0x130] ss:$24 sps:$4 sm:$0xff]  }
 0x167   : > { %4866 = vrsqrt.f32 %v830_v15  ;;  %v4593_v15 = vld [vmem:[%s5153_s13 + $0x164] ss:$24 sps:$4 sm:$0xff]  }
 0x168   : > { %v4859_v33 = vpop.eup %4858 }
 0x169   : > { %v837_v34 = vmul.f32 %v4859_v33, %v5285_v5  ;;  %v836_v36 = vmul.f32 %v4859_v33, %v5282_v4  ;;  %v4596_v33 = vld [vmem:[%s5153_s13 + $0x194] ss:$24 sps:$4 sm:$0xff]  }
 0x16b   : > { %v858_v39 = vmul.f32 %v854_v35, %v837_v34  ;;  %v857_v43 = vmul.f32 %v850_v22, %v836_v36  ;;  %v4594_v34 = vld [vmem:[%s5153_s13 + $0x190] ss:$24 sps:$4 sm:$0xff]   ;;  %v4602_v36 = vld [vmem:[%s5153_s13 + $0x1f4] ss:$24 sps:$4 sm:$0xff]  }
 0x16c   : > { %v4861_v37 = vpop.eup %4860 }
 0x16d   : > { %v4863_v38 = vpop.eup %4862  ;;  %v841_v41 = vmul.f32 %v4861_v37, %v5291_v7  ;;  %v879_v48 = vadd.f32 %v875_v40, %v858_v39  ;;  %v878_v52 = vadd.f32 %v871_v44, %v857_v43  ;;  %v840_v54 = vmul.f32 %v4861_v37, %v5288_v6  ;;  %v4605_v37 = vld [vmem:[%s5153_s13 + $0x224] ss:$24 sps:$4 sm:$0xff]   ;;  %v4608_v39 = vld [vmem:[%s5153_s13 + $0x254] ss:$24 sps:$4 sm:$0xff]   ;;  %v4612_v43 = vld [vmem:[%s5153_s13 + $0x2b0] ss:$24 sps:$4 sm:$0xff]  }
 0x16e   : > { %v839_v5 = vmul.f32 %v4863_v38, %v5305_v14  ;;  %v838_v42 = vmul.f32 %v4863_v38, %v5302_v23  ;;  %v4603_v38 = vld [vmem:[%s5153_s13 + $0x220] ss:$24 sps:$4 sm:$0xff]  }
 0x16f   : > { %v862_v50 = vmul.f32 %v854_v35, %v841_v41  ;;  %v861_v6 = vmul.f32 %v850_v22, %v840_v54  ;;  %v4611_v41 = vld [vmem:[%s5153_s13 + $0x284] ss:$24 sps:$4 sm:$0xff]  }
 0x170   : > { %v4865_v45 = vpop.eup %4864  ;;  %v860_v46 = vmul.f32 %v854_v35, %v839_v5  ;;  %v859_v4 = vmul.f32 %v850_v22, %v838_v42  ;;  %v4609_v5 = vld [vmem:[%s5153_s13 + $0x280] ss:$24 sps:$4 sm:$0xff]   ;;  %v4614_v42 = vld [vmem:[%s5153_s13 + $0x2b4] ss:$24 sps:$4 sm:$0xff]  }
 0x171   : > { %v4867_v47 = vpop.eup %4866  ;;  %v843_v49 = vmul.f32 %v4865_v45, %v5311_v26  ;;  %v842_v51 = vmul.f32 %v4865_v45, %v5308_v25  ;;  %v883_v58 = vadd.f32 %v875_v40, %v862_v50  ;;  %v4575_v25 = vld [vmem:[%s5153_s13 + $0x44] ss:$24 sps:$4 sm:$0xff]   ;;  %v882_v2 = vadd.f32 %v871_v44, %v861_v6  ;;  %v4615_v45 = vld [vmem:[%s5153_s13 + $0x2e0] ss:$24 sps:$4 sm:$0xff]  }
 0x172   : > { %v881_v7 = vadd.f32 %v875_v40, %v860_v46  ;;  %v880_v14 = vadd.f32 %v871_v44, %v859_v4  ;;  %v845_v23 = vmul.f32 %v4867_v47, %v5325_v31  ;;  %v844_v0 = vmul.f32 %v4867_v47, %v5322_v19  ;;  %v4579_v19 = vld [vmem:[%s5153_s13 + $0xa0] ss:$24 sps:$4 sm:$0xff]  }
 0x173   : > { %v864_v53 = vmul.f32 %v854_v35, %v843_v49  ;;  %v863_v59 = vmul.f32 %v850_v22, %v842_v51  ;;  %v5018_v46 = vmov 0.0   ;;  %v5448_v4 = vld [vmem:[%s5167_s21] sm:$0x3f]  ;;  %v1035_v47 = vsub.s32 2, %v5361_v24  ;;  %s6183_s21 = scalar_lea.vmem %s6143_s6, %s5135_s27 }
 0x174   : > { %v1019_v55 = vpack.c.bf16 %v881_v7, %v879_v48  ;;  %v5393_v57 = vpack.c.bf16 %v880_v14, %v878_v52  ;;  %v866_v60 = vmul.f32 %v854_v35, %v845_v23  ;;  %v865_v13 = vmul.f32 %v850_v22, %v844_v0  ;;  %v4599_v35 = vld [vmem:[%s5153_s13 + $0x1c4] ss:$24 sps:$4 sm:$0xff]   ;;  %v4600_v22 = vld [vmem:[%s5153_s13 + $0x1f0] ss:$24 sps:$4 sm:$0xff]   ;;  %4340 = vmatprep.subr.bf16.mxu1 %v5018_v46 }
 0x175   : > { %v885_v26 = vadd.f32 %v875_v40, %v864_v53  ;;  %v884_v63 = vadd.f32 %v871_v44, %v863_v59  ;;  %v1039_v48 = vsub.s32 3, %v5361_v24  ;;  %v5454_v49 = vrot.slane %v5448_v4, %v5372_v32 }
 0x176   : > { %1567 = vmatprep.mubr.bf16.mxu0 %v1019_v55  ;;  %1628 = vmatprep.mubr.bf16.mxu1 %v1019_v55  ;;  %v887_v1 = vadd.f32 %v875_v40, %v866_v60  ;;  %v886_v10 = vadd.f32 %v871_v44, %v865_v13  ;;  %v4606_v40 = vld [vmem:[%s5153_s13 + $0x250] ss:$24 sps:$4 sm:$0xff]   ;;  %v4617_v44 = vld [vmem:[%s5153_s13 + $0x2e4] ss:$24 sps:$4 sm:$0xff]   ;;  %v5458_v50 = vrot.slane %v5448_v4, %v5364_v16 }
 0x177   : > { %1568 = vmatmul.mubr.bf16.vlgmr.msra.gmra.mrb[0].mxu0 %v5393_v57  ;;  %1629 = vmatmul.mubr.bf16.vlgmr.msra.gmra.mrb[0].mxu1 %v5393_v57  ;;  %v5398_v31 = vpack.c.bf16 %v885_v26, %v883_v58  ;;  %v5406_v8 = vpack.c.bf16 %v884_v63, %v882_v2  ;;  %v1036_v51 = vrot.slane %v5448_v4, %v1035_v47 }
 0x178   : > { %1658 = vmatpush1.bf16.msra.mxu0 %v4570_v56  ;;  %v5409_v17 = vpack.c.bf16 %v887_v1, %v887_v1  ;;  %v1022_v12 = vpack.c.bf16 %v886_v10, %v886_v10  ;;  %v5466_v14 = vrot.slane %v5448_v4, %v1039_v48 }
 0x179   : > { %1577 = vmatprep.mubr.bf16.mxu0 %v5398_v31  ;;  %1638 = vmatprep.mubr.bf16.mxu1 %v5398_v31 }
 0x17a   : > { %1659 = vmatprep.subr.bf16.mxu0 %v4575_v25 }
 0x17c   : > { %1660 = vmatpush1.bf16.msra.mxu0 %v4573_v61 }
 0x17d   : > { %1661 = vmatprep.subr.bf16.mxu0 %v4578_v62 }
 0x17f   : > { %1578 = vmatmul.mubr.bf16.gmra.mrb[4].mxu0 %v5406_v8  ;;  %1639 = vmatmul.mubr.bf16.gmra.mrb[4].mxu1 %v5406_v8 }
 0x180   : > { %1662 = vmatpush1.bf16.msra.mxu0 %v4576_v3  ;;  %1587 = vmatprep.mubr.bf16.mxu0 %v5409_v17 }
 0x181   : > { %1648 = vmatprep.mubr.bf16.mxu1 %v5409_v17  ;;  %1663 = vmatprep.subr.bf16.mxu0 %v4581_v9 }
 0x184   : > { %1664 = vmatpush1.bf16.msra.mxu0 %v4579_v19 }
 0x185   : > { %1665 = vmatprep.subr.bf16.mxu0 %v4584_v21 }
 0x187   : > { %1588 = vmatmul.mubr.bf16.gmra.mrb[8].mxu0 %v1022_v12  ;;  %1649 = vmatmul.mubr.bf16.gmra.mrb[8].mxu1 %v1022_v12 }
 0x188   : > { %1666 = vmatpush1.bf16.msra.mxu0 %v4582_v11  ;;  %1689 = vmatprep.mubr.bf16.mxu0 %v1019_v55 }
 0x189   : > { %1667 = vmatprep.subr.bf16.mxu0 %v4587_v27  ;;  %4346 = vmatprep.mubr.msk.bf16.mxu1 %vm5019_vm1, %v5018_v46 }
 0x18c   : > { %1668 = vmatpush1.bf16.msra.mxu0 %v4585_v28 }
 0x18d   : > { %1669 = vmatprep.subr.bf16.mxu0 %v4590_v29 }
 0x190   : > { %1670 = vmatpush1.bf16.msra.mxu0 %v4588_v30 }
 0x191   : > { %1671 = vmatprep.subr.bf16.mxu0 %v4593_v15 }
 0x194   : > { %1672 = vmatpush1.bf16.msra.mxu0 %v4591_v18 }
 0x195   : > { %1673 = vmatprep.subr.bf16.mxu0 %v4596_v33 }
 0x198   : > { %1674 = vmatpush1.bf16.msra.mxu0 %v4594_v34 }
 0x199   : > { %1675 = vmatprep.subr.bf16.mxu0 %v4599_v35 }
 0x19c   : > { %1676 = vmatpush1.bf16.msra.mxu0 %v4597_v20 }
 0x19d   : > { %1677 = vmatprep.subr.bf16.mxu0 %v4602_v36 }
 0x1a0   : > { %1678 = vmatpush1.bf16.msra.mxu0 %v4600_v22 }
 0x1a1   : > { %1679 = vmatprep.subr.bf16.mxu0 %v4605_v37 }
 0x1a4   : > { %1680 = vmatpush1.bf16.msra.mxu0 %v4603_v38 }
 0x1a5   : > { %1681 = vmatprep.subr.bf16.mxu0 %v4608_v39 }
 0x1a8   : > { %1682 = vmatpush1.bf16.msra.mxu0 %v4606_v40 }
 0x1a9   : > { %1683 = vmatprep.subr.bf16.mxu0 %v4611_v41 }
 0x1ac   : > { %1684 = vmatpush1.bf16.msra.mxu0 %v4609_v5 }
 0x1ad   : > { %1685 = vmatprep.subr.bf16.mxu0 %v4614_v42 }
 0x1b0   : > { %1686 = vmatpush1.bf16.msra.mxu0 %v4612_v43 }
 0x1b1   : > { %1687 = vmatprep.subr.bf16.mxu0 %v4617_v44 }
 0x1b4   : > { %1688 = vmatpush1.bf16.msra.mxu0 %v4615_v45 }
 0x1b7   : > { %1690 = vmatmul.mubr.bf16.vlgmr.msra.gmra.mrb[12].mxu0 %v5393_v57 }
 0x1b8   : > { %1699 = vmatprep.mubr.bf16.mxu0 %v5398_v31 }
 0x1bf   : > { %1700 = vmatmul.mubr.bf16.gmra.mrb[16].mxu0 %v5406_v8 }
 0x1c0   : > { %1709 = vmatprep.mubr.bf16.mxu0 %v5409_v17 }
 0x1c7   : > { %1710 = vmatmul.mubr.bf16.gmra.mrb[20].mxu0 %v1022_v12 }
 0x24a   : > { %v1569_v7 = vpop.f32.mrb[0].mxu0  ;;  %v1630_v52 = vpop.f32.mrb[0].mxu1 }
 0x24b   : > { %v1570_v23 = vadd.f32 %v1569_v7, %v5454_v49  ;;  %v1571_v53 = vpop.f32.mrb[1].mxu0  ;;  %v1632_v54 = vpop.f32.mrb[1].mxu1  ;;  %v1631_v58 = vadd.f32 %v1630_v52, %v1036_v51 }
 0x24c   : > { %v1572_v55 = vadd.f32 %v1571_v53, %v5458_v50  ;;  %v1573_v56 = vpop.f32.mrb[2].mxu0  ;;  %v1634_v57 = vpop.f32.mrb[2].mxu1  ;;  %v5472_v31 = vadd.f32 %v1632_v54, %v5466_v14 }
 0x24d   : > { %v1574_v26 = vadd.f32 %v1573_v56, %v5454_v49  ;;  %v1635_v59 = vadd.f32 %v1634_v57, %v1036_v51  ;;  %v1575_v25 = vpop.f32.mrb[3].mxu0  ;;  %v1636_v60 = vpop.f32.mrb[3].mxu1  ;;  %v1718_v62 = vmul.f32 0.088388346, %v1570_v23  ;;  %v1043_v57 = vsub.s32 4, %v5361_v24 }
 0x24e   : > { %v1576_v6 = vadd.f32 %v1575_v25, %v5458_v50  ;;  %v5476_v61 = vadd.f32 %v1636_v60, %v5466_v14  ;;  %v5478_v1 = vmul.f32 0.088388346, %v1572_v55 }
 0x24f   : > { %v1719_v63 = vmul.f32 0.088388346, %v1574_v26  ;;  %v1726_v0 = vpack.c.bf16 %v1635_v59, %v1631_v58  ;;  %v1047_v58 = vsub.s32 5, %v5361_v24  ;;  %v1044_v26 = vrot.slane %v5448_v4, %v1043_v57 }
 0x250   : > { %v5480_v2 = vmul.f32 0.088388346, %v1576_v6  ;;  %v1926_v3 = vpack.c.bf16 %v5476_v61, %v5472_v31 }
 0x251   : > { %v1723_v8 = vpack.c.bf16 %v1719_v63, %v1718_v62  ;;  %4341 = vmatpush3.bf16.xpose.msra.mxu1 %v1726_v0  ;;  %v1048_v25 = vrot.slane %v5448_v4, %v1047_v58 }
 0x252   : > { %v1923_v9 = vpack.c.bf16 %v5480_v2, %v5478_v1  ;;  %v1579_v13 = vpop.f32.mrb[4].mxu0  ;;  %v1640_v17 = vpop.f32.mrb[4].mxu1  ;;  %4342 = vmatprep.subr.bf16.mxu1 %v5018_v46 }
 0x253   : > { %v1580_v19 = vadd.f32 %v1579_v13, %v5454_v49  ;;  %v1581_v21 = vpop.f32.mrb[5].mxu0  ;;  %v1642_v10 = vpop.f32.mrb[5].mxu1  ;;  %v1641_v28 = vadd.f32 %v1640_v17, %v1036_v51 }
 0x254   : > { %v1582_v11 = vadd.f32 %v1581_v21, %v5458_v50  ;;  %v1583_v12 = vpop.f32.mrb[6].mxu0  ;;  %v1644_v27 = vpop.f32.mrb[6].mxu1  ;;  %v5491_v33 = vadd.f32 %v1642_v10, %v5466_v14 }
 0x255   : > { %v1584_v29 = vadd.f32 %v1583_v12, %v5454_v49  ;;  %v1645_v30 = vadd.f32 %v1644_v27, %v1036_v51  ;;  %v1585_v15 = vpop.f32.mrb[7].mxu0  ;;  %v1646_v18 = vpop.f32.mrb[7].mxu1  ;;  %v1720_v20 = vmul.f32 0.088388346, %v1580_v19 }
 0x256   : > { %v1586_v34 = vadd.f32 %v1585_v15, %v5458_v50  ;;  %v5495_v35 = vadd.f32 %v1646_v18, %v5466_v14  ;;  %v5497_v37 = vmul.f32 0.088388346, %v1582_v11 }
 0x257   : > { %v1721_v36 = vmul.f32 0.088388346, %v1584_v29  ;;  %v1727_v22 = vpack.c.bf16 %v1645_v30, %v1641_v28 }
 0x258   : > { %v5499_v38 = vmul.f32 0.088388346, %v1586_v34  ;;  %v1927_v39 = vpack.c.bf16 %v5495_v35, %v5491_v33 }
 0x259   : > { %v1724_v40 = vpack.c.bf16 %v1721_v36, %v1720_v20  ;;  %4343 = vmatpush3.bf16.xpose.msra.mxu1 %v1727_v22  ;;  %v5020_v20 = vmov 0  }
 0x25a   : > { %v1924_v41 = vpack.c.bf16 %v5499_v38, %v5497_v37  ;;  %v1589_v5 = vpop.f32.mrb[8].mxu0  ;;  %v1650_v42 = vpop.f32.mrb[8].mxu1  ;;  %4344 = vmatprep.subr.bf16.mxu1 %v5018_v46  ;;  %v1858_v36 = vsel %vm772_vm0, 65535, %v5020_v20 }
 0x25b   : > { %v1651_v43 = vadd.f32 %v1650_v42, %v1036_v51  ;;  %v5506_v44 = vpop.f32.mrb[9].mxu0  ;;  %v5508_v45 = vpop.f32.mrb[9].mxu1  ;;  %v1590_v55 = vadd.f32 %v1589_v5, %v5454_v49 }
 0x25c   : > { %v1593_v7 = vpop.f32.mrb[10].mxu0  ;;  %v1654_v52 = vpop.f32.mrb[10].mxu1  ;;  %v1653_v61 = vadd.f32 %v5508_v45, %v5466_v14  ;;  %v1592_v14 = vadd.f32 %v5506_v44, %v5458_v50 }
 0x25d   : > { %v1594_v23 = vpop.f32.mrb[11].mxu0  ;;  %v1655_v53 = vpop.f32.mrb[11].mxu1  ;;  %v1728_v54 = vpack.c.bf16 %v1651_v43, %v1651_v43  ;;  %v1722_v51 = vmul.f32 0.088388346, %v1590_v55 }
 0x25e   : > { %v1922_v1 = vmul.f32 0.088388346, %v1592_v14 }
 0x25f   : > { %v1725_v56 = vpack.c.bf16 %v1722_v51, %v1722_v51 }
 0x260   : > { %v1925_v2 = vpack.c.bf16 %v1922_v1, %v1922_v1  ;;  %v4620_v1 = vld [vmem:[%s5158_s30 + $0x4] ss:$8 sps:$4 sm:$0xff]  }
 0x261   : > { %4345 = vmatpush3.bf16.xpose.msra.mxu1 %v1728_v54 }
 0x262   : > { %4358 = vmatprep.subr.bf16.mxu1 %v5018_v46 }
 0x268   : > { %4347 = vmatmul.mubr.bf16.vlgmr.msra.gmra.mrb[12].mxu1 %v1723_v8 }
 0x269   : > { %4350 = vmatprep.mubr.msk.bf16.mxu1 %vm5019_vm1, %v5018_v46 }
 0x270   : > { %4351 = vmatmul.mubr.bf16.gmra.mrb[16].mxu1 %v1724_v40 }
 0x271   : > { %4354 = vmatprep.mubr.msk.bf16.mxu1 %vm5019_vm1, %v5018_v46 }
 0x278   : > { %4355 = vmatmul.mubr.bf16.gmra.mrb[20].mxu1 %v1725_v56 }
 0x279   : > { %4364 = vmatprep.mubr.msk.bf16.mxu1 %vm5019_vm1, %v5018_v46 }
 0x28a   : > { %v1691_v59 = vpop.f32.mrb[12].mxu0 }
 0x28b   : > { %v1693_v49 = vpop.f32.mrb[13].mxu0  ;;  %v1692_v6 = vadd.f32 %v1691_v59, %v1044_v26 }
 0x28c   : > { %v1695_v60 = vpop.f32.mrb[14].mxu0  ;;  %v5522_v0 = vadd.f32 %v1693_v49, %v1048_v25 }
 0x28d   : > { %v1696_v62 = vadd.f32 %v1695_v60, %v1044_v26  ;;  %v1697_v63 = vpop.f32.mrb[15].mxu0 }
 0x28e   : > { %v5524_v8 = vadd.f32 %v1697_v63, %v1048_v25 }
 0x28f   : > { %v1729_v13 = vpack.c.bf16 %v1696_v62, %v1692_v6 }
 0x290   : > { %v1929_v17 = vpack.c.bf16 %v5524_v8, %v5522_v0 }
 0x291   : > { %4359 = vmatpush3.bf16.msra.mxu1 %v1729_v13 }
 0x292   : > { %v1701_v19 = vpop.f32.mrb[16].mxu0  ;;  %4360 = vmatprep.subr.bf16.mxu1 %v5018_v46 }
 0x293   : > { %v1703_v21 = vpop.f32.mrb[17].mxu0  ;;  %v1702_v4 = vadd.f32 %v1701_v19, %v1044_v26 }
 0x294   : > { %v1705_v10 = vpop.f32.mrb[18].mxu0  ;;  %v5529_v27 = vadd.f32 %v1703_v21, %v1048_v25 }
 0x295   : > { %v1706_v11 = vadd.f32 %v1705_v10, %v1044_v26  ;;  %v1707_v12 = vpop.f32.mrb[19].mxu0 }
 0x296   : > { %v5531_v28 = vadd.f32 %v1707_v12, %v1048_v25 }
 0x297   : > { %v1730_v29 = vpack.c.bf16 %v1706_v11, %v1702_v4 }
 0x298   : > { %v1930_v30 = vpack.c.bf16 %v5531_v28, %v5529_v27 }
 0x299   : > { %4361 = vmatpush3.bf16.msra.mxu1 %v1730_v29 }
 0x29a   : > { %v1711_v15 = vpop.f32.mrb[20].mxu0  ;;  %4362 = vmatprep.subr.bf16.mxu1 %v5018_v46 }
 0x29b   : > { %v1712_v18 = vadd.f32 %v1711_v15, %v1044_v26  ;;  %v1713_v34 = vpop.f32.mrb[21].mxu0 }
 0x29c   : > { %v1714_v22 = vadd.f32 %v1713_v34, %v1048_v25  ;;  %v1715_v40 = vpop.f32.mrb[22].mxu0 }
 0x29d   : > { %v1731_v5 = vpack.c.bf16 %v1712_v18, %v1712_v18  ;;  %v1716_v42 = vpop.f32.mrb[23].mxu0 }
 0x29e   : > { %v1931_v43 = vpack.c.bf16 %v1714_v22, %v1714_v22 }
 0x29f   : > { %v1860_v7 = vand.u32 %v1858_v36, %v1731_v5 }
 0x2a0   : > { %v5537_v52 = vand.u32 %v1931_v43, %v1858_v36 }
 0x2a1   : > { %4363 = vmatpush3.bf16.msra.mxu1 %v1860_v7 }
 0x2a2   : > { %4376 = vmatprep.subr.bf16.mxu1 %v5018_v46 }
 0x33b   : > { %v1766_v23 = vpop.f32.mrb[12].mxu1 }
 0x33c   : > { %v4348_v53 = vpop.f32.mrb[13].mxu1  ;;  %v1789_v54 = vsel %vm1788_vm2, %v1766_v23, -inf }
 0x33d   : > { %1790 = vmax.xlane.f32.xlu0 %v1789_v54  ;;  %v1769_v55 = vpop.f32.mrb[14].mxu1 }
 0x33e   : > { %v4349_v51 = vpop.f32.mrb[15].mxu1  ;;  %v1792_v56 = vsel %vm1788_vm2, %v1769_v55, -inf }
 0x33f   : > { %1793 = vmax.xlane.f32.xlu1 %v1792_v56 }
 0x343   : > { %v1774_v57 = vpop.f32.mrb[16].mxu1 }
 0x344   : > { %v4352_v58 = vpop.f32.mrb[17].mxu1  ;;  %v1795_v26 = vsel %vm1788_vm2, %v1774_v57, -inf }
 0x345   : > { %1796 = vmax.xlane.f32.xlu0 %v1795_v26  ;;  %v1777_v59 = vpop.f32.mrb[18].mxu1 }
 0x346   : > { %v4353_v25 = vpop.f32.mrb[19].mxu1  ;;  %v1798_v49 = vsel %vm1788_vm2, %v1777_v59, -inf }
 0x347   : > { %1799 = vmax.xlane.f32.xlu1 %v1798_v49 }
 0x34b   : > { %v1782_v60 = vpop.f32.mrb[20].mxu1 }
 0x34c   : > { %v4356_v6 = vpop.f32.mrb[21].mxu1  ;;  %v1802_v62 = vsel %vm1801_vm3, %v1782_v60, -inf }
 0x34d   : > { %1803 = vmax.xlane.f32.xlu0 %v1802_v62  ;;  %v1785_v63 = vpop.f32.mrb[22].mxu1 }
 0x34e   : > { %v4357_v13 = vpop.f32.mrb[23].mxu1 }
 0x3ca   : > { %v1791_v19 = vpop.xlane.xlu0 %1790 }
 0x3cb   : > { %v1805_v21 = vsub.f32 %v1766_v23, %v1791_v19 }
 0x3cc   : > { %v1794_v10 = vpop.xlane.xlu1 %1793 }
 0x3cd   : > { %v1810_v4 = vmul.f32 1.442695, %v1805_v21  ;;  %v1806_v11 = vsub.f32 %v1769_v55, %v1794_v10 }
 0x3cf   : > { %4868 = vpow2.f32 %v1810_v4  ;;  %v1812_v12 = vmul.f32 1.442695, %v1806_v11 }
 0x3d1   : > { %4870 = vpow2.f32 %v1812_v12 }
 0x3d2   : > { %v1797_v29 = vpop.xlane.xlu0 %1796 }
 0x3d3   : > { %v1807_v15 = vsub.f32 %v1774_v57, %v1797_v29  ;;  %v1928_v29 = vpack.c.bf16 %v1653_v61, %v1653_v61 }
 0x3d4   : > { %v1800_v18 = vpop.xlane.xlu1 %1799 }
 0x3d5   : > { %v1814_v34 = vmul.f32 1.442695, %v1807_v15  ;;  %v1808_v20 = vsub.f32 %v1777_v59, %v1800_v18 }
 0x3d7   : > { %4872 = vpow2.f32 %v1814_v34  ;;  %v1816_v36 = vmul.f32 1.442695, %v1808_v20 }
 0x3d9   : > { %v4869_v22 = vpop.eup %4868  ;;  %4874 = vpow2.f32 %v1816_v36 }
 0x3da   : > { %v1804_v40 = vpop.xlane.xlu0 %1803  ;;  %v1820_v5 = vsel %vm1788_vm2, %v4869_v22, 0.0 }
 0x3db   : > { %v4871_v42 = vpop.eup %4870  ;;  %v1809_v43 = vsub.f32 %v1782_v60, %v1804_v40  ;;  %1821 = vadd.xlane.f32.xlu1 %v1820_v5 }
 0x3dc   : > { %v1823_v7 = vsel %vm1788_vm2, %v4871_v42, 0.0 }
 0x3dd   : > { %v1818_v23 = vmul.f32 1.442695, %v1809_v43  ;;  %1824 = vadd.xlane.f32.xlu0 %v1823_v7 }
 0x3df   : > { %4876 = vpow2.f32 %v1818_v23 }
 0x3e1   : > { %v4873_v53 = vpop.eup %4872 }
 0x3e2   : > { %v1826_v54 = vsel %vm1788_vm2, %v4873_v53, 0.0 }
 0x3e3   : > { %v4875_v55 = vpop.eup %4874  ;;  %1827 = vadd.xlane.f32.xlu1 %v1826_v54 }
 0x3e4   : > { %v1829_v51 = vsel %vm1788_vm2, %v4875_v55, 0.0 }
 0x3e5   : > { %1830 = vadd.xlane.f32.xlu0 %v1829_v51 }
 0x3e9   : > { %v4877_v56 = vpop.eup %4876 }
 0x3ea   : > { %v1832_v57 = vsel %vm1801_vm3, %v4877_v56, 0.0 }
 0x3eb   : > { %1833 = vadd.xlane.f32.xlu1 %v1832_v57 }
 0x468   : > { %v1822_v58 = vpop.xlane.xlu1 %1821 }
 0x469   : > { %4878 = vrcp.f32 %v1822_v58 }
 0x46a   : > { %v1825_v26 = vpop.xlane.xlu0 %1824 }
 0x46b   : > { %4880 = vrcp.f32 %v1825_v26 }
 0x470   : > { %v1828_v59 = vpop.xlane.xlu1 %1827 }
 0x471   : > { %4882 = vrcp.f32 %v1828_v59 }
 0x472   : > { %v1831_v25 = vpop.xlane.xlu0 %1830 }
 0x473   : > { %v4879_v49 = vpop.eup %4878  ;;  %4884 = vrcp.f32 %v1831_v25 }
 0x474   : > { %v1840_v6 = vmul.f32 %v4879_v49, %v4869_v22 }
 0x475   : > { %v4881_v60 = vpop.eup %4880 }
 0x476   : > { %v1841_v62 = vmul.f32 %v4881_v60, %v4871_v42 }
 0x478   : > { %v1845_v63 = vpack.c.bf16 %v1841_v62, %v1840_v6  ;;  %v1834_v13 = vpop.xlane.xlu1 %1833 }
 0x479   : > { %4886 = vrcp.f32 %v1834_v13 }
 0x47a   : > { %4365 = vmatmul.mubr.msk.bf16.vlgmr.msra.gmra.mrb[24].mxu1 %vm1788_vm2, %v1845_v63 }
 0x47b   : > { %v4883_v19 = vpop.eup %4882  ;;  %4377 = vmatpush3.bf16.xpose.msra.mxu1 %v1926_v3  ;;  %4368 = vmatprep.mubr.msk.bf16.mxu1 %vm5019_vm1, %v5018_v46 }
 0x47c   : > { %4378 = vmatprep.subr.bf16.mxu1 %v5018_v46  ;;  %v1842_v10 = vmul.f32 %v4883_v19, %v4873_v53 }
 0x47d   : > { %v4885_v21 = vpop.eup %4884 }
 0x47e   : > { %v1843_v4 = vmul.f32 %v4885_v21, %v4875_v55 }
 0x480   : > { %v1846_v11 = vpack.c.bf16 %v1843_v4, %v1842_v10 }
 0x482   : > { %4369 = vmatmul.mubr.msk.bf16.gmra.mrb[28].mxu1 %vm1788_vm2, %v1846_v11 }
 0x483   : > { %v4887_v12 = vpop.eup %4886  ;;  %4379 = vmatpush3.bf16.xpose.msra.mxu1 %v1927_v39  ;;  %4372 = vmatprep.mubr.msk.bf16.mxu1 %vm5019_vm1, %v5018_v46 }
 0x484   : > { %4380 = vmatprep.subr.bf16.mxu1 %v5018_v46  ;;  %v1844_v31 = vmul.f32 %v4887_v12, %v4877_v56 }
 0x486   : > { %v1847_v3 = vpack.c.bf16 %v1844_v31, %v1844_v31 }
 0x48a   : > { %4373 = vmatmul.mubr.msk.bf16.gmra.mrb[32].mxu1 %vm1788_vm2, %v1847_v3 }
 0x48b   : > { %4381 = vmatpush3.bf16.xpose.msra.mxu1 %v1928_v29  ;;  %4382 = vmatprep.mubr.msk.bf16.mxu1 %vm5019_vm1, %v5018_v46 }
 0x48c   : > { %4394 = vmatprep.subr.bf16.mxu1 %v5018_v46 }
 0x492   : > { %4383 = vmatmul.mubr.bf16.vlgmr.msra.gmra.mrb[36].mxu1 %v1923_v9 }
 0x493   : > { %4395 = vmatpush3.bf16.msra.mxu1 %v1929_v17  ;;  %4386 = vmatprep.mubr.msk.bf16.mxu1 %vm5019_vm1, %v5018_v46 }
 0x494   : > { %4396 = vmatprep.subr.bf16.mxu1 %v5018_v46 }
 0x497   : > { %4397 = vmatpush3.bf16.msra.mxu1 %v1930_v30 }
 0x498   : > { %4398 = vmatprep.subr.bf16.mxu1 %v5018_v46 }
 0x49a   : > { %4387 = vmatmul.mubr.bf16.gmra.mrb[40].mxu1 %v1924_v41 }
 0x49b   : > { %4399 = vmatpush3.bf16.msra.mxu1 %v5537_v52  ;;  %4390 = vmatprep.mubr.msk.bf16.mxu1 %vm5019_vm1, %v5018_v46 }
 0x49c   : > { %2291 = vmatprep.subr.bf16.mxu1 %v4620_v1 }
 0x4a2   : > { %4391 = vmatmul.mubr.bf16.gmra.mrb[44].mxu1 %v1925_v2 }
 0x4a3   : > { %4400 = vmatprep.mubr.msk.bf16.mxu1 %vm5019_vm1, %v5018_v46 }
 0x54d   : > { %v5593_v9 = vpop.f32.mrb[24].mxu1 }
 0x54e   : > { %v4366_v50 = vpop.f32.mrb[25].mxu1 }
 0x54f   : > { %v5595_v33 = vpop.f32.mrb[26].mxu1 }
 0x550   : > { %v2114_v35 = vpack.c.bf16 %v5595_v33, %v5593_v9  ;;  %v4367_v37 = vpop.f32.mrb[27].mxu1  ;;  %v1017_v33 = vld [vmem:[%s6183_s21] sm:$0x3] }
 0x555   : > { %v5599_v38 = vpop.f32.mrb[28].mxu1 }
 0x556   : > { %v4370_v39 = vpop.f32.mrb[29].mxu1 }
 0x557   : > { %v5601_v41 = vpop.f32.mrb[30].mxu1 }
 0x558   : > { %v2116_v44 = vpack.c.bf16 %v5601_v41, %v5599_v38  ;;  %v4371_v45 = vpop.f32.mrb[31].mxu1  ;;  %v2128_v38 = vrot.slane %v1017_v33, %v5364_v16 }
 0x55d   : > { %v5605_v0 = vpop.f32.mrb[32].mxu1 }
 0x55e   : > { %v4374_v8 = vpop.f32.mrb[33].mxu1  ;;  %v2118_v9 = vpack.c.bf16 %v5605_v0, %v5605_v0 }
 0x55f   : > { %v1915_v17 = vpop.f32.mrb[34].mxu1 }
 0x560   : > { %v4375_v27 = vpop.f32.mrb[35].mxu1 }
 0x565   : > { %v1966_v28 = vpop.f32.mrb[36].mxu1 }
 0x566   : > { %v4384_v30 = vpop.f32.mrb[37].mxu1  ;;  %v1988_v52 = vsel %vm1788_vm2, %v1966_v28, -inf }
 0x567   : > { %1989 = vmax.xlane.f32.xlu0 %v1988_v52  ;;  %v1969_v15 = vpop.f32.mrb[38].mxu1 }
 0x568   : > { %v4385_v18 = vpop.f32.mrb[39].mxu1  ;;  %v1991_v34 = vsel %vm1788_vm2, %v1969_v15, -inf }
 0x569   : > { %1992 = vmax.xlane.f32.xlu1 %v1991_v34  ;;  %v4621_v34 = vld [vmem:[%s5158_s30 + $0x10] ss:$8 sps:$4 sm:$0xff]  }
 0x56d   : > { %v1974_v20 = vpop.f32.mrb[40].mxu1 }
 0x56e   : > { %v4388_v36 = vpop.f32.mrb[41].mxu1  ;;  %v1994_v22 = vsel %vm1788_vm2, %v1974_v20, -inf }
 0x56f   : > { %1995 = vmax.xlane.f32.xlu0 %v1994_v22  ;;  %v1977_v40 = vpop.f32.mrb[42].mxu1 }
 0x570   : > { %v4389_v5 = vpop.f32.mrb[43].mxu1  ;;  %v1997_v42 = vsel %vm1788_vm2, %v1977_v40, -inf }
 0x571   : > { %1998 = vmax.xlane.f32.xlu1 %v1997_v42  ;;  %v4624_v5 = vld [vmem:[%s5158_s30 + $0x20] ss:$8 sps:$4 sm:$0xff]  }
 0x575   : > { %v1982_v43 = vpop.f32.mrb[44].mxu1 }
 0x576   : > { %v4392_v7 = vpop.f32.mrb[45].mxu1  ;;  %v2000_v23 = vsel %vm1801_vm3, %v1982_v43, -inf }
 0x577   : > { %2001 = vmax.xlane.f32.xlu0 %v2000_v23  ;;  %v1985_v53 = vpop.f32.mrb[46].mxu1  ;;  %v4627_v23 = vld [vmem:[%s5158_s30 + $0x30] ss:$8 sps:$4 sm:$0xff]  }
 0x578   : > { %v4393_v54 = vpop.f32.mrb[47].mxu1 }
 0x579   : > { %v4632_v54 = vld [vmem:[%s5158_s30 + $0x44] ss:$8 sps:$4 sm:$0xff]  }
 0x5f4   : > { %v1990_v55 = vpop.xlane.xlu0 %1989 }
 0x5f5   : > { %v2003_v51 = vsub.f32 %v1966_v28, %v1990_v55  ;;  %v4618_v28 = vld [vmem:[%s5158_s30] ss:$8 sps:$4 sm:$0xff]  }
 0x5f6   : > { %v1993_v56 = vpop.xlane.xlu1 %1992  ;;  %v4630_v55 = vld [vmem:[%s5158_s30 + $0x40] ss:$8 sps:$4 sm:$0xff]  }
 0x5f7   : > { %v2008_v57 = vmul.f32 1.442695, %v2003_v51  ;;  %v2004_v58 = vsub.f32 %v1969_v15, %v1993_v56  ;;  %v4623_v15 = vld [vmem:[%s5158_s30 + $0x14] ss:$8 sps:$4 sm:$0xff]  }
 0x5f8   : > { %v4635_v56 = vld [vmem:[%s5158_s30 + $0x54] ss:$8 sps:$4 sm:$0xff]  }
 0x5f9   : > { %4888 = vpow2.f32 %v2008_v57  ;;  %v2010_v26 = vmul.f32 1.442695, %v2004_v58  ;;  %v4638_v57 = vld [vmem:[%s5158_s30 + $0x64] ss:$8 sps:$4 sm:$0xff]   ;;  %v4636_v58 = vld [vmem:[%s5158_s30 + $0x60] ss:$8 sps:$4 sm:$0xff]  }
 0x5fb   : > { %4890 = vpow2.f32 %v2010_v26  ;;  %v4641_v26 = vld [vmem:[%s5158_s30 + $0x74] ss:$8 sps:$4 sm:$0xff]  }
 0x5fc   : > { %v1996_v59 = vpop.xlane.xlu0 %1995 }
 0x5fd   : > { %v2005_v25 = vsub.f32 %v1974_v20, %v1996_v59  ;;  %v4626_v20 = vld [vmem:[%s5158_s30 + $0x24] ss:$8 sps:$4 sm:$0xff]   ;;  %v4639_v59 = vld [vmem:[%s5158_s30 + $0x70] ss:$8 sps:$4 sm:$0xff]  }
 0x5fe   : > { %v1999_v49 = vpop.xlane.xlu1 %1998 }
 0x5ff   : > { %v2012_v60 = vmul.f32 1.442695, %v2005_v25  ;;  %v2006_v6 = vsub.f32 %v1977_v40, %v1999_v49  ;;  %v4644_v25 = vld [vmem:[%s5158_s30 + $0x84] ss:$8 sps:$4 sm:$0xff]   ;;  %v4642_v49 = vld [vmem:[%s5158_s30 + $0x80] ss:$8 sps:$4 sm:$0xff]  }
 0x601   : > { %4892 = vpow2.f32 %v2012_v60  ;;  %v2014_v62 = vmul.f32 1.442695, %v2006_v6  ;;  %v4647_v60 = vld [vmem:[%s5158_s30 + $0x94] ss:$8 sps:$4 sm:$0xff]   ;;  %v4645_v6 = vld [vmem:[%s5158_s30 + $0x90] ss:$8 sps:$4 sm:$0xff]  }
 0x603   : > { %v4889_v63 = vpop.eup %4888  ;;  %4894 = vpow2.f32 %v2014_v62  ;;  %v4650_v62 = vld [vmem:[%s5158_s30 + $0xa4] ss:$8 sps:$4 sm:$0xff]  }
 0x604   : > { %v2002_v13 = vpop.xlane.xlu0 %2001  ;;  %v2018_v19 = vsel %vm1788_vm2, %v4889_v63, 0.0 }
 0x605   : > { %v4891_v21 = vpop.eup %4890  ;;  %v2007_v10 = vsub.f32 %v1982_v43, %v2002_v13  ;;  %2019 = vadd.xlane.f32.xlu1 %v2018_v19  ;;  %v4629_v43 = vld [vmem:[%s5158_s30 + $0x34] ss:$8 sps:$4 sm:$0xff]   ;;  %v4651_v19 = vld [vmem:[%s5158_s30 + $0xb0] ss:$8 sps:$4 sm:$0xff]  }
 0x606   : > { %v2021_v4 = vsel %vm1788_vm2, %v4891_v21, 0.0  ;;  %v4653_v13 = vld [vmem:[%s5158_s30 + $0xb4] ss:$8 sps:$4 sm:$0xff]  }
 0x607   : > { %v2016_v11 = vmul.f32 1.442695, %v2007_v10  ;;  %2022 = vadd.xlane.f32.xlu0 %v2021_v4  ;;  %v4654_v10 = vld [vmem:[%s5158_s30 + $0xc0] ss:$8 sps:$4 sm:$0xff]   ;;  %v4659_v4 = vld [vmem:[%s5158_s30 + $0xd4] ss:$8 sps:$4 sm:$0xff]  }
 0x609   : > { %4896 = vpow2.f32 %v2016_v11  ;;  %v4657_v11 = vld [vmem:[%s5158_s30 + $0xd0] ss:$8 sps:$4 sm:$0xff]  }
 0x60b   : > { %v4893_v12 = vpop.eup %4892 }
 0x60c   : > { %v2024_v31 = vsel %vm1788_vm2, %v4893_v12, 0.0 }
 0x60d   : > { %v4895_v61 = vpop.eup %4894  ;;  %2025 = vadd.xlane.f32.xlu1 %v2024_v31  ;;  %v4660_v31 = vld [vmem:[%s5158_s30 + $0xe0] ss:$8 sps:$4 sm:$0xff]  }
 0x60e   : > { %v2027_v3 = vsel %vm1788_vm2, %v4895_v61, 0.0 }
 0x60f   : > { %2028 = vadd.xlane.f32.xlu0 %v2027_v3  ;;  %v4663_v3 = vld [vmem:[%s5158_s30 + $0xf0] ss:$8 sps:$4 sm:$0xff]  }
 0x613   : > { %v4897_v29 = vpop.eup %4896 }
 0x614   : > { %v2030_v14 = vsel %vm1801_vm3, %v4897_v29, 0.0 }
 0x615   : > { %2031 = vadd.xlane.f32.xlu1 %v2030_v14 }
 0x692   : > { %v2020_v2 = vpop.xlane.xlu1 %2019 }
 0x693   : > { %4898 = vrcp.f32 %v2020_v2 }
 0x694   : > { %v2023_v50 = vpop.xlane.xlu0 %2022 }
 0x695   : > { %4900 = vrcp.f32 %v2023_v50 }
 0x69a   : > { %v2026_v37 = vpop.xlane.xlu1 %2025 }
 0x69b   : > { %4902 = vrcp.f32 %v2026_v37 }
 0x69c   : > { %v2029_v39 = vpop.xlane.xlu0 %2028 }
 0x69d   : > { %v4899_v45 = vpop.eup %4898  ;;  %4904 = vrcp.f32 %v2029_v39 }
 0x69e   : > { %v2038_v17 = vmul.f32 %v4899_v45, %v4889_v63  ;;  %v4648_v63 = vld [vmem:[%s5158_s30 + $0xa0] ss:$8 sps:$4 sm:$0xff]  }
 0x69f   : > { %v4901_v8 = vpop.eup %4900 }
 0x6a0   : > { %v2039_v27 = vmul.f32 %v4901_v8, %v4891_v21  ;;  %v4656_v21 = vld [vmem:[%s5158_s30 + $0xc4] ss:$8 sps:$4 sm:$0xff]  }
 0x6a2   : > { %v2043_v30 = vpack.c.bf16 %v2039_v27, %v2038_v17  ;;  %v2032_v52 = vpop.xlane.xlu1 %2031 }
 0x6a3   : > { %4906 = vrcp.f32 %v2032_v52 }
 0x6a4   : > { %4401 = vmatmul.mubr.msk.bf16.vlgmr.msra.gmra.mrb[48].mxu1 %vm1788_vm2, %v2043_v30 }
 0x6a5   : > { %v4903_v18 = vpop.eup %4902  ;;  %4404 = vmatprep.mubr.msk.bf16.mxu1 %vm5019_vm1, %v5018_v46  ;;  %2292 = vmatpush1.bf16.msra.mxu1 %v4618_v28 }
 0x6a6   : > { %2293 = vmatprep.subr.bf16.mxu1 %v4623_v15  ;;  %v2040_v22 = vmul.f32 %v4903_v18, %v4893_v12  ;;  %v4662_v12 = vld [vmem:[%s5158_s30 + $0xe4] ss:$8 sps:$4 sm:$0xff]  }
 0x6a7   : > { %v4905_v36 = vpop.eup %4904 }
 0x6a8   : > { %v2041_v40 = vmul.f32 %v4905_v36, %v4895_v61  ;;  %v4665_v61 = vld [vmem:[%s5158_s30 + $0xf4] ss:$8 sps:$4 sm:$0xff]   ;;  %v4958_v36 = vld [vmem:[#allocation2] sm:$0xff] }
 0x6a9   : > { %2294 = vmatpush1.bf16.msra.mxu1 %v4621_v34 }
 0x6aa   : > { %v2044_v42 = vpack.c.bf16 %v2041_v40, %v2040_v22  ;;  %2295 = vmatprep.subr.bf16.mxu1 %v4626_v20 }
 0x6ac   : > { %4405 = vmatmul.mubr.msk.bf16.gmra.mrb[52].mxu1 %vm1788_vm2, %v2044_v42 }
 0x6ad   : > { %v4907_v7 = vpop.eup %4906  ;;  %4408 = vmatprep.mubr.msk.bf16.mxu1 %vm5019_vm1, %v5018_v46  ;;  %2296 = vmatpush1.bf16.msra.mxu1 %v4624_v5  ;;  %v4633_v46 = vld [vmem:[%s5158_s30 + $0x50] ss:$8 sps:$4 sm:$0xff]   ;;  %v4959_v5 = vld [vmem:[#allocation2 + $0x8] sm:$0xff] }
 0x6ae   : > { %v2042_v53 = vmul.f32 %v4907_v7, %v4897_v29  ;;  %2297 = vmatprep.subr.bf16.mxu1 %v4629_v43  ;;  %v4960_v7 = vld [vmem:[#allocation2 + $0x10] sm:$0xff] }
 0x6b0   : > { %v2045_v51 = vpack.c.bf16 %v2042_v53, %v2042_v53  ;;  %v4961_v53 = vld [vmem:[#allocation2 + $0x18] sm:$0xff] }
 0x6b1   : > { %2298 = vmatpush1.bf16.msra.mxu1 %v4627_v23 }
 0x6b2   : > { %2299 = vmatprep.subr.bf16.mxu1 %v4632_v54 }
 0x6b4   : > { %4409 = vmatmul.mubr.msk.bf16.gmra.mrb[56].mxu1 %vm1788_vm2, %v2045_v51 }
 0x6b5   : > { %2300 = vmatpush1.bf16.msra.mxu1 %v4630_v55 }
 0x6b6   : > { %2301 = vmatprep.subr.bf16.mxu1 %v4635_v56 }
 0x6b9   : > { %2302 = vmatpush1.bf16.msra.mxu1 %v4633_v46 }
 0x6ba   : > { %2303 = vmatprep.subr.bf16.mxu1 %v4638_v57 }
 0x6bd   : > { %2304 = vmatpush1.bf16.msra.mxu1 %v4636_v58 }
 0x6be   : > { %2305 = vmatprep.subr.bf16.mxu1 %v4641_v26 }
 0x6c1   : > { %2306 = vmatpush1.bf16.msra.mxu1 %v4639_v59  ;;  %v4962_v59 = vld [vmem:[#allocation2 + $0x20] sm:$0xff] }
 0x6c2   : > { %2307 = vmatprep.subr.bf16.mxu1 %v4644_v25 }
 0x6c5   : > { %2308 = vmatpush1.bf16.msra.mxu1 %v4642_v49 }
 0x6c6   : > { %2309 = vmatprep.subr.bf16.mxu1 %v4647_v60 }
 0x6c9   : > { %2310 = vmatpush1.bf16.msra.mxu1 %v4645_v6  ;;  %v4963_v6 = vld [vmem:[#allocation2 + $0x28] sm:$0xff] }
 0x6ca   : > { %2311 = vmatprep.subr.bf16.mxu1 %v4650_v62 }
 0x6cd   : > { %2312 = vmatpush1.bf16.msra.mxu1 %v4648_v63 }
 0x6ce   : > { %2313 = vmatprep.subr.bf16.mxu1 %v4653_v13  ;;  %v4964_v13 = vld [vmem:[#allocation2 + $0x30] sm:$0xff] }
 0x6d1   : > { %2314 = vmatpush1.bf16.msra.mxu1 %v4651_v19 }
 0x6d2   : > { %2315 = vmatprep.subr.bf16.mxu1 %v4656_v21  ;;  %v4965_v21 = vld [vmem:[#allocation2 + $0x38] sm:$0xff] }
 0x6d5   : > { %2316 = vmatpush1.bf16.msra.mxu1 %v4654_v10 }
 0x6d6   : > { %2317 = vmatprep.subr.bf16.mxu1 %v4659_v4 }
 0x6d9   : > { %2318 = vmatpush1.bf16.msra.mxu1 %v4657_v11 }
 0x6da   : > { %2319 = vmatprep.subr.bf16.mxu1 %v4662_v12 }
 0x6dd   : > { %2320 = vmatpush1.bf16.msra.mxu1 %v4660_v31 }
 0x6de   : > { %2321 = vmatprep.subr.bf16.mxu1 %v4665_v61 }
 0x6e1   : > { %2322 = vmatpush1.bf16.msra.mxu1 %v4663_v3 }
 0x777   : > { %v2092_v29 = vpop.f32.mrb[48].mxu1 }
 0x778   : > { %v4402_v14 = vpop.f32.mrb[49].mxu1 }
 0x779   : > { %v2095_v1 = vpop.f32.mrb[50].mxu1  ;;  %v4966_v14 = vld [vmem:[#allocation2 + $0x40] sm:$0x1] }
 0x77a   : > { %v2115_v2 = vpack.c.bf16 %v2095_v1, %v2092_v29  ;;  %v4403_v50 = vpop.f32.mrb[51].mxu1 }
 0x77b   : > { %v4967_v50 = vld [vmem:[#allocation2 + $0x48] sm:$0x1] }
 0x77c   : > { %2323 = vmatprep.mubr.bf16.mxu1 %v2115_v2 }
 0x77d   : > { %2324 = vmatmul.mubr.bf16.vlgmr.msra.gmra.mrb[60].mxu1 %v2114_v35  ;;  %v2124_v35 = vrot.slane %v1017_v33, %v5372_v32  ;;  %v4675_v33 = vld [vmem:[%s5180_s5 + $0x28] ss:$16 sps:$4 sm:$0xff]  }
 0x77f   : > { %v2100_v37 = vpop.f32.mrb[52].mxu1 }
 0x780   : > { %v4406_v39 = vpop.f32.mrb[53].mxu1 }
 0x781   : > { %v2103_v45 = vpop.f32.mrb[54].mxu1 }
 0x782   : > { %v2117_v8 = vpack.c.bf16 %v2103_v45, %v2100_v37  ;;  %v4407_v17 = vpop.f32.mrb[55].mxu1 }
 0x783   : > { %v4666_v17 = vld [vmem:[%s5180_s5] ss:$16 sps:$4 sm:$0xff]  }
 0x784   : > { %2333 = vmatprep.mubr.bf16.mxu1 %v2117_v8 }
 0x785   : > { %2334 = vmatmul.mubr.bf16.gmra.mrb[64].mxu1 %v2116_v44 }
 0x787   : > { %v2108_v27 = vpop.f32.mrb[56].mxu1 }
 0x788   : > { %v2119_v28 = vpack.c.bf16 %v2108_v27, %v2108_v27  ;;  %v4410_v30 = vpop.f32.mrb[57].mxu1  ;;  %v4668_v27 = vld [vmem:[%s5180_s5 + $0x4] ss:$16 sps:$4 sm:$0xff]  }
 0x789   : > { %v2111_v52 = vpop.f32.mrb[58].mxu1  ;;  %v4671_v30 = vld [vmem:[%s5180_s5 + $0xc] ss:$16 sps:$4 sm:$0xff]   ;;  %2902 = vmatprep.subr.bf16.mxu0 %v4668_v27 }
 0x78a   : > { %v4411_v15 = vpop.f32.mrb[59].mxu1  ;;  %2343 = vmatprep.mubr.bf16.mxu1 %v2119_v28  ;;  %v4669_v28 = vld [vmem:[%s5180_s5 + $0x8] ss:$16 sps:$4 sm:$0xff]   ;;  %v4674_v52 = vld [vmem:[%s5180_s5 + $0x24] ss:$16 sps:$4 sm:$0xff]   ;;  %2963 = vmatprep.subr.bf16.mxu1 %v4671_v30 }
 0x78b   : > { %v4677_v15 = vld [vmem:[%s5180_s5 + $0x2c] ss:$16 sps:$4 sm:$0xff]   ;;  %2903 = vmatpush1.bf16.msra.mxu0 %v4666_v17  ;;  %2964 = vmatpush1.bf16.msra.mxu1 %v4669_v28 }
 0x78c   : > { %2904 = vmatprep.subr.bf16.mxu0 %v4674_v52  ;;  %2965 = vmatprep.subr.bf16.mxu1 %v4677_v15 }
 0x78d   : > { %2344 = vmatmul.mubr.bf16.gmra.mrb[68].mxu1 %v2118_v9  ;;  %v4672_v9 = vld [vmem:[%s5180_s5 + $0x20] ss:$16 sps:$4 sm:$0xff]  }
 0x78f   : > { %2905 = vmatpush1.bf16.msra.mxu0 %v4672_v9  ;;  %2966 = vmatpush1.bf16.msra.mxu1 %v4675_v33 }
 0x850   : > { %v2325_v41 = vpop.f32.mrb[60].mxu1 }
 0x851   : > { %v2326_v44 = vadd.f32 %v2325_v41, %v2124_v35  ;;  %v2327_v18 = vpop.f32.mrb[61].mxu1  ;;  %v4678_v41 = vld [vmem:[%s5180_s5 + $0x40] ss:$16 sps:$4 sm:$0xff]  }
 0x852   : > { %v2328_v34 = vadd.f32 %v2327_v18, %v2128_v38  ;;  %v2329_v20 = vpop.f32.mrb[62].mxu1  ;;  %v4686_v18 = vld [vmem:[%s5180_s5 + $0x64] ss:$16 sps:$4 sm:$0xff]  }
 0x853   : > { %v5671_v22 = vadd.f32 %v4958_v36, %v2326_v44  ;;  %v2330_v40 = vadd.f32 %v2329_v20, %v2124_v35  ;;  %v2331_v0 = vpop.f32.mrb[63].mxu1  ;;  %v4681_v44 = vld [vmem:[%s5180_s5 + $0x48] ss:$16 sps:$4 sm:$0xff]   ;;  %v4684_v20 = vld [vmem:[%s5180_s5 + $0x60] ss:$16 sps:$4 sm:$0xff]  }
 0x854   : > { %v5673_v42 = vadd.f32 %v4959_v5, %v2328_v34  ;;  %v2332_v43 = vadd.f32 %v2331_v0, %v2128_v38  ;;  %v4689_v34 = vld [vmem:[%s5180_s5 + $0x6c] ss:$16 sps:$4 sm:$0xff]   ;;  %v4687_v36 = vld [vmem:[%s5180_s5 + $0x68] ss:$16 sps:$4 sm:$0xff]   ;;  %v4690_v5 = vld [vmem:[%s5180_s5 + $0x80] ss:$16 sps:$4 sm:$0xff]  }
 0x855   : > { %v5675_v23 = vadd.f32 %v4960_v7, %v2330_v40  ;;  %v4692_v40 = vld [vmem:[%s5180_s5 + $0x84] ss:$16 sps:$4 sm:$0xff]   ;;  %v4695_v0 = vld [vmem:[%s5180_s5 + $0x8c] ss:$16 sps:$4 sm:$0xff]  }
 0x856   : > { %v5677_v54 = vadd.f32 %v4961_v53, %v2332_v43  ;;  %v2364_v55 = vadd.f32 %v5673_v42, %v5671_v22  ;;  %v4693_v43 = vld [vmem:[%s5180_s5 + $0x88] ss:$16 sps:$4 sm:$0xff]   ;;  %v4698_v7 = vld [vmem:[%s5180_s5 + $0xa4] ss:$16 sps:$4 sm:$0xff]   ;;  %v4701_v53 = vld [vmem:[%s5180_s5 + $0xac] ss:$16 sps:$4 sm:$0xff]  }
 0x858   : > { %v2335_v51 = vpop.f32.mrb[64].mxu1  ;;  %2365 = vadd.xlane.f32.xlu0 %v2364_v55  ;;  %v2367_v56 = vadd.f32 %v5677_v54, %v5675_v23  ;;  %v4696_v55 = vld [vmem:[%s5180_s5 + $0xa0] ss:$16 sps:$4 sm:$0xff]  }
 0x859   : > { %v2336_v46 = vadd.f32 %v2335_v51, %v2124_v35  ;;  %v2337_v57 = vpop.f32.mrb[65].mxu1  ;;  %v4699_v51 = vld [vmem:[%s5180_s5 + $0xa8] ss:$16 sps:$4 sm:$0xff]  }
 0x85a   : > { %v2338_v58 = vadd.f32 %v2337_v57, %v2128_v38  ;;  %v2339_v26 = vpop.f32.mrb[66].mxu1  ;;  %2368 = vadd.xlane.f32.xlu1 %v2367_v56  ;;  %v4704_v56 = vld [vmem:[%s5180_s5 + $0xc4] ss:$16 sps:$4 sm:$0xff]   ;;  %v4702_v57 = vld [vmem:[%s5180_s5 + $0xc0] ss:$16 sps:$4 sm:$0xff]  }
 0x85b   : > { %v5683_v25 = vadd.f32 %v4962_v59, %v2336_v46  ;;  %v2340_v49 = vadd.f32 %v2339_v26, %v2124_v35  ;;  %v2341_v60 = vpop.f32.mrb[67].mxu1  ;;  %v4707_v46 = vld [vmem:[%s5180_s5 + $0xcc] ss:$16 sps:$4 sm:$0xff]   ;;  %v4710_v26 = vld [vmem:[%s5180_s5 + $0xe4] ss:$16 sps:$4 sm:$0xff]  }
 0x85c   : > { %v5685_v62 = vadd.f32 %v4963_v6, %v2338_v58  ;;  %v2342_v63 = vadd.f32 %v2341_v60, %v2128_v38  ;;  %v4705_v58 = vld [vmem:[%s5180_s5 + $0xc8] ss:$16 sps:$4 sm:$0xff]   ;;  %v4713_v59 = vld [vmem:[%s5180_s5 + $0xec] ss:$16 sps:$4 sm:$0xff]   ;;  %v4716_v6 = vld [vmem:[%s5180_s5 + $0x104] ss:$16 sps:$4 sm:$0xff]  }
 0x85d   : > { %v5687_v19 = vadd.f32 %v4964_v13, %v2340_v49  ;;  %v4708_v49 = vld [vmem:[%s5180_s5 + $0xe0] ss:$16 sps:$4 sm:$0xff]   ;;  %v4711_v60 = vld [vmem:[%s5180_s5 + $0xe8] ss:$16 sps:$4 sm:$0xff]  }
 0x85e   : > { %v5689_v10 = vadd.f32 %v4965_v21, %v2342_v63  ;;  %v2370_v4 = vadd.f32 %v5685_v62, %v5683_v25  ;;  %v4719_v63 = vld [vmem:[%s5180_s5 + $0x10c] ss:$16 sps:$4 sm:$0xff]   ;;  %v4714_v13 = vld [vmem:[%s5180_s5 + $0x100] ss:$16 sps:$4 sm:$0xff]   ;;  %v4717_v21 = vld [vmem:[%s5180_s5 + $0x108] ss:$16 sps:$4 sm:$0xff]  }
 0x860   : > { %v2345_v11 = vpop.f32.mrb[68].mxu1  ;;  %2371 = vadd.xlane.f32.xlu0 %v2370_v4  ;;  %v2373_v12 = vadd.f32 %v5689_v10, %v5687_v19  ;;  %v4722_v4 = vld [vmem:[%s5180_s5 + $0x124] ss:$16 sps:$4 sm:$0xff]  }
 0x861   : > { %v2346_v31 = vadd.f32 %v2345_v11, %v2124_v35  ;;  %v2347_v61 = vpop.f32.mrb[69].mxu1  ;;  %v4680_v35 = vld [vmem:[%s5180_s5 + $0x44] ss:$16 sps:$4 sm:$0xff]   ;;  %v4725_v11 = vld [vmem:[%s5180_s5 + $0x12c] ss:$16 sps:$4 sm:$0xff]  }
 0x862   : > { %v2348_v3 = vadd.f32 %v2347_v61, %v2128_v38  ;;  %v2349_v29 = vpop.f32.mrb[70].mxu1  ;;  %2374 = vadd.xlane.f32.xlu1 %v2373_v12  ;;  %v4683_v38 = vld [vmem:[%s5180_s5 + $0x4c] ss:$16 sps:$4 sm:$0xff]   ;;  %2906 = vmatprep.subr.bf16.mxu0 %v4680_v35  ;;  %v4720_v12 = vld [vmem:[%s5180_s5 + $0x120] ss:$16 sps:$4 sm:$0xff]  }
 0x863   : > { %v5695_v1 = vadd.f32 %v4966_v14, %v2346_v31  ;;  %v2350_v2 = vpop.f32.mrb[71].mxu1  ;;  %2967 = vmatprep.subr.bf16.mxu1 %v4683_v38  ;;  %2907 = vmatpush1.bf16.msra.mxu0 %v4678_v41  ;;  %v4723_v31 = vld [vmem:[%s5180_s5 + $0x128] ss:$16 sps:$4 sm:$0xff]  }
 0x864   : > { %v5697_v37 = vadd.f32 %v4967_v50, %v2348_v3  ;;  %2968 = vmatpush1.bf16.msra.mxu1 %v4681_v44  ;;  %2908 = vmatprep.subr.bf16.mxu0 %v4686_v18 }
 0x865   : > { %v2376_v39 = vsel %vm772_vm0, %v5695_v1, 0.0  ;;  %2969 = vmatprep.subr.bf16.mxu1 %v4689_v34 }
 0x866   : > { %v2377_v45 = vsel %vm772_vm0, %v5697_v37, 0.0 }
 0x867   : > { %v2378_v8 = vadd.f32 %v2377_v45, %v2376_v39  ;;  %2909 = vmatpush1.bf16.msra.mxu0 %v4684_v20 }
 0x868   : > { %2970 = vmatpush1.bf16.msra.mxu1 %v4687_v36  ;;  %2910 = vmatprep.subr.bf16.mxu0 %v4692_v40 }
 0x869   : > { %2379 = vadd.xlane.f32.xlu0 %v2378_v8  ;;  %2971 = vmatprep.subr.bf16.mxu1 %v4695_v0 }
 0x86b   : > { %2911 = vmatpush1.bf16.msra.mxu0 %v4690_v5 }
 0x86c   : > { %2972 = vmatpush1.bf16.msra.mxu1 %v4693_v43  ;;  %2912 = vmatprep.subr.bf16.mxu0 %v4698_v7 }
 0x86d   : > { %2973 = vmatprep.subr.bf16.mxu1 %v4701_v53 }
 0x86f   : > { %2913 = vmatpush1.bf16.msra.mxu0 %v4696_v55 }
 0x870   : > { %2974 = vmatpush1.bf16.msra.mxu1 %v4699_v51  ;;  %2914 = vmatprep.subr.bf16.mxu0 %v4704_v56 }
 0x871   : > { %2975 = vmatprep.subr.bf16.mxu1 %v4707_v46 }
 0x873   : > { %2915 = vmatpush1.bf16.msra.mxu0 %v4702_v57 }
 0x874   : > { %2976 = vmatpush1.bf16.msra.mxu1 %v4705_v58  ;;  %2916 = vmatprep.subr.bf16.mxu0 %v4710_v26  ;;  %v4728_v58 = vld [vmem:[%s5180_s5 + $0x144] ss:$16 sps:$4 sm:$0xff]   ;;  %v4731_v26 = vld [vmem:[%s5180_s5 + $0x14c] ss:$16 sps:$4 sm:$0xff]  }
 0x875   : > { %2977 = vmatprep.subr.bf16.mxu1 %v4713_v59 }
 0x877   : > { %2917 = vmatpush1.bf16.msra.mxu0 %v4708_v49  ;;  %v4726_v49 = vld [vmem:[%s5180_s5 + $0x140] ss:$16 sps:$4 sm:$0xff]  }
 0x878   : > { %2978 = vmatpush1.bf16.msra.mxu1 %v4711_v60  ;;  %2918 = vmatprep.subr.bf16.mxu0 %v4716_v6  ;;  %v4729_v60 = vld [vmem:[%s5180_s5 + $0x148] ss:$16 sps:$4 sm:$0xff]   ;;  %v4734_v6 = vld [vmem:[%s5180_s5 + $0x164] ss:$16 sps:$4 sm:$0xff]  }
 0x879   : > { %2979 = vmatprep.subr.bf16.mxu1 %v4719_v63  ;;  %v4737_v63 = vld [vmem:[%s5180_s5 + $0x16c] ss:$16 sps:$4 sm:$0xff]  }
 0x87b   : > { %2919 = vmatpush1.bf16.msra.mxu0 %v4714_v13  ;;  %v4732_v13 = vld [vmem:[%s5180_s5 + $0x160] ss:$16 sps:$4 sm:$0xff]  }
 0x87c   : > { %2980 = vmatpush1.bf16.msra.mxu1 %v4717_v21  ;;  %2920 = vmatprep.subr.bf16.mxu0 %v4722_v4  ;;  %v4735_v21 = vld [vmem:[%s5180_s5 + $0x168] ss:$16 sps:$4 sm:$0xff]   ;;  %v4740_v4 = vld [vmem:[%s5180_s5 + $0x184] ss:$16 sps:$4 sm:$0xff]  }
 0x87d   : > { %2981 = vmatprep.subr.bf16.mxu1 %v4725_v11  ;;  %v4743_v11 = vld [vmem:[%s5180_s5 + $0x18c] ss:$16 sps:$4 sm:$0xff]  }
 0x87f   : > { %2921 = vmatpush1.bf16.msra.mxu0 %v4720_v12  ;;  %v4738_v12 = vld [vmem:[%s5180_s5 + $0x180] ss:$16 sps:$4 sm:$0xff]  }
 0x880   : > { %2982 = vmatpush1.bf16.msra.mxu1 %v4723_v31  ;;  %2922 = vmatprep.subr.bf16.mxu0 %v4728_v58  ;;  %v4741_v31 = vld [vmem:[%s5180_s5 + $0x188] ss:$16 sps:$4 sm:$0xff]  }
 0x881   : > { %2983 = vmatprep.subr.bf16.mxu1 %v4731_v26  ;;  %v2363_v26 = vld [vmem:[%s6185_s20] sm:$0x3] }
 0x883   : > { %2923 = vmatpush1.bf16.msra.mxu0 %v4726_v49 }
 0x884   : > { %2984 = vmatpush1.bf16.msra.mxu1 %v4729_v60  ;;  %2924 = vmatprep.subr.bf16.mxu0 %v4734_v6 }
 0x885   : > { %2985 = vmatprep.subr.bf16.mxu1 %v4737_v63 }
 0x887   : > { %2925 = vmatpush1.bf16.msra.mxu0 %v4732_v13  ;;  %v2473_v13 = vrot.slane %v2363_v26, %v5372_v32 }
 0x888   : > { %2986 = vmatpush1.bf16.msra.mxu1 %v4735_v21  ;;  %2926 = vmatprep.subr.bf16.mxu0 %v4740_v4  ;;  %v2477_v21 = vrot.slane %v2363_v26, %v5364_v16 }
 0x889   : > { %2987 = vmatprep.subr.bf16.mxu1 %v4743_v11 }
 0x88b   : > { %2927 = vmatpush1.bf16.msra.mxu0 %v4738_v12 }
 0x88c   : > { %2988 = vmatpush1.bf16.msra.mxu1 %v4741_v31 }
 0x8e5   : > { %v2366_v61 = vpop.xlane.xlu0 %2365 }
 0x8e6   : > { %v2381_v3 = vmul.f32 0.00390625, %v2366_v61  ;;  %v4746_v61 = vld [vmem:[%s5180_s5 + $0x1a4] ss:$16 sps:$4 sm:$0xff]  }
 0x8e7   : > { %v2369_v29 = vpop.xlane.xlu1 %2368  ;;  %2928 = vmatprep.subr.bf16.mxu0 %v4746_v61 }
 0x8e8   : > { %v5744_v14 = vsub.f32 %v5671_v22, %v2381_v3  ;;  %v5747_v2 = vsub.f32 %v5673_v42, %v2381_v3  ;;  %v2382_v50 = vmul.f32 0.00390625, %v2369_v29  ;;  %v4749_v3 = vld [vmem:[%s5180_s5 + $0x1ac] ss:$16 sps:$4 sm:$0xff]   ;;  %v4744_v29 = vld [vmem:[%s5180_s5 + $0x1a0] ss:$16 sps:$4 sm:$0xff]  }
 0x8e9   : > { %2989 = vmatprep.subr.bf16.mxu1 %v4749_v3  ;;  %2929 = vmatpush1.bf16.msra.mxu0 %v4744_v29 }
 0x8ea   : > { %v5750_v39 = vsub.f32 %v5675_v23, %v2382_v50  ;;  %v5753_v45 = vsub.f32 %v5677_v54, %v2382_v50  ;;  %v2396_v8 = vmul.f32 %v5744_v14, %v5744_v14  ;;  %v2397_v17 = vmul.f32 %v5747_v2, %v5747_v2  ;;  %v4747_v50 = vld [vmem:[%s5180_s5 + $0x1a8] ss:$16 sps:$4 sm:$0xff]  }
 0x8eb   : > { %2990 = vmatpush1.bf16.msra.mxu1 %v4747_v50 }
 0x8ec   : > { %v2406_v27 = vadd.f32 %v2397_v17, %v2396_v8  ;;  %v2398_v28 = vmul.f32 %v5750_v39, %v5750_v39  ;;  %v2399_v30 = vmul.f32 %v5753_v45, %v5753_v45  ;;  %v4752_v8 = vld [vmem:[%s5180_s5 + $0x1c4] ss:$16 sps:$4 sm:$0xff]   ;;  %v4755_v17 = vld [vmem:[%s5180_s5 + $0x1cc] ss:$16 sps:$4 sm:$0xff]  }
 0x8ed   : > { %v2372_v52 = vpop.xlane.xlu0 %2371  ;;  %2930 = vmatprep.subr.bf16.mxu0 %v4752_v8  ;;  %2991 = vmatprep.subr.bf16.mxu1 %v4755_v17 }
 0x8ee   : > { %v2383_v15 = vmul.f32 0.00390625, %v2372_v52  ;;  %2407 = vadd.xlane.f32.xlu1 %v2406_v27  ;;  %v2409_v9 = vadd.f32 %v2399_v30, %v2398_v28  ;;  %v4750_v27 = vld [vmem:[%s5180_s5 + $0x1c0] ss:$16 sps:$4 sm:$0xff]   ;;  %v4753_v28 = vld [vmem:[%s5180_s5 + $0x1c8] ss:$16 sps:$4 sm:$0xff]  }
 0x8ef   : > { %v2375_v33 = vpop.xlane.xlu1 %2374  ;;  %2931 = vmatpush1.bf16.msra.mxu0 %v4750_v27  ;;  %2992 = vmatpush1.bf16.msra.mxu1 %v4753_v28  ;;  %v4758_v30 = vld [vmem:[%s5180_s5 + $0x1e4] ss:$16 sps:$4 sm:$0xff]   ;;  %v4761_v52 = vld [vmem:[%s5180_s5 + $0x1ec] ss:$16 sps:$4 sm:$0xff]  }
 0x8f0   : > { %v5764_v35 = vsub.f32 %v5683_v25, %v2383_v15  ;;  %v5767_v38 = vsub.f32 %v5685_v62, %v2383_v15  ;;  %v2384_v41 = vmul.f32 0.00390625, %v2375_v33  ;;  %2410 = vadd.xlane.f32.xlu0 %v2409_v9  ;;  %v4756_v15 = vld [vmem:[%s5180_s5 + $0x1e0] ss:$16 sps:$4 sm:$0xff]   ;;  %v4759_v9 = vld [vmem:[%s5180_s5 + $0x1e8] ss:$16 sps:$4 sm:$0xff]   ;;  %2932 = vmatprep.subr.bf16.mxu0 %v4758_v30 }
 0x8f1   : > { %2993 = vmatprep.subr.bf16.mxu1 %v4761_v52  ;;  %v4764_v33 = vld [vmem:[%s5190_s19 + $0x4] ss:$8 sps:$4 sm:$0xff]  }
 0x8f2   : > { %v5770_v44 = vsub.f32 %v5687_v19, %v2384_v41  ;;  %v5773_v18 = vsub.f32 %v5689_v10, %v2384_v41  ;;  %v2400_v34 = vmul.f32 %v5764_v35, %v5764_v35  ;;  %v2401_v20 = vmul.f32 %v5767_v38, %v5767_v38 }
 0x8f3   : > { %2933 = vmatpush1.bf16.msra.mxu0 %v4756_v15  ;;  %2994 = vmatpush1.bf16.msra.mxu1 %v4759_v9  ;;  %v4762_v15 = vld [vmem:[%s5190_s19] ss:$8 sps:$4 sm:$0xff]  }
 0x8f4   : > { %v2412_v36 = vadd.f32 %v2401_v20, %v2400_v34  ;;  %v2402_v40 = vmul.f32 %v5770_v44, %v5770_v44  ;;  %v2403_v0 = vmul.f32 %v5773_v18, %v5773_v18  ;;  %3532 = vmatprep.subr.bf16.mxu0 %v4764_v33  ;;  %v4767_v33 = vld [vmem:[%s5190_s19 + $0x14] ss:$8 sps:$4 sm:$0xff]  }
 0x8f6   : > { %2413 = vadd.xlane.f32.xlu1 %v2412_v36  ;;  %v2380_v5 = vpop.xlane.xlu0 %2379  ;;  %v2415_v43 = vadd.f32 %v2403_v0, %v2402_v40 }
 0x8f7   : > { %v2385_v7 = vmul.f32 0.00390625, %v2380_v5 }
 0x8f8   : > { %2416 = vadd.xlane.f32.xlu0 %v2415_v43 }
 0x8f9   : > { %v5784_v53 = vsub.f32 %v5695_v1, %v2385_v7  ;;  %v5787_v55 = vsub.f32 %v5697_v37, %v2385_v7 }
 0x8fb   : > { %v2404_v51 = vmul.f32 %v5784_v53, %v5784_v53  ;;  %v2405_v56 = vmul.f32 %v5787_v55, %v5787_v55 }
 0x8fd   : > { %v2418_v46 = vsel %vm772_vm0, %v2404_v51, 0.0  ;;  %v2419_v57 = vsel %vm772_vm0, %v2405_v56, 0.0  ;;  %v2362_v51 = vld [vmem:[%s6184_s18] sm:$0x3] }
 0x8fe   : > { %v2420_v59 = vadd.f32 %v2419_v57, %v2418_v46  ;;  %v5826_v58 = vrot.slane %v2362_v51, %v5372_v32 }
 0x900   : > { %2421 = vadd.xlane.f32.xlu1 %v2420_v59  ;;  %v2456_v59 = vrot.slane %v2362_v51, %v5364_v16 }
 0x97b   : > { %v2408_v41 = vpop.xlane.xlu1 %2407 }
 0x97c   : > { %v2423_v34 = vmul.f32 0.00390625, %v2408_v41 }
 0x97d   : > { %v2411_v20 = vpop.xlane.xlu0 %2410 }
 0x97e   : > { %v2428_v36 = vadd.f32 1e-05, %v2423_v34  ;;  %v2424_v40 = vmul.f32 0.00390625, %v2411_v20 }
 0x980   : > { %4908 = vrsqrt.f32 %v2428_v36  ;;  %v2429_v0 = vadd.f32 1e-05, %v2424_v40  ;;  %v4765_v40 = vld [vmem:[%s5190_s19 + $0x10] ss:$8 sps:$4 sm:$0xff]  }
 0x982   : > { %4910 = vrsqrt.f32 %v2429_v0  ;;  %v4770_v0 = vld [vmem:[%s5190_s19 + $0x24] ss:$8 sps:$4 sm:$0xff]  }
 0x983   : > { %v2414_v5 = vpop.xlane.xlu1 %2413 }
 0x984   : > { %v2425_v43 = vmul.f32 0.00390625, %v2414_v5 }
 0x985   : > { %v2417_v7 = vpop.xlane.xlu0 %2416 }
 0x986   : > { %v2430_v56 = vadd.f32 1e-05, %v2425_v43  ;;  %v2426_v46 = vmul.f32 0.00390625, %v2417_v7 }
 0x988   : > { %4912 = vrsqrt.f32 %v2430_v56  ;;  %v2431_v57 = vadd.f32 1e-05, %v2426_v46  ;;  %v4768_v56 = vld [vmem:[%s5190_s19 + $0x20] ss:$8 sps:$4 sm:$0xff]  }
 0x98a   : > { %v4909_v49 = vpop.eup %4908  ;;  %4914 = vrsqrt.f32 %v2431_v57  ;;  %v4773_v57 = vld [vmem:[%s5190_s19 + $0x34] ss:$8 sps:$4 sm:$0xff]  }
 0x98b   : > { %v2438_v60 = vmul.f32 %v4909_v49, %v5744_v14  ;;  %v2439_v6 = vmul.f32 %v4909_v49, %v5747_v2 }
 0x98c   : > { %v4911_v63 = vpop.eup %4910 }
 0x98d   : > { %v2459_v4 = vmul.f32 %v5826_v58, %v2438_v60  ;;  %v2440_v11 = vmul.f32 %v4911_v63, %v5750_v39  ;;  %v2422_v12 = vpop.xlane.xlu1 %2421  ;;  %v2441_v31 = vmul.f32 %v4911_v63, %v5753_v45  ;;  %v2460_v61 = vmul.f32 %v2456_v59, %v2439_v6  ;;  %v4771_v63 = vld [vmem:[%s5190_s19 + $0x30] ss:$8 sps:$4 sm:$0xff]  }
 0x98e   : > { %v2427_v3 = vmul.f32 0.00390625, %v2422_v12 }
 0x98f   : > { %v2461_v14 = vmul.f32 %v5826_v58, %v2440_v11  ;;  %v2462_v29 = vmul.f32 %v2456_v59, %v2441_v31  ;;  %v2481_v50 = vadd.f32 %v2477_v21, %v2460_v61  ;;  %v2480_v17 = vadd.f32 %v2473_v13, %v2459_v4  ;;  %v4776_v4 = vld [vmem:[%s5190_s19 + $0x44] ss:$8 sps:$4 sm:$0xff]  }
 0x990   : > { %v2432_v2 = vadd.f32 1e-05, %v2427_v3  ;;  %v4783_v3 = vld [vmem:[%s5190_s19 + $0x70] ss:$8 sps:$4 sm:$0xff]  }
 0x991   : > { %v2483_v8 = vadd.f32 %v2477_v21, %v2462_v29  ;;  %v2482_v27 = vadd.f32 %v2473_v13, %v2461_v14  ;;  %v4788_v14 = vld [vmem:[%s5190_s19 + $0x84] ss:$8 sps:$4 sm:$0xff]   ;;  %v4786_v29 = vld [vmem:[%s5190_s19 + $0x80] ss:$8 sps:$4 sm:$0xff]  }
 0x992   : > { %v4913_v28 = vpop.eup %4912  ;;  %4916 = vrsqrt.f32 %v2432_v2  ;;  %v4791_v2 = vld [vmem:[%s5190_s19 + $0x94] ss:$8 sps:$4 sm:$0xff]  }
 0x993   : > { %v2491_v30 = vpack.c.bf16 %v2483_v8, %v2481_v50  ;;  %v2490_v52 = vpack.c.bf16 %v2482_v27, %v2480_v17  ;;  %v2443_v39 = vmul.f32 %v4913_v28, %v5767_v38  ;;  %v2442_v45 = vmul.f32 %v4913_v28, %v5764_v35  ;;  %v4789_v50 = vld [vmem:[%s5190_s19 + $0x90] ss:$8 sps:$4 sm:$0xff]   ;;  %v4794_v8 = vld [vmem:[%s5190_s19 + $0xa4] ss:$8 sps:$4 sm:$0xff]   ;;  %v4792_v17 = vld [vmem:[%s5190_s19 + $0xa0] ss:$8 sps:$4 sm:$0xff]  }
 0x994   : > { %v4915_v9 = vpop.eup %4914  ;;  %v4797_v27 = vld [vmem:[%s5190_s19 + $0xb4] ss:$8 sps:$4 sm:$0xff]   ;;  %v4795_v28 = vld [vmem:[%s5190_s19 + $0xb0] ss:$8 sps:$4 sm:$0xff]  }
 0x995   : > { %2934 = vmatprep.mubr.bf16.mxu0 %v2491_v30  ;;  %2995 = vmatprep.mubr.bf16.mxu1 %v2491_v30  ;;  %v2445_v41 = vmul.f32 %v4915_v9, %v5773_v18  ;;  %v2464_v34 = vmul.f32 %v2456_v59, %v2443_v39  ;;  %v2444_v20 = vmul.f32 %v4915_v9, %v5770_v44  ;;  %v4800_v30 = vld [vmem:[%s5190_s19 + $0xc4] ss:$8 sps:$4 sm:$0xff]   ;;  %v4803_v39 = vld [vmem:[%s5190_s19 + $0xd4] ss:$8 sps:$4 sm:$0xff]   ;;  %v4804_v9 = vld [vmem:[%s5190_s19 + $0xe0] ss:$8 sps:$4 sm:$0xff]  }
 0x996   : > { %2935 = vmatmul.mubr.bf16.vlgmr.msra.gmra.mrb[24].mxu0 %v2490_v52  ;;  %2996 = vmatmul.mubr.bf16.vlgmr.msra.gmra.mrb[72].mxu1 %v2490_v52  ;;  %v2463_v36 = vmul.f32 %v5826_v58, %v2442_v45  ;;  %v4798_v52 = vld [vmem:[%s5190_s19 + $0xc0] ss:$8 sps:$4 sm:$0xff]   ;;  %v4801_v45 = vld [vmem:[%s5190_s19 + $0xd0] ss:$8 sps:$4 sm:$0xff]  }
 0x997   : > { %v2466_v38 = vmul.f32 %v2456_v59, %v2445_v41  ;;  %v2465_v35 = vmul.f32 %v5826_v58, %v2444_v20  ;;  %3533 = vmatpush1.bf16.msra.mxu0 %v4762_v15  ;;  %v2485_v5 = vadd.f32 %v2477_v21, %v2464_v34  ;;  %v4806_v15 = vld [vmem:[%s5190_s19 + $0xe4] ss:$8 sps:$4 sm:$0xff]   ;;  %v4807_v41 = vld [vmem:[%s5190_s19 + $0xf0] ss:$8 sps:$4 sm:$0xff]   ;;  %v2560_v20 = vld [vmem:[%s5185_s1] sm:$0xf] }
 0x998   : > { %3534 = vmatprep.subr.bf16.mxu0 %v4767_v33  ;;  %v2484_v7 = vadd.f32 %v2473_v13, %v2463_v36  ;;  %v4809_v33 = vld [vmem:[%s5190_s19 + $0xf4] ss:$8 sps:$4 sm:$0xff]   ;;  %v4812_v34 = vld [vmem:[%s5190_s19 + $0x104] ss:$8 sps:$4 sm:$0xff]   ;;  %v5885_v36 = vrot.slane %v2560_v20, %v5372_v32 }
 0x999   : > { %v2487_v43 = vadd.f32 %v2477_v21, %v2466_v38  ;;  %v2486_v18 = vadd.f32 %v2473_v13, %v2465_v35  ;;  %v5889_v38 = vrot.slane %v2560_v20, %v1035_v47  ;;  %v5892_v35 = vrot.slane %v2560_v20, %v5364_v16 }
 0x99b   : > { %v2493_v51 = vpack.c.bf16 %v2487_v43, %v2485_v5  ;;  %v2492_v44 = vpack.c.bf16 %v2486_v18, %v2484_v7  ;;  %3535 = vmatpush1.bf16.msra.mxu0 %v4765_v40  ;;  %v5896_v40 = vrot.slane %v2560_v20, %v1039_v48 }
 0x99c   : > { %v4917_v46 = vpop.eup %4916  ;;  %3536 = vmatprep.subr.bf16.mxu0 %v4770_v0 }
 0x99d   : > { %2944 = vmatprep.mubr.bf16.mxu0 %v2493_v51  ;;  %3005 = vmatprep.mubr.bf16.mxu1 %v2493_v51  ;;  %v2447_v26 = vmul.f32 %v4917_v46, %v5787_v55  ;;  %v2446_v49 = vmul.f32 %v4917_v46, %v5784_v53  ;;  %v4774_v53 = vld [vmem:[%s5190_s19 + $0x40] ss:$8 sps:$4 sm:$0xff]   ;;  %v4779_v55 = vld [vmem:[%s5190_s19 + $0x54] ss:$8 sps:$4 sm:$0xff]  }
 0x99e   : > { %2945 = vmatmul.mubr.bf16.gmra.mrb[28].mxu0 %v2492_v44  ;;  %3006 = vmatmul.mubr.bf16.gmra.mrb[76].mxu1 %v2492_v44 }
 0x99f   : > { %v2468_v60 = vmul.f32 %v2456_v59, %v2447_v26  ;;  %v2467_v6 = vmul.f32 %v5826_v58, %v2446_v49  ;;  %3537 = vmatpush1.bf16.msra.mxu0 %v4768_v56  ;;  %v4777_v58 = vld [vmem:[%s5190_s19 + $0x50] ss:$8 sps:$4 sm:$0xff]   ;;  %v4782_v59 = vld [vmem:[%s5190_s19 + $0x64] ss:$8 sps:$4 sm:$0xff]  }
 0x9a0   : > { %3538 = vmatprep.subr.bf16.mxu0 %v4773_v57 }
 0x9a1   : > { %v2489_v11 = vadd.f32 %v2477_v21, %v2468_v60  ;;  %v2488_v12 = vadd.f32 %v2473_v13, %v2467_v6  ;;  %v4780_v13 = vld [vmem:[%s5190_s19 + $0x60] ss:$8 sps:$4 sm:$0xff]   ;;  %v4785_v21 = vld [vmem:[%s5190_s19 + $0x74] ss:$8 sps:$4 sm:$0xff]  }
 0x9a3   : > { %v2495_v31 = vpack.c.bf16 %v2489_v11, %v2489_v11  ;;  %v2494_v61 = vpack.c.bf16 %v2488_v12, %v2488_v12  ;;  %3539 = vmatpush1.bf16.msra.mxu0 %v4771_v63 }
 0x9a4   : > { %3540 = vmatprep.subr.bf16.mxu0 %v4776_v4 }
 0x9a5   : > { %2954 = vmatprep.mubr.bf16.mxu0 %v2495_v31  ;;  %3015 = vmatprep.mubr.bf16.mxu1 %v2495_v31 }
 0x9a6   : > { %2955 = vmatmul.mubr.bf16.gmra.mrb[32].mxu0 %v2494_v61  ;;  %3016 = vmatmul.mubr.bf16.gmra.mrb[80].mxu1 %v2494_v61 }
 0x9a7   : > { %3541 = vmatpush1.bf16.msra.mxu0 %v4774_v53 }
 0x9a8   : > { %3542 = vmatprep.subr.bf16.mxu0 %v4779_v55 }
 0x9ab   : > { %3543 = vmatpush1.bf16.msra.mxu0 %v4777_v58 }
 0x9ac   : > { %3544 = vmatprep.subr.bf16.mxu0 %v4782_v59 }
 0x9af   : > { %3545 = vmatpush1.bf16.msra.mxu0 %v4780_v13 }
 0x9b0   : > { %3546 = vmatprep.subr.bf16.mxu0 %v4785_v21 }
 0x9b3   : > { %3547 = vmatpush1.bf16.msra.mxu0 %v4783_v3 }
 0x9b4   : > { %3548 = vmatprep.subr.bf16.mxu0 %v4788_v14 }
 0x9b7   : > { %3549 = vmatpush1.bf16.msra.mxu0 %v4786_v29 }
 0x9b8   : > { %3550 = vmatprep.subr.bf16.mxu0 %v4791_v2 }
 0x9bb   : > { %3551 = vmatpush1.bf16.msra.mxu0 %v4789_v50 }
 0x9bc   : > { %3552 = vmatprep.subr.bf16.mxu0 %v4794_v8 }
 0x9bf   : > { %3553 = vmatpush1.bf16.msra.mxu0 %v4792_v17 }
 0x9c0   : > { %3554 = vmatprep.subr.bf16.mxu0 %v4797_v27 }
 0x9c3   : > { %3555 = vmatpush1.bf16.msra.mxu0 %v4795_v28 }
 0x9c4   : > { %3556 = vmatprep.subr.bf16.mxu0 %v4800_v30 }
 0x9c7   : > { %3557 = vmatpush1.bf16.msra.mxu0 %v4798_v52 }
 0x9c8   : > { %3558 = vmatprep.subr.bf16.mxu0 %v4803_v39 }
 0x9cb   : > { %3559 = vmatpush1.bf16.msra.mxu0 %v4801_v45 }
 0x9cc   : > { %3560 = vmatprep.subr.bf16.mxu0 %v4806_v15 }
 0x9cf   : > { %3561 = vmatpush1.bf16.msra.mxu0 %v4804_v9 }
 0x9d0   : > { %3562 = vmatprep.subr.bf16.mxu0 %v4809_v33 }
 0x9d3   : > { %3563 = vmatpush1.bf16.msra.mxu0 %v4807_v41 }
 0x9d4   : > { %3593 = vmatprep.subr.bf16.mxu0 %v4812_v34 }
 0xa69   : > { %v2936_v0 = vpop.f32.mrb[24].mxu0  ;;  %v2997_v5 = vpop.f32.mrb[72].mxu1 }
 0xa6a   : > { %v2937_v43 = vadd.f32 %v2936_v0, %v5885_v36  ;;  %v5900_v7 = vadd.f32 %v2997_v5, %v5889_v38  ;;  %v2938_v18 = vpop.f32.mrb[25].mxu0  ;;  %v2999_v51 = vpop.f32.mrb[73].mxu1 }
 0xa6b   : > { %v5903_v44 = vadd.f32 %v2938_v18, %v5892_v35  ;;  %v5906_v47 = vadd.f32 %v2999_v51, %v5896_v40  ;;  %v2940_v56 = vpop.f32.mrb[26].mxu0  ;;  %v3001_v46 = vpop.f32.mrb[74].mxu1 }
 0xa6c   : > { %v3044_v24 = vmul.f32 0.70710677, %v2937_v43  ;;  %v3046_v48 = vmul.f32 0.70710677, %v5900_v7  ;;  %v2941_v49 = vadd.f32 %v2940_v56, %v5885_v36  ;;  %v3002_v60 = vadd.f32 %v3001_v46, %v5889_v38  ;;  %v2942_v6 = vpop.f32.mrb[27].mxu0  ;;  %v3003_v63 = vpop.f32.mrb[75].mxu1 }
 0xa6d   : > { %v3045_v57 = vmul.f32 0.70710677, %v5903_v44  ;;  %v3047_v26 = vmul.f32 0.70710677, %v5906_v47  ;;  %v2943_v4 = vadd.f32 %v2942_v6, %v5892_v35  ;;  %v3004_v11 = vadd.f32 %v3003_v63, %v5896_v40 }
 0xa6e   : > { %4918 = verf.f32 %v3044_v24  ;;  %v3048_v12 = vmul.f32 0.70710677, %v2941_v49  ;;  %v3050_v31 = vmul.f32 0.70710677, %v3002_v60  ;;  %v3024_v51 = vmul.f32 0.5, %v2937_v43 }
 0xa6f   : > { %4920 = verf.f32 %v3046_v48  ;;  %v3049_v61 = vmul.f32 0.70710677, %v2943_v4  ;;  %v3051_v55 = vmul.f32 0.70710677, %v3004_v11 }
 0xa70   : > { %4922 = verf.f32 %v3045_v57  ;;  %v3026_v57 = vmul.f32 0.5, %v5900_v7 }
 0xa71   : > { %4924 = verf.f32 %v3047_v26  ;;  %v2946_v53 = vpop.f32.mrb[28].mxu0  ;;  %v3007_v59 = vpop.f32.mrb[76].mxu1  ;;  %v3028_v26 = vmul.f32 0.5, %v2941_v49 }
 0xa72   : > { %4926 = verf.f32 %v3048_v12  ;;  %v5916_v58 = vadd.f32 %v2946_v53, %v5885_v36  ;;  %v2948_v13 = vpop.f32.mrb[29].mxu0  ;;  %v5919_v21 = vadd.f32 %v3007_v59, %v5889_v38  ;;  %v3009_v14 = vpop.f32.mrb[77].mxu1  ;;  %v3029_v53 = vmul.f32 0.5, %v2943_v4 }
 0xa73   : > { %4928 = verf.f32 %v3050_v31  ;;  %v5922_v3 = vadd.f32 %v2948_v13, %v5892_v35  ;;  %v2950_v29 = vpop.f32.mrb[30].mxu0  ;;  %v5926_v50 = vadd.f32 %v3009_v14, %v5896_v40  ;;  %v3011_v8 = vpop.f32.mrb[78].mxu1 }
 0xa74   : > { %4930 = verf.f32 %v3049_v61  ;;  %v3052_v2 = vmul.f32 0.70710677, %v5916_v58  ;;  %v2952_v17 = vpop.f32.mrb[31].mxu0  ;;  %v3054_v27 = vmul.f32 0.70710677, %v5919_v21  ;;  %v3013_v28 = vpop.f32.mrb[79].mxu1  ;;  %v5932_v39 = vadd.f32 %v2950_v29, %v5885_v36 }
 0xa75   : > { %4932 = verf.f32 %v3051_v55  ;;  %v3053_v30 = vmul.f32 0.70710677, %v5922_v3  ;;  %v3055_v52 = vmul.f32 0.70710677, %v5926_v50  ;;  %v5935_v45 = vadd.f32 %v3011_v8, %v5889_v38 }
 0xa76   : > { %4934 = verf.f32 %v3052_v2  ;;  %v5938_v15 = vadd.f32 %v2952_v17, %v5892_v35  ;;  %v3056_v34 = vmul.f32 0.70710677, %v5932_v39  ;;  %v5942_v20 = vadd.f32 %v3013_v28, %v5896_v40 }
 0xa77   : > { %4936 = verf.f32 %v3054_v27  ;;  %v3058_v46 = vmul.f32 0.70710677, %v5935_v45  ;;  %v3030_v61 = vmul.f32 0.5, %v3002_v60  ;;  %v3031_v55 = vmul.f32 0.5, %v3004_v11 }
 0xa78   : > { %v4919_v9 = vpop.eup %4918  ;;  %4938 = verf.f32 %v3053_v30  ;;  %v3057_v6 = vmul.f32 0.70710677, %v5938_v15  ;;  %v3059_v7 = vmul.f32 0.70710677, %v5942_v20 }
 0xa79   : > { %v4921_v33 = vpop.eup %4920  ;;  %v3084_v41 = vadd.f32 1.0, %v4919_v9  ;;  %v2956_v0 = vpop.f32.mrb[32].mxu0  ;;  %4940 = verf.f32 %v3055_v52 }
 0xa7a   : > { %v5944_v5 = vpop.f32.mrb[80].mxu1  ;;  %v4923_v18 = vpop.eup %4922  ;;  %v3086_v56 = vadd.f32 1.0, %v4921_v33  ;;  %4942 = verf.f32 %v3056_v34  ;;  %v5955_v28 = vadd.f32 %v2956_v0, %v5885_v36 }
 0xa7b   : > { %v2958_v24 = vpop.f32.mrb[33].mxu0  ;;  %v4925_v48 = vpop.eup %4924  ;;  %4944 = verf.f32 %v3058_v46  ;;  %v3104_v14 = vmul.f32 %v3084_v41, %v3024_v51  ;;  %v3085_v17 = vadd.f32 1.0, %v4923_v18  ;;  %v3025_v18 = vmul.f32 0.5, %v5903_v44 }
 0xa7c   : > { %v5949_v63 = vpop.f32.mrb[81].mxu1  ;;  %v2960_v12 = vpop.f32.mrb[34].mxu0  ;;  %4946 = verf.f32 %v3057_v6  ;;  %v5952_v8 = vmul.f32 %v3086_v56, %v3026_v57  ;;  %v3087_v4 = vadd.f32 1.0, %v4925_v48  ;;  %v3060_v33 = vmul.f32 0.70710677, %v5955_v28 }
 0xa7d   : > { %v4927_v31 = vpop.eup %4926  ;;  %v3021_v43 = vpop.f32.mrb[82].mxu1  ;;  %4948 = verf.f32 %v3059_v7  ;;  %v5961_v41 = vadd.f32 %v2958_v24, %v5892_v35  ;;  %v3027_v51 = vmul.f32 0.5, %v5906_v47  ;;  %v3032_v44 = vmul.f32 0.5, %v5916_v58  ;;  %v4815_v7 = vld [vmem:[%s5190_s19 + $0x114] ss:$8 sps:$4 sm:$0xff]  }
 0xa7e   : > { %v2961_v59 = vpop.f32.mrb[35].mxu0  ;;  %v4929_v13 = vpop.eup %4928  ;;  %v3088_v29 = vadd.f32 1.0, %v4927_v31  ;;  %4950 = verf.f32 %v3060_v33  ;;  %v3034_v31 = vmul.f32 0.5, %v5919_v21  ;;  %v4810_v43 = vld [vmem:[%s5190_s19 + $0x100] ss:$8 sps:$4 sm:$0xff]  }
 0xa7f   : > { %v3022_v49 = vpop.f32.mrb[83].mxu1  ;;  %v4931_v2 = vpop.eup %4930  ;;  %v3090_v27 = vadd.f32 1.0, %v4929_v13  ;;  %v5969_v6 = vmul.f32 %v3087_v4, %v3027_v51  ;;  %v3061_v47 = vmul.f32 0.70710677, %v5961_v41  ;;  %v4818_v51 = vld [vmem:[%s5190_s19 + $0x124] ss:$8 sps:$4 sm:$0xff]  }
 0xa80   : > { %v4933_v60 = vpop.eup %4932  ;;  %v3108_v11 = vmul.f32 %v3088_v29, %v3028_v26  ;;  %v3089_v30 = vadd.f32 1.0, %v4931_v2  ;;  %v3105_v26 = vmul.f32 %v3085_v17, %v3025_v18  ;;  %v3033_v49 = vmul.f32 0.5, %v5922_v3 }
 0xa81   : > { %v5957_v52 = vmul.f32 %v3090_v27, %v3030_v61  ;;  %v3091_v9 = vadd.f32 1.0, %v4933_v60  ;;  %v4935_v34 = vpop.eup %4934  ;;  %4952 = verf.f32 %v3061_v47  ;;  %v3038_v2 = vmul.f32 0.5, %v5935_v45  ;;  %v4813_v45 = vld [vmem:[%s5190_s19 + $0x110] ss:$8 sps:$4 sm:$0xff]  }
 0xa82   : > { %v3124_v36 = vpack.c.bf16 %v3108_v11, %v3104_v14  ;;  %v3109_v0 = vmul.f32 %v3089_v30, %v3029_v53  ;;  %v4937_v56 = vpop.eup %4936  ;;  %v3092_v24 = vadd.f32 1.0, %v4935_v34  ;;  %v3036_v14 = vmul.f32 0.5, %v5932_v39 }
 0xa83   : > { %v3126_v46 = vpack.c.bf16 %v5957_v52, %v5952_v8  ;;  %v5967_v48 = vmul.f32 %v3091_v9, %v3031_v55  ;;  %v4939_v57 = vpop.eup %4938  ;;  %v3094_v61 = vadd.f32 1.0, %v4937_v56  ;;  %v3037_v17 = vmul.f32 0.5, %v5938_v15 }
 0xa84   : > { %v4941_v35 = vpop.eup %4940  ;;  %v3125_v53 = vpack.c.bf16 %v3109_v0, %v3105_v26  ;;  %v3093_v13 = vadd.f32 1.0, %v4939_v57  ;;  %v3112_v27 = vmul.f32 %v3092_v24, %v3032_v44  ;;  %v3035_v9 = vmul.f32 0.5, %v5926_v50 }
 0xa85   : > { %v4943_v12 = vpop.eup %4942  ;;  %v3127_v55 = vpack.c.bf16 %v5967_v48, %v5969_v6  ;;  %v3095_v60 = vadd.f32 1.0, %v4941_v35  ;;  %v5982_v30 = vmul.f32 %v3094_v61, %v3034_v31  ;;  %v3039_v3 = vmul.f32 0.5, %v5942_v20  ;;  %v4816_v20 = vld [vmem:[%s5190_s19 + $0x120] ss:$8 sps:$4 sm:$0xff]   ;;  %v4821_v6 = vld [vmem:[%s5190_s19 + $0x134] ss:$8 sps:$4 sm:$0xff]  }
 0xa86   : > { %v4945_v59 = vpop.eup %4944  ;;  %v3096_v29 = vadd.f32 1.0, %v4943_v12  ;;  %3564 = vmatprep.mubr.bf16.mxu0 %v3125_v53  ;;  %v3113_v15 = vmul.f32 %v3093_v13, %v3033_v49  ;;  %v3040_v24 = vmul.f32 0.5, %v5955_v28  ;;  %v3041_v47 = vmul.f32 0.5, %v5961_v41  ;;  %v4819_v31 = vld [vmem:[%s5190_s19 + $0x130] ss:$8 sps:$4 sm:$0xff]  }
 0xa87   : > { %v4947_v58 = vpop.eup %4946  ;;  %v3098_v21 = vadd.f32 1.0, %v4945_v59  ;;  %3565 = vmatmul.mubr.bf16.vlgmr.msra.gmra.mrb[36].mxu0 %v3124_v36  ;;  %v5992_v48 = vmul.f32 %v3095_v60, %v3035_v9  ;;  %v4824_v61 = vld [vmem:[%s5190_s19 + $0x144] ss:$8 sps:$4 sm:$0xff]   ;;  %v4822_v13 = vld [vmem:[%s5190_s19 + $0x140] ss:$8 sps:$4 sm:$0xff]  }
 0xa88   : > { %v3116_v4 = vmul.f32 %v3096_v29, %v3036_v14  ;;  %v3097_v11 = vadd.f32 1.0, %v4947_v58  ;;  %v4949_v39 = vpop.eup %4948  ;;  %3594 = vmatpush1.bf16.msra.mxu0 %v4810_v43  ;;  %v4827_v14 = vld [vmem:[%s5190_s19 + $0x154] ss:$8 sps:$4 sm:$0xff]   ;;  %v4825_v41 = vld [vmem:[%s5190_s19 + $0x150] ss:$8 sps:$4 sm:$0xff]  }
 0xa89   : > { %v5985_v33 = vmul.f32 %v3098_v21, %v3038_v2  ;;  %v3099_v18 = vadd.f32 1.0, %v4949_v39  ;;  %3595 = vmatprep.subr.bf16.mxu0 %v4815_v7  ;;  %v4951_v56 = vpop.eup %4950  ;;  %v4830_v29 = vld [vmem:[%s5190_s19 + $0x164] ss:$8 sps:$4 sm:$0xff]   ;;  %v4828_v7 = vld [vmem:[%s5190_s19 + $0x160] ss:$8 sps:$4 sm:$0xff]   ;;  %v3020_v39 = vadd.f32 %v5949_v63, %v5896_v40 }
 0xa8a   : > { %v3117_v34 = vmul.f32 %v3097_v11, %v3037_v17  ;;  %v3128_v0 = vpack.c.bf16 %v3116_v4, %v3112_v27  ;;  %v3100_v26 = vadd.f32 1.0, %v4951_v56  ;;  %v4833_v58 = vld [vmem:[%s5190_s19 + $0x174] ss:$8 sps:$4 sm:$0xff]   ;;  %v4831_v49 = vld [vmem:[%s5190_s19 + $0x170] ss:$8 sps:$4 sm:$0xff]  }
 0xa8b   : > { %v3130_v36 = vpack.c.bf16 %v5985_v33, %v5982_v30  ;;  %v5994_v50 = vmul.f32 %v3099_v18, %v3039_v3  ;;  %v4953_v44 = vpop.eup %4952  ;;  %v4836_v2 = vld [vmem:[%s5190_s19 + $0x184] ss:$8 sps:$4 sm:$0xff]   ;;  %v4834_v21 = vld [vmem:[%s5190_s19 + $0x180] ss:$8 sps:$4 sm:$0xff]   ;;  %v4837_v17 = vld [vmem:[%s5190_s19 + $0x190] ss:$8 sps:$4 sm:$0xff]  }
 0xa8c   : > { %v3129_v57 = vpack.c.bf16 %v3117_v34, %v3113_v15  ;;  %3596 = vmatpush1.bf16.msra.mxu0 %v4813_v45  ;;  %v3101_v12 = vadd.f32 1.0, %v4953_v44  ;;  %v3120_v53 = vmul.f32 %v3100_v26, %v3040_v24  ;;  %v4842_v27 = vld [vmem:[%s5190_s19 + $0x1a4] ss:$8 sps:$4 sm:$0xff]   ;;  %v4840_v60 = vld [vmem:[%s5190_s19 + $0x1a0] ss:$8 sps:$4 sm:$0xff]   ;;  %v3018_v34 = vadd.f32 %v5944_v5, %v5889_v38 }
 0xa8d   : > { %3597 = vmatprep.subr.bf16.mxu0 %v4818_v51  ;;  %v3131_v35 = vpack.c.bf16 %v5994_v50, %v5992_v48  ;;  %v4845_v4 = vld [vmem:[%s5190_s19 + $0x1b4] ss:$8 sps:$4 sm:$0xff]   ;;  %v4843_v11 = vld [vmem:[%s5190_s19 + $0x1b0] ss:$8 sps:$4 sm:$0xff]   ;;  %v4848_v9 = vld [vmem:[%s5190_s19 + $0x1c4] ss:$8 sps:$4 sm:$0xff]  }
 0xa8e   : > { %3574 = vmatprep.mubr.bf16.mxu0 %v3129_v57  ;;  %v3121_v43 = vmul.f32 %v3101_v12, %v3041_v47  ;;  %v3132_v28 = vpack.c.bf16 %v3120_v53, %v3120_v53  ;;  %v4846_v3 = vld [vmem:[%s5190_s19 + $0x1c0] ss:$8 sps:$4 sm:$0xff]   ;;  %v3063_v45 = vmul.f32 0.70710677, %v3020_v39  ;;  %v4851_v15 = vld [vmem:[%s5190_s19 + $0x1d4] ss:$8 sps:$4 sm:$0xff]  }
 0xa8f   : > { %3575 = vmatmul.mubr.bf16.gmra.mrb[40].mxu0 %v3128_v0  ;;  %v4849_v18 = vld [vmem:[%s5190_s19 + $0x1d0] ss:$8 sps:$4 sm:$0xff]   ;;  %v4854_v51 = vld [vmem:[%s5190_s19 + $0x1e4] ss:$8 sps:$4 sm:$0xff]   ;;  %v3062_v0 = vmul.f32 0.70710677, %v3018_v34 }
 0xa90   : > { %3598 = vmatpush1.bf16.msra.mxu0 %v4816_v20  ;;  %v3133_v59 = vpack.c.bf16 %v3121_v43, %v3121_v43  ;;  %4954 = verf.f32 %v3063_v45  ;;  %v4852_v40 = vld [vmem:[%s5190_s19 + $0x1e0] ss:$8 sps:$4 sm:$0xff]   ;;  %v4857_v63 = vld [vmem:[%s5190_s19 + $0x1f4] ss:$8 sps:$4 sm:$0xff]   ;;  %v4855_v56 = vld [vmem:[%s5190_s19 + $0x1f0] ss:$8 sps:$4 sm:$0xff]  }
 0xa91   : > { %3599 = vmatprep.subr.bf16.mxu0 %v4821_v6  ;;  %4956 = verf.f32 %v3062_v0  ;;  %v3043_v38 = vmul.f32 0.5, %v3020_v39  ;;  %v3042_v24 = vmul.f32 0.5, %v3018_v34  ;;  %v3200_v48 = vld [vmem:[%s717_s3] sm:$0x3]  ;;  %s6187_s3 = sld [smem:[#allocation3_spill]] }
 0xa92   : > { %3584 = vmatprep.mubr.bf16.mxu0 %v3133_v59  ;;  %v3205_v50 = vrot.slane %v3200_v48, %v5372_v32 }
 0xa94   : > { %3600 = vmatpush1.bf16.msra.mxu0 %v4819_v31 }
 0xa95   : > { %3601 = vmatprep.subr.bf16.mxu0 %v4824_v61 }
 0xa97   : > { %3585 = vmatmul.mubr.bf16.gmra.mrb[44].mxu0 %v3132_v28  ;;  %p4310_p8 = scmp.ne.s32.totalorder %s6187_s3, 1 }
 0xa98   : > { %3602 = vmatpush1.bf16.msra.mxu0 %v4822_v13  ;;  %3625 = vmatprep.mubr.bf16.mxu0 %v3127_v55  ;;  %v4839_v55 = vld [vmem:[%s5190_s19 + $0x194] ss:$8 sps:$4 sm:$0xff]   ;;  %s6188_s25 = sld [smem:[#allocation15_spill]] (!%p4310_p8)  ;;  %s6189_s16 = sld [smem:[#allocation16_spill]] (!%p4310_p8) }
 0xa99   : > { %3603 = vmatprep.subr.bf16.mxu0 %v4827_v14 }
 0xa9a   : > { %v4955_v57 = vpop.eup %4954 }
 0xa9b   : > { %v3103_v20 = vadd.f32 1.0, %v4955_v57  ;;  %v4957_v5 = vpop.eup %4956 }
 0xa9c   : > { %3604 = vmatpush1.bf16.msra.mxu0 %v4825_v41  ;;  %v3102_v6 = vadd.f32 1.0, %v4957_v5 }
 0xa9d   : > { %3605 = vmatprep.subr.bf16.mxu0 %v4830_v29  ;;  %v3123_v26 = vmul.f32 %v3103_v20, %v3043_v38 }
 0xa9e   : > { %v3122_v47 = vmul.f32 %v3102_v6, %v3042_v24 }
 0xa9f   : > { %v3135_v44 = vpack.c.bf16 %v3123_v26, %v3123_v26 }
 0xaa0   : > { %3606 = vmatpush1.bf16.msra.mxu0 %v4828_v7  ;;  %v3134_v12 = vpack.c.bf16 %v3122_v47, %v3122_v47 }
 0xaa1   : > { %3607 = vmatprep.subr.bf16.mxu0 %v4833_v58 }
 0xaa4   : > { %3608 = vmatpush1.bf16.msra.mxu0 %v4831_v49 }
 0xaa5   : > { %3609 = vmatprep.subr.bf16.mxu0 %v4836_v2 }
 0xaa8   : > { %3610 = vmatpush1.bf16.msra.mxu0 %v4834_v21 }
 0xaa9   : > { %3611 = vmatprep.subr.bf16.mxu0 %v4839_v55 }
 0xaac   : > { %3612 = vmatpush1.bf16.msra.mxu0 %v4837_v17 }
 0xaad   : > { %3613 = vmatprep.subr.bf16.mxu0 %v4842_v27 }
 0xab0   : > { %3614 = vmatpush1.bf16.msra.mxu0 %v4840_v60 }
 0xab1   : > { %3615 = vmatprep.subr.bf16.mxu0 %v4845_v4 }
 0xab4   : > { %3616 = vmatpush1.bf16.msra.mxu0 %v4843_v11 }
 0xab5   : > { %3617 = vmatprep.subr.bf16.mxu0 %v4848_v9 }
 0xab8   : > { %3618 = vmatpush1.bf16.msra.mxu0 %v4846_v3 }
 0xab9   : > { %3619 = vmatprep.subr.bf16.mxu0 %v4851_v15 }
 0xabc   : > { %3620 = vmatpush1.bf16.msra.mxu0 %v4849_v18 }
 0xabd   : > { %3621 = vmatprep.subr.bf16.mxu0 %v4854_v51 }
 0xac0   : > { %3622 = vmatpush1.bf16.msra.mxu0 %v4852_v40 }
 0xac1   : > { %3623 = vmatprep.subr.bf16.mxu0 %v4857_v63 }
 0xac4   : > { %3624 = vmatpush1.bf16.msra.mxu0 %v4855_v56 }
 0xac7   : > { %3626 = vmatmul.mubr.bf16.vlgmr.msra.gmra.mrb[36].mxu0 %v3126_v46 }
 0xac8   : > { %3635 = vmatprep.mubr.bf16.mxu0 %v3131_v35  ;;  %v3209_v35 = vrot.slane %v3200_v48, %v5364_v16 }
 0xacf   : > { %3636 = vmatmul.mubr.bf16.gmra.mrb[40].mxu0 %v3130_v36 }
 0xad0   : > { %3645 = vmatprep.mubr.bf16.mxu0 %v3135_v44 }
 0xad7   : > { %3646 = vmatmul.mubr.bf16.gmra.mrb[48].mxu0 %v3134_v12 }
 0xb6a   : > { %v3586_v8 = vpop.f32.mrb[44].mxu0 }
 0xb6b   : > { %v3588_v52 = vpop.f32.mrb[45].mxu0  ;;  %v3587_v60 = vadd.f32 %v3586_v8, %v3205_v50 }
 0xb6c   : > { %v3590_v46 = vpop.f32.mrb[46].mxu0  ;;  %v3589_v4 = vadd.f32 %v3588_v52, %v3209_v35 }
 0xb6d   : > { %v3591_v31 = vpop.f32.mrb[47].mxu0 }
 0xb9a   : > { %v3627_v61 = vpop.f32.mrb[36].mxu0 }
 0xb9b   : > { %v4412_v30 = vadd.f32 %v3627_v61, %v3205_v50  ;;  %v3629_v33 = vpop.f32.mrb[37].mxu0 }
 0xb9c   : > { %v4413_v36 = vadd.f32 %v3629_v33, %v3209_v35  ;;  %v3631_v53 = vpop.f32.mrb[38].mxu0 }
 0xb9d   : > { %v6048_v43 = vadd.f32 %v4412_v30, %v5671_v22  ;;  %v4414_v59 = vadd.f32 %v3631_v53, %v3205_v50  ;;  %v3633_v13 = vpop.f32.mrb[39].mxu0 }
 0xb9e   : > { %v6051_v28 = vadd.f32 %v4413_v36, %v5673_v42  ;;  %v4415_v14 = vadd.f32 %v3633_v13, %v3209_v35 }
 0xb9f   : > { %3664 = vst [vmem:[#allocation2] sm:$0xff] %v6048_v43  ;;  %v3656_v41 = vadd.f32 %v4414_v59, %v5675_v23 }
 0xba0   : > { %3665 = vst [vmem:[#allocation2 + $0x8] sm:$0xff] %v6051_v28  ;;  %v3657_v29 = vadd.f32 %v4415_v14, %v5677_v54 }
 0xba1   : > { %3666 = vst [vmem:[#allocation2 + $0x10] sm:$0xff] %v3656_v41 }
 0xba2   : > { %3667 = vst [vmem:[#allocation2 + $0x18] sm:$0xff] %v3657_v29  ;;  %v3637_v7 = vpop.f32.mrb[40].mxu0 }
 0xba3   : > { %v4416_v58 = vadd.f32 %v3637_v7, %v3205_v50  ;;  %v3639_v22 = vpop.f32.mrb[41].mxu0 }
 0xba4   : > { %v4417_v49 = vadd.f32 %v3639_v22, %v3209_v35  ;;  %v3641_v2 = vpop.f32.mrb[42].mxu0 }
 0xba5   : > { %v3658_v21 = vadd.f32 %v4416_v58, %v5683_v25  ;;  %v4418_v42 = vadd.f32 %v3641_v2, %v3205_v50  ;;  %v3643_v55 = vpop.f32.mrb[43].mxu0 }
 0xba6   : > { %v3659_v17 = vadd.f32 %v4417_v49, %v5685_v62  ;;  %v4419_v27 = vadd.f32 %v3643_v55, %v3209_v35 }
 0xba7   : > { %3668 = vst [vmem:[#allocation2 + $0x20] sm:$0xff] %v3658_v21  ;;  %v3660_v23 = vadd.f32 %v4418_v42, %v5687_v19  ;;  %v3683_v19 = vadd.f32 (!%p4310_p8), %v3657_v29, %v3656_v41 }
 0xba8   : > { %3669 = vst [vmem:[#allocation2 + $0x28] sm:$0xff] %v3659_v17  ;;  %v3661_v54 = vadd.f32 %v4419_v27, %v5689_v10  ;;  %v3686_v51 = vadd.f32 (!%p4310_p8), %v3659_v17, %v3658_v21 }
 0xba9   : > { %3670 = vst [vmem:[#allocation2 + $0x30] sm:$0xff] %v3660_v23  ;;  %3684 = vadd.xlane.f32.xlu1 (!%p4310_p8), %v3683_v19 }
 0xbaa   : > { %3671 = vst [vmem:[#allocation2 + $0x38] sm:$0xff] %v3661_v54  ;;  %v3647_v11 = vpop.f32.mrb[48].mxu0  ;;  %3677 = sbr.rel (%p4310_p8) target bundleno = 3321 (0xcf9), region = 88 }
 0xbab   : > { %v3648_v39 = vadd.f32 %v3647_v11, %v3587_v60  ;;  %v3649_v9 = vpop.f32.mrb[49].mxu0  ;;  %v3678_v11 = vld [vmem:[%s6188_s25] sm:$0x3] (!%p4310_p8) }
 0xbac   : > { %v3650_v3 = vadd.f32 %v3649_v9, %v3589_v4  ;;  %v3651_v25 = vpop.f32.mrb[50].mxu0 }
 0xbad   : > { %v3662_v45 = vadd.f32 %v3648_v39, %v5695_v1  ;;  %v3652_v15 = vpop.f32.mrb[51].mxu0  ;;  %v3680_v1 = vadd.f32 (!%p4310_p8), %v6051_v28, %v6048_v43  ;;  %3687 = vadd.xlane.f32.xlu1 (!%p4310_p8), %v3686_v51  ;;  %v3679_v39 = vld [vmem:[%s6189_s16] sm:$0x3] (!%p4310_p8) }
 0xbae   : > { %v3663_v62 = vadd.f32 %v3650_v3, %v5697_v37  ;;  %v3689_v37 = vadd.f32 (!%p4310_p8), %v3661_v54, %v3660_v23  ;;  %v3772_v15 = vrot.slane (!%p4310_p8), %v3678_v11, %v5364_v16  ;;  %v3793_v51 = vrot.slane (!%p4310_p8), %v3679_v39, %v5364_v16 }
 0xbaf   : > { %3672 = vst [vmem:[#allocation2 + $0x40] sm:$0x1] %v3662_v45  ;;  %v3692_v10 = vsel (!%p4310_p8), %vm772_vm0, %v3662_v45, 0.0 }
 0xbb0   : > { %3673 = vst [vmem:[#allocation2 + $0x48] sm:$0x1] %v3663_v62  ;;  %v3693_v34 = vsel (!%p4310_p8), %vm772_vm0, %v3663_v62, 0.0 }
 0xbb1   : > { %v3694_v18 = vadd.f32 %v3693_v34, %v3692_v10  ;;  %v3789_v10 = vrot.slane %v3679_v39, %v5372_v32 }
 0xbb3   : > { %3695 = vadd.xlane.f32.xlu0 %v3694_v18 }
 0xbb7   : > { %3681 = vadd.xlane.f32.xlu0 %v3680_v1 }
 0xbbb   : > { %3690 = vadd.xlane.f32.xlu0 %v3689_v37 }
 0xc36   : > { %v3685_v0 = vpop.xlane.xlu1 %3684 }
 0xc37   : > { %v3698_v40 = vmul.f32 0.00390625, %v3685_v0 }
 0xc39   : > { %v6068_v56 = vsub.f32 %v3656_v41, %v3698_v40  ;;  %v6070_v57 = vsub.f32 %v3657_v29, %v3698_v40 }
 0xc3a   : > { %v3688_v20 = vpop.xlane.xlu1 %3687 }
 0xc3b   : > { %v3699_v26 = vmul.f32 0.00390625, %v3688_v20  ;;  %v3714_v6 = vmul.f32 %v6068_v56, %v6068_v56  ;;  %v3715_v44 = vmul.f32 %v6070_v57, %v6070_v57 }
 0xc3d   : > { %v6076_v47 = vsub.f32 %v3658_v21, %v3699_v26  ;;  %v6078_v12 = vsub.f32 %v3659_v17, %v3699_v26  ;;  %v3725_v8 = vadd.f32 %v3715_v44, %v3714_v6 }
 0xc3f   : > { %3726 = vadd.xlane.f32.xlu0 %v3725_v8  ;;  %v3716_v35 = vmul.f32 %v6076_v47, %v6076_v47  ;;  %v3717_v36 = vmul.f32 %v6078_v12, %v6078_v12 }
 0xc40   : > { %v3696_v63 = vpop.xlane.xlu0 %3695 }
 0xc41   : > { %v3701_v38 = vmul.f32 0.00390625, %v3696_v63  ;;  %v3728_v14 = vadd.f32 %v3717_v36, %v3716_v35 }
 0xc43   : > { %v6082_v31 = vsub.f32 %v3662_v45, %v3701_v38  ;;  %v6084_v48 = vsub.f32 %v3663_v62, %v3701_v38  ;;  %v3768_v45 = vrot.slane %v3678_v11, %v5372_v32 }
 0xc44   : > { %v3682_v5 = vpop.xlane.xlu0 %3681 }
 0xc45   : > { %v3697_v24 = vmul.f32 0.00390625, %v3682_v5  ;;  %v3720_v13 = vmul.f32 %v6082_v31, %v6082_v31 }
 0xc47   : > { %v3702_v52 = vsub.f32 %v6048_v43, %v3697_v24  ;;  %v3703_v46 = vsub.f32 %v6051_v28, %v3697_v24  ;;  %v3721_v28 = vmul.f32 %v6084_v48, %v6084_v48  ;;  %v3734_v58 = vsel %vm772_vm0, %v3720_v13, 0.0 }
 0xc48   : > { %v3691_v50 = vpop.xlane.xlu0 %3690 }
 0xc49   : > { %v3700_v61 = vmul.f32 0.00390625, %v3691_v50  ;;  %v3712_v30 = vmul.f32 %v3702_v52, %v3702_v52  ;;  %v3713_v33 = vmul.f32 %v3703_v46, %v3703_v46  ;;  %v3735_v22 = vsel %vm772_vm0, %v3721_v28, 0.0 }
 0xc4a   : > { %v3736_v49 = vadd.f32 %v3735_v22, %v3734_v58 }
 0xc4b   : > { %v3708_v53 = vsub.f32 %v3660_v23, %v3700_v61  ;;  %v3709_v59 = vsub.f32 %v3661_v54, %v3700_v61  ;;  %v3722_v43 = vadd.f32 %v3713_v33, %v3712_v30 }
 0xc4d   : > { %3723 = vadd.xlane.f32.xlu1 %v3722_v43  ;;  %v3718_v41 = vmul.f32 %v3708_v53, %v3708_v53  ;;  %v3719_v29 = vmul.f32 %v3709_v59, %v3709_v59 }
 0xc4f   : > { %v3731_v7 = vadd.f32 %v3719_v29, %v3718_v41 }
 0xc51   : > { %3729 = vadd.xlane.f32.xlu1 %v3728_v14  ;;  %3732 = vadd.xlane.f32.xlu0 %v3731_v7 }
 0xc55   : > { %3737 = vadd.xlane.f32.xlu1 %v3736_v49 }
 0xccc   : > { %v3727_v2 = vpop.xlane.xlu0 %3726 }
 0xccd   : > { %v3740_v21 = vmul.f32 0.00390625, %v3727_v2 }
 0xccf   : > { %v3745_v42 = vadd.f32 1e-05, %v3740_v21 }
 0xcd1   : > { %4968 = vrsqrt.f32 %v3745_v42 }
 0xcda   : > { %v3724_v55 = vpop.xlane.xlu1 %3723 }
 0xcdb   : > { %v3739_v17 = vmul.f32 0.00390625, %v3724_v55  ;;  %v4969_v19 = vpop.eup %4968 }
 0xcdc   : > { %v3756_v34 = vmul.f32 %v4969_v19, %v6068_v56  ;;  %v3757_v18 = vmul.f32 %v4969_v19, %v6070_v57 }
 0xcdd   : > { %v3744_v27 = vadd.f32 1e-05, %v3739_v17 }
 0xcde   : > { %v3730_v23 = vpop.xlane.xlu1 %3729  ;;  %v3733_v54 = vpop.xlane.xlu0 %3732  ;;  %v3777_v37 = vmul.f32 %v3768_v45, %v3756_v34  ;;  %v3778_v0 = vmul.f32 %v3772_v15, %v3757_v18 }
 0xcdf   : > { %4970 = vrsqrt.f32 %v3744_v27  ;;  %v3741_v60 = vmul.f32 0.00390625, %v3730_v23  ;;  %v3742_v4 = vmul.f32 0.00390625, %v3733_v54 }
 0xce0   : > { %v3798_v63 = vadd.f32 %v3789_v10, %v3777_v37  ;;  %v3799_v20 = vadd.f32 %v3793_v51, %v3778_v0 }
 0xce1   : > { %v3746_v9 = vadd.f32 1e-05, %v3741_v60  ;;  %v3747_v3 = vadd.f32 1e-05, %v3742_v4 }
 0xce2   : > { %v3738_v25 = vpop.xlane.xlu1 %3737  ;;  %3808 = vst [vmem:[%s5199_s29 + $0x10] sm:$0xff] %v3798_v63  ;;  %3809 = vst [vmem:[%s5199_s29 + $0x18] sm:$0xff] %v3799_v20 }
 0xce3   : > { %4972 = vrsqrt.f32 %v3746_v9  ;;  %v3743_v62 = vmul.f32 0.00390625, %v3738_v25 }
 0xce4   : > { %4974 = vrsqrt.f32 %v3747_v3 }
 0xce5   : > { %v3748_v1 = vadd.f32 1e-05, %v3743_v62 }
 0xce7   : > { %4976 = vrsqrt.f32 %v3748_v1 }
 0xce9   : > { %v4971_v40 = vpop.eup %4970 }
 0xcea   : > { %v3754_v38 = vmul.f32 %v4971_v40, %v3702_v52  ;;  %v3755_v5 = vmul.f32 %v4971_v40, %v3703_v46 }
 0xcec   : > { %v3775_v32 = vmul.f32 %v3768_v45, %v3754_v38  ;;  %v3776_v26 = vmul.f32 %v3772_v15, %v3755_v5 }
 0xced   : > { %v4973_v56 = vpop.eup %4972 }
 0xcee   : > { %v4975_v6 = vpop.eup %4974  ;;  %v3796_v57 = vadd.f32 %v3789_v10, %v3775_v32  ;;  %v3797_v44 = vadd.f32 %v3793_v51, %v3776_v26  ;;  %v3758_v16 = vmul.f32 %v4973_v56, %v6076_v47  ;;  %v3759_v24 = vmul.f32 %v4973_v56, %v6078_v12 }
 0xcef   : > { %v3760_v8 = vmul.f32 %v4975_v6, %v3708_v53  ;;  %v3761_v50 = vmul.f32 %v4975_v6, %v3709_v59 }
 0xcf0   : > { %3806 = vst [vmem:[%s5199_s29] sm:$0xff] %v3796_v57  ;;  %3807 = vst [vmem:[%s5199_s29 + $0x8] sm:$0xff] %v3797_v44  ;;  %v3779_v52 = vmul.f32 %v3768_v45, %v3758_v16  ;;  %v3780_v46 = vmul.f32 %v3772_v15, %v3759_v24 }
 0xcf1   : > { %v4977_v35 = vpop.eup %4976  ;;  %v3781_v61 = vmul.f32 %v3768_v45, %v3760_v8  ;;  %v3782_v30 = vmul.f32 %v3772_v15, %v3761_v50 }
 0xcf2   : > { %v3800_v33 = vadd.f32 %v3789_v10, %v3779_v52  ;;  %v3801_v36 = vadd.f32 %v3793_v51, %v3780_v46  ;;  %v3762_v47 = vmul.f32 %v4977_v35, %v6082_v31  ;;  %v3763_v12 = vmul.f32 %v4977_v35, %v6084_v48 }
 0xcf3   : > { %v3802_v53 = vadd.f32 %v3789_v10, %v3781_v61  ;;  %v3803_v43 = vadd.f32 %v3793_v51, %v3782_v30 }
 0xcf4   : > { %3810 = vst [vmem:[%s5199_s29 + $0x20] sm:$0xff] %v3800_v33  ;;  %3811 = vst [vmem:[%s5199_s29 + $0x28] sm:$0xff] %v3801_v36  ;;  %v3783_v59 = vmul.f32 %v3768_v45, %v3762_v47  ;;  %v3784_v13 = vmul.f32 %v3772_v15, %v3763_v12 }
 0xcf5   : > { %3812 = vst [vmem:[%s5199_s29 + $0x30] sm:$0xff] %v3802_v53  ;;  %3813 = vst [vmem:[%s5199_s29 + $0x38] sm:$0xff] %v3803_v43 }
 0xcf6   : > { %v3804_v28 = vadd.f32 %v3789_v10, %v3783_v59  ;;  %v3805_v14 = vadd.f32 %v3793_v51, %v3784_v13 }
 0xcf8   : > { %3814 = vst [vmem:[%s5199_s29 + $0x40] sm:$0x1] %v3804_v28  ;;  %3815 = vst [vmem:[%s5199_s29 + $0x48] sm:$0x1] %v3805_v14 }
 0xcf9 PF: > { %s6190_s17 = sld [smem:[#allocation6_spill]]  ;;  %s6191_s18 = sld [smem:[#allocation4_spill]] }
 0xcfa   : > { %s6192_s19 = sld [smem:[#allocation5_spill]]  ;;  %s6193_s20 = sld [smem:[#allocation7_spill]] }
 0xcfb   : > { %s6194_s21 = sld [smem:[#allocation8_spill]] }
 0xcff   : > { %s25_s22 = sadd.s32 1, %s6190_s17  }
 0xd00   : > { %p22_p9 = scmp.ge.s32.totalorder %s25_s22, 10  }
 0xd02   :  { %24 = sbr.rel (!%p22_p9) target bundleno = 10 (0xa), region = 154 }

// kernel: _lambda_.5
= control target key start
LH: loop header
LB: loop body
LE: loop exit
PB: predicated region body
PF: predicated region fallthrough
CT: control target
= control target key end

     0   :  { %s3685_s18 = smov 0   ;;  %s4632_s0 = inlined_call_operand.vmem [shape: f32[8,17,256], index: 0, kind: input, shape index: {}]   ;;  %s4633_s1 = inlined_call_operand.vmem [shape: bf16[256,256], index: 1, kind: input, shape index: {}]   ;;  %s4634_s2 = inlined_call_operand.vmem [shape: f32[1,256], index: 2, kind: input, shape index: {}]   ;;  %s4635_s3 = inlined_call_operand.vmem [shape: bf16[256,512], index: 3, kind: input, shape index: {}]   ;;  %s4636_s4 = inlined_call_operand.vmem [shape: f32[1,512], index: 4, kind: input, shape index: {}]   ;;  %s4637_s5 = inlined_call_operand.vmem [shape: bf16[256,256], index: 5, kind: input, shape index: {}]   ;;  %s4638_s6 = inlined_call_operand.vmem [shape: f32[1,256], index: 6, kind: input, shape index: {}]   ;;  %s4639_s7 = inlined_call_operand.vmem [shape: f32[1,256], index: 7, kind: input, shape index: {}]   ;;  %s4640_s8 = inlined_call_operand.vmem [shape: f32[1,256], index: 8, kind: input, shape index: {}]   ;;  %s4641_s9 = inlined_call_operand.vmem [shape: bf16[256,512], index: 9, kind: input, shape index: {}]   ;;  %s4642_s10 = inlined_call_operand.vmem [shape: f32[1,512], index: 10, kind: input, shape index: {}]   ;;  %s4643_s11 = inlined_call_operand.vmem [shape: bf16[512,256], index: 11, kind: input, shape index: {}]   ;;  %s4644_s12 = inlined_call_operand.vmem [shape: f32[1,256], index: 12, kind: input, shape index: {}]   ;;  %s4645_s13 = inlined_call_operand.vmem [shape: f32[1,256], index: 13, kind: input, shape index: {}]   ;;  %s4646_s14 = inlined_call_operand.vmem [shape: f32[1,256], index: 14, kind: input, shape index: {}]   ;;  %s4647_s15 = inlined_call_operand.vmem [shape: f32[8,1,256], index: 15, kind: output, shape index: {}]  }
   0x1 LB: > { %s2872_s19 = sadd.s32 4294967295, %s3599_s18   ;;  %p2876_p0 = scmp.ge.s32.totalorder %s3599_s18, 1  ;;  %s3599_s18 = sphi %s3685_s18, %s25_s18  }
   0x2   : > { %p437_p1 = scmp.lt.s32.totalorder %s3599_s18, 9 }
   0x4   : > { %p438_p2 = pnand %p2876_p0, %p437_p1 }
   0x5   : > { %v3196_v0 = vld [vmem:[%s4635_s3 + $0x4] ss:$16 sps:$4 sm:$0xff] (!%p438_p2)   ;;  %v3198_v1 = vld [vmem:[%s4635_s3] ss:$16 sps:$4 sm:$0xff] (!%p438_p2)   ;;  %p484_p3 = scmp.lt.s32.totalorder (!%p438_p2), %s2872_s19, 7  ;;  %vm3602_vm0 = vmmov (!%p438_p2), 0  }
   0x6   : > { %441 = sbr.rel (%p438_p2) target bundleno = 2350 (0x92e), region = 80  ;;  %1157 = vmatprep.subr.bf16.mxu1 (!%p438_p2), %v3196_v0  ;;  %v3199_v2 = vld [vmem:[%s4635_s3 + $0x24] ss:$16 sps:$4 sm:$0xff] (!%p438_p2)   ;;  %v3201_v3 = vld [vmem:[%s4635_s3 + $0x20] ss:$16 sps:$4 sm:$0xff] (!%p438_p2)   ;;  %vm1322_vm1 = vcmask (!%p438_p2), 1040384  }
   0x7   : > { %1158 = vmatpush1.bf16.msra.mxu1 (!%p438_p2), %v3198_v1  ;;  %v3202_v4 = vld [vmem:[%s4635_s3 + $0x44] ss:$16 sps:$4 sm:$0xff] (!%p438_p2)   ;;  %v3210_v6 = vld [vmem:[%s4633_s1] ss:$8 sps:$4 sm:$0xff] (!%p438_p2)   ;;  %v3216_v10 = vld [vmem:[%s4633_s1 + $0x10] ss:$8 sps:$4 sm:$0xff] (!%p438_p2)  }
   0x8   : > { %1159 = vmatprep.subr.bf16.mxu1 (!%p438_p2), %v3199_v2  ;;  %v3207_v5 = vld [vmem:[%s4633_s1 + $0x4] ss:$8 sps:$4 sm:$0xff] (!%p438_p2)   ;;  %v3204_v7 = vld [vmem:[%s4635_s3 + $0x40] ss:$16 sps:$4 sm:$0xff] (!%p438_p2)   ;;  %v3213_v9 = vld [vmem:[%s4633_s1 + $0x14] ss:$8 sps:$4 sm:$0xff] (!%p438_p2)  }
   0x9   : > { %706 = vmatprep.subr.bf16.mxu0 (!%p438_p2), %v3207_v5  ;;  %v3205_v8 = vld [vmem:[%s4635_s3 + $0x64] ss:$16 sps:$4 sm:$0xff] (!%p438_p2)   ;;  %v3209_v11 = vld [vmem:[%s4635_s3 + $0x60] ss:$16 sps:$4 sm:$0xff] (!%p438_p2)   ;;  %vm1305_vm2 = vcmask (!%p438_p2), 131072   ;;  %vm1318_vm3 = vcmask (!%p438_p2), 138240  }
   0xa   : > { %707 = vmatpush1.bf16.msra.mxu0 (!%p438_p2), %v3210_v6  ;;  %v3211_v12 = vld [vmem:[%s4635_s3 + $0x84] ss:$16 sps:$4 sm:$0xff] (!%p438_p2)   ;;  %v3222_v14 = vld [vmem:[%s4633_s1 + $0x20] ss:$8 sps:$4 sm:$0xff] (!%p438_p2)   ;;  %v3228_v18 = vld [vmem:[%s4633_s1 + $0x30] ss:$8 sps:$4 sm:$0xff] (!%p438_p2)  }
   0xb   : > { %1160 = vmatpush1.bf16.msra.mxu1 (!%p438_p2), %v3201_v3  ;;  %708 = vmatprep.subr.bf16.mxu0 (!%p438_p2), %v3213_v9  ;;  %v3219_v13 = vld [vmem:[%s4633_s1 + $0x24] ss:$8 sps:$4 sm:$0xff] (!%p438_p2)   ;;  %v3225_v15 = vld [vmem:[%s4633_s1 + $0x34] ss:$8 sps:$4 sm:$0xff] (!%p438_p2)   ;;  %v3215_v16 = vld [vmem:[%s4635_s3 + $0x80] ss:$16 sps:$4 sm:$0xff] (!%p438_p2)  }
   0xc   : > { %1161 = vmatprep.subr.bf16.mxu1 (!%p438_p2), %v3202_v4  ;;  %v3217_v17 = vld [vmem:[%s4635_s3 + $0xa4] ss:$16 sps:$4 sm:$0xff] (!%p438_p2)   ;;  %v3221_v20 = vld [vmem:[%s4635_s3 + $0xa0] ss:$16 sps:$4 sm:$0xff] (!%p438_p2)  }
   0xd   : > { %v3231_v19 = vld [vmem:[%s4633_s1 + $0x44] ss:$8 sps:$4 sm:$0xff]   ;;  %v3234_v22 = vld [vmem:[%s4633_s1 + $0x40] ss:$8 sps:$4 sm:$0xff]   ;;  %v3237_v23 = vld [vmem:[%s4633_s1 + $0x54] ss:$8 sps:$4 sm:$0xff]  }
   0xe   : > { %709 = vmatpush1.bf16.msra.mxu0 %v3216_v10  ;;  %v3223_v21 = vld [vmem:[%s4635_s3 + $0xc4] ss:$16 sps:$4 sm:$0xff]   ;;  %v3227_v24 = vld [vmem:[%s4635_s3 + $0xc0] ss:$16 sps:$4 sm:$0xff]   ;;  %s4649_s19 = smov (!%p484_p3, %s2872_s19), 7 }
   0xf   : > { %1162 = vmatpush1.bf16.msra.mxu1 %v3204_v7  ;;  %710 = vmatprep.subr.bf16.mxu0 %v3219_v13  ;;  %v3229_v25 = vld [vmem:[%s4635_s3 + $0xe4] ss:$16 sps:$4 sm:$0xff]   ;;  %v3240_v26 = vld [vmem:[%s4633_s1 + $0x50] ss:$8 sps:$4 sm:$0xff]   ;;  %v3246_v30 = vld [vmem:[%s4633_s1 + $0x60] ss:$8 sps:$4 sm:$0xff]  }
  0x10   : > { %1163 = vmatprep.subr.bf16.mxu1 %v3205_v8  ;;  %v3243_v27 = vld [vmem:[%s4633_s1 + $0x64] ss:$8 sps:$4 sm:$0xff]   ;;  %v3233_v28 = vld [vmem:[%s4635_s3 + $0xe0] ss:$16 sps:$4 sm:$0xff]   ;;  %v3249_v31 = vld [vmem:[%s4633_s1 + $0x74] ss:$8 sps:$4 sm:$0xff]  }
  0x11   : > { %v3235_v29 = vld [vmem:[%s4635_s3 + $0x104] ss:$16 sps:$4 sm:$0xff]   ;;  %v3239_v32 = vld [vmem:[%s4635_s3 + $0x100] ss:$16 sps:$4 sm:$0xff]   ;;  %s3183_s21 = smul.u32 48, %s4649_s19  ;;  %s2878_s24 = sshll.u32 %s4649_s19, 1 }
  0x12   : > { %711 = vmatpush1.bf16.msra.mxu0 %v3222_v14  ;;  %v3241_v33 = vld [vmem:[%s4635_s3 + $0x124] ss:$16 sps:$4 sm:$0xff]   ;;  %v3252_v34 = vld [vmem:[%s4633_s1 + $0x70] ss:$8 sps:$4 sm:$0xff]   ;;  %v3258_v38 = vld [vmem:[%s4633_s1 + $0x80] ss:$8 sps:$4 sm:$0xff]   ;;  %s492_s27 = scalar_lea.vmem %s4647_s15, %s2878_s24 }
  0x13   : > { %1164 = vmatpush1.bf16.msra.mxu1 %v3209_v11  ;;  %712 = vmatprep.subr.bf16.mxu0 %v3225_v15  ;;  %v3255_v35 = vld [vmem:[%s4633_s1 + $0x84] ss:$8 sps:$4 sm:$0xff]   ;;  %v3245_v36 = vld [vmem:[%s4635_s3 + $0x120] ss:$16 sps:$4 sm:$0xff]   ;;  %s3817_s22 = scalar_lea.vmem %s4632_s0, %s3183_s21  ;;  %v3261_v39 = vld [vmem:[%s4633_s1 + $0x94] ss:$8 sps:$4 sm:$0xff]  }
  0x14   : > { %1165 = vmatprep.subr.bf16.mxu1 %v3211_v12  ;;  %v3247_v37 = vld [vmem:[%s4635_s3 + $0x144] ss:$16 sps:$4 sm:$0xff]   ;;  %v495_v40 = vld [vmem:[%s3817_s22 + $0x8] sm:$0xff]  ;;  %v3251_v41 = vld [vmem:[%s4635_s3 + $0x140] ss:$16 sps:$4 sm:$0xff]  }
  0x15   : > { %v3253_v42 = vld [vmem:[%s4635_s3 + $0x164] ss:$16 sps:$4 sm:$0xff]   ;;  %v497_v43 = vld [vmem:[%s3817_s22 + $0x18] sm:$0xff]  ;;  %v501_v44 = vpack.c.bf16 %v495_v40, %v495_v40  ;;  %v3257_v48 = vld [vmem:[%s4635_s3 + $0x160] ss:$16 sps:$4 sm:$0xff]  }
  0x16   : > { %713 = vmatpush1.bf16.msra.mxu0 %v3228_v18  ;;  %v3264_v45 = vld [vmem:[%s4633_s1 + $0x90] ss:$8 sps:$4 sm:$0xff]   ;;  %v3836_v46 = vpack.c.bf16 %v497_v43, %v495_v40  ;;  %v3267_v47 = vld [vmem:[%s4633_s1 + $0xa4] ss:$8 sps:$4 sm:$0xff]   ;;  %v3270_v50 = vld [vmem:[%s4633_s1 + $0xa0] ss:$8 sps:$4 sm:$0xff]  }
  0x17   : > { %1166 = vmatpush1.bf16.msra.mxu1 %v3215_v16  ;;  %714 = vmatprep.subr.bf16.mxu0 %v3231_v19  ;;  %v3259_v49 = vld [vmem:[%s4635_s3 + $0x184] ss:$16 sps:$4 sm:$0xff]   ;;  %v3263_v52 = vld [vmem:[%s4635_s3 + $0x180] ss:$16 sps:$4 sm:$0xff]   ;;  %v499_v4 = vld [vmem:[%s3817_s22 + $0x28] sm:$0x1] }
  0x18   : > { %1167 = vmatprep.subr.bf16.mxu1 %v3217_v17  ;;  %738 = vmatprep.mubr.bf16.mxu0 %v501_v44  ;;  %v3273_v51 = vld [vmem:[%s4633_s1 + $0xb4] ss:$8 sps:$4 sm:$0xff]   ;;  %v3276_v54 = vld [vmem:[%s4633_s1 + $0xb0] ss:$8 sps:$4 sm:$0xff]   ;;  %v3279_v55 = vld [vmem:[%s4633_s1 + $0xc4] ss:$8 sps:$4 sm:$0xff]   ;;  %v3907_v7 = vpack.c.bf16 %v499_v4, %v499_v4 }
  0x19   : > { %1189 = vmatprep.mubr.bf16.mxu1 %v3836_v46  ;;  %v3265_v53 = vld [vmem:[%s4635_s3 + $0x1a4] ss:$16 sps:$4 sm:$0xff]   ;;  %v3269_v56 = vld [vmem:[%s4635_s3 + $0x1a0] ss:$16 sps:$4 sm:$0xff]   ;;  %v3294_v10 = vld [vmem:[%s4635_s3 + $0xc] ss:$16 sps:$4 sm:$0xff]  }
  0x1a   : > { %715 = vmatpush1.bf16.msra.mxu0 %v3234_v22  ;;  %v3271_v57 = vld [vmem:[%s4635_s3 + $0x1c4] ss:$16 sps:$4 sm:$0xff]   ;;  %v3282_v58 = vld [vmem:[%s4633_s1 + $0xc0] ss:$8 sps:$4 sm:$0xff]   ;;  %v3285_v62 = vld [vmem:[%s4633_s1 + $0xd0] ss:$8 sps:$4 sm:$0xff]  }
  0x1b   : > { %1168 = vmatpush1.bf16.msra.mxu1 %v3221_v20  ;;  %716 = vmatprep.subr.bf16.mxu0 %v3237_v23  ;;  %v3283_v59 = vld [vmem:[%s4633_s1 + $0xd4] ss:$8 sps:$4 sm:$0xff]   ;;  %v3275_v60 = vld [vmem:[%s4635_s3 + $0x1c0] ss:$16 sps:$4 sm:$0xff]   ;;  %v3286_v0 = vld [vmem:[%s4633_s1 + $0xe4] ss:$8 sps:$4 sm:$0xff]  }
  0x1c   : > { %1169 = vmatprep.subr.bf16.mxu1 %v3223_v21  ;;  %v3277_v61 = vld [vmem:[%s4635_s3 + $0x1e4] ss:$16 sps:$4 sm:$0xff]   ;;  %v3281_v63 = vld [vmem:[%s4635_s3 + $0x1e0] ss:$16 sps:$4 sm:$0xff]   ;;  %v3292_v11 = vld [vmem:[%s4635_s3 + $0x8] ss:$16 sps:$4 sm:$0xff]  }
  0x1d   : > { %v3894_v1 = vld [vmem:[%s3817_s22] sm:$0xff]  ;;  %v496_v2 = vld [vmem:[%s3817_s22 + $0x10] sm:$0xff]  ;;  %v3297_v13 = vld [vmem:[%s4635_s3 + $0x2c] ss:$16 sps:$4 sm:$0xff]   ;;  %v3601_v44 = vmov 0.0  }
  0x1e   : > { %717 = vmatpush1.bf16.msra.mxu0 %v3240_v26  ;;  %v3288_v3 = vld [vmem:[%s4633_s1 + $0xe0] ss:$8 sps:$4 sm:$0xff]   ;;  %v3289_v5 = vld [vmem:[%s4633_s1 + $0xf4] ss:$8 sps:$4 sm:$0xff]   ;;  %v3905_v6 = vpack.c.bf16 %v496_v2, %v3894_v1  ;;  %v3291_v8 = vld [vmem:[%s4633_s1 + $0xf0] ss:$8 sps:$4 sm:$0xff]   ;;  %v500_v12 = vpack.c.bf16 %v3894_v1, %v3894_v1 }
  0x1f   : > { %1170 = vmatpush1.bf16.msra.mxu1 %v3227_v24  ;;  %718 = vmatprep.subr.bf16.mxu0 %v3243_v27  ;;  %v498_v9 = vld [vmem:[%s3817_s22 + $0x20] sm:$0x1]  ;;  %v3295_v15 = vld [vmem:[%s4635_s3 + $0x28] ss:$16 sps:$4 sm:$0xff]   ;;  %v3300_v16 = vld [vmem:[%s4635_s3 + $0x4c] ss:$16 sps:$4 sm:$0xff]  }
  0x20   : > { %1171 = vmatprep.subr.bf16.mxu1 %v3229_v25  ;;  %v3926_v14 = vpack.c.bf16 %v498_v9, %v498_v9  ;;  %v3298_v17 = vld [vmem:[%s4635_s3 + $0x48] ss:$16 sps:$4 sm:$0xff]   ;;  %v3303_v18 = vld [vmem:[%s4635_s3 + $0x6c] ss:$16 sps:$4 sm:$0xff]  }
  0x21   : > { %v3301_v19 = vld [vmem:[%s4635_s3 + $0x68] ss:$16 sps:$4 sm:$0xff]   ;;  %v3306_v20 = vld [vmem:[%s4635_s3 + $0x8c] ss:$16 sps:$4 sm:$0xff]  }
  0x22   : > { %719 = vmatpush1.bf16.msra.mxu0 %v3246_v30  ;;  %v3304_v21 = vld [vmem:[%s4635_s3 + $0x88] ss:$16 sps:$4 sm:$0xff]   ;;  %v3309_v22 = vld [vmem:[%s4635_s3 + $0xac] ss:$16 sps:$4 sm:$0xff]  }
  0x23   : > { %1172 = vmatpush1.bf16.msra.mxu1 %v3233_v28  ;;  %720 = vmatprep.subr.bf16.mxu0 %v3249_v31  ;;  %v3307_v23 = vld [vmem:[%s4635_s3 + $0xa8] ss:$16 sps:$4 sm:$0xff]   ;;  %v3312_v24 = vld [vmem:[%s4635_s3 + $0xcc] ss:$16 sps:$4 sm:$0xff]  }
  0x24   : > { %1173 = vmatprep.subr.bf16.mxu1 %v3235_v29  ;;  %v3310_v25 = vld [vmem:[%s4635_s3 + $0xc8] ss:$16 sps:$4 sm:$0xff]   ;;  %v3315_v26 = vld [vmem:[%s4635_s3 + $0xec] ss:$16 sps:$4 sm:$0xff]  }
  0x25   : > { %v3313_v27 = vld [vmem:[%s4635_s3 + $0xe8] ss:$16 sps:$4 sm:$0xff]   ;;  %v3318_v28 = vld [vmem:[%s4635_s3 + $0x10c] ss:$16 sps:$4 sm:$0xff]  }
  0x26   : > { %721 = vmatpush1.bf16.msra.mxu0 %v3252_v34  ;;  %v3316_v29 = vld [vmem:[%s4635_s3 + $0x108] ss:$16 sps:$4 sm:$0xff]   ;;  %v3321_v30 = vld [vmem:[%s4635_s3 + $0x12c] ss:$16 sps:$4 sm:$0xff]  }
  0x27   : > { %1174 = vmatpush1.bf16.msra.mxu1 %v3239_v32  ;;  %722 = vmatprep.subr.bf16.mxu0 %v3255_v35  ;;  %v3319_v31 = vld [vmem:[%s4635_s3 + $0x128] ss:$16 sps:$4 sm:$0xff]   ;;  %v3324_v32 = vld [vmem:[%s4635_s3 + $0x14c] ss:$16 sps:$4 sm:$0xff]  }
  0x28   : > { %1175 = vmatprep.subr.bf16.mxu1 %v3241_v33  ;;  %v3322_v33 = vld [vmem:[%s4635_s3 + $0x148] ss:$16 sps:$4 sm:$0xff]   ;;  %v3327_v34 = vld [vmem:[%s4635_s3 + $0x16c] ss:$16 sps:$4 sm:$0xff]  }
  0x29   : > { %v3325_v35 = vld [vmem:[%s4635_s3 + $0x168] ss:$16 sps:$4 sm:$0xff]   ;;  %v3336_v40 = vld [vmem:[%s4635_s3 + $0x1cc] ss:$16 sps:$4 sm:$0xff]  }
  0x2a   : > { %723 = vmatpush1.bf16.msra.mxu0 %v3258_v38  ;;  %v3333_v38 = vld [vmem:[%s4635_s3 + $0x1ac] ss:$16 sps:$4 sm:$0xff]   ;;  %v3337_v43 = vld [vmem:[%s4635_s3 + $0x1e8] ss:$16 sps:$4 sm:$0xff]  }
  0x2b   : > { %1176 = vmatpush1.bf16.msra.mxu1 %v3245_v36  ;;  %724 = vmatprep.subr.bf16.mxu0 %v3261_v39  ;;  %v3330_v36 = vld [vmem:[%s4635_s3 + $0x18c] ss:$16 sps:$4 sm:$0xff]   ;;  %v3331_v39 = vld [vmem:[%s4635_s3 + $0x1a8] ss:$16 sps:$4 sm:$0xff]  }
  0x2c   : > { %1177 = vmatprep.subr.bf16.mxu1 %v3247_v37  ;;  %v3328_v37 = vld [vmem:[%s4635_s3 + $0x188] ss:$16 sps:$4 sm:$0xff]  }
  0x2e   : > { %725 = vmatpush1.bf16.msra.mxu0 %v3264_v45  ;;  %v696_v45 = vlaneseq }
  0x2f   : > { %1178 = vmatpush1.bf16.msra.mxu1 %v3251_v41  ;;  %726 = vmatprep.subr.bf16.mxu0 %v3267_v47  ;;  %v3334_v41 = vld [vmem:[%s4635_s3 + $0x1c8] ss:$16 sps:$4 sm:$0xff]  }
  0x30   : > { %1179 = vmatprep.subr.bf16.mxu1 %v3253_v42  ;;  %v3339_v42 = vld [vmem:[%s4635_s3 + $0x1ec] ss:$16 sps:$4 sm:$0xff]   ;;  %vm2816_vm4 = vcmp.lt.s32.totalorder %v696_v45, 256 }
  0x32   : > { %727 = vmatpush1.bf16.msra.mxu0 %v3270_v50 }
  0x33   : > { %1180 = vmatpush1.bf16.msra.mxu1 %v3257_v48  ;;  %728 = vmatprep.subr.bf16.mxu0 %v3273_v51  ;;  %v815_v48 = vld [vmem:[%s4636_s4] sm:$0xf] }
  0x34   : > { %1181 = vmatprep.subr.bf16.mxu1 %v3259_v49 }
  0x36   : > { %729 = vmatpush1.bf16.msra.mxu0 %v3276_v54 }
  0x37   : > { %1182 = vmatpush1.bf16.msra.mxu1 %v3263_v52  ;;  %730 = vmatprep.subr.bf16.mxu0 %v3279_v55 }
  0x38   : > { %1183 = vmatprep.subr.bf16.mxu1 %v3265_v53 }
  0x3a   : > { %731 = vmatpush1.bf16.msra.mxu0 %v3282_v58  ;;  %v534_v58 = vld [vmem:[%s4634_s2] sm:$0x3] }
  0x3b   : > { %1184 = vmatpush1.bf16.msra.mxu1 %v3269_v56  ;;  %732 = vmatprep.subr.bf16.mxu0 %v3283_v59 }
  0x3c   : > { %1185 = vmatprep.subr.bf16.mxu1 %v3271_v57 }
  0x3e   : > { %733 = vmatpush1.bf16.msra.mxu0 %v3285_v62 }
  0x3f   : > { %1186 = vmatpush1.bf16.msra.mxu1 %v3275_v60  ;;  %734 = vmatprep.subr.bf16.mxu0 %v3286_v0 }
  0x40   : > { %1187 = vmatprep.subr.bf16.mxu1 %v3277_v61 }
  0x42   : > { %735 = vmatpush1.bf16.msra.mxu0 %v3288_v3 }
  0x43   : > { %1188 = vmatpush1.bf16.msra.mxu1 %v3281_v63  ;;  %736 = vmatprep.subr.bf16.mxu0 %v3289_v5 }
  0x44   : > { %3151 = vmatprep.subr.bf16.mxu1 %v3601_v44 }
  0x46   : > { %1190 = vmatmul.mubr.bf16.vlgmr.msra.gmra.mrb[0].mxu1 %v3905_v6  ;;  %737 = vmatpush1.bf16.msra.mxu0 %v3291_v8 }
  0x47   : > { %1199 = vmatprep.mubr.bf16.mxu1 %v3907_v7  ;;  %1208 = vmatprep.subr.bf16.mxu0 %v3294_v10 }
  0x49   : > { %739 = vmatmul.mubr.bf16.vlgmr.msra.gmra.mrb[0].mxu0 %v500_v12 }
  0x4a   : > { %1209 = vmatpush1.bf16.msra.mxu0 %v3292_v11  ;;  %1240 = vmatprep.mubr.bf16.mxu0 %v3836_v46  ;;  %v4027_v46 = vshrl.u32 %v696_v45, 7 }
  0x4b   : > { %1210 = vmatprep.subr.bf16.mxu0 %v3297_v13 }
  0x4c   : > { %v4030_v47 = vsub.s32 0, %v4027_v46  ;;  %v4036_v49 = vsub.s32 1, %v4027_v46 }
  0x4e   : > { %1200 = vmatmul.mubr.bf16.gmra.mrb[4].mxu1 %v3926_v14  ;;  %1211 = vmatpush1.bf16.msra.mxu0 %v3295_v15  ;;  %v820_v50 = vrot.slane %v815_v48, %v4030_v47  ;;  %v824_v52 = vrot.slane %v815_v48, %v4036_v49  ;;  %v699_v0 = vrot.slane %v534_v58, %v4030_v47 }
  0x4f   : > { %1212 = vmatprep.subr.bf16.mxu0 %v3300_v16  ;;  %3155 = vmatprep.mubr.msk.bf16.mxu1 %vm3602_vm0, %v3601_v44  ;;  %v703_v3 = vrot.slane %v534_v58, %v4036_v49 }
  0x52   : > { %1213 = vmatpush1.bf16.msra.mxu0 %v3298_v17 }
  0x53   : > { %1214 = vmatprep.subr.bf16.mxu0 %v3303_v18 }
  0x56   : > { %1215 = vmatpush1.bf16.msra.mxu0 %v3301_v19 }
  0x57   : > { %1216 = vmatprep.subr.bf16.mxu0 %v3306_v20  ;;  %v827_v20 = vsub.s32 2, %v4027_v46 }
  0x5a   : > { %1217 = vmatpush1.bf16.msra.mxu0 %v3304_v21  ;;  %v831_v21 = vsub.s32 3, %v4027_v46 }
  0x5b   : > { %1218 = vmatprep.subr.bf16.mxu0 %v3309_v22  ;;  %v828_v22 = vrot.slane %v815_v48, %v827_v20 }
  0x5e   : > { %1219 = vmatpush1.bf16.msra.mxu0 %v3307_v23  ;;  %v832_v23 = vrot.slane %v815_v48, %v831_v21 }
  0x5f   : > { %1220 = vmatprep.subr.bf16.mxu0 %v3312_v24 }
  0x62   : > { %1221 = vmatpush1.bf16.msra.mxu0 %v3310_v25 }
  0x63   : > { %1222 = vmatprep.subr.bf16.mxu0 %v3315_v26 }
  0x66   : > { %1223 = vmatpush1.bf16.msra.mxu0 %v3313_v27 }
  0x67   : > { %1224 = vmatprep.subr.bf16.mxu0 %v3318_v28 }
  0x6a   : > { %1225 = vmatpush1.bf16.msra.mxu0 %v3316_v29 }
  0x6b   : > { %1226 = vmatprep.subr.bf16.mxu0 %v3321_v30 }
  0x6e   : > { %1227 = vmatpush1.bf16.msra.mxu0 %v3319_v31 }
  0x6f   : > { %1228 = vmatprep.subr.bf16.mxu0 %v3324_v32 }
  0x72   : > { %1229 = vmatpush1.bf16.msra.mxu0 %v3322_v33 }
  0x73   : > { %1230 = vmatprep.subr.bf16.mxu0 %v3327_v34 }
  0x76   : > { %1231 = vmatpush1.bf16.msra.mxu0 %v3325_v35 }
  0x77   : > { %1232 = vmatprep.subr.bf16.mxu0 %v3330_v36 }
  0x7a   : > { %1233 = vmatpush1.bf16.msra.mxu0 %v3328_v37  ;;  %v3603_v37 = vmov 0  }
  0x7b   : > { %1234 = vmatprep.subr.bf16.mxu0 %v3333_v38  ;;  %v1324_v38 = vsel %vm1322_vm1, 65535, %v3603_v37  ;;  %v3372_v37 = vld [vmem:[%s4637_s5 + $0xa4] ss:$8 sps:$4 sm:$0xff]  }
  0x7e   : > { %1235 = vmatpush1.bf16.msra.mxu0 %v3331_v39 }
  0x7f   : > { %1236 = vmatprep.subr.bf16.mxu0 %v3336_v40 }
  0x82   : > { %1237 = vmatpush1.bf16.msra.mxu0 %v3334_v41 }
  0x83   : > { %1238 = vmatprep.subr.bf16.mxu0 %v3339_v42 }
  0x86   : > { %1239 = vmatpush1.bf16.msra.mxu0 %v3337_v43 }
  0x87   : > { %3167 = vmatprep.subr.bf16.mxu0 %v3601_v44 }
  0x89   : > { %1241 = vmatmul.mubr.bf16.vlgmr.msra.gmra.mrb[4].mxu0 %v3905_v6 }
  0x8a   : > { %1250 = vmatprep.mubr.bf16.mxu0 %v3907_v7 }
  0x91   : > { %1251 = vmatmul.mubr.bf16.gmra.mrb[8].mxu0 %v3926_v14 }
  0x92   : > { %3171 = vmatprep.mubr.msk.bf16.mxu0 %vm3602_vm0, %v3601_v44 }
 0x119   : > { %v1191_v51 = vpop.f32.mrb[0].mxu1 }
 0x11a   : > { %v1193_v53 = vpop.f32.mrb[1].mxu1  ;;  %v1192_v55 = vadd.f32 %v1191_v51, %v820_v50 }
 0x11b   : > { %v1195_v54 = vpop.f32.mrb[2].mxu1  ;;  %v1194_v59 = vadd.f32 %v1193_v53, %v824_v52 }
 0x11c   : > { %v1196_v56 = vadd.f32 %v1195_v54, %v820_v50  ;;  %v1197_v57 = vpop.f32.mrb[3].mxu1  ;;  %v740_v62 = vpop.f32.mrb[0].mxu0 }
 0x11d   : > { %v1198_v60 = vadd.f32 %v1197_v57, %v824_v52  ;;  %v742_v2 = vpop.f32.mrb[1].mxu0  ;;  %v741_v11 = vadd.f32 %v740_v62, %v699_v0 }
 0x11e   : > { %v1261_v61 = vpack.c.bf16 %v1196_v56, %v1192_v55  ;;  %v744_v4 = vpop.f32.mrb[2].mxu0  ;;  %v743_v14 = vadd.f32 %v742_v2, %v703_v3 }
 0x11f   : > { %v1370_v63 = vpack.c.bf16 %v1198_v60, %v1194_v59  ;;  %v745_v6 = vpop.f32.mrb[3].mxu0  ;;  %v1259_v16 = vmul.f32 0.088388346, %v741_v11 }
 0x120   : > { %3152 = vmatpush3.bf16.xpose.msra.mxu1 %v1261_v61  ;;  %v1368_v17 = vmul.f32 0.088388346, %v743_v14 }
 0x121   : > { %v1201_v5 = vpop.f32.mrb[4].mxu1  ;;  %3168 = vmatpush3.bf16.xpose.msra.mxu0 %v1370_v63  ;;  %3153 = vmatprep.subr.bf16.mxu1 %v3601_v44  ;;  %v1260_v18 = vpack.c.bf16 %v1259_v16, %v1259_v16 }
 0x122   : > { %v1202_v7 = vadd.f32 %v1201_v5, %v820_v50  ;;  %v1203_v8 = vpop.f32.mrb[5].mxu1  ;;  %3169 = vmatprep.subr.bf16.mxu0 %v3601_v44  ;;  %v1369_v19 = vpack.c.bf16 %v1368_v17, %v1368_v17  ;;  %v3345_v17 = vld [vmem:[%s4637_s5 + $0x14] ss:$8 sps:$4 sm:$0xff]  }
 0x123   : > { %v1204_v9 = vadd.f32 %v1203_v8, %v824_v52  ;;  %v1205_v10 = vpop.f32.mrb[6].mxu1 }
 0x124   : > { %v1262_v12 = vpack.c.bf16 %v1202_v7, %v1202_v7  ;;  %v1206_v13 = vpop.f32.mrb[7].mxu1  ;;  %v3342_v7 = vld [vmem:[%s4637_s5 + $0x4] ss:$8 sps:$4 sm:$0xff]  }
 0x125   : > { %v1371_v15 = vpack.c.bf16 %v1204_v9, %v1204_v9 }
 0x128   : > { %3154 = vmatpush3.bf16.xpose.msra.mxu1 %v1262_v12 }
 0x129   : > { %3170 = vmatpush3.bf16.xpose.msra.mxu0 %v1371_v15  ;;  %3159 = vmatprep.subr.bf16.mxu1 %v3601_v44  ;;  %v3340_v15 = vld [vmem:[%s4637_s5] ss:$8 sps:$4 sm:$0xff]  }
 0x12a   : > { %3175 = vmatprep.subr.bf16.mxu0 %v3601_v44 }
 0x12f   : > { %3156 = vmatmul.mubr.bf16.vlgmr.msra.gmra.mrb[8].mxu1 %v1260_v18  ;;  %v3343_v18 = vld [vmem:[%s4637_s5 + $0x10] ss:$8 sps:$4 sm:$0xff]  }
 0x130   : > { %3172 = vmatmul.mubr.bf16.vlgmr.msra.gmra.mrb[12].mxu0 %v1369_v19  ;;  %3163 = vmatprep.mubr.msk.bf16.mxu1 %vm3602_vm0, %v3601_v44  ;;  %v3348_v19 = vld [vmem:[%s4637_s5 + $0x24] ss:$8 sps:$4 sm:$0xff]  }
 0x131   : > { %3179 = vmatprep.mubr.msk.bf16.mxu0 %vm3602_vm0, %v3601_v44 }
 0x15c   : > { %v1242_v24 = vpop.f32.mrb[4].mxu0 }
 0x15d   : > { %v1243_v25 = vadd.f32 %v1242_v24, %v828_v22  ;;  %v1244_v26 = vpop.f32.mrb[5].mxu0  ;;  %v3349_v24 = vld [vmem:[%s4637_s5 + $0x30] ss:$8 sps:$4 sm:$0xff]  }
 0x15e   : > { %v1245_v27 = vadd.f32 %v1244_v26, %v832_v23  ;;  %v1246_v28 = vpop.f32.mrb[6].mxu0  ;;  %v3352_v26 = vld [vmem:[%s4637_s5 + $0x40] ss:$8 sps:$4 sm:$0xff]  }
 0x15f   : > { %v1247_v29 = vadd.f32 %v1246_v28, %v828_v22  ;;  %v1248_v30 = vpop.f32.mrb[7].mxu0  ;;  %v3355_v28 = vld [vmem:[%s4637_s5 + $0x50] ss:$8 sps:$4 sm:$0xff]  }
 0x160   : > { %v1249_v31 = vadd.f32 %v1248_v30, %v832_v23  ;;  %v3358_v30 = vld [vmem:[%s4637_s5 + $0x60] ss:$8 sps:$4 sm:$0xff]  }
 0x161   : > { %v1263_v32 = vpack.c.bf16 %v1247_v29, %v1243_v25  ;;  %v3354_v25 = vld [vmem:[%s4637_s5 + $0x44] ss:$8 sps:$4 sm:$0xff]  }
 0x162   : > { %v1372_v33 = vpack.c.bf16 %v1249_v31, %v1245_v27  ;;  %v3357_v27 = vld [vmem:[%s4637_s5 + $0x54] ss:$8 sps:$4 sm:$0xff]   ;;  %v3360_v29 = vld [vmem:[%s4637_s5 + $0x64] ss:$8 sps:$4 sm:$0xff]  }
 0x163   : > { %3160 = vmatpush3.bf16.msra.mxu1 %v1263_v32  ;;  %v3363_v31 = vld [vmem:[%s4637_s5 + $0x74] ss:$8 sps:$4 sm:$0xff]   ;;  %v3361_v32 = vld [vmem:[%s4637_s5 + $0x70] ss:$8 sps:$4 sm:$0xff]  }
 0x164   : > { %v1252_v34 = vpop.f32.mrb[8].mxu0  ;;  %3176 = vmatpush3.bf16.msra.mxu0 %v1372_v33  ;;  %3161 = vmatprep.subr.bf16.mxu1 %v3601_v44  ;;  %v3366_v33 = vld [vmem:[%s4637_s5 + $0x84] ss:$8 sps:$4 sm:$0xff]  }
 0x165   : > { %v1253_v35 = vadd.f32 %v1252_v34, %v828_v22  ;;  %v1254_v36 = vpop.f32.mrb[9].mxu0  ;;  %3177 = vmatprep.subr.bf16.mxu0 %v3601_v44  ;;  %v3346_v22 = vld [vmem:[%s4637_s5 + $0x20] ss:$8 sps:$4 sm:$0xff]  }
 0x166   : > { %v1255_v39 = vadd.f32 %v1254_v36, %v832_v23  ;;  %v1256_v40 = vpop.f32.mrb[10].mxu0  ;;  %v3351_v23 = vld [vmem:[%s4637_s5 + $0x34] ss:$8 sps:$4 sm:$0xff]   ;;  %v3364_v34 = vld [vmem:[%s4637_s5 + $0x80] ss:$8 sps:$4 sm:$0xff]  }
 0x167   : > { %v1264_v41 = vpack.c.bf16 %v1253_v35, %v1253_v35  ;;  %v1257_v42 = vpop.f32.mrb[11].mxu0  ;;  %v3369_v35 = vld [vmem:[%s4637_s5 + $0x94] ss:$8 sps:$4 sm:$0xff]   ;;  %v3367_v36 = vld [vmem:[%s4637_s5 + $0x90] ss:$8 sps:$4 sm:$0xff]  }
 0x168   : > { %v1373_v43 = vpack.c.bf16 %v1255_v39, %v1255_v39  ;;  %v3375_v39 = vld [vmem:[%s4637_s5 + $0xb4] ss:$8 sps:$4 sm:$0xff]   ;;  %v3373_v40 = vld [vmem:[%s4637_s5 + $0xb0] ss:$8 sps:$4 sm:$0xff]   ;;  %v3376_v42 = vld [vmem:[%s4637_s5 + $0xc0] ss:$8 sps:$4 sm:$0xff]  }
 0x169   : > { %v1326_v48 = vand.u32 %v1324_v38, %v1264_v41  ;;  %v3378_v41 = vld [vmem:[%s4637_s5 + $0xc4] ss:$8 sps:$4 sm:$0xff]  }
 0x16a   : > { %v1430_v50 = vand.u32 %v1373_v43, %v1324_v38  ;;  %v3370_v38 = vld [vmem:[%s4637_s5 + $0xa0] ss:$8 sps:$4 sm:$0xff]   ;;  %v3381_v43 = vld [vmem:[%s4637_s5 + $0xd4] ss:$8 sps:$4 sm:$0xff]  }
 0x16b   : > { %3162 = vmatpush3.bf16.msra.mxu1 %v1326_v48  ;;  %v3379_v48 = vld [vmem:[%s4637_s5 + $0xd0] ss:$8 sps:$4 sm:$0xff]  }
 0x16c   : > { %3178 = vmatpush3.bf16.msra.mxu0 %v1430_v50  ;;  %1678 = vmatprep.subr.bf16.mxu1 %v3342_v7  ;;  %v3384_v50 = vld [vmem:[%s4637_s5 + $0xe4] ss:$8 sps:$4 sm:$0xff]  }
 0x202   : > { %v1299_v51 = vpop.f32.mrb[8].mxu1 }
 0x203   : > { %v3157_v52 = vpop.f32.mrb[9].mxu1  ;;  %v1408_v53 = vpop.f32.mrb[12].mxu0  ;;  %v1306_v59 = vsel %vm1305_vm2, %v1299_v51, -inf }
 0x204   : > { %v1302_v54 = vpop.f32.mrb[10].mxu1  ;;  %v3173_v55 = vpop.f32.mrb[13].mxu0  ;;  %v1414_v44 = vsel %vm1305_vm2, %v1408_v53, -inf  ;;  %v3387_v52 = vld [vmem:[%s4637_s5 + $0xf4] ss:$8 sps:$4 sm:$0xff]  }
 0x205   : > { %1415 = vmax.xlane.f32.xlu0 %v1414_v44  ;;  %v3158_v56 = vpop.f32.mrb[11].mxu1  ;;  %v1411_v57 = vpop.f32.mrb[14].mxu0 }
 0x206   : > { %v3174_v58 = vpop.f32.mrb[15].mxu0 }
 0x209   : > { %1307 = vmax.xlane.f32.xlu0 %v1306_v59 }
 0x292   : > { %v1416_v60 = vpop.xlane.xlu0 %1415 }
 0x293   : > { %v1417_v61 = vsub.f32 %v1408_v53, %v1416_v60  ;;  %v3385_v53 = vld [vmem:[%s4637_s5 + $0xf0] ss:$8 sps:$4 sm:$0xff]  }
 0x295   : > { %v1418_v62 = vmul.f32 1.442695, %v1417_v61 }
 0x296   : > { %v1308_v63 = vpop.xlane.xlu0 %1307 }
 0x297   : > { %3580 = vpow2.f32 %v1418_v62  ;;  %v1309_v0 = vsub.f32 %v1299_v51, %v1308_v63  ;;  %v3382_v51 = vld [vmem:[%s4637_s5 + $0xe0] ss:$8 sps:$4 sm:$0xff]  }
 0x298   : > { %v1506_v63 = vld [vmem:[%s4638_s6] sm:$0x3] }
 0x299   : > { %v1310_v2 = vmul.f32 1.442695, %v1309_v0  ;;  %v1671_v0 = vrot.slane %v1506_v63, %v4030_v47 }
 0x29b   : > { %3582 = vpow2.f32 %v1310_v2  ;;  %v1675_v2 = vrot.slane %v1506_v63, %v4036_v49 }
 0x2a1   : > { %v3581_v3 = vpop.eup %3580 }
 0x2a2   : > { %v1420_v4 = vsel %vm1305_vm2, %v3581_v3, 0.0 }
 0x2a3   : > { %1421 = vadd.xlane.f32.xlu1 %v1420_v4 }
 0x2a5   : > { %v3583_v5 = vpop.eup %3582 }
 0x2a6   : > { %v1312_v6 = vsel %vm1305_vm2, %v3583_v5, 0.0 }
 0x2a7   : > { %1313 = vadd.xlane.f32.xlu1 %v1312_v6 }
 0x330   : > { %v1422_v8 = vpop.xlane.xlu1 %1421 }
 0x331   : > { %3584 = vrcp.f32 %v1422_v8 }
 0x334   : > { %v1314_v9 = vpop.xlane.xlu1 %1313 }
 0x335   : > { %3586 = vrcp.f32 %v1314_v9 }
 0x33b   : > { %v3585_v10 = vpop.eup %3584 }
 0x33c   : > { %v1424_v11 = vmul.f32 %v3585_v10, %v3581_v3  ;;  %v3592_v10 = vld [vmem:[%s3817_s22 + $0x8] sm:$0xff] }
 0x33e   : > { %v1425_v12 = vpack.c.bf16 %v1424_v11, %v1424_v11 }
 0x33f   : > { %v3587_v13 = vpop.eup %3586 }
 0x340   : > { %v1316_v14 = vmul.f32 %v3587_v13, %v3583_v5  ;;  %3180 = vmatmul.mubr.msk.bf16.vlgmr.msra.gmra.mrb[16].mxu0 %vm1318_vm3, %v1425_v12 }
 0x342   : > { %v1317_v16 = vpack.c.bf16 %v1316_v14, %v1316_v14 }
 0x344   : > { %3164 = vmatmul.mubr.msk.bf16.vlgmr.msra.gmra.mrb[12].mxu1 %vm1318_vm3, %v1317_v16  ;;  %v3391_v16 = vld [vmem:[%s4641_s9 + $0x8] ss:$16 sps:$4 sm:$0xff]  }
 0x345   : > { %1679 = vmatpush1.bf16.msra.mxu1 %v3340_v15  ;;  %v3388_v15 = vld [vmem:[%s4641_s9] ss:$16 sps:$4 sm:$0xff]  }
 0x346   : > { %1680 = vmatprep.subr.bf16.mxu1 %v3345_v17  ;;  %v3393_v17 = vld [vmem:[%s4641_s9 + $0xc] ss:$16 sps:$4 sm:$0xff]  }
 0x349   : > { %1681 = vmatpush1.bf16.msra.mxu1 %v3343_v18  ;;  %v3396_v18 = vld [vmem:[%s4641_s9 + $0x24] ss:$16 sps:$4 sm:$0xff]  }
 0x34a   : > { %1682 = vmatprep.subr.bf16.mxu1 %v3348_v19  ;;  %v3399_v19 = vld [vmem:[%s4641_s9 + $0x2c] ss:$16 sps:$4 sm:$0xff]  }
 0x34d   : > { %1683 = vmatpush1.bf16.msra.mxu1 %v3346_v22  ;;  %v3394_v22 = vld [vmem:[%s4641_s9 + $0x20] ss:$16 sps:$4 sm:$0xff]  }
 0x34e   : > { %1684 = vmatprep.subr.bf16.mxu1 %v3351_v23  ;;  %v3397_v23 = vld [vmem:[%s4641_s9 + $0x28] ss:$16 sps:$4 sm:$0xff]  }
 0x351   : > { %1685 = vmatpush1.bf16.msra.mxu1 %v3349_v24  ;;  %v3402_v24 = vld [vmem:[%s4641_s9 + $0x44] ss:$16 sps:$4 sm:$0xff]  }
 0x352   : > { %1686 = vmatprep.subr.bf16.mxu1 %v3354_v25  ;;  %v3405_v25 = vld [vmem:[%s4641_s9 + $0x4c] ss:$16 sps:$4 sm:$0xff]  }
 0x355   : > { %1687 = vmatpush1.bf16.msra.mxu1 %v3352_v26  ;;  %v3400_v26 = vld [vmem:[%s4641_s9 + $0x40] ss:$16 sps:$4 sm:$0xff]  }
 0x356   : > { %1688 = vmatprep.subr.bf16.mxu1 %v3357_v27  ;;  %v3403_v27 = vld [vmem:[%s4641_s9 + $0x48] ss:$16 sps:$4 sm:$0xff]  }
 0x359   : > { %1689 = vmatpush1.bf16.msra.mxu1 %v3355_v28  ;;  %v3408_v28 = vld [vmem:[%s4641_s9 + $0x64] ss:$16 sps:$4 sm:$0xff]  }
 0x35a   : > { %1690 = vmatprep.subr.bf16.mxu1 %v3360_v29  ;;  %v3411_v29 = vld [vmem:[%s4641_s9 + $0x6c] ss:$16 sps:$4 sm:$0xff]  }
 0x35d   : > { %1691 = vmatpush1.bf16.msra.mxu1 %v3358_v30  ;;  %v3406_v30 = vld [vmem:[%s4641_s9 + $0x60] ss:$16 sps:$4 sm:$0xff]  }
 0x35e   : > { %1692 = vmatprep.subr.bf16.mxu1 %v3363_v31  ;;  %v3409_v31 = vld [vmem:[%s4641_s9 + $0x68] ss:$16 sps:$4 sm:$0xff]  }
 0x361   : > { %1693 = vmatpush1.bf16.msra.mxu1 %v3361_v32  ;;  %v3414_v32 = vld [vmem:[%s4641_s9 + $0x84] ss:$16 sps:$4 sm:$0xff]  }
 0x362   : > { %1694 = vmatprep.subr.bf16.mxu1 %v3366_v33  ;;  %v3417_v33 = vld [vmem:[%s4641_s9 + $0x8c] ss:$16 sps:$4 sm:$0xff]  }
 0x365   : > { %1695 = vmatpush1.bf16.msra.mxu1 %v3364_v34  ;;  %v3412_v34 = vld [vmem:[%s4641_s9 + $0x80] ss:$16 sps:$4 sm:$0xff]  }
 0x366   : > { %1696 = vmatprep.subr.bf16.mxu1 %v3369_v35  ;;  %v3415_v35 = vld [vmem:[%s4641_s9 + $0x88] ss:$16 sps:$4 sm:$0xff]  }
 0x369   : > { %1697 = vmatpush1.bf16.msra.mxu1 %v3367_v36  ;;  %v3420_v36 = vld [vmem:[%s4641_s9 + $0xa4] ss:$16 sps:$4 sm:$0xff]  }
 0x36a   : > { %1698 = vmatprep.subr.bf16.mxu1 %v3372_v37  ;;  %v3423_v37 = vld [vmem:[%s4641_s9 + $0xac] ss:$16 sps:$4 sm:$0xff]  }
 0x36d   : > { %1699 = vmatpush1.bf16.msra.mxu1 %v3370_v38  ;;  %v3418_v38 = vld [vmem:[%s4641_s9 + $0xa0] ss:$16 sps:$4 sm:$0xff]  }
 0x36e   : > { %1700 = vmatprep.subr.bf16.mxu1 %v3375_v39  ;;  %v3421_v39 = vld [vmem:[%s4641_s9 + $0xa8] ss:$16 sps:$4 sm:$0xff]  }
 0x371   : > { %1701 = vmatpush1.bf16.msra.mxu1 %v3373_v40  ;;  %v3426_v40 = vld [vmem:[%s4641_s9 + $0xc4] ss:$16 sps:$4 sm:$0xff]  }
 0x372   : > { %1702 = vmatprep.subr.bf16.mxu1 %v3378_v41  ;;  %v3429_v41 = vld [vmem:[%s4641_s9 + $0xcc] ss:$16 sps:$4 sm:$0xff]  }
 0x375   : > { %1703 = vmatpush1.bf16.msra.mxu1 %v3376_v42  ;;  %v3424_v42 = vld [vmem:[%s4641_s9 + $0xc0] ss:$16 sps:$4 sm:$0xff]  }
 0x376   : > { %1704 = vmatprep.subr.bf16.mxu1 %v3381_v43  ;;  %v3427_v43 = vld [vmem:[%s4641_s9 + $0xc8] ss:$16 sps:$4 sm:$0xff]  }
 0x379   : > { %1705 = vmatpush1.bf16.msra.mxu1 %v3379_v48  ;;  %v3432_v48 = vld [vmem:[%s4641_s9 + $0xe4] ss:$16 sps:$4 sm:$0xff]  }
 0x37a   : > { %1706 = vmatprep.subr.bf16.mxu1 %v3384_v50  ;;  %v3435_v50 = vld [vmem:[%s4641_s9 + $0xec] ss:$16 sps:$4 sm:$0xff]  }
 0x37d   : > { %1707 = vmatpush1.bf16.msra.mxu1 %v3382_v51  ;;  %v3430_v51 = vld [vmem:[%s4641_s9 + $0xe0] ss:$16 sps:$4 sm:$0xff]  }
 0x37e   : > { %1708 = vmatprep.subr.bf16.mxu1 %v3387_v52  ;;  %v3433_v52 = vld [vmem:[%s4641_s9 + $0xe8] ss:$16 sps:$4 sm:$0xff]  }
 0x381   : > { %1709 = vmatpush1.bf16.msra.mxu1 %v3385_v53  ;;  %v3438_v53 = vld [vmem:[%s4641_s9 + $0x104] ss:$16 sps:$4 sm:$0xff]  }
 0x382   : > { %2219 = vmatprep.subr.bf16.mxu1 %v3393_v17  ;;  %v3468_v17 = vld [vmem:[%s4641_s9 + $0x1a4] ss:$16 sps:$4 sm:$0xff]  }
 0x413   : > { %v1466_v54 = vpop.f32.mrb[16].mxu0 }
 0x414   : > { %v1473_v55 = vpack.c.bf16 %v1466_v54, %v1466_v54  ;;  %v3181_v44 = vpop.f32.mrb[17].mxu0  ;;  %v3441_v54 = vld [vmem:[%s4641_s9 + $0x10c] ss:$16 sps:$4 sm:$0xff]  }
 0x415   : > { %v1469_v56 = vpop.f32.mrb[18].mxu0  ;;  %v3439_v44 = vld [vmem:[%s4641_s9 + $0x108] ss:$16 sps:$4 sm:$0xff]  }
 0x416   : > { %v3182_v57 = vpop.f32.mrb[19].mxu0  ;;  %1710 = vmatprep.mubr.bf16.mxu1 %v1473_v55  ;;  %v3436_v55 = vld [vmem:[%s4641_s9 + $0x100] ss:$16 sps:$4 sm:$0xff]   ;;  %v3444_v56 = vld [vmem:[%s4641_s9 + $0x124] ss:$16 sps:$4 sm:$0xff]  }
 0x417   : > { %v1362_v58 = vpop.f32.mrb[12].mxu1  ;;  %v3447_v57 = vld [vmem:[%s4641_s9 + $0x12c] ss:$16 sps:$4 sm:$0xff]  }
 0x418   : > { %v1472_v59 = vpack.c.bf16 %v1362_v58, %v1362_v58  ;;  %v3165_v60 = vpop.f32.mrb[13].mxu1  ;;  %v3442_v58 = vld [vmem:[%s4641_s9 + $0x120] ss:$16 sps:$4 sm:$0xff]  }
 0x419   : > { %v1365_v61 = vpop.f32.mrb[14].mxu1 }
 0x41a   : > { %v3166_v62 = vpop.f32.mrb[15].mxu1  ;;  %1711 = vmatmul.mubr.bf16.vlgmr.msra.gmra.mrb[16].mxu1 %v1472_v59  ;;  %v3445_v59 = vld [vmem:[%s4641_s9 + $0x128] ss:$16 sps:$4 sm:$0xff]  }
 0x41b   : > { %2220 = vmatpush1.bf16.msra.mxu1 %v3391_v16  ;;  %v3463_v16 = vld [vmem:[%s4641_s9 + $0x188] ss:$16 sps:$4 sm:$0xff]  }
 0x41c   : > { %2221 = vmatprep.subr.bf16.mxu1 %v3399_v19  ;;  %v3466_v19 = vld [vmem:[%s4641_s9 + $0x1a0] ss:$16 sps:$4 sm:$0xff]  }
 0x41f   : > { %2222 = vmatpush1.bf16.msra.mxu1 %v3397_v23  ;;  %v3474_v23 = vld [vmem:[%s4641_s9 + $0x1c4] ss:$16 sps:$4 sm:$0xff]  }
 0x420   : > { %2223 = vmatprep.subr.bf16.mxu1 %v3405_v25  ;;  %v3472_v25 = vld [vmem:[%s4641_s9 + $0x1c0] ss:$16 sps:$4 sm:$0xff]  }
 0x423   : > { %2224 = vmatpush1.bf16.msra.mxu1 %v3403_v27  ;;  %v3480_v27 = vld [vmem:[%s4641_s9 + $0x1e4] ss:$16 sps:$4 sm:$0xff]  }
 0x424   : > { %2225 = vmatprep.subr.bf16.mxu1 %v3411_v29  ;;  %v3478_v29 = vld [vmem:[%s4641_s9 + $0x1e0] ss:$16 sps:$4 sm:$0xff]  }
 0x427   : > { %2226 = vmatpush1.bf16.msra.mxu1 %v3409_v31  ;;  %v3486_v31 = vld [vmem:[%s4643_s11 + $0x4] ss:$8 sps:$4 sm:$0xff]  }
 0x428   : > { %2227 = vmatprep.subr.bf16.mxu1 %v3417_v33 }
 0x42b   : > { %2228 = vmatpush1.bf16.msra.mxu1 %v3415_v35 }
 0x42c   : > { %2229 = vmatprep.subr.bf16.mxu1 %v3423_v37  ;;  %v1722_v37 = vld [vmem:[%s4640_s8] sm:$0x3] }
 0x42f   : > { %2230 = vmatpush1.bf16.msra.mxu1 %v3421_v39 }
 0x430   : > { %2231 = vmatprep.subr.bf16.mxu1 %v3429_v41 }
 0x433   : > { %2232 = vmatpush1.bf16.msra.mxu1 %v3427_v43  ;;  %v1761_v43 = vrot.slane %v1722_v37, %v4030_v47 }
 0x434   : > { %2233 = vmatprep.subr.bf16.mxu1 %v3435_v50 }
 0x437   : > { %2234 = vmatpush1.bf16.msra.mxu1 %v3433_v52 }
 0x438   : > { %2235 = vmatprep.subr.bf16.mxu1 %v3441_v54 }
 0x43b   : > { %2236 = vmatpush1.bf16.msra.mxu1 %v3439_v44  ;;  %v3484_v44 = vld [vmem:[%s4643_s11] ss:$8 sps:$4 sm:$0xff]  }
 0x43c   : > { %2237 = vmatprep.subr.bf16.mxu1 %v3447_v57  ;;  %v3492_v57 = vld [vmem:[%s4643_s11 + $0x14] ss:$8 sps:$4 sm:$0xff]  }
 0x43f   : > { %2238 = vmatpush1.bf16.msra.mxu1 %v3445_v59  ;;  %v3490_v59 = vld [vmem:[%s4643_s11 + $0x10] ss:$8 sps:$4 sm:$0xff]  }
 0x4ed   : > { %v1712_v3 = vpop.f32.mrb[16].mxu1 }
 0x4ee   : > { %v1713_v4 = vadd.f32 %v1712_v3, %v1671_v0  ;;  %v1714_v5 = vpop.f32.mrb[17].mxu1 }
 0x4ef   : > { %v1715_v6 = vadd.f32 %v1714_v5, %v1675_v2  ;;  %v1716_v7 = vpop.f32.mrb[18].mxu1 }
 0x4f0   : > { %v4168_v8 = vadd.f32 %v1713_v4, %v3894_v1  ;;  %v1717_v9 = vpop.f32.mrb[19].mxu1  ;;  %v3390_v1 = vld [vmem:[%s4641_s9 + $0x4] ss:$16 sps:$4 sm:$0xff]   ;;  %v3453_v7 = vld [vmem:[%s4641_s9 + $0x14c] ss:$16 sps:$4 sm:$0xff]  }
 0x4f1   : > { %v4171_v11 = vadd.f32 %v3592_v10, %v1715_v6  ;;  %2178 = vmatprep.subr.bf16.mxu0 %v3390_v1  ;;  %v3450_v6 = vld [vmem:[%s4641_s9 + $0x144] ss:$16 sps:$4 sm:$0xff]   ;;  %v3451_v9 = vld [vmem:[%s4641_s9 + $0x148] ss:$16 sps:$4 sm:$0xff]   ;;  %2239 = vmatprep.subr.bf16.mxu1 %v3453_v7  ;;  %v3460_v1 = vld [vmem:[%s4641_s9 + $0x180] ss:$16 sps:$4 sm:$0xff]  }
 0x4f2   : > { %v1723_v12 = vsel %vm1322_vm1, %v4168_v8, 0.0  ;;  %2179 = vmatpush1.bf16.msra.mxu0 %v3388_v15  ;;  %2240 = vmatpush1.bf16.msra.mxu1 %v3451_v9  ;;  %v3456_v10 = vld [vmem:[%s4641_s9 + $0x164] ss:$16 sps:$4 sm:$0xff]   ;;  %v3465_v15 = vld [vmem:[%s4641_s9 + $0x18c] ss:$16 sps:$4 sm:$0xff]  }
 0x4f3   : > { %v1724_v13 = vsel %vm1322_vm1, %v4171_v11, 0.0  ;;  %2180 = vmatprep.subr.bf16.mxu0 %v3396_v18  ;;  %v3471_v18 = vld [vmem:[%s4641_s9 + $0x1ac] ss:$16 sps:$4 sm:$0xff]   ;;  %v3511_v9 = vld [vmem:[%s4643_s11 + $0x140] ss:$8 sps:$4 sm:$0xff]  }
 0x4f4   : > { %v1725_v14 = vadd.f32 %v1724_v13, %v1723_v12  ;;  %v3454_v12 = vld [vmem:[%s4641_s9 + $0x160] ss:$16 sps:$4 sm:$0xff]   ;;  %v3457_v13 = vld [vmem:[%s4641_s9 + $0x168] ss:$16 sps:$4 sm:$0xff]   ;;  %v3513_v7 = vld [vmem:[%s4643_s11 + $0x144] ss:$8 sps:$4 sm:$0xff]  }
 0x4f6   : > { %1726 = vadd.xlane.f32.xlu0 %v1725_v14  ;;  %2181 = vmatpush1.bf16.msra.mxu0 %v3394_v22  ;;  %v3462_v14 = vld [vmem:[%s4641_s9 + $0x184] ss:$16 sps:$4 sm:$0xff]   ;;  %v3469_v22 = vld [vmem:[%s4641_s9 + $0x1a8] ss:$16 sps:$4 sm:$0xff]  }
 0x4f7   : > { %2182 = vmatprep.subr.bf16.mxu0 %v3402_v24  ;;  %v3477_v24 = vld [vmem:[%s4641_s9 + $0x1cc] ss:$16 sps:$4 sm:$0xff]  }
 0x4fa   : > { %2183 = vmatpush1.bf16.msra.mxu0 %v3400_v26  ;;  %v3475_v26 = vld [vmem:[%s4641_s9 + $0x1c8] ss:$16 sps:$4 sm:$0xff]  }
 0x4fb   : > { %2184 = vmatprep.subr.bf16.mxu0 %v3408_v28  ;;  %v3483_v28 = vld [vmem:[%s4641_s9 + $0x1ec] ss:$16 sps:$4 sm:$0xff]  }
 0x4fe   : > { %2185 = vmatpush1.bf16.msra.mxu0 %v3406_v30  ;;  %v3481_v30 = vld [vmem:[%s4641_s9 + $0x1e8] ss:$16 sps:$4 sm:$0xff]  }
 0x4ff   : > { %2186 = vmatprep.subr.bf16.mxu0 %v3414_v32  ;;  %v3489_v32 = vld [vmem:[%s4643_s11 + $0x104] ss:$8 sps:$4 sm:$0xff]  }
 0x502   : > { %2187 = vmatpush1.bf16.msra.mxu0 %v3412_v34 }
 0x503   : > { %2188 = vmatprep.subr.bf16.mxu0 %v3420_v36  ;;  %v1721_v36 = vld [vmem:[%s4639_s7] sm:$0x3] }
 0x504   : > { %v1752_v39 = vrot.slane %v1721_v36, %v4036_v49 }
 0x506   : > { %2189 = vmatpush1.bf16.msra.mxu0 %v3418_v38  ;;  %v1748_v38 = vrot.slane %v1721_v36, %v4030_v47  ;;  %v3555_v36 = vld [vmem:[%s4643_s11 + $0x1b4] ss:$8 sps:$4 sm:$0xff]  }
 0x507   : > { %2190 = vmatprep.subr.bf16.mxu0 %v3426_v40 }
 0x50a   : > { %2191 = vmatpush1.bf16.msra.mxu0 %v3424_v42 }
 0x50b   : > { %2192 = vmatprep.subr.bf16.mxu0 %v3432_v48  ;;  %v1765_v48 = vrot.slane %v1722_v37, %v4036_v49  ;;  %v3550_v37 = vld [vmem:[%s4643_s11 + $0xb0] ss:$8 sps:$4 sm:$0xff]  }
 0x50e   : > { %2193 = vmatpush1.bf16.msra.mxu0 %v3430_v51 }
 0x50f   : > { %2194 = vmatprep.subr.bf16.mxu0 %v3438_v53 }
 0x512   : > { %2195 = vmatpush1.bf16.msra.mxu0 %v3436_v55 }
 0x513   : > { %2196 = vmatprep.subr.bf16.mxu0 %v3444_v56  ;;  %v3487_v56 = vld [vmem:[%s4643_s11 + $0x100] ss:$8 sps:$4 sm:$0xff]  }
 0x516   : > { %2197 = vmatpush1.bf16.msra.mxu0 %v3442_v58  ;;  %v3495_v58 = vld [vmem:[%s4643_s11 + $0x114] ss:$8 sps:$4 sm:$0xff]  }
 0x517   : > { %2198 = vmatprep.subr.bf16.mxu0 %v3450_v6  ;;  %v3510_v6 = vld [vmem:[%s4643_s11 + $0x44] ss:$8 sps:$4 sm:$0xff]  }
 0x583   : > { %v1727_v60 = vpop.xlane.xlu0 %1726 }
 0x584   : > { %v1729_v61 = vmul.f32 0.00390625, %v1727_v60  ;;  %v3493_v60 = vld [vmem:[%s4643_s11 + $0x110] ss:$8 sps:$4 sm:$0xff]  }
 0x586   : > { %v4298_v62 = vsub.f32 %v4168_v8, %v1729_v61  ;;  %v4301_v63 = vsub.f32 %v4171_v11, %v1729_v61  ;;  %v3448_v8 = vld [vmem:[%s4641_s9 + $0x140] ss:$16 sps:$4 sm:$0xff]   ;;  %v3459_v11 = vld [vmem:[%s4641_s9 + $0x16c] ss:$16 sps:$4 sm:$0xff]  }
 0x587   : > { %2199 = vmatpush1.bf16.msra.mxu0 %v3448_v8  ;;  %2241 = vmatprep.subr.bf16.mxu1 %v3459_v11  ;;  %v3498_v61 = vld [vmem:[%s4643_s11 + $0x24] ss:$8 sps:$4 sm:$0xff]   ;;  %v3508_v8 = vld [vmem:[%s4643_s11 + $0x40] ss:$8 sps:$4 sm:$0xff]   ;;  %v3519_v11 = vld [vmem:[%s4643_s11 + $0x154] ss:$8 sps:$4 sm:$0xff]  }
 0x588   : > { %v1732_v0 = vmul.f32 %v4298_v62, %v4298_v62  ;;  %v1733_v2 = vmul.f32 %v4301_v63, %v4301_v63  ;;  %2200 = vmatprep.subr.bf16.mxu0 %v3456_v10  ;;  %2242 = vmatpush1.bf16.msra.mxu1 %v3457_v13  ;;  %v3516_v10 = vld [vmem:[%s4643_s11 + $0x54] ss:$8 sps:$4 sm:$0xff]   ;;  %v3517_v13 = vld [vmem:[%s4643_s11 + $0x150] ss:$8 sps:$4 sm:$0xff]  }
 0x589   : > { %2243 = vmatprep.subr.bf16.mxu1 %v3465_v15  ;;  %v3525_v15 = vld [vmem:[%s4643_s11 + $0x164] ss:$8 sps:$4 sm:$0xff]  }
 0x58a   : > { %v1734_v3 = vsel %vm1322_vm1, %v1732_v0, 0.0  ;;  %v1735_v4 = vsel %vm1322_vm1, %v1733_v2, 0.0  ;;  %v3499_v0 = vld [vmem:[%s4643_s11 + $0x120] ss:$8 sps:$4 sm:$0xff]   ;;  %v3504_v2 = vld [vmem:[%s4643_s11 + $0x34] ss:$8 sps:$4 sm:$0xff]  }
 0x58b   : > { %v1736_v5 = vadd.f32 %v1735_v4, %v1734_v3  ;;  %2201 = vmatpush1.bf16.msra.mxu0 %v3454_v12  ;;  %v3507_v3 = vld [vmem:[%s4643_s11 + $0x134] ss:$8 sps:$4 sm:$0xff]   ;;  %v3502_v4 = vld [vmem:[%s4643_s11 + $0x30] ss:$8 sps:$4 sm:$0xff]  }
 0x58c   : > { %2202 = vmatprep.subr.bf16.mxu0 %v3462_v14  ;;  %2244 = vmatpush1.bf16.msra.mxu1 %v3463_v16  ;;  %v3514_v12 = vld [vmem:[%s4643_s11 + $0x50] ss:$8 sps:$4 sm:$0xff]   ;;  %v3522_v14 = vld [vmem:[%s4643_s11 + $0x64] ss:$8 sps:$4 sm:$0xff]   ;;  %v3523_v16 = vld [vmem:[%s4643_s11 + $0x160] ss:$8 sps:$4 sm:$0xff]  }
 0x58d   : > { %1737 = vadd.xlane.f32.xlu1 %v1736_v5  ;;  %2245 = vmatprep.subr.bf16.mxu1 %v3471_v18  ;;  %v3505_v5 = vld [vmem:[%s4643_s11 + $0x130] ss:$8 sps:$4 sm:$0xff]   ;;  %v3531_v18 = vld [vmem:[%s4643_s11 + $0x174] ss:$8 sps:$4 sm:$0xff]  }
 0x58f   : > { %2203 = vmatpush1.bf16.msra.mxu0 %v3460_v1  ;;  %v3520_v1 = vld [vmem:[%s4643_s11 + $0x60] ss:$8 sps:$4 sm:$0xff]  }
 0x590   : > { %2204 = vmatprep.subr.bf16.mxu0 %v3468_v17  ;;  %2246 = vmatpush1.bf16.msra.mxu1 %v3469_v22  ;;  %v3528_v17 = vld [vmem:[%s4643_s11 + $0x74] ss:$8 sps:$4 sm:$0xff]   ;;  %v3529_v22 = vld [vmem:[%s4643_s11 + $0x170] ss:$8 sps:$4 sm:$0xff]  }
 0x591   : > { %2247 = vmatprep.subr.bf16.mxu1 %v3477_v24  ;;  %v3537_v24 = vld [vmem:[%s4643_s11 + $0x184] ss:$8 sps:$4 sm:$0xff]  }
 0x593   : > { %2205 = vmatpush1.bf16.msra.mxu0 %v3466_v19  ;;  %v3526_v19 = vld [vmem:[%s4643_s11 + $0x70] ss:$8 sps:$4 sm:$0xff]  }
 0x594   : > { %2206 = vmatprep.subr.bf16.mxu0 %v3474_v23  ;;  %2248 = vmatpush1.bf16.msra.mxu1 %v3475_v26  ;;  %v3534_v23 = vld [vmem:[%s4643_s11 + $0x84] ss:$8 sps:$4 sm:$0xff]   ;;  %v3535_v26 = vld [vmem:[%s4643_s11 + $0x180] ss:$8 sps:$4 sm:$0xff]  }
 0x595   : > { %2249 = vmatprep.subr.bf16.mxu1 %v3483_v28  ;;  %v3543_v28 = vld [vmem:[%s4643_s11 + $0x194] ss:$8 sps:$4 sm:$0xff]  }
 0x597   : > { %2207 = vmatpush1.bf16.msra.mxu0 %v3472_v25  ;;  %v3532_v25 = vld [vmem:[%s4643_s11 + $0x80] ss:$8 sps:$4 sm:$0xff]  }
 0x598   : > { %2208 = vmatprep.subr.bf16.mxu0 %v3480_v27  ;;  %2250 = vmatpush1.bf16.msra.mxu1 %v3481_v30  ;;  %v3540_v27 = vld [vmem:[%s4643_s11 + $0x94] ss:$8 sps:$4 sm:$0xff]   ;;  %v3541_v30 = vld [vmem:[%s4643_s11 + $0x190] ss:$8 sps:$4 sm:$0xff]  }
 0x599   : > { %2705 = vmatprep.subr.bf16.mxu1 %v3489_v32  ;;  %v3549_v32 = vld [vmem:[%s4643_s11 + $0x1a4] ss:$8 sps:$4 sm:$0xff]  }
 0x59b   : > { %2209 = vmatpush1.bf16.msra.mxu0 %v3478_v29  ;;  %v3538_v29 = vld [vmem:[%s4643_s11 + $0x90] ss:$8 sps:$4 sm:$0xff]  }
 0x59c   : > { %2664 = vmatprep.subr.bf16.mxu0 %v3486_v31  ;;  %v3546_v31 = vld [vmem:[%s4643_s11 + $0xa4] ss:$8 sps:$4 sm:$0xff]  }
 0x61a   : > { %v1738_v33 = vpop.xlane.xlu1 %1737 }
 0x61b   : > { %v1739_v34 = vmul.f32 0.00390625, %v1738_v33  ;;  %v3544_v33 = vld [vmem:[%s4643_s11 + $0xa0] ss:$8 sps:$4 sm:$0xff]  }
 0x61d   : > { %v1740_v35 = vadd.f32 1e-05, %v1739_v34  ;;  %v3547_v34 = vld [vmem:[%s4643_s11 + $0x1a0] ss:$8 sps:$4 sm:$0xff]  }
 0x61f   : > { %3588 = vrsqrt.f32 %v1740_v35  ;;  %v3552_v35 = vld [vmem:[%s4643_s11 + $0xb4] ss:$8 sps:$4 sm:$0xff]  }
 0x629   : > { %v3589_v40 = vpop.eup %3588 }
 0x62a   : > { %v1742_v41 = vmul.f32 %v3589_v40, %v4298_v62  ;;  %v1743_v42 = vmul.f32 %v3589_v40, %v4301_v63  ;;  %v3501_v62 = vld [vmem:[%s4643_s11 + $0x124] ss:$8 sps:$4 sm:$0xff]   ;;  %v3496_v63 = vld [vmem:[%s4643_s11 + $0x20] ss:$8 sps:$4 sm:$0xff]  }
 0x62b   : > { %v3561_v40 = vld [vmem:[%s4643_s11 + $0x1c4] ss:$8 sps:$4 sm:$0xff]  }
 0x62c   : > { %v1756_v50 = vmul.f32 %v1752_v39, %v1743_v42  ;;  %v1755_v51 = vmul.f32 %v1748_v38, %v1742_v41  ;;  %v3553_v38 = vld [vmem:[%s4643_s11 + $0x1b0] ss:$8 sps:$4 sm:$0xff]   ;;  %v3558_v39 = vld [vmem:[%s4643_s11 + $0xc4] ss:$8 sps:$4 sm:$0xff]   ;;  %v3556_v41 = vld [vmem:[%s4643_s11 + $0xc0] ss:$8 sps:$4 sm:$0xff]  }
 0x62d   : > { %v3559_v42 = vld [vmem:[%s4643_s11 + $0x1c0] ss:$8 sps:$4 sm:$0xff]  }
 0x62e   : > { %v4399_v52 = vadd.f32 %v1765_v48, %v1756_v50  ;;  %v4401_v53 = vadd.f32 %v1761_v43, %v1755_v51  ;;  %v3564_v43 = vld [vmem:[%s4643_s11 + $0xd4] ss:$8 sps:$4 sm:$0xff]   ;;  %v3562_v50 = vld [vmem:[%s4643_s11 + $0xd0] ss:$8 sps:$4 sm:$0xff]  }
 0x62f   : > { %v3567_v48 = vld [vmem:[%s4643_s11 + $0x1d4] ss:$8 sps:$4 sm:$0xff]   ;;  %v3565_v51 = vld [vmem:[%s4643_s11 + $0x1d0] ss:$8 sps:$4 sm:$0xff]  }
 0x630   : > { %v1771_v54 = vpack.c.bf16 %v4399_v52, %v4399_v52  ;;  %v1770_v55 = vpack.c.bf16 %v4401_v53, %v4401_v53 }
 0x632   : > { %2210 = vmatprep.mubr.bf16.mxu0 %v1771_v54  ;;  %2251 = vmatprep.mubr.bf16.mxu1 %v1771_v54  ;;  %v3570_v54 = vld [vmem:[%s4643_s11 + $0xe4] ss:$8 sps:$4 sm:$0xff]  }
 0x633   : > { %2211 = vmatmul.mubr.bf16.vlgmr.msra.gmra.mrb[20].mxu0 %v1770_v55  ;;  %2252 = vmatmul.mubr.bf16.vlgmr.msra.gmra.mrb[20].mxu1 %v1770_v55  ;;  %v3573_v55 = vld [vmem:[%s4643_s11 + $0x1e4] ss:$8 sps:$4 sm:$0xff]  }
 0x634   : > { %2665 = vmatpush1.bf16.msra.mxu0 %v3484_v44  ;;  %2706 = vmatpush1.bf16.msra.mxu1 %v3487_v56  ;;  %v3568_v44 = vld [vmem:[%s4643_s11 + $0xe0] ss:$8 sps:$4 sm:$0xff]  }
 0x635   : > { %2666 = vmatprep.subr.bf16.mxu0 %v3492_v57  ;;  %2707 = vmatprep.subr.bf16.mxu1 %v3495_v58  ;;  %v3571_v56 = vld [vmem:[%s4643_s11 + $0x1e0] ss:$8 sps:$4 sm:$0xff]   ;;  %v3576_v57 = vld [vmem:[%s4643_s11 + $0xf4] ss:$8 sps:$4 sm:$0xff]  }
 0x636   : > { %v3579_v58 = vld [vmem:[%s4643_s11 + $0x1f4] ss:$8 sps:$4 sm:$0xff]  }
 0x638   : > { %2667 = vmatpush1.bf16.msra.mxu0 %v3490_v59  ;;  %2708 = vmatpush1.bf16.msra.mxu1 %v3493_v60  ;;  %v3574_v59 = vld [vmem:[%s4643_s11 + $0xf0] ss:$8 sps:$4 sm:$0xff]  }
 0x639   : > { %2668 = vmatprep.subr.bf16.mxu0 %v3498_v61  ;;  %2709 = vmatprep.subr.bf16.mxu1 %v3501_v62  ;;  %v3577_v60 = vld [vmem:[%s4643_s11 + $0x1f0] ss:$8 sps:$4 sm:$0xff]   ;;  %v1836_v61 = vld [vmem:[%s4642_s10] sm:$0xf] }
 0x63a   : > { %v2161_v62 = vrot.slane %v1836_v61, %v4030_v47 }
 0x63c   : > { %2669 = vmatpush1.bf16.msra.mxu0 %v3496_v63  ;;  %2710 = vmatpush1.bf16.msra.mxu1 %v3499_v0  ;;  %v2169_v63 = vrot.slane %v1836_v61, %v827_v20  ;;  %v2165_v0 = vrot.slane %v1836_v61, %v4036_v49 }
 0x63d   : > { %2670 = vmatprep.subr.bf16.mxu0 %v3504_v2  ;;  %2711 = vmatprep.subr.bf16.mxu1 %v3507_v3  ;;  %v2173_v2 = vrot.slane %v1836_v61, %v831_v21 }
 0x640   : > { %2671 = vmatpush1.bf16.msra.mxu0 %v3502_v4  ;;  %2712 = vmatpush1.bf16.msra.mxu1 %v3505_v5 }
 0x641   : > { %2672 = vmatprep.subr.bf16.mxu0 %v3510_v6  ;;  %2713 = vmatprep.subr.bf16.mxu1 %v3513_v7 }
 0x644   : > { %2673 = vmatpush1.bf16.msra.mxu0 %v3508_v8  ;;  %2714 = vmatpush1.bf16.msra.mxu1 %v3511_v9 }
 0x645   : > { %2674 = vmatprep.subr.bf16.mxu0 %v3516_v10  ;;  %2715 = vmatprep.subr.bf16.mxu1 %v3519_v11 }
 0x648   : > { %2675 = vmatpush1.bf16.msra.mxu0 %v3514_v12  ;;  %2716 = vmatpush1.bf16.msra.mxu1 %v3517_v13 }
 0x649   : > { %2676 = vmatprep.subr.bf16.mxu0 %v3522_v14  ;;  %2717 = vmatprep.subr.bf16.mxu1 %v3525_v15 }
 0x64c   : > { %2677 = vmatpush1.bf16.msra.mxu0 %v3520_v1  ;;  %2718 = vmatpush1.bf16.msra.mxu1 %v3523_v16 }
 0x64d   : > { %2678 = vmatprep.subr.bf16.mxu0 %v3528_v17  ;;  %2719 = vmatprep.subr.bf16.mxu1 %v3531_v18 }
 0x650   : > { %2679 = vmatpush1.bf16.msra.mxu0 %v3526_v19  ;;  %2720 = vmatpush1.bf16.msra.mxu1 %v3529_v22  ;;  %v2332_v22 = vld [vmem:[%s4644_s12] sm:$0x3] }
 0x651   : > { %2680 = vmatprep.subr.bf16.mxu0 %v3534_v23  ;;  %2721 = vmatprep.subr.bf16.mxu1 %v3537_v24  ;;  %v2657_v23 = vrot.slane %v2332_v22, %v4030_v47  ;;  %v2661_v24 = vrot.slane %v2332_v22, %v4036_v49 }
 0x654   : > { %2681 = vmatpush1.bf16.msra.mxu0 %v3532_v25  ;;  %2722 = vmatpush1.bf16.msra.mxu1 %v3535_v26 }
 0x655   : > { %2682 = vmatprep.subr.bf16.mxu0 %v3540_v27  ;;  %2723 = vmatprep.subr.bf16.mxu1 %v3543_v28 }
 0x658   : > { %2683 = vmatpush1.bf16.msra.mxu0 %v3538_v29  ;;  %2724 = vmatpush1.bf16.msra.mxu1 %v3541_v30 }
 0x659   : > { %2684 = vmatprep.subr.bf16.mxu0 %v3546_v31  ;;  %2725 = vmatprep.subr.bf16.mxu1 %v3549_v32 }
 0x65c   : > { %2685 = vmatpush1.bf16.msra.mxu0 %v3544_v33  ;;  %2726 = vmatpush1.bf16.msra.mxu1 %v3547_v34 }
 0x65d   : > { %2686 = vmatprep.subr.bf16.mxu0 %v3552_v35  ;;  %2727 = vmatprep.subr.bf16.mxu1 %v3555_v36 }
 0x660   : > { %2687 = vmatpush1.bf16.msra.mxu0 %v3550_v37  ;;  %2728 = vmatpush1.bf16.msra.mxu1 %v3553_v38 }
 0x661   : > { %2688 = vmatprep.subr.bf16.mxu0 %v3558_v39  ;;  %2729 = vmatprep.subr.bf16.mxu1 %v3561_v40 }
 0x664   : > { %2689 = vmatpush1.bf16.msra.mxu0 %v3556_v41  ;;  %2730 = vmatpush1.bf16.msra.mxu1 %v3559_v42 }
 0x665   : > { %2690 = vmatprep.subr.bf16.mxu0 %v3564_v43  ;;  %2731 = vmatprep.subr.bf16.mxu1 %v3567_v48 }
 0x668   : > { %2691 = vmatpush1.bf16.msra.mxu0 %v3562_v50  ;;  %2732 = vmatpush1.bf16.msra.mxu1 %v3565_v51 }
 0x669   : > { %2692 = vmatprep.subr.bf16.mxu0 %v3570_v54  ;;  %2733 = vmatprep.subr.bf16.mxu1 %v3573_v55 }
 0x66c   : > { %2693 = vmatpush1.bf16.msra.mxu0 %v3568_v44  ;;  %2734 = vmatpush1.bf16.msra.mxu1 %v3571_v56 }
 0x66d   : > { %2694 = vmatprep.subr.bf16.mxu0 %v3576_v57  ;;  %2735 = vmatprep.subr.bf16.mxu1 %v3579_v58  ;;  %v2748_v58 = vld [vmem:[%s4645_s13] sm:$0x3] }
 0x670   : > { %2695 = vmatpush1.bf16.msra.mxu0 %v3574_v59  ;;  %2736 = vmatpush1.bf16.msra.mxu1 %v3577_v60  ;;  %v2749_v59 = vld [vmem:[%s4646_s14] sm:$0x3]  ;;  %v3604_v60 = vmov 1966171168  }
 0x671   : > { %v2800_v61 = vunpack.c.l.s4 %v3604_v60 }
 0x706   : > { %v2212_v3 = vpop.f32.mrb[20].mxu0  ;;  %v2253_v4 = vpop.f32.mrb[20].mxu1 }
 0x707   : > { %v2213_v5 = vadd.f32 %v2212_v3, %v2161_v62  ;;  %v2254_v6 = vadd.f32 %v2253_v4, %v2169_v63  ;;  %v2214_v7 = vpop.f32.mrb[21].mxu0  ;;  %v2255_v8 = vpop.f32.mrb[21].mxu1  ;;  %v2774_v62 = vrot.slane %v2748_v58, %v4030_v47  ;;  %v2778_v63 = vrot.slane %v2748_v58, %v4036_v49 }
 0x708   : > { %v2215_v9 = vadd.f32 %v2214_v7, %v2165_v0  ;;  %v2256_v10 = vadd.f32 %v2255_v8, %v2173_v2  ;;  %v2216_v11 = vpop.f32.mrb[22].mxu0  ;;  %v2257_v12 = vpop.f32.mrb[22].mxu1  ;;  %v2787_v2 = vrot.slane %v2749_v59, %v4030_v47  ;;  %v2791_v3 = vrot.slane %v2749_v59, %v4036_v49 }
 0x709   : > { %v2260_v13 = vmax.f32 %v2213_v5, 0.0  ;;  %v2262_v14 = vmax.f32 %v2254_v6, 0.0  ;;  %v2217_v15 = vpop.f32.mrb[23].mxu0  ;;  %v2258_v1 = vpop.f32.mrb[23].mxu1  ;;  %v2801_v4 = vunpack.c.0.s8 %v2800_v61 }
 0x70a   : > { %v2261_v20 = vmax.f32 %v2215_v9, 0.0  ;;  %v2263_v16 = vmax.f32 %v2256_v10, 0.0 }
 0x70b   : > { %v2264_v19 = vpack.c.bf16 %v2260_v13, %v2260_v13  ;;  %v2266_v21 = vpack.c.bf16 %v2262_v14, %v2262_v14  ;;  %v2804_v9 = vsub.s32 %v2801_v4, %v4027_v46 }
 0x70c   : > { %v2265_v17 = vpack.c.bf16 %v2261_v20, %v2261_v20  ;;  %v2267_v18 = vpack.c.bf16 %v2263_v16, %v2263_v16 }
 0x70e   : > { %2696 = vmatprep.mubr.bf16.mxu0 %v2265_v17  ;;  %2737 = vmatprep.mubr.bf16.mxu1 %v2267_v18 }
 0x70f   : > { %2697 = vmatmul.mubr.bf16.vlgmr.msra.gmra.mrb[24].mxu0 %v2264_v19  ;;  %2738 = vmatmul.mubr.bf16.vlgmr.msra.gmra.mrb[24].mxu1 %v2266_v21 }
 0x7e2   : > { %v2698_v25 = vpop.f32.mrb[24].mxu0  ;;  %v2739_v26 = vpop.f32.mrb[24].mxu1 }
 0x7e3   : > { %v2699_v27 = vadd.f32 %v2698_v25, %v2657_v23  ;;  %v2700_v28 = vpop.f32.mrb[25].mxu0  ;;  %v2741_v29 = vpop.f32.mrb[25].mxu1 }
 0x7e4   : > { %v2701_v30 = vadd.f32 %v2700_v28, %v2661_v24  ;;  %v2702_v31 = vpop.f32.mrb[26].mxu0  ;;  %v2743_v32 = vpop.f32.mrb[26].mxu1 }
 0x7e5   : > { %v2740_v33 = vadd.f32 %v2739_v26, %v2699_v27  ;;  %v2703_v34 = vpop.f32.mrb[27].mxu0  ;;  %v2744_v35 = vpop.f32.mrb[27].mxu1 }
 0x7e6   : > { %v2742_v36 = vadd.f32 %v2741_v29, %v2701_v30 }
 0x7e7   : > { %v2746_v37 = vadd.f32 %v2740_v33, %v4401_v53 }
 0x7e8   : > { %v2747_v38 = vadd.f32 %v2742_v36, %v4399_v52 }
 0x7e9   : > { %v2750_v39 = vsel %vm1322_vm1, %v2746_v37, 0.0 }
 0x7ea   : > { %v2751_v40 = vsel %vm1322_vm1, %v2747_v38, 0.0 }
 0x7eb   : > { %v2752_v41 = vadd.f32 %v2751_v40, %v2750_v39 }
 0x7ed   : > { %2753 = vadd.xlane.f32.xlu0 %v2752_v41 }
 0x87a   : > { %v2754_v42 = vpop.xlane.xlu0 %2753 }
 0x87b   : > { %v2755_v43 = vmul.f32 0.00390625, %v2754_v42 }
 0x87d   : > { %v2756_v48 = vsub.f32 %v2746_v37, %v2755_v43  ;;  %v2757_v50 = vsub.f32 %v2747_v38, %v2755_v43 }
 0x87f   : > { %v2758_v51 = vmul.f32 %v2756_v48, %v2756_v48  ;;  %v2759_v54 = vmul.f32 %v2757_v50, %v2757_v50 }
 0x881   : > { %v2760_v55 = vsel %vm1322_vm1, %v2758_v51, 0.0  ;;  %v2761_v44 = vsel %vm1322_vm1, %v2759_v54, 0.0 }
 0x882   : > { %v2762_v56 = vadd.f32 %v2761_v44, %v2760_v55 }
 0x884   : > { %2763 = vadd.xlane.f32.xlu1 %v2762_v56 }
 0x911   : > { %v2764_v53 = vpop.xlane.xlu1 %2763 }
 0x912   : > { %v2765_v52 = vmul.f32 0.00390625, %v2764_v53 }
 0x914   : > { %v2766_v57 = vadd.f32 1e-05, %v2765_v52 }
 0x916   : > { %3590 = vrsqrt.f32 %v2766_v57 }
 0x920   : > { %v3591_v0 = vpop.eup %3590 }
 0x921   : > { %v2768_v5 = vmul.f32 %v3591_v0, %v2756_v48  ;;  %v2769_v6 = vmul.f32 %v3591_v0, %v2757_v50 }
 0x923   : > { %v2781_v7 = vmul.f32 %v2774_v62, %v2768_v5  ;;  %v2782_v8 = vmul.f32 %v2778_v63, %v2769_v6 }
 0x925   : > { %v2794_v10 = vadd.f32 %v2787_v2, %v2781_v7  ;;  %v2795_v11 = vadd.f32 %v2791_v3, %v2782_v8 }
 0x927   : > { %v2798_v12 = vcombine.low %v2794_v10, %v2795_v11 }
 0x929   : > { %v2805_v13 = vrot.slane %v2798_v12, %v2804_v9 }
 0x92b   : > { %v2812_v47 = vrot.slane %v2805_v13, %v2804_v9 }
 0x92d   : > { %2818 = vst.msk [vmem:[%s492_s27] sm:$0x3] %vm2816_vm4, %v2812_v47 }
 0x92e PF: > { %s25_s18 = sadd.s32 1, %s3599_s18  }
 0x92f   : > { %p22_p4 = scmp.ge.s32.totalorder %s25_s18, 10  }
 0x931   :  { %24 = sbr.rel (!%p22_p4) target bundleno = 1 (0x1), region = 110 }

</bundles_post_ra>
